<compile_context>
chip_gen: v7x
topology: tpu7x:2x2x1
jax: 0.10.0
libtpu: 0.0.40
codegen_flags: <defaults>
</compile_context>

<pallas_src>
import functools
import math

import numpy as np
import jax
import jax.numpy as jnp
from jax import lax
from jax.experimental import pallas as pl
from jax.experimental.pallas import tpu as pltpu

EPS = 1e-5  # torch BatchNorm2d default


# ----------------------------------------------------------------------------
# Small helpers
# ----------------------------------------------------------------------------
def _nbytes(shape, dtype):
    return int(np.prod(shape)) * np.dtype(dtype).itemsize


@functools.lru_cache(maxsize=1)
def _vmem_hw_cap():
    """Hardware-aware scoped-VMEM ceiling (v7x has only 64 MiB per TensorCore)."""
    try:
        cap = int(pltpu.get_tpu_info().vmem_capacity_bytes)
    except Exception:
        cap = 64 * 1024 * 1024  # conservative fallback that fits every generation
    return int(max(min(int(cap * 0.85), cap - (8 << 20)), 32 * 1024 * 1024))


def _vmem_limit_bytes(block_bytes, scratch_bytes=0):
    """Explicit scoped-VMEM request: double-buffered blocks + scratch + margin."""
    total = 2 * sum(block_bytes) + scratch_bytes
    total = int(total * 1.3) + (2 << 20)
    return int(min(max(total, 16 * 1024 * 1024), _vmem_hw_cap()))


def _choose_tk(cin):
    """Cin-reduction tile (always a divisor of cin) keeping weight blocks small."""
    if cin <= 512:
        return cin
    for cand in (512, 384, 256, 128):
        if cin % cand == 0:
            return cand
    for cand in range(512, 0, -1):          # always returns a true divisor
        if cin % cand == 0:
            return cand
    return cin


def _choose_bn(n, h, w, tk, cout, n_k):
    """Images per deconv grid step: as many as the VMEM budget allows (so the
    weight tile is reused across them) while keeping >=2 grid blocks along N
    for megacore parallelism whenever N >= 2."""
    per_img = (
        2 * _nbytes((h, w, tk), jnp.bfloat16)                 # x block (dbl buf)
        + _nbytes((h + 2, w + 2, tk), jnp.bfloat16)           # zero-padded scratch
        + 2 * _nbytes((h, 2, w, 2 * cout), jnp.bfloat16)      # out block (dbl buf)
        + 9 * _nbytes((h * w, tk), jnp.bfloat16)              # hoisted windows
        + 4 * _nbytes((h * w, cout), jnp.float32))            # per-parity partials
    if n_k > 1:
        per_img += 4 * _nbytes((h * w, cout), jnp.float32)    # f32 accumulator
    fixed = 2 * _nbytes((16, tk, cout), jnp.bfloat16) + (6 << 20)
    budget = max(int(_vmem_hw_cap() / 1.4) - fixed, per_img)
    bmax = max(1, budget // per_img)
    best = 1
    for d in range(1, n + 1):
        if n % d == 0 and d <= bmax and (n // d >= 2 or n == 1):
            best = d
    return best


# ----------------------------------------------------------------------------
# Pallas kernels
# ----------------------------------------------------------------------------
def _deconv_bn_relu_kernel(n_k, x_ref, w_ref, scale_ref, bias_ref, out_ref,
                           xpad_ref, acc_ref=None):
    """ConvTranspose2d(k=4,s=2,p=1) + BatchNorm(eval) + ReLU.

    Grid = (N // B, n_k); axis 1 is the Cin reduction.
      x_ref    : [B, H, W, TK]        bf16  unpadded input channel slice
      w_ref    : [16, TK, Cout]       bf16  taps, index = kh*4 + kw
      scale_ref: [1, Cout]            f32   gamma / sqrt(var + eps)
      bias_ref : [1, Cout]            f32   beta - mean * scale
      out_ref  : [B, H, 2, W, 2*Cout] bf16  parity-major output
      xpad_ref : [B, H+2, W+2, TK]    bf16  zero-bordered copy of the input slice
      acc_ref  : [4, B*H*W, Cout]     f32   present only when n_k > 1
    """
    k = pl.program_id(1)
    B, H, W, TK = x_ref.shape
    Cout = w_ref.shape[2]
    M = B * H * W

    # In-VMEM zero padding: border zeroed once per image block, interior
    # refreshed with the current Cin slice every reduction step (no HBM pad).
    @pl.when(k == 0)
    def _zero_pad():
        xpad_ref[...] = jnp.zeros_like(xpad_ref)

    xpad_ref[:, 1:H + 1, 1:W + 1, :] = x_ref[...]

    # Hoist the 9 distinct shifted windows (shared across parities) once.
    win = {}
    for hs in range(3):
        for ws in range(3):
            win[(hs, ws)] = xpad_ref[:, hs:hs + H, ws:ws + W, :].reshape(M, TK)

    # Per output parity: 4 accumulating MXU dots (K = TK) against per-tap weights.
    ys = []
    for ph in range(2):
        for pw in range(2):
            y = None
            for dh in range(2):
                for dw in range(2):
                    hs, ws = 1 + ph - dh, 1 + pw - dw
                    kh, kw = (1 - ph) + 2 * dh, (1 - pw) + 2 * dw
                    d = jnp.dot(win[(hs, ws)], w_ref[kh * 4 + kw],
                                preferred_element_type=jnp.float32)
                    y = d if y is None else y + d
            ys.append(y)

    def _bn_relu_store(vals):
        # Implicit [1, Cout] broadcast of scale/bias (no materialized broadcast).
        for p in range(4):
            ph, pw = divmod(p, 2)
            o = jnp.maximum(vals[p] * scale_ref[...] + bias_ref[...], 0.0)
            out_ref[:, :, ph, :, pw * Cout:(pw + 1) * Cout] = (
                o.reshape(B, H, W, Cout).astype(out_ref.dtype))

    if n_k == 1:
        # Single Cin tile (layers 2/3): skip the accumulator round-trip entirely.
        _bn_relu_store(ys)
    else:
        @pl.when(k == 0)
        def _first():
            for p in range(4):
                acc_ref[p] = ys[p]          # direct assign: no zero-init + RMW

        @pl.when(k > 0)
        def _accum():
            for p in range(4):
                acc_ref[p] += ys[p]

        @pl.when(k == pl.num_programs(1) - 1)
        def _finalize():
            _bn_relu_store([acc_ref[p] for p in range(4)])


def _conv1x1_kernel(x_ref, w_ref, b_ref, out_ref):
    """1x1 conv with bias, emitting NCHW tiles directly (lane dim = spatial TM).

    x_ref  : [1, TM, Cin]     bf16
    w_ref  : [Cout_p, Cin]    bf16
    b_ref  : [Cout_p, 1]      f32
    out_ref: [1, Cout_p, TM]  f32
    """
    y = lax.dot_general(w_ref[...], x_ref[0], (((1,), (1,)), ((), ())),
                        preferred_element_type=jnp.float32)
    out_ref[0] = y + b_ref[...]


# ----------------------------------------------------------------------------
# Wrappers
# ----------------------------------------------------------------------------
def deconv_bn_relu(x_nhwc, w_taps, scale, bias, tk):
    N, H, W, Cin = x_nhwc.shape
    Cout = w_taps.shape[2]
    assert Cin % tk == 0, (Cin, tk)
    n_k = Cin // tk
    bn = _choose_bn(N, H, W, tk, Cout, n_k)
    n_blocks = N // bn

    block_bytes = [
        _nbytes((bn, H, W, tk), jnp.bfloat16),
        _nbytes((16, tk, Cout), jnp.bfloat16),
        2 * _nbytes((1, Cout), jnp.float32),
        _nbytes((bn, H, 2, W, 2 * Cout), jnp.bfloat16),
    ]
    scratch_bytes = (_nbytes((bn, H + 2, W + 2, tk), jnp.bfloat16)
                     + 9 * _nbytes((bn * H * W, tk), jnp.bfloat16)
                     + 4 * _nbytes((bn * H * W, Cout), jnp.float32))
    scratch_shapes = [pltpu.VMEM((bn, H + 2, W + 2, tk), jnp.bfloat16)]
    if n_k > 1:
        scratch_bytes += _nbytes((4, bn * H * W, Cout), jnp.float32)
        scratch_shapes.append(pltpu.VMEM((4, bn * H * W, Cout), jnp.float32))

    out = pl.pallas_call(
        functools.partial(_deconv_bn_relu_kernel, n_k),
        out_shape=jax.ShapeDtypeStruct((N, H, 2, W, 2 * Cout), jnp.bfloat16),
        grid=(n_blocks, n_k),
        in_specs=[
            pl.BlockSpec((bn, H, W, tk), lambda n, k: (n, 0, 0, k)),
            pl.BlockSpec((16, tk, Cout), lambda n, k: (0, k, 0)),
            pl.BlockSpec((1, Cout), lambda n, k: (0, 0)),
            pl.BlockSpec((1, Cout), lambda n, k: (0, 0)),
        ],
        out_specs=pl.BlockSpec((bn, H, 2, W, 2 * Cout),
                               lambda n, k: (n, 0, 0, 0, 0)),
        scratch_shapes=scratch_shapes,
        compiler_params=pltpu.CompilerParams(
            dimension_semantics=("parallel", "arbitrary"),
            vmem_limit_bytes=_vmem_limit_bytes(block_bytes, scratch_bytes)),
    )(x_nhwc, w_taps, scale, bias)

    # Parity interleave back to NHWC is a free row-major reshape in this layout.
    return out.reshape(N, 2 * H, 2 * W, Cout)


def conv1x1_nchw(x_nhwc, w, b, cout_orig):
    N, H, W, Cin = x_nhwc.shape
    Cout_p = w.shape[0]
    HW = H * W
    TM = math.gcd(HW, 1024)
    if TM < 8:
        TM = HW
    n_m = HW // TM
    xf = x_nhwc.reshape(N, HW, Cin)

    vmem = _vmem_limit_bytes([
        _nbytes((1, TM, Cin), jnp.bfloat16),
        _nbytes((Cout_p, Cin), jnp.bfloat16),
        _nbytes((Cout_p, 1), jnp.float32),
        _nbytes((1, Cout_p, TM), jnp.float32),
    ])

    out = pl.pallas_call(
        _conv1x1_kernel,
        out_shape=jax.ShapeDtypeStruct((N, Cout_p, HW), jnp.float32),
        grid=(N, n_m),
        in_specs=[
            pl.BlockSpec((1, TM, Cin), lambda n, m: (n, m, 0)),
            pl.BlockSpec((Cout_p, Cin), lambda n, m: (0, 0)),
            pl.BlockSpec((Cout_p, 1), lambda n, m: (0, 0)),
        ],
        out_specs=pl.BlockSpec((1, Cout_p, TM), lambda n, m: (n, 0, m)),
        compiler_params=pltpu.CompilerParams(
            dimension_semantics=("parallel", "parallel"),
            vmem_limit_bytes=vmem),
    )(xf, w, b)

    out = out.reshape(N, Cout_p, H, W)               # already NCHW, free reshape
    if cout_orig != Cout_p:
        out = out[:, :cout_orig]   # only when joint_num*depth_dim isn't lane-aligned
    return out


def _build_taps(w):
    """torch ConvTranspose2d weight [Cin, Cout, 4, 4] -> [16, Cin, Cout] bf16,
    tap index = kh*4 + kw (the kernel picks taps per (parity, offset) pair)."""
    cin, cout = w.shape[0], w.shape[1]
    return jnp.transpose(w, (2, 3, 0, 1)).reshape(16, cin, cout).astype(jnp.bfloat16)


class HeadNetPallas:
    """Pallas implementation of HeadNet.forward (BatchNorm in inference mode)."""

    def __init__(self, params):
        _vmem_hw_cap()                                 # warm the hardware query
        self.deconv = []
        for (w, gamma, beta, mean, var) in params["deconv"]:
            cin = w.shape[0]
            tk = _choose_tk(cin)
            assert cin % tk == 0, (cin, tk)
            scale = (gamma / jnp.sqrt(var + EPS)).astype(jnp.float32)
            bias = (beta - mean * scale).astype(jnp.float32)
            self.deconv.append((_build_taps(w), tk,
                                scale.reshape(1, -1), bias.reshape(1, -1)))
        wf, bf = params["final"]                       # [Cout, Cin, 1, 1], [Cout]
        cout = wf.shape[0]
        cout_p = ((cout + 127) // 128) * 128           # lane-dense final stores
        wt = wf[:, :, 0, 0].astype(jnp.bfloat16)       # [Cout, Cin]
        bt = bf.reshape(-1, 1).astype(jnp.float32)     # [Cout, 1]
        if cout_p != cout:
            wt = jnp.pad(wt, ((0, cout_p - cout), (0, 0)))
            bt = jnp.pad(bt, ((0, cout_p - cout), (0, 0)))
        self.wf = wt
        self.bf = bt
        self.final_cout = cout

    @functools.partial(jax.jit, static_argnums=0)
    def __call__(self, x_nchw):
        # Cast before the layout change so the transpose moves bf16, not f32.
        x = jnp.transpose(x_nchw.astype(jnp.bfloat16), (0, 2, 3, 1))   # NCHW->NHWC
        for (w_taps, tk, scale, bias) in self.deconv:
            x = deconv_bn_relu(x, w_taps, scale, bias, tk)
        # The 1x1 conv emits NCHW directly -> no trailing HBM transpose.
        return conv1x1_nchw(x, self.wf, self.bf, self.final_cout)


# ----------------------------------------------------------------------------
# NumPy reference (torch semantics, NCHW, f64)
# ----------------------------------------------------------------------------
def _convtranspose2d_ref(x, w):  # x: [N,Cin,H,W], w: [Cin,Cout,4,4]; s=2, p=1
    N, Cin, H, W = x.shape
    _, Cout, KH, KW = w.shape
    OH, OW = 2 * H, 2 * W
    out = np.zeros((N, Cout, OH, OW), np.float64)
    for kh in range(KH):
        for kw in range(KW):
            oh = np.arange(H) * 2 - 1 + kh
            ow = np.arange(W) * 2 - 1 + kw
            vh = (oh >= 0) & (oh < OH)
            vw = (ow >= 0) & (ow < OW)
            contrib = np.einsum("nchw,cd->ndhw", x.astype(np.float64),
                                w[:, :, kh, kw].astype(np.float64))
            out[:, :, oh[vh][:, None], ow[vw][None, :]] += (
                contrib[:, :, vh, :][:, :, :, vw])
    return out


def ref_forward(x_nchw, params):
    x = np.asarray(x_nchw, np.float64)
    for (w, gamma, beta, mean, var) in params["deconv"]:
        w, gamma, beta, mean, var = (np.asarray(a, np.float64)
                                     for a in (w, gamma, beta, mean, var))
        x = _convtranspose2d_ref(x, w)
        x = (x - mean[None, :, None, None]) / np.sqrt(
            var[None, :, None, None] + EPS) * gamma[None, :, None, None] \
            + beta[None, :, None, None]
        x = np.maximum(x, 0.0)
    wf, bf = (np.asarray(a, np.float64) for a in params["final"])
    x = np.einsum("nchw,dc->ndhw", x, wf[:, :, 0, 0]) + bf[None, :, None, None]
    return x


# ----------------------------------------------------------------------------
# main
# ----------------------------------------------------------------------------
if __name__ == "__main__":
    key = jax.random.PRNGKey(0)

    # Small config (module defaults are inplanes=2048, outplanes=256; scaled
    # down here for a quick synthetic test — the kernels are shape-generic).
    N, H0, W0 = 2, 4, 4
    inplanes, outplanes = 32, 16
    joint_num, depth_dim = 3, 8          # cfg.depth_dim stand-in
    final_out = joint_num * depth_dim

    keys = jax.random.split(key, 32)
    ki = iter(keys)

    x = jax.random.normal(next(ki), (N, inplanes, H0, W0), jnp.float32)

    params = {"deconv": [], "final": None}
    cin = inplanes
    for _ in range(3):
        w = 0.1 * jax.random.normal(next(ki), (cin, outplanes, 4, 4), jnp.float32)
        gamma = 1.0 + 0.1 * jax.random.normal(next(ki), (outplanes,), jnp.float32)
        beta = 0.05 * jax.random.normal(next(ki), (outplanes,), jnp.float32)
        mean = 0.1 * jax.random.normal(next(ki), (outplanes,), jnp.float32)
        var = jax.random.uniform(next(ki), (outplanes,), jnp.float32, 0.5, 1.5)
        params["deconv"].append((w, gamma, beta, mean, var))
        cin = outplanes
    wf = 0.1 * jax.random.normal(next(ki), (final_out, outplanes, 1, 1), jnp.float32)
    bf = 0.05 * jax.random.normal(next(ki), (final_out,), jnp.float32)
    params["final"] = (wf, bf)

    model = HeadNetPallas(params)
    out = model(x)
    out = jax.block_until_ready(out)

    expected_shape = (N, final_out, H0 * 8, W0 * 8)
    assert out.shape == expected_shape, (out.shape, expected_shape)

    ref = ref_forward(np.asarray(x), params)
    got = np.asarray(out, np.float64)
    assert np.allclose(got, ref, rtol=5e-2, atol=5e-2), (
        "max abs diff %g" % np.max(np.abs(got - ref)))

    print("KERNEL_OK")
</pallas_src>

<mosaic_0001>
module attributes {stable_mosaic.version = 11 : i64} {
  func.func @_deconv_bn_relu_kernel(%arg0: i32, %arg1: i32, %arg2: memref<1x8x8x16xbf16, #tpu.memory_space<vmem>>, %arg3: memref<16x16x16xbf16, #tpu.memory_space<vmem>>, %arg4: memref<1x16xf32, #tpu.memory_space<vmem>>, %arg5: memref<1x16xf32, #tpu.memory_space<vmem>>, %arg6: memref<1x8x2x8x32xbf16, #tpu.memory_space<vmem>>, %arg7: memref<1x10x10x16xbf16, #tpu.memory_space<vmem>>) attributes {dimension_semantics = [#tpu.dimension_semantics<parallel>, #tpu.dimension_semantics<arbitrary>], iteration_bounds = array<i64: 2, 1>, scalar_prefetch = 0 : i64, scratch_operands = 1 : i64, tpu.core_type = #tpu.core_type<tc>, window_params = [{transform_indices = @transform_0, window_bounds = array<i64: 1, 8, 8, 16>}, {transform_indices = @transform_1, window_bounds = array<i64: 16, 16, 16>}, {pipeline_mode = #tpu.pipeline_mode<synchronous>, transform_indices = @transform_2, window_bounds = array<i64: 1, 16>}, {pipeline_mode = #tpu.pipeline_mode<synchronous>, transform_indices = @transform_3, window_bounds = array<i64: 1, 16>}, {transform_indices = @transform_4, window_bounds = array<i64: 1, 8, 2, 8, 32>}]} {
    %c0_i32 = arith.constant 0 : i32
    %0 = arith.cmpi eq, %arg1, %c0_i32 : i32
    %1 = arith.extui %0 : i1 to i32
    %c0_i32_0 = arith.constant 0 : i32
    %2 = arith.cmpi ne, %1, %c0_i32_0 : i32
    scf.if %2 {
      %cst_131 = arith.constant 0.000000e+00 : bf16
      %135 = vector.broadcast %cst_131 : bf16 to vector<1x10x10x16xbf16>
      %c0_132 = arith.constant 0 : index
      %c0_133 = arith.constant 0 : index
      %c0_134 = arith.constant 0 : index
      %c0_135 = arith.constant 0 : index
      %136 = vector.load %arg7[%c0_132, %c0_133, %c0_134, %c0_135] : memref<1x10x10x16xbf16, #tpu.memory_space<vmem>>, vector<1x10x10x16xbf16>
      tpu.vector_store %arg7[%c0_132, %c0_133, %c0_134, %c0_135], %135 {strides = array<i32>} : memref<1x10x10x16xbf16, #tpu.memory_space<vmem>>, vector<1x10x10x16xbf16>,
    } else {
    }
    %c0 = arith.constant 0 : index
    %c0_1 = arith.constant 0 : index
    %c0_2 = arith.constant 0 : index
    %c0_3 = arith.constant 0 : index
    %3 = vector.load %arg2[%c0, %c0_1, %c0_2, %c0_3] : memref<1x8x8x16xbf16, #tpu.memory_space<vmem>>, vector<1x8x8x16xbf16>
    %c0_4 = arith.constant 0 : index
    %c1 = arith.constant 1 : index
    %c1_5 = arith.constant 1 : index
    %c0_6 = arith.constant 0 : index
    %4 = vector.load %arg7[%c0_4, %c1, %c1_5, %c0_6] : memref<1x10x10x16xbf16, #tpu.memory_space<vmem>>, vector<1x8x8x16xbf16>
    tpu.vector_store %arg7[%c0_4, %c1, %c1_5, %c0_6], %3 {strides = array<i32>} : memref<1x10x10x16xbf16, #tpu.memory_space<vmem>>, vector<1x8x8x16xbf16>,
    %c0_7 = arith.constant 0 : index
    %c0_8 = arith.constant 0 : index
    %c0_9 = arith.constant 0 : index
    %c0_10 = arith.constant 0 : index
    %5 = vector.load %arg7[%c0_7, %c0_8, %c0_9, %c0_10] : memref<1x10x10x16xbf16, #tpu.memory_space<vmem>>, vector<1x8x8x16xbf16>
    %6 = vector.shape_cast %5 : vector<1x8x8x16xbf16> to vector<64x16xbf16>
    %c0_11 = arith.constant 0 : index
    %c0_12 = arith.constant 0 : index
    %c1_13 = arith.constant 1 : index
    %c0_14 = arith.constant 0 : index
    %7 = vector.load %arg7[%c0_11, %c0_12, %c1_13, %c0_14] : memref<1x10x10x16xbf16, #tpu.memory_space<vmem>>, vector<1x8x8x16xbf16>
    %8 = vector.shape_cast %7 : vector<1x8x8x16xbf16> to vector<64x16xbf16>
    %c0_15 = arith.constant 0 : index
    %c0_16 = arith.constant 0 : index
    %c2 = arith.constant 2 : index
    %c0_17 = arith.constant 0 : index
    %9 = vector.load %arg7[%c0_15, %c0_16, %c2, %c0_17] : memref<1x10x10x16xbf16, #tpu.memory_space<vmem>>, vector<1x8x8x16xbf16>
    %10 = vector.shape_cast %9 : vector<1x8x8x16xbf16> to vector<64x16xbf16>
    %c0_18 = arith.constant 0 : index
    %c1_19 = arith.constant 1 : index
    %c0_20 = arith.constant 0 : index
    %c0_21 = arith.constant 0 : index
    %11 = vector.load %arg7[%c0_18, %c1_19, %c0_20, %c0_21] : memref<1x10x10x16xbf16, #tpu.memory_space<vmem>>, vector<1x8x8x16xbf16>
    %12 = vector.shape_cast %11 : vector<1x8x8x16xbf16> to vector<64x16xbf16>
    %c0_22 = arith.constant 0 : index
    %c1_23 = arith.constant 1 : index
    %c1_24 = arith.constant 1 : index
    %c0_25 = arith.constant 0 : index
    %13 = vector.load %arg7[%c0_22, %c1_23, %c1_24, %c0_25] : memref<1x10x10x16xbf16, #tpu.memory_space<vmem>>, vector<1x8x8x16xbf16>
    %14 = vector.shape_cast %13 : vector<1x8x8x16xbf16> to vector<64x16xbf16>
    %c0_26 = arith.constant 0 : index
    %c1_27 = arith.constant 1 : index
    %c2_28 = arith.constant 2 : index
    %c0_29 = arith.constant 0 : index
    %15 = vector.load %arg7[%c0_26, %c1_27, %c2_28, %c0_29] : memref<1x10x10x16xbf16, #tpu.memory_space<vmem>>, vector<1x8x8x16xbf16>
    %16 = vector.shape_cast %15 : vector<1x8x8x16xbf16> to vector<64x16xbf16>
    %c0_30 = arith.constant 0 : index
    %c2_31 = arith.constant 2 : index
    %c0_32 = arith.constant 0 : index
    %c0_33 = arith.constant 0 : index
    %17 = vector.load %arg7[%c0_30, %c2_31, %c0_32, %c0_33] : memref<1x10x10x16xbf16, #tpu.memory_space<vmem>>, vector<1x8x8x16xbf16>
    %18 = vector.shape_cast %17 : vector<1x8x8x16xbf16> to vector<64x16xbf16>
    %c0_34 = arith.constant 0 : index
    %c2_35 = arith.constant 2 : index
    %c1_36 = arith.constant 1 : index
    %c0_37 = arith.constant 0 : index
    %19 = vector.load %arg7[%c0_34, %c2_35, %c1_36, %c0_37] : memref<1x10x10x16xbf16, #tpu.memory_space<vmem>>, vector<1x8x8x16xbf16>
    %20 = vector.shape_cast %19 : vector<1x8x8x16xbf16> to vector<64x16xbf16>
    %c0_38 = arith.constant 0 : index
    %c2_39 = arith.constant 2 : index
    %c2_40 = arith.constant 2 : index
    %c0_41 = arith.constant 0 : index
    %21 = vector.load %arg7[%c0_38, %c2_39, %c2_40, %c0_41] : memref<1x10x10x16xbf16, #tpu.memory_space<vmem>>, vector<1x8x8x16xbf16>
    %22 = vector.shape_cast %21 : vector<1x8x8x16xbf16> to vector<64x16xbf16>
    %c5 = arith.constant 5 : index
    %c0_42 = arith.constant 0 : index
    %c0_43 = arith.constant 0 : index
    %23 = vector.load %arg3[%c5, %c0_42, %c0_43] : memref<16x16x16xbf16, #tpu.memory_space<vmem>>, vector<1x16x16xbf16>
    %24 = vector.shape_cast %23 : vector<1x16x16xbf16> to vector<16x16xbf16>
    %cst = arith.constant dense<0.000000e+00> : vector<64x16xf32>
    %25 = tpu.matmul %14, %24, %cst {dimension_numbers = #tpu.dot_dimension_numbers<[1], [0], [0], [1], [0, 0, 1, 1], [], []>} : vector<64x16xbf16>, vector<16x16xbf16>, vector<64x16xf32> -> vector<64x16xf32>
    %c7 = arith.constant 7 : index
    %c0_44 = arith.constant 0 : index
    %c0_45 = arith.constant 0 : index
    %26 = vector.load %arg3[%c7, %c0_44, %c0_45] : memref<16x16x16xbf16, #tpu.memory_space<vmem>>, vector<1x16x16xbf16>
    %27 = vector.shape_cast %26 : vector<1x16x16xbf16> to vector<16x16xbf16>
    %cst_46 = arith.constant dense<0.000000e+00> : vector<64x16xf32>
    %28 = tpu.matmul %12, %27, %cst_46 {dimension_numbers = #tpu.dot_dimension_numbers<[1], [0], [0], [1], [0, 0, 1, 1], [], []>} : vector<64x16xbf16>, vector<16x16xbf16>, vector<64x16xf32> -> vector<64x16xf32>
    %29 = arith.addf %25, %28 : vector<64x16xf32>
    %c13 = arith.constant 13 : index
    %c0_47 = arith.constant 0 : index
    %c0_48 = arith.constant 0 : index
    %30 = vector.load %arg3[%c13, %c0_47, %c0_48] : memref<16x16x16xbf16, #tpu.memory_space<vmem>>, vector<1x16x16xbf16>
    %31 = vector.shape_cast %30 : vector<1x16x16xbf16> to vector<16x16xbf16>
    %cst_49 = arith.constant dense<0.000000e+00> : vector<64x16xf32>
    %32 = tpu.matmul %8, %31, %cst_49 {dimension_numbers = #tpu.dot_dimension_numbers<[1], [0], [0], [1], [0, 0, 1, 1], [], []>} : vector<64x16xbf16>, vector<16x16xbf16>, vector<64x16xf32> -> vector<64x16xf32>
    %33 = arith.addf %29, %32 : vector<64x16xf32>
    %c15 = arith.constant 15 : index
    %c0_50 = arith.constant 0 : index
    %c0_51 = arith.constant 0 : index
    %34 = vector.load %arg3[%c15, %c0_50, %c0_51] : memref<16x16x16xbf16, #tpu.memory_space<vmem>>, vector<1x16x16xbf16>
    %35 = vector.shape_cast %34 : vector<1x16x16xbf16> to vector<16x16xbf16>
    %cst_52 = arith.constant dense<0.000000e+00> : vector<64x16xf32>
    %36 = tpu.matmul %6, %35, %cst_52 {dimension_numbers = #tpu.dot_dimension_numbers<[1], [0], [0], [1], [0, 0, 1, 1], [], []>} : vector<64x16xbf16>, vector<16x16xbf16>, vector<64x16xf32> -> vector<64x16xf32>
    %37 = arith.addf %33, %36 : vector<64x16xf32>
    %c4 = arith.constant 4 : index
    %c0_53 = arith.constant 0 : index
    %c0_54 = arith.constant 0 : index
    %38 = vector.load %arg3[%c4, %c0_53, %c0_54] : memref<16x16x16xbf16, #tpu.memory_space<vmem>>, vector<1x16x16xbf16>
    %39 = vector.shape_cast %38 : vector<1x16x16xbf16> to vector<16x16xbf16>
    %cst_55 = arith.constant dense<0.000000e+00> : vector<64x16xf32>
    %40 = tpu.matmul %16, %39, %cst_55 {dimension_numbers = #tpu.dot_dimension_numbers<[1], [0], [0], [1], [0, 0, 1, 1], [], []>} : vector<64x16xbf16>, vector<16x16xbf16>, vector<64x16xf32> -> vector<64x16xf32>
    %c6 = arith.constant 6 : index
    %c0_56 = arith.constant 0 : index
    %c0_57 = arith.constant 0 : index
    %41 = vector.load %arg3[%c6, %c0_56, %c0_57] : memref<16x16x16xbf16, #tpu.memory_space<vmem>>, vector<1x16x16xbf16>
    %42 = vector.shape_cast %41 : vector<1x16x16xbf16> to vector<16x16xbf16>
    %cst_58 = arith.constant dense<0.000000e+00> : vector<64x16xf32>
    %43 = tpu.matmul %14, %42, %cst_58 {dimension_numbers = #tpu.dot_dimension_numbers<[1], [0], [0], [1], [0, 0, 1, 1], [], []>} : vector<64x16xbf16>, vector<16x16xbf16>, vector<64x16xf32> -> vector<64x16xf32>
    %44 = arith.addf %40, %43 : vector<64x16xf32>
    %c12 = arith.constant 12 : index
    %c0_59 = arith.constant 0 : index
    %c0_60 = arith.constant 0 : index
    %45 = vector.load %arg3[%c12, %c0_59, %c0_60] : memref<16x16x16xbf16, #tpu.memory_space<vmem>>, vector<1x16x16xbf16>
    %46 = vector.shape_cast %45 : vector<1x16x16xbf16> to vector<16x16xbf16>
    %cst_61 = arith.constant dense<0.000000e+00> : vector<64x16xf32>
    %47 = tpu.matmul %10, %46, %cst_61 {dimension_numbers = #tpu.dot_dimension_numbers<[1], [0], [0], [1], [0, 0, 1, 1], [], []>} : vector<64x16xbf16>, vector<16x16xbf16>, vector<64x16xf32> -> vector<64x16xf32>
    %48 = arith.addf %44, %47 : vector<64x16xf32>
    %c14 = arith.constant 14 : index
    %c0_62 = arith.constant 0 : index
    %c0_63 = arith.constant 0 : index
    %49 = vector.load %arg3[%c14, %c0_62, %c0_63] : memref<16x16x16xbf16, #tpu.memory_space<vmem>>, vector<1x16x16xbf16>
    %50 = vector.shape_cast %49 : vector<1x16x16xbf16> to vector<16x16xbf16>
    %cst_64 = arith.constant dense<0.000000e+00> : vector<64x16xf32>
    %51 = tpu.matmul %8, %50, %cst_64 {dimension_numbers = #tpu.dot_dimension_numbers<[1], [0], [0], [1], [0, 0, 1, 1], [], []>} : vector<64x16xbf16>, vector<16x16xbf16>, vector<64x16xf32> -> vector<64x16xf32>
    %52 = arith.addf %48, %51 : vector<64x16xf32>
    %c1_65 = arith.constant 1 : index
    %c0_66 = arith.constant 0 : index
    %c0_67 = arith.constant 0 : index
    %53 = vector.load %arg3[%c1_65, %c0_66, %c0_67] : memref<16x16x16xbf16, #tpu.memory_space<vmem>>, vector<1x16x16xbf16>
    %54 = vector.shape_cast %53 : vector<1x16x16xbf16> to vector<16x16xbf16>
    %cst_68 = arith.constant dense<0.000000e+00> : vector<64x16xf32>
    %55 = tpu.matmul %20, %54, %cst_68 {dimension_numbers = #tpu.dot_dimension_numbers<[1], [0], [0], [1], [0, 0, 1, 1], [], []>} : vector<64x16xbf16>, vector<16x16xbf16>, vector<64x16xf32> -> vector<64x16xf32>
    %c3 = arith.constant 3 : index
    %c0_69 = arith.constant 0 : index
    %c0_70 = arith.constant 0 : index
    %56 = vector.load %arg3[%c3, %c0_69, %c0_70] : memref<16x16x16xbf16, #tpu.memory_space<vmem>>, vector<1x16x16xbf16>
    %57 = vector.shape_cast %56 : vector<1x16x16xbf16> to vector<16x16xbf16>
    %cst_71 = arith.constant dense<0.000000e+00> : vector<64x16xf32>
    %58 = tpu.matmul %18, %57, %cst_71 {dimension_numbers = #tpu.dot_dimension_numbers<[1], [0], [0], [1], [0, 0, 1, 1], [], []>} : vector<64x16xbf16>, vector<16x16xbf16>, vector<64x16xf32> -> vector<64x16xf32>
    %59 = arith.addf %55, %58 : vector<64x16xf32>
    %c9 = arith.constant 9 : index
    %c0_72 = arith.constant 0 : index
    %c0_73 = arith.constant 0 : index
    %60 = vector.load %arg3[%c9, %c0_72, %c0_73] : memref<16x16x16xbf16, #tpu.memory_space<vmem>>, vector<1x16x16xbf16>
    %61 = vector.shape_cast %60 : vector<1x16x16xbf16> to vector<16x16xbf16>
    %cst_74 = arith.constant dense<0.000000e+00> : vector<64x16xf32>
    %62 = tpu.matmul %14, %61, %cst_74 {dimension_numbers = #tpu.dot_dimension_numbers<[1], [0], [0], [1], [0, 0, 1, 1], [], []>} : vector<64x16xbf16>, vector<16x16xbf16>, vector<64x16xf32> -> vector<64x16xf32>
    %63 = arith.addf %59, %62 : vector<64x16xf32>
    %c11 = arith.constant 11 : index
    %c0_75 = arith.constant 0 : index
    %c0_76 = arith.constant 0 : index
    %64 = vector.load %arg3[%c11, %c0_75, %c0_76] : memref<16x16x16xbf16, #tpu.memory_space<vmem>>, vector<1x16x16xbf16>
    %65 = vector.shape_cast %64 : vector<1x16x16xbf16> to vector<16x16xbf16>
    %cst_77 = arith.constant dense<0.000000e+00> : vector<64x16xf32>
    %66 = tpu.matmul %12, %65, %cst_77 {dimension_numbers = #tpu.dot_dimension_numbers<[1], [0], [0], [1], [0, 0, 1, 1], [], []>} : vector<64x16xbf16>, vector<16x16xbf16>, vector<64x16xf32> -> vector<64x16xf32>
    %67 = arith.addf %63, %66 : vector<64x16xf32>
    %c0_78 = arith.constant 0 : index
    %c0_79 = arith.constant 0 : index
    %c0_80 = arith.constant 0 : index
    %68 = vector.load %arg3[%c0_78, %c0_79, %c0_80] : memref<16x16x16xbf16, #tpu.memory_space<vmem>>, vector<1x16x16xbf16>
    %69 = vector.shape_cast %68 : vector<1x16x16xbf16> to vector<16x16xbf16>
    %cst_81 = arith.constant dense<0.000000e+00> : vector<64x16xf32>
    %70 = tpu.matmul %22, %69, %cst_81 {dimension_numbers = #tpu.dot_dimension_numbers<[1], [0], [0], [1], [0, 0, 1, 1], [], []>} : vector<64x16xbf16>, vector<16x16xbf16>, vector<64x16xf32> -> vector<64x16xf32>
    %c2_82 = arith.constant 2 : index
    %c0_83 = arith.constant 0 : index
    %c0_84 = arith.constant 0 : index
    %71 = vector.load %arg3[%c2_82, %c0_83, %c0_84] : memref<16x16x16xbf16, #tpu.memory_space<vmem>>, vector<1x16x16xbf16>
    %72 = vector.shape_cast %71 : vector<1x16x16xbf16> to vector<16x16xbf16>
    %cst_85 = arith.constant dense<0.000000e+00> : vector<64x16xf32>
    %73 = tpu.matmul %20, %72, %cst_85 {dimension_numbers = #tpu.dot_dimension_numbers<[1], [0], [0], [1], [0, 0, 1, 1], [], []>} : vector<64x16xbf16>, vector<16x16xbf16>, vector<64x16xf32> -> vector<64x16xf32>
    %74 = arith.addf %70, %73 : vector<64x16xf32>
    %c8 = arith.constant 8 : index
    %c0_86 = arith.constant 0 : index
    %c0_87 = arith.constant 0 : index
    %75 = vector.load %arg3[%c8, %c0_86, %c0_87] : memref<16x16x16xbf16, #tpu.memory_space<vmem>>, vector<1x16x16xbf16>
    %76 = vector.shape_cast %75 : vector<1x16x16xbf16> to vector<16x16xbf16>
    %cst_88 = arith.constant dense<0.000000e+00> : vector<64x16xf32>
    %77 = tpu.matmul %16, %76, %cst_88 {dimension_numbers = #tpu.dot_dimension_numbers<[1], [0], [0], [1], [0, 0, 1, 1], [], []>} : vector<64x16xbf16>, vector<16x16xbf16>, vector<64x16xf32> -> vector<64x16xf32>
    %78 = arith.addf %74, %77 : vector<64x16xf32>
    %c10 = arith.constant 10 : index
    %c0_89 = arith.constant 0 : index
    %c0_90 = arith.constant 0 : index
    %79 = vector.load %arg3[%c10, %c0_89, %c0_90] : memref<16x16x16xbf16, #tpu.memory_space<vmem>>, vector<1x16x16xbf16>
    %80 = vector.shape_cast %79 : vector<1x16x16xbf16> to vector<16x16xbf16>
    %cst_91 = arith.constant dense<0.000000e+00> : vector<64x16xf32>
    %81 = tpu.matmul %14, %80, %cst_91 {dimension_numbers = #tpu.dot_dimension_numbers<[1], [0], [0], [1], [0, 0, 1, 1], [], []>} : vector<64x16xbf16>, vector<16x16xbf16>, vector<64x16xf32> -> vector<64x16xf32>
    %82 = arith.addf %78, %81 : vector<64x16xf32>
    %c0_92 = arith.constant 0 : index
    %c0_93 = arith.constant 0 : index
    %83 = vector.load %arg4[%c0_92, %c0_93] : memref<1x16xf32, #tpu.memory_space<vmem>>, vector<1x16xf32>
    %84 = vector.broadcast %83 : vector<1x16xf32> to vector<64x16xf32>
    %85 = arith.mulf %37, %84 : vector<64x16xf32>
    %c0_94 = arith.constant 0 : index
    %c0_95 = arith.constant 0 : index
    %86 = vector.load %arg5[%c0_94, %c0_95] : memref<1x16xf32, #tpu.memory_space<vmem>>, vector<1x16xf32>
    %87 = vector.broadcast %86 : vector<1x16xf32> to vector<64x16xf32>
    %88 = arith.addf %85, %87 : vector<64x16xf32>
    %cst_96 = arith.constant 0.000000e+00 : f32
    %89 = vector.broadcast %cst_96 : f32 to vector<64x16xf32>
    %90 = arith.maximumf %88, %89 : vector<64x16xf32>
    %91 = vector.shape_cast %90 : vector<64x16xf32> to vector<1x8x8x16xf32>
    %92 = arith.truncf %91 : vector<1x8x8x16xf32> to vector<1x8x8x16xbf16>
    %c0_97 = arith.constant 0 : index
    %c0_98 = arith.constant 0 : index
    %c0_99 = arith.constant 0 : index
    %c0_100 = arith.constant 0 : index
    %c0_101 = arith.constant 0 : index
    %93 = vector.load %arg6[%c0_97, %c0_98, %c0_99, %c0_100, %c0_101] : memref<1x8x2x8x32xbf16, #tpu.memory_space<vmem>>, vector<1x8x1x8x16xbf16>
    %94 = vector.shape_cast %93 : vector<1x8x1x8x16xbf16> to vector<1x8x8x16xbf16>
    %95 = vector.shape_cast %92 : vector<1x8x8x16xbf16> to vector<1x8x1x8x16xbf16>
    tpu.vector_store %arg6[%c0_97, %c0_98, %c0_99, %c0_100, %c0_101], %95 {strides = array<i32>} : memref<1x8x2x8x32xbf16, #tpu.memory_space<vmem>>, vector<1x8x1x8x16xbf16>,
    %c0_102 = arith.constant 0 : index
    %c0_103 = arith.constant 0 : index
    %96 = vector.load %arg4[%c0_102, %c0_103] : memref<1x16xf32, #tpu.memory_space<vmem>>, vector<1x16xf32>
    %97 = vector.broadcast %96 : vector<1x16xf32> to vector<64x16xf32>
    %98 = arith.mulf %52, %97 : vector<64x16xf32>
    %c0_104 = arith.constant 0 : index
    %c0_105 = arith.constant 0 : index
    %99 = vector.load %arg5[%c0_104, %c0_105] : memref<1x16xf32, #tpu.memory_space<vmem>>, vector<1x16xf32>
    %100 = vector.broadcast %99 : vector<1x16xf32> to vector<64x16xf32>
    %101 = arith.addf %98, %100 : vector<64x16xf32>
    %cst_106 = arith.constant 0.000000e+00 : f32
    %102 = vector.broadcast %cst_106 : f32 to vector<64x16xf32>
    %103 = arith.maximumf %101, %102 : vector<64x16xf32>
    %104 = vector.shape_cast %103 : vector<64x16xf32> to vector<1x8x8x16xf32>
    %105 = arith.truncf %104 : vector<1x8x8x16xf32> to vector<1x8x8x16xbf16>
    %c0_107 = arith.constant 0 : index
    %c0_108 = arith.constant 0 : index
    %c0_109 = arith.constant 0 : index
    %c0_110 = arith.constant 0 : index
    %c16 = arith.constant 16 : index
    %106 = vector.load %arg6[%c0_107, %c0_108, %c0_109, %c0_110, %c16] : memref<1x8x2x8x32xbf16, #tpu.memory_space<vmem>>, vector<1x8x1x8x16xbf16>
    %107 = vector.shape_cast %106 : vector<1x8x1x8x16xbf16> to vector<1x8x8x16xbf16>
    %108 = vector.shape_cast %105 : vector<1x8x8x16xbf16> to vector<1x8x1x8x16xbf16>
    tpu.vector_store %arg6[%c0_107, %c0_108, %c0_109, %c0_110, %c16], %108 {strides = array<i32>} : memref<1x8x2x8x32xbf16, #tpu.memory_space<vmem>>, vector<1x8x1x8x16xbf16>,
    %c0_111 = arith.constant 0 : index
    %c0_112 = arith.constant 0 : index
    %109 = vector.load %arg4[%c0_111, %c0_112] : memref<1x16xf32, #tpu.memory_space<vmem>>, vector<1x16xf32>
    %110 = vector.broadcast %109 : vector<1x16xf32> to vector<64x16xf32>
    %111 = arith.mulf %67, %110 : vector<64x16xf32>
    %c0_113 = arith.constant 0 : index
    %c0_114 = arith.constant 0 : index
    %112 = vector.load %arg5[%c0_113, %c0_114] : memref<1x16xf32, #tpu.memory_space<vmem>>, vector<1x16xf32>
    %113 = vector.broadcast %112 : vector<1x16xf32> to vector<64x16xf32>
    %114 = arith.addf %111, %113 : vector<64x16xf32>
    %cst_115 = arith.constant 0.000000e+00 : f32
    %115 = vector.broadcast %cst_115 : f32 to vector<64x16xf32>
    %116 = arith.maximumf %114, %115 : vector<64x16xf32>
    %117 = vector.shape_cast %116 : vector<64x16xf32> to vector<1x8x8x16xf32>
    %118 = arith.truncf %117 : vector<1x8x8x16xf32> to vector<1x8x8x16xbf16>
    %c0_116 = arith.constant 0 : index
    %c0_117 = arith.constant 0 : index
    %c1_118 = arith.constant 1 : index
    %c0_119 = arith.constant 0 : index
    %c0_120 = arith.constant 0 : index
    %119 = vector.load %arg6[%c0_116, %c0_117, %c1_118, %c0_119, %c0_120] : memref<1x8x2x8x32xbf16, #tpu.memory_space<vmem>>, vector<1x8x1x8x16xbf16>
    %120 = vector.shape_cast %119 : vector<1x8x1x8x16xbf16> to vector<1x8x8x16xbf16>
    %121 = vector.shape_cast %118 : vector<1x8x8x16xbf16> to vector<1x8x1x8x16xbf16>
    tpu.vector_store %arg6[%c0_116, %c0_117, %c1_118, %c0_119, %c0_120], %121 {strides = array<i32>} : memref<1x8x2x8x32xbf16, #tpu.memory_space<vmem>>, vector<1x8x1x8x16xbf16>,
    %c0_121 = arith.constant 0 : index
    %c0_122 = arith.constant 0 : index
    %122 = vector.load %arg4[%c0_121, %c0_122] : memref<1x16xf32, #tpu.memory_space<vmem>>, vector<1x16xf32>
    %123 = vector.broadcast %122 : vector<1x16xf32> to vector<64x16xf32>
    %124 = arith.mulf %82, %123 : vector<64x16xf32>
    %c0_123 = arith.constant 0 : index
    %c0_124 = arith.constant 0 : index
    %125 = vector.load %arg5[%c0_123, %c0_124] : memref<1x16xf32, #tpu.memory_space<vmem>>, vector<1x16xf32>
    %126 = vector.broadcast %125 : vector<1x16xf32> to vector<64x16xf32>
    %127 = arith.addf %124, %126 : vector<64x16xf32>
    %cst_125 = arith.constant 0.000000e+00 : f32
    %128 = vector.broadcast %cst_125 : f32 to vector<64x16xf32>
    %129 = arith.maximumf %127, %128 : vector<64x16xf32>
    %130 = vector.shape_cast %129 : vector<64x16xf32> to vector<1x8x8x16xf32>
    %131 = arith.truncf %130 : vector<1x8x8x16xf32> to vector<1x8x8x16xbf16>
    %c0_126 = arith.constant 0 : index
    %c0_127 = arith.constant 0 : index
    %c1_128 = arith.constant 1 : index
    %c0_129 = arith.constant 0 : index
    %c16_130 = arith.constant 16 : index
    %132 = vector.load %arg6[%c0_126, %c0_127, %c1_128, %c0_129, %c16_130] : memref<1x8x2x8x32xbf16, #tpu.memory_space<vmem>>, vector<1x8x1x8x16xbf16>
    %133 = vector.shape_cast %132 : vector<1x8x1x8x16xbf16> to vector<1x8x8x16xbf16>
    %134 = vector.shape_cast %131 : vector<1x8x8x16xbf16> to vector<1x8x1x8x16xbf16>
    tpu.vector_store %arg6[%c0_126, %c0_127, %c1_128, %c0_129, %c16_130], %134 {strides = array<i32>} : memref<1x8x2x8x32xbf16, #tpu.memory_space<vmem>>, vector<1x8x1x8x16xbf16>,
    return
  }
  func.func @transform_0(%arg0: i32, %arg1: i32) -> (i32, i32, i32, i32) {
    %c0_i32 = arith.constant 0 : i32
    %c0_i32_0 = arith.constant 0 : i32
    %c0_i32_1 = arith.constant 0 : i32
    return %arg0, %c0_i32, %c0_i32_0, %arg1 : i32, i32, i32, i32
  }
  func.func @transform_1(%arg0: i32, %arg1: i32) -> (i32, i32, i32) {
    %c0_i32 = arith.constant 0 : i32
    %c0_i32_0 = arith.constant 0 : i32
    %c0_i32_1 = arith.constant 0 : i32
    return %c0_i32, %arg1, %c0_i32_0 : i32, i32, i32
  }
  func.func @transform_2(%arg0: i32, %arg1: i32) -> (i32, i32) {
    %c0_i32 = arith.constant 0 : i32
    %c0_i32_0 = arith.constant 0 : i32
    %c0_i32_1 = arith.constant 0 : i32
    return %c0_i32, %c0_i32_0 : i32, i32
  }
  func.func @transform_3(%arg0: i32, %arg1: i32) -> (i32, i32) {
    %c0_i32 = arith.constant 0 : i32
    %c0_i32_0 = arith.constant 0 : i32
    %c0_i32_1 = arith.constant 0 : i32
    return %c0_i32, %c0_i32_0 : i32, i32
  }
  func.func @transform_4(%arg0: i32, %arg1: i32) -> (i32, i32, i32, i32, i32) {
    %c0_i32 = arith.constant 0 : i32
    %c0_i32_0 = arith.constant 0 : i32
    %c0_i32_1 = arith.constant 0 : i32
    %c0_i32_2 = arith.constant 0 : i32
    %c0_i32_3 = arith.constant 0 : i32
    return %arg0, %c0_i32, %c0_i32_0, %c0_i32_1, %c0_i32_2 : i32, i32, i32, i32, i32
  }
}

module attributes {stable_mosaic.version = 11 : i64} {
  func.func @_deconv_bn_relu_kernel(%arg0: i32, %arg1: i32, %arg2: memref<1x4x4x32xbf16, #tpu.memory_space<vmem>>, %arg3: memref<16x32x16xbf16, #tpu.memory_space<vmem>>, %arg4: memref<1x16xf32, #tpu.memory_space<vmem>>, %arg5: memref<1x16xf32, #tpu.memory_space<vmem>>, %arg6: memref<1x4x2x4x32xbf16, #tpu.memory_space<vmem>>, %arg7: memref<1x6x6x32xbf16, #tpu.memory_space<vmem>>) attributes {dimension_semantics = [#tpu.dimension_semantics<parallel>, #tpu.dimension_semantics<arbitrary>], iteration_bounds = array<i64: 2, 1>, scalar_prefetch = 0 : i64, scratch_operands = 1 : i64, tpu.core_type = #tpu.core_type<tc>, window_params = [{transform_indices = @transform_0, window_bounds = array<i64: 1, 4, 4, 32>}, {transform_indices = @transform_1, window_bounds = array<i64: 16, 32, 16>}, {pipeline_mode = #tpu.pipeline_mode<synchronous>, transform_indices = @transform_2, window_bounds = array<i64: 1, 16>}, {pipeline_mode = #tpu.pipeline_mode<synchronous>, transform_indices = @transform_3, window_bounds = array<i64: 1, 16>}, {transform_indices = @transform_4, window_bounds = array<i64: 1, 4, 2, 4, 32>}]} {
    %c0_i32 = arith.constant 0 : i32
    %0 = arith.cmpi eq, %arg1, %c0_i32 : i32
    %1 = arith.extui %0 : i1 to i32
    %c0_i32_0 = arith.constant 0 : i32
    %2 = arith.cmpi ne, %1, %c0_i32_0 : i32
    scf.if %2 {
      %cst_131 = arith.constant 0.000000e+00 : bf16
      %135 = vector.broadcast %cst_131 : bf16 to vector<1x6x6x32xbf16>
      %c0_132 = arith.constant 0 : index
      %c0_133 = arith.constant 0 : index
      %c0_134 = arith.constant 0 : index
      %c0_135 = arith.constant 0 : index
      %136 = vector.load %arg7[%c0_132, %c0_133, %c0_134, %c0_135] : memref<1x6x6x32xbf16, #tpu.memory_space<vmem>>, vector<1x6x6x32xbf16>
      tpu.vector_store %arg7[%c0_132, %c0_133, %c0_134, %c0_135], %135 {strides = array<i32>} : memref<1x6x6x32xbf16, #tpu.memory_space<vmem>>, vector<1x6x6x32xbf16>,
    } else {
    }
    %c0 = arith.constant 0 : index
    %c0_1 = arith.constant 0 : index
    %c0_2 = arith.constant 0 : index
    %c0_3 = arith.constant 0 : index
    %3 = vector.load %arg2[%c0, %c0_1, %c0_2, %c0_3] : memref<1x4x4x32xbf16, #tpu.memory_space<vmem>>, vector<1x4x4x32xbf16>
    %c0_4 = arith.constant 0 : index
    %c1 = arith.constant 1 : index
    %c1_5 = arith.constant 1 : index
    %c0_6 = arith.constant 0 : index
    %4 = vector.load %arg7[%c0_4, %c1, %c1_5, %c0_6] : memref<1x6x6x32xbf16, #tpu.memory_space<vmem>>, vector<1x4x4x32xbf16>
    tpu.vector_store %arg7[%c0_4, %c1, %c1_5, %c0_6], %3 {strides = array<i32>} : memref<1x6x6x32xbf16, #tpu.memory_space<vmem>>, vector<1x4x4x32xbf16>,
    %c0_7 = arith.constant 0 : index
    %c0_8 = arith.constant 0 : index
    %c0_9 = arith.constant 0 : index
    %c0_10 = arith.constant 0 : index
    %5 = vector.load %arg7[%c0_7, %c0_8, %c0_9, %c0_10] : memref<1x6x6x32xbf16, #tpu.memory_space<vmem>>, vector<1x4x4x32xbf16>
    %6 = vector.shape_cast %5 : vector<1x4x4x32xbf16> to vector<16x32xbf16>
    %c0_11 = arith.constant 0 : index
    %c0_12 = arith.constant 0 : index
    %c1_13 = arith.constant 1 : index
    %c0_14 = arith.constant 0 : index
    %7 = vector.load %arg7[%c0_11, %c0_12, %c1_13, %c0_14] : memref<1x6x6x32xbf16, #tpu.memory_space<vmem>>, vector<1x4x4x32xbf16>
    %8 = vector.shape_cast %7 : vector<1x4x4x32xbf16> to vector<16x32xbf16>
    %c0_15 = arith.constant 0 : index
    %c0_16 = arith.constant 0 : index
    %c2 = arith.constant 2 : index
    %c0_17 = arith.constant 0 : index
    %9 = vector.load %arg7[%c0_15, %c0_16, %c2, %c0_17] : memref<1x6x6x32xbf16, #tpu.memory_space<vmem>>, vector<1x4x4x32xbf16>
    %10 = vector.shape_cast %9 : vector<1x4x4x32xbf16> to vector<16x32xbf16>
    %c0_18 = arith.constant 0 : index
    %c1_19 = arith.constant 1 : index
    %c0_20 = arith.constant 0 : index
    %c0_21 = arith.constant 0 : index
    %11 = vector.load %arg7[%c0_18, %c1_19, %c0_20, %c0_21] : memref<1x6x6x32xbf16, #tpu.memory_space<vmem>>, vector<1x4x4x32xbf16>
    %12 = vector.shape_cast %11 : vector<1x4x4x32xbf16> to vector<16x32xbf16>
    %c0_22 = arith.constant 0 : index
    %c1_23 = arith.constant 1 : index
    %c1_24 = arith.constant 1 : index
    %c0_25 = arith.constant 0 : index
    %13 = vector.load %arg7[%c0_22, %c1_23, %c1_24, %c0_25] : memref<1x6x6x32xbf16, #tpu.memory_space<vmem>>, vector<1x4x4x32xbf16>
    %14 = vector.shape_cast %13 : vector<1x4x4x32xbf16> to vector<16x32xbf16>
    %c0_26 = arith.constant 0 : index
    %c1_27 = arith.constant 1 : index
    %c2_28 = arith.constant 2 : index
    %c0_29 = arith.constant 0 : index
    %15 = vector.load %arg7[%c0_26, %c1_27, %c2_28, %c0_29] : memref<1x6x6x32xbf16, #tpu.memory_space<vmem>>, vector<1x4x4x32xbf16>
    %16 = vector.shape_cast %15 : vector<1x4x4x32xbf16> to vector<16x32xbf16>
    %c0_30 = arith.constant 0 : index
    %c2_31 = arith.constant 2 : index
    %c0_32 = arith.constant 0 : index
    %c0_33 = arith.constant 0 : index
    %17 = vector.load %arg7[%c0_30, %c2_31, %c0_32, %c0_33] : memref<1x6x6x32xbf16, #tpu.memory_space<vmem>>, vector<1x4x4x32xbf16>
    %18 = vector.shape_cast %17 : vector<1x4x4x32xbf16> to vector<16x32xbf16>
    %c0_34 = arith.constant 0 : index
    %c2_35 = arith.constant 2 : index
    %c1_36 = arith.constant 1 : index
    %c0_37 = arith.constant 0 : index
    %19 = vector.load %arg7[%c0_34, %c2_35, %c1_36, %c0_37] : memref<1x6x6x32xbf16, #tpu.memory_space<vmem>>, vector<1x4x4x32xbf16>
    %20 = vector.shape_cast %19 : vector<1x4x4x32xbf16> to vector<16x32xbf16>
    %c0_38 = arith.constant 0 : index
    %c2_39 = arith.constant 2 : index
    %c2_40 = arith.constant 2 : index
    %c0_41 = arith.constant 0 : index
    %21 = vector.load %arg7[%c0_38, %c2_39, %c2_40, %c0_41] : memref<1x6x6x32xbf16, #tpu.memory_space<vmem>>, vector<1x4x4x32xbf16>
    %22 = vector.shape_cast %21 : vector<1x4x4x32xbf16> to vector<16x32xbf16>
    %c5 = arith.constant 5 : index
    %c0_42 = arith.constant 0 : index
    %c0_43 = arith.constant 0 : index
    %23 = vector.load %arg3[%c5, %c0_42, %c0_43] : memref<16x32x16xbf16, #tpu.memory_space<vmem>>, vector<1x32x16xbf16>
    %24 = vector.shape_cast %23 : vector<1x32x16xbf16> to vector<32x16xbf16>
    %cst = arith.constant dense<0.000000e+00> : vector<16x16xf32>
    %25 = tpu.matmul %14, %24, %cst {dimension_numbers = #tpu.dot_dimension_numbers<[1], [0], [0], [1], [0, 0, 1, 1], [], []>} : vector<16x32xbf16>, vector<32x16xbf16>, vector<16x16xf32> -> vector<16x16xf32>
    %c7 = arith.constant 7 : index
    %c0_44 = arith.constant 0 : index
    %c0_45 = arith.constant 0 : index
    %26 = vector.load %arg3[%c7, %c0_44, %c0_45] : memref<16x32x16xbf16, #tpu.memory_space<vmem>>, vector<1x32x16xbf16>
    %27 = vector.shape_cast %26 : vector<1x32x16xbf16> to vector<32x16xbf16>
    %cst_46 = arith.constant dense<0.000000e+00> : vector<16x16xf32>
    %28 = tpu.matmul %12, %27, %cst_46 {dimension_numbers = #tpu.dot_dimension_numbers<[1], [0], [0], [1], [0, 0, 1, 1], [], []>} : vector<16x32xbf16>, vector<32x16xbf16>, vector<16x16xf32> -> vector<16x16xf32>
    %29 = arith.addf %25, %28 : vector<16x16xf32>
    %c13 = arith.constant 13 : index
    %c0_47 = arith.constant 0 : index
    %c0_48 = arith.constant 0 : index
    %30 = vector.load %arg3[%c13, %c0_47, %c0_48] : memref<16x32x16xbf16, #tpu.memory_space<vmem>>, vector<1x32x16xbf16>
    %31 = vector.shape_cast %30 : vector<1x32x16xbf16> to vector<32x16xbf16>
    %cst_49 = arith.constant dense<0.000000e+00> : vector<16x16xf32>
    %32 = tpu.matmul %8, %31, %cst_49 {dimension_numbers = #tpu.dot_dimension_numbers<[1], [0], [0], [1], [0, 0, 1, 1], [], []>} : vector<16x32xbf16>, vector<32x16xbf16>, vector<16x16xf32> -> vector<16x16xf32>
    %33 = arith.addf %29, %32 : vector<16x16xf32>
    %c15 = arith.constant 15 : index
    %c0_50 = arith.constant 0 : index
    %c0_51 = arith.constant 0 : index
    %34 = vector.load %arg3[%c15, %c0_50, %c0_51] : memref<16x32x16xbf16, #tpu.memory_space<vmem>>, vector<1x32x16xbf16>
    %35 = vector.shape_cast %34 : vector<1x32x16xbf16> to vector<32x16xbf16>
    %cst_52 = arith.constant dense<0.000000e+00> : vector<16x16xf32>
    %36 = tpu.matmul %6, %35, %cst_52 {dimension_numbers = #tpu.dot_dimension_numbers<[1], [0], [0], [1], [0, 0, 1, 1], [], []>} : vector<16x32xbf16>, vector<32x16xbf16>, vector<16x16xf32> -> vector<16x16xf32>
    %37 = arith.addf %33, %36 : vector<16x16xf32>
    %c4 = arith.constant 4 : index
    %c0_53 = arith.constant 0 : index
    %c0_54 = arith.constant 0 : index
    %38 = vector.load %arg3[%c4, %c0_53, %c0_54] : memref<16x32x16xbf16, #tpu.memory_space<vmem>>, vector<1x32x16xbf16>
    %39 = vector.shape_cast %38 : vector<1x32x16xbf16> to vector<32x16xbf16>
    %cst_55 = arith.constant dense<0.000000e+00> : vector<16x16xf32>
    %40 = tpu.matmul %16, %39, %cst_55 {dimension_numbers = #tpu.dot_dimension_numbers<[1], [0], [0], [1], [0, 0, 1, 1], [], []>} : vector<16x32xbf16>, vector<32x16xbf16>, vector<16x16xf32> -> vector<16x16xf32>
    %c6 = arith.constant 6 : index
    %c0_56 = arith.constant 0 : index
    %c0_57 = arith.constant 0 : index
    %41 = vector.load %arg3[%c6, %c0_56, %c0_57] : memref<16x32x16xbf16, #tpu.memory_space<vmem>>, vector<1x32x16xbf16>
    %42 = vector.shape_cast %41 : vector<1x32x16xbf16> to vector<32x16xbf16>
    %cst_58 = arith.constant dense<0.000000e+00> : vector<16x16xf32>
    %43 = tpu.matmul %14, %42, %cst_58 {dimension_numbers = #tpu.dot_dimension_numbers<[1], [0], [0], [1], [0, 0, 1, 1], [], []>} : vector<16x32xbf16>, vector<32x16xbf16>, vector<16x16xf32> -> vector<16x16xf32>
    %44 = arith.addf %40, %43 : vector<16x16xf32>
    %c12 = arith.constant 12 : index
    %c0_59 = arith.constant 0 : index
    %c0_60 = arith.constant 0 : index
    %45 = vector.load %arg3[%c12, %c0_59, %c0_60] : memref<16x32x16xbf16, #tpu.memory_space<vmem>>, vector<1x32x16xbf16>
    %46 = vector.shape_cast %45 : vector<1x32x16xbf16> to vector<32x16xbf16>
    %cst_61 = arith.constant dense<0.000000e+00> : vector<16x16xf32>
    %47 = tpu.matmul %10, %46, %cst_61 {dimension_numbers = #tpu.dot_dimension_numbers<[1], [0], [0], [1], [0, 0, 1, 1], [], []>} : vector<16x32xbf16>, vector<32x16xbf16>, vector<16x16xf32> -> vector<16x16xf32>
    %48 = arith.addf %44, %47 : vector<16x16xf32>
    %c14 = arith.constant 14 : index
    %c0_62 = arith.constant 0 : index
    %c0_63 = arith.constant 0 : index
    %49 = vector.load %arg3[%c14, %c0_62, %c0_63] : memref<16x32x16xbf16, #tpu.memory_space<vmem>>, vector<1x32x16xbf16>
    %50 = vector.shape_cast %49 : vector<1x32x16xbf16> to vector<32x16xbf16>
    %cst_64 = arith.constant dense<0.000000e+00> : vector<16x16xf32>
    %51 = tpu.matmul %8, %50, %cst_64 {dimension_numbers = #tpu.dot_dimension_numbers<[1], [0], [0], [1], [0, 0, 1, 1], [], []>} : vector<16x32xbf16>, vector<32x16xbf16>, vector<16x16xf32> -> vector<16x16xf32>
    %52 = arith.addf %48, %51 : vector<16x16xf32>
    %c1_65 = arith.constant 1 : index
    %c0_66 = arith.constant 0 : index
    %c0_67 = arith.constant 0 : index
    %53 = vector.load %arg3[%c1_65, %c0_66, %c0_67] : memref<16x32x16xbf16, #tpu.memory_space<vmem>>, vector<1x32x16xbf16>
    %54 = vector.shape_cast %53 : vector<1x32x16xbf16> to vector<32x16xbf16>
    %cst_68 = arith.constant dense<0.000000e+00> : vector<16x16xf32>
    %55 = tpu.matmul %20, %54, %cst_68 {dimension_numbers = #tpu.dot_dimension_numbers<[1], [0], [0], [1], [0, 0, 1, 1], [], []>} : vector<16x32xbf16>, vector<32x16xbf16>, vector<16x16xf32> -> vector<16x16xf32>
    %c3 = arith.constant 3 : index
    %c0_69 = arith.constant 0 : index
    %c0_70 = arith.constant 0 : index
    %56 = vector.load %arg3[%c3, %c0_69, %c0_70] : memref<16x32x16xbf16, #tpu.memory_space<vmem>>, vector<1x32x16xbf16>
    %57 = vector.shape_cast %56 : vector<1x32x16xbf16> to vector<32x16xbf16>
    %cst_71 = arith.constant dense<0.000000e+00> : vector<16x16xf32>
    %58 = tpu.matmul %18, %57, %cst_71 {dimension_numbers = #tpu.dot_dimension_numbers<[1], [0], [0], [1], [0, 0, 1, 1], [], []>} : vector<16x32xbf16>, vector<32x16xbf16>, vector<16x16xf32> -> vector<16x16xf32>
    %59 = arith.addf %55, %58 : vector<16x16xf32>
    %c9 = arith.constant 9 : index
    %c0_72 = arith.constant 0 : index
    %c0_73 = arith.constant 0 : index
    %60 = vector.load %arg3[%c9, %c0_72, %c0_73] : memref<16x32x16xbf16, #tpu.memory_space<vmem>>, vector<1x32x16xbf16>
    %61 = vector.shape_cast %60 : vector<1x32x16xbf16> to vector<32x16xbf16>
    %cst_74 = arith.constant dense<0.000000e+00> : vector<16x16xf32>
    %62 = tpu.matmul %14, %61, %cst_74 {dimension_numbers = #tpu.dot_dimension_numbers<[1], [0], [0], [1], [0, 0, 1, 1], [], []>} : vector<16x32xbf16>, vector<32x16xbf16>, vector<16x16xf32> -> vector<16x16xf32>
    %63 = arith.addf %59, %62 : vector<16x16xf32>
    %c11 = arith.constant 11 : index
    %c0_75 = arith.constant 0 : index
    %c0_76 = arith.constant 0 : index
    %64 = vector.load %arg3[%c11, %c0_75, %c0_76] : memref<16x32x16xbf16, #tpu.memory_space<vmem>>, vector<1x32x16xbf16>
    %65 = vector.shape_cast %64 : vector<1x32x16xbf16> to vector<32x16xbf16>
    %cst_77 = arith.constant dense<0.000000e+00> : vector<16x16xf32>
    %66 = tpu.matmul %12, %65, %cst_77 {dimension_numbers = #tpu.dot_dimension_numbers<[1], [0], [0], [1], [0, 0, 1, 1], [], []>} : vector<16x32xbf16>, vector<32x16xbf16>, vector<16x16xf32> -> vector<16x16xf32>
    %67 = arith.addf %63, %66 : vector<16x16xf32>
    %c0_78 = arith.constant 0 : index
    %c0_79 = arith.constant 0 : index
    %c0_80 = arith.constant 0 : index
    %68 = vector.load %arg3[%c0_78, %c0_79, %c0_80] : memref<16x32x16xbf16, #tpu.memory_space<vmem>>, vector<1x32x16xbf16>
    %69 = vector.shape_cast %68 : vector<1x32x16xbf16> to vector<32x16xbf16>
    %cst_81 = arith.constant dense<0.000000e+00> : vector<16x16xf32>
    %70 = tpu.matmul %22, %69, %cst_81 {dimension_numbers = #tpu.dot_dimension_numbers<[1], [0], [0], [1], [0, 0, 1, 1], [], []>} : vector<16x32xbf16>, vector<32x16xbf16>, vector<16x16xf32> -> vector<16x16xf32>
    %c2_82 = arith.constant 2 : index
    %c0_83 = arith.constant 0 : index
    %c0_84 = arith.constant 0 : index
    %71 = vector.load %arg3[%c2_82, %c0_83, %c0_84] : memref<16x32x16xbf16, #tpu.memory_space<vmem>>, vector<1x32x16xbf16>
    %72 = vector.shape_cast %71 : vector<1x32x16xbf16> to vector<32x16xbf16>
    %cst_85 = arith.constant dense<0.000000e+00> : vector<16x16xf32>
    %73 = tpu.matmul %20, %72, %cst_85 {dimension_numbers = #tpu.dot_dimension_numbers<[1], [0], [0], [1], [0, 0, 1, 1], [], []>} : vector<16x32xbf16>, vector<32x16xbf16>, vector<16x16xf32> -> vector<16x16xf32>
    %74 = arith.addf %70, %73 : vector<16x16xf32>
    %c8 = arith.constant 8 : index
    %c0_86 = arith.constant 0 : index
    %c0_87 = arith.constant 0 : index
    %75 = vector.load %arg3[%c8, %c0_86, %c0_87] : memref<16x32x16xbf16, #tpu.memory_space<vmem>>, vector<1x32x16xbf16>
    %76 = vector.shape_cast %75 : vector<1x32x16xbf16> to vector<32x16xbf16>
    %cst_88 = arith.constant dense<0.000000e+00> : vector<16x16xf32>
    %77 = tpu.matmul %16, %76, %cst_88 {dimension_numbers = #tpu.dot_dimension_numbers<[1], [0], [0], [1], [0, 0, 1, 1], [], []>} : vector<16x32xbf16>, vector<32x16xbf16>, vector<16x16xf32> -> vector<16x16xf32>
    %78 = arith.addf %74, %77 : vector<16x16xf32>
    %c10 = arith.constant 10 : index
    %c0_89 = arith.constant 0 : index
    %c0_90 = arith.constant 0 : index
    %79 = vector.load %arg3[%c10, %c0_89, %c0_90] : memref<16x32x16xbf16, #tpu.memory_space<vmem>>, vector<1x32x16xbf16>
    %80 = vector.shape_cast %79 : vector<1x32x16xbf16> to vector<32x16xbf16>
    %cst_91 = arith.constant dense<0.000000e+00> : vector<16x16xf32>
    %81 = tpu.matmul %14, %80, %cst_91 {dimension_numbers = #tpu.dot_dimension_numbers<[1], [0], [0], [1], [0, 0, 1, 1], [], []>} : vector<16x32xbf16>, vector<32x16xbf16>, vector<16x16xf32> -> vector<16x16xf32>
    %82 = arith.addf %78, %81 : vector<16x16xf32>
    %c0_92 = arith.constant 0 : index
    %c0_93 = arith.constant 0 : index
    %83 = vector.load %arg4[%c0_92, %c0_93] : memref<1x16xf32, #tpu.memory_space<vmem>>, vector<1x16xf32>
    %84 = vector.broadcast %83 : vector<1x16xf32> to vector<16x16xf32>
    %85 = arith.mulf %37, %84 : vector<16x16xf32>
    %c0_94 = arith.constant 0 : index
    %c0_95 = arith.constant 0 : index
    %86 = vector.load %arg5[%c0_94, %c0_95] : memref<1x16xf32, #tpu.memory_space<vmem>>, vector<1x16xf32>
    %87 = vector.broadcast %86 : vector<1x16xf32> to vector<16x16xf32>
    %88 = arith.addf %85, %87 : vector<16x16xf32>
    %cst_96 = arith.constant 0.000000e+00 : f32
    %89 = vector.broadcast %cst_96 : f32 to vector<16x16xf32>
    %90 = arith.maximumf %88, %89 : vector<16x16xf32>
    %91 = vector.shape_cast %90 : vector<16x16xf32> to vector<1x4x4x16xf32>
    %92 = arith.truncf %91 : vector<1x4x4x16xf32> to vector<1x4x4x16xbf16>
    %c0_97 = arith.constant 0 : index
    %c0_98 = arith.constant 0 : index
    %c0_99 = arith.constant 0 : index
    %c0_100 = arith.constant 0 : index
    %c0_101 = arith.constant 0 : index
    %93 = vector.load %arg6[%c0_97, %c0_98, %c0_99, %c0_100, %c0_101] : memref<1x4x2x4x32xbf16, #tpu.memory_space<vmem>>, vector<1x4x1x4x16xbf16>
    %94 = vector.shape_cast %93 : vector<1x4x1x4x16xbf16> to vector<1x4x4x16xbf16>
    %95 = vector.shape_cast %92 : vector<1x4x4x16xbf16> to vector<1x4x1x4x16xbf16>
    tpu.vector_store %arg6[%c0_97, %c0_98, %c0_99, %c0_100, %c0_101], %95 {strides = array<i32>} : memref<1x4x2x4x32xbf16, #tpu.memory_space<vmem>>, vector<1x4x1x4x16xbf16>,
    %c0_102 = arith.constant 0 : index
    %c0_103 = arith.constant 0 : index
    %96 = vector.load %arg4[%c0_102, %c0_103] : memref<1x16xf32, #tpu.memory_space<vmem>>, vector<1x16xf32>
    %97 = vector.broadcast %96 : vector<1x16xf32> to vector<16x16xf32>
    %98 = arith.mulf %52, %97 : vector<16x16xf32>
    %c0_104 = arith.constant 0 : index
    %c0_105 = arith.constant 0 : index
    %99 = vector.load %arg5[%c0_104, %c0_105] : memref<1x16xf32, #tpu.memory_space<vmem>>, vector<1x16xf32>
    %100 = vector.broadcast %99 : vector<1x16xf32> to vector<16x16xf32>
    %101 = arith.addf %98, %100 : vector<16x16xf32>
    %cst_106 = arith.constant 0.000000e+00 : f32
    %102 = vector.broadcast %cst_106 : f32 to vector<16x16xf32>
    %103 = arith.maximumf %101, %102 : vector<16x16xf32>
    %104 = vector.shape_cast %103 : vector<16x16xf32> to vector<1x4x4x16xf32>
    %105 = arith.truncf %104 : vector<1x4x4x16xf32> to vector<1x4x4x16xbf16>
    %c0_107 = arith.constant 0 : index
    %c0_108 = arith.constant 0 : index
    %c0_109 = arith.constant 0 : index
    %c0_110 = arith.constant 0 : index
    %c16 = arith.constant 16 : index
    %106 = vector.load %arg6[%c0_107, %c0_108, %c0_109, %c0_110, %c16] : memref<1x4x2x4x32xbf16, #tpu.memory_space<vmem>>, vector<1x4x1x4x16xbf16>
    %107 = vector.shape_cast %106 : vector<1x4x1x4x16xbf16> to vector<1x4x4x16xbf16>
    %108 = vector.shape_cast %105 : vector<1x4x4x16xbf16> to vector<1x4x1x4x16xbf16>
    tpu.vector_store %arg6[%c0_107, %c0_108, %c0_109, %c0_110, %c16], %108 {strides = array<i32>} : memref<1x4x2x4x32xbf16, #tpu.memory_space<vmem>>, vector<1x4x1x4x16xbf16>,
    %c0_111 = arith.constant 0 : index
    %c0_112 = arith.constant 0 : index
    %109 = vector.load %arg4[%c0_111, %c0_112] : memref<1x16xf32, #tpu.memory_space<vmem>>, vector<1x16xf32>
    %110 = vector.broadcast %109 : vector<1x16xf32> to vector<16x16xf32>
    %111 = arith.mulf %67, %110 : vector<16x16xf32>
    %c0_113 = arith.constant 0 : index
    %c0_114 = arith.constant 0 : index
    %112 = vector.load %arg5[%c0_113, %c0_114] : memref<1x16xf32, #tpu.memory_space<vmem>>, vector<1x16xf32>
    %113 = vector.broadcast %112 : vector<1x16xf32> to vector<16x16xf32>
    %114 = arith.addf %111, %113 : vector<16x16xf32>
    %cst_115 = arith.constant 0.000000e+00 : f32
    %115 = vector.broadcast %cst_115 : f32 to vector<16x16xf32>
    %116 = arith.maximumf %114, %115 : vector<16x16xf32>
    %117 = vector.shape_cast %116 : vector<16x16xf32> to vector<1x4x4x16xf32>
    %118 = arith.truncf %117 : vector<1x4x4x16xf32> to vector<1x4x4x16xbf16>
    %c0_116 = arith.constant 0 : index
    %c0_117 = arith.constant 0 : index
    %c1_118 = arith.constant 1 : index
    %c0_119 = arith.constant 0 : index
    %c0_120 = arith.constant 0 : index
    %119 = vector.load %arg6[%c0_116, %c0_117, %c1_118, %c0_119, %c0_120] : memref<1x4x2x4x32xbf16, #tpu.memory_space<vmem>>, vector<1x4x1x4x16xbf16>
    %120 = vector.shape_cast %119 : vector<1x4x1x4x16xbf16> to vector<1x4x4x16xbf16>
    %121 = vector.shape_cast %118 : vector<1x4x4x16xbf16> to vector<1x4x1x4x16xbf16>
    tpu.vector_store %arg6[%c0_116, %c0_117, %c1_118, %c0_119, %c0_120], %121 {strides = array<i32>} : memref<1x4x2x4x32xbf16, #tpu.memory_space<vmem>>, vector<1x4x1x4x16xbf16>,
    %c0_121 = arith.constant 0 : index
    %c0_122 = arith.constant 0 : index
    %122 = vector.load %arg4[%c0_121, %c0_122] : memref<1x16xf32, #tpu.memory_space<vmem>>, vector<1x16xf32>
    %123 = vector.broadcast %122 : vector<1x16xf32> to vector<16x16xf32>
    %124 = arith.mulf %82, %123 : vector<16x16xf32>
    %c0_123 = arith.constant 0 : index
    %c0_124 = arith.constant 0 : index
    %125 = vector.load %arg5[%c0_123, %c0_124] : memref<1x16xf32, #tpu.memory_space<vmem>>, vector<1x16xf32>
    %126 = vector.broadcast %125 : vector<1x16xf32> to vector<16x16xf32>
    %127 = arith.addf %124, %126 : vector<16x16xf32>
    %cst_125 = arith.constant 0.000000e+00 : f32
    %128 = vector.broadcast %cst_125 : f32 to vector<16x16xf32>
    %129 = arith.maximumf %127, %128 : vector<16x16xf32>
    %130 = vector.shape_cast %129 : vector<16x16xf32> to vector<1x4x4x16xf32>
    %131 = arith.truncf %130 : vector<1x4x4x16xf32> to vector<1x4x4x16xbf16>
    %c0_126 = arith.constant 0 : index
    %c0_127 = arith.constant 0 : index
    %c1_128 = arith.constant 1 : index
    %c0_129 = arith.constant 0 : index
    %c16_130 = arith.constant 16 : index
    %132 = vector.load %arg6[%c0_126, %c0_127, %c1_128, %c0_129, %c16_130] : memref<1x4x2x4x32xbf16, #tpu.memory_space<vmem>>, vector<1x4x1x4x16xbf16>
    %133 = vector.shape_cast %132 : vector<1x4x1x4x16xbf16> to vector<1x4x4x16xbf16>
    %134 = vector.shape_cast %131 : vector<1x4x4x16xbf16> to vector<1x4x1x4x16xbf16>
    tpu.vector_store %arg6[%c0_126, %c0_127, %c1_128, %c0_129, %c16_130], %134 {strides = array<i32>} : memref<1x4x2x4x32xbf16, #tpu.memory_space<vmem>>, vector<1x4x1x4x16xbf16>,
    return
  }
  func.func @transform_0(%arg0: i32, %arg1: i32) -> (i32, i32, i32, i32) {
    %c0_i32 = arith.constant 0 : i32
    %c0_i32_0 = arith.constant 0 : i32
    %c0_i32_1 = arith.constant 0 : i32
    return %arg0, %c0_i32, %c0_i32_0, %arg1 : i32, i32, i32, i32
  }
  func.func @transform_1(%arg0: i32, %arg1: i32) -> (i32, i32, i32) {
    %c0_i32 = arith.constant 0 : i32
    %c0_i32_0 = arith.constant 0 : i32
    %c0_i32_1 = arith.constant 0 : i32
    return %c0_i32, %arg1, %c0_i32_0 : i32, i32, i32
  }
  func.func @transform_2(%arg0: i32, %arg1: i32) -> (i32, i32) {
    %c0_i32 = arith.constant 0 : i32
    %c0_i32_0 = arith.constant 0 : i32
    %c0_i32_1 = arith.constant 0 : i32
    return %c0_i32, %c0_i32_0 : i32, i32
  }
  func.func @transform_3(%arg0: i32, %arg1: i32) -> (i32, i32) {
    %c0_i32 = arith.constant 0 : i32
    %c0_i32_0 = arith.constant 0 : i32
    %c0_i32_1 = arith.constant 0 : i32
    return %c0_i32, %c0_i32_0 : i32, i32
  }
  func.func @transform_4(%arg0: i32, %arg1: i32) -> (i32, i32, i32, i32, i32) {
    %c0_i32 = arith.constant 0 : i32
    %c0_i32_0 = arith.constant 0 : i32
    %c0_i32_1 = arith.constant 0 : i32
    %c0_i32_2 = arith.constant 0 : i32
    %c0_i32_3 = arith.constant 0 : i32
    return %arg0, %c0_i32, %c0_i32_0, %c0_i32_1, %c0_i32_2 : i32, i32, i32, i32, i32
  }
}

module attributes {stable_mosaic.version = 11 : i64} {
  func.func @_deconv_bn_relu_kernel(%arg0: i32, %arg1: i32, %arg2: memref<1x16x16x16xbf16, #tpu.memory_space<vmem>>, %arg3: memref<16x16x16xbf16, #tpu.memory_space<vmem>>, %arg4: memref<1x16xf32, #tpu.memory_space<vmem>>, %arg5: memref<1x16xf32, #tpu.memory_space<vmem>>, %arg6: memref<1x16x2x16x32xbf16, #tpu.memory_space<vmem>>, %arg7: memref<1x18x18x16xbf16, #tpu.memory_space<vmem>>) attributes {dimension_semantics = [#tpu.dimension_semantics<parallel>, #tpu.dimension_semantics<arbitrary>], iteration_bounds = array<i64: 2, 1>, scalar_prefetch = 0 : i64, scratch_operands = 1 : i64, tpu.core_type = #tpu.core_type<tc>, window_params = [{transform_indices = @transform_0, window_bounds = array<i64: 1, 16, 16, 16>}, {transform_indices = @transform_1, window_bounds = array<i64: 16, 16, 16>}, {pipeline_mode = #tpu.pipeline_mode<synchronous>, transform_indices = @transform_2, window_bounds = array<i64: 1, 16>}, {pipeline_mode = #tpu.pipeline_mode<synchronous>, transform_indices = @transform_3, window_bounds = array<i64: 1, 16>}, {transform_indices = @transform_4, window_bounds = array<i64: 1, 16, 2, 16, 32>}]} {
    %c0_i32 = arith.constant 0 : i32
    %0 = arith.cmpi eq, %arg1, %c0_i32 : i32
    %1 = arith.extui %0 : i1 to i32
    %c0_i32_0 = arith.constant 0 : i32
    %2 = arith.cmpi ne, %1, %c0_i32_0 : i32
    scf.if %2 {
      %cst_131 = arith.constant 0.000000e+00 : bf16
      %135 = vector.broadcast %cst_131 : bf16 to vector<1x18x18x16xbf16>
      %c0_132 = arith.constant 0 : index
      %c0_133 = arith.constant 0 : index
      %c0_134 = arith.constant 0 : index
      %c0_135 = arith.constant 0 : index
      %136 = vector.load %arg7[%c0_132, %c0_133, %c0_134, %c0_135] : memref<1x18x18x16xbf16, #tpu.memory_space<vmem>>, vector<1x18x18x16xbf16>
      tpu.vector_store %arg7[%c0_132, %c0_133, %c0_134, %c0_135], %135 {strides = array<i32>} : memref<1x18x18x16xbf16, #tpu.memory_space<vmem>>, vector<1x18x18x16xbf16>,
    } else {
    }
    %c0 = arith.constant 0 : index
    %c0_1 = arith.constant 0 : index
    %c0_2 = arith.constant 0 : index
    %c0_3 = arith.constant 0 : index
    %3 = vector.load %arg2[%c0, %c0_1, %c0_2, %c0_3] : memref<1x16x16x16xbf16, #tpu.memory_space<vmem>>, vector<1x16x16x16xbf16>
    %c0_4 = arith.constant 0 : index
    %c1 = arith.constant 1 : index
    %c1_5 = arith.constant 1 : index
    %c0_6 = arith.constant 0 : index
    %4 = vector.load %arg7[%c0_4, %c1, %c1_5, %c0_6] : memref<1x18x18x16xbf16, #tpu.memory_space<vmem>>, vector<1x16x16x16xbf16>
    tpu.vector_store %arg7[%c0_4, %c1, %c1_5, %c0_6], %3 {strides = array<i32>} : memref<1x18x18x16xbf16, #tpu.memory_space<vmem>>, vector<1x16x16x16xbf16>,
    %c0_7 = arith.constant 0 : index
    %c0_8 = arith.constant 0 : index
    %c0_9 = arith.constant 0 : index
    %c0_10 = arith.constant 0 : index
    %5 = vector.load %arg7[%c0_7, %c0_8, %c0_9, %c0_10] : memref<1x18x18x16xbf16, #tpu.memory_space<vmem>>, vector<1x16x16x16xbf16>
    %6 = vector.shape_cast %5 : vector<1x16x16x16xbf16> to vector<256x16xbf16>
    %c0_11 = arith.constant 0 : index
    %c0_12 = arith.constant 0 : index
    %c1_13 = arith.constant 1 : index
    %c0_14 = arith.constant 0 : index
    %7 = vector.load %arg7[%c0_11, %c0_12, %c1_13, %c0_14] : memref<1x18x18x16xbf16, #tpu.memory_space<vmem>>, vector<1x16x16x16xbf16>
    %8 = vector.shape_cast %7 : vector<1x16x16x16xbf16> to vector<256x16xbf16>
    %c0_15 = arith.constant 0 : index
    %c0_16 = arith.constant 0 : index
    %c2 = arith.constant 2 : index
    %c0_17 = arith.constant 0 : index
    %9 = vector.load %arg7[%c0_15, %c0_16, %c2, %c0_17] : memref<1x18x18x16xbf16, #tpu.memory_space<vmem>>, vector<1x16x16x16xbf16>
    %10 = vector.shape_cast %9 : vector<1x16x16x16xbf16> to vector<256x16xbf16>
    %c0_18 = arith.constant 0 : index
    %c1_19 = arith.constant 1 : index
    %c0_20 = arith.constant 0 : index
    %c0_21 = arith.constant 0 : index
    %11 = vector.load %arg7[%c0_18, %c1_19, %c0_20, %c0_21] : memref<1x18x18x16xbf16, #tpu.memory_space<vmem>>, vector<1x16x16x16xbf16>
    %12 = vector.shape_cast %11 : vector<1x16x16x16xbf16> to vector<256x16xbf16>
    %c0_22 = arith.constant 0 : index
    %c1_23 = arith.constant 1 : index
    %c1_24 = arith.constant 1 : index
    %c0_25 = arith.constant 0 : index
    %13 = vector.load %arg7[%c0_22, %c1_23, %c1_24, %c0_25] : memref<1x18x18x16xbf16, #tpu.memory_space<vmem>>, vector<1x16x16x16xbf16>
    %14 = vector.shape_cast %13 : vector<1x16x16x16xbf16> to vector<256x16xbf16>
    %c0_26 = arith.constant 0 : index
    %c1_27 = arith.constant 1 : index
    %c2_28 = arith.constant 2 : index
    %c0_29 = arith.constant 0 : index
    %15 = vector.load %arg7[%c0_26, %c1_27, %c2_28, %c0_29] : memref<1x18x18x16xbf16, #tpu.memory_space<vmem>>, vector<1x16x16x16xbf16>
    %16 = vector.shape_cast %15 : vector<1x16x16x16xbf16> to vector<256x16xbf16>
    %c0_30 = arith.constant 0 : index
    %c2_31 = arith.constant 2 : index
    %c0_32 = arith.constant 0 : index
    %c0_33 = arith.constant 0 : index
    %17 = vector.load %arg7[%c0_30, %c2_31, %c0_32, %c0_33] : memref<1x18x18x16xbf16, #tpu.memory_space<vmem>>, vector<1x16x16x16xbf16>
    %18 = vector.shape_cast %17 : vector<1x16x16x16xbf16> to vector<256x16xbf16>
    %c0_34 = arith.constant 0 : index
    %c2_35 = arith.constant 2 : index
    %c1_36 = arith.constant 1 : index
    %c0_37 = arith.constant 0 : index
    %19 = vector.load %arg7[%c0_34, %c2_35, %c1_36, %c0_37] : memref<1x18x18x16xbf16, #tpu.memory_space<vmem>>, vector<1x16x16x16xbf16>
    %20 = vector.shape_cast %19 : vector<1x16x16x16xbf16> to vector<256x16xbf16>
    %c0_38 = arith.constant 0 : index
    %c2_39 = arith.constant 2 : index
    %c2_40 = arith.constant 2 : index
    %c0_41 = arith.constant 0 : index
    %21 = vector.load %arg7[%c0_38, %c2_39, %c2_40, %c0_41] : memref<1x18x18x16xbf16, #tpu.memory_space<vmem>>, vector<1x16x16x16xbf16>
    %22 = vector.shape_cast %21 : vector<1x16x16x16xbf16> to vector<256x16xbf16>
    %c5 = arith.constant 5 : index
    %c0_42 = arith.constant 0 : index
    %c0_43 = arith.constant 0 : index
    %23 = vector.load %arg3[%c5, %c0_42, %c0_43] : memref<16x16x16xbf16, #tpu.memory_space<vmem>>, vector<1x16x16xbf16>
    %24 = vector.shape_cast %23 : vector<1x16x16xbf16> to vector<16x16xbf16>
    %cst = arith.constant dense<0.000000e+00> : vector<256x16xf32>
    %25 = tpu.matmul %14, %24, %cst {dimension_numbers = #tpu.dot_dimension_numbers<[1], [0], [0], [1], [0, 0, 1, 1], [], []>} : vector<256x16xbf16>, vector<16x16xbf16>, vector<256x16xf32> -> vector<256x16xf32>
    %c7 = arith.constant 7 : index
    %c0_44 = arith.constant 0 : index
    %c0_45 = arith.constant 0 : index
    %26 = vector.load %arg3[%c7, %c0_44, %c0_45] : memref<16x16x16xbf16, #tpu.memory_space<vmem>>, vector<1x16x16xbf16>
    %27 = vector.shape_cast %26 : vector<1x16x16xbf16> to vector<16x16xbf16>
    %cst_46 = arith.constant dense<0.000000e+00> : vector<256x16xf32>
    %28 = tpu.matmul %12, %27, %cst_46 {dimension_numbers = #tpu.dot_dimension_numbers<[1], [0], [0], [1], [0, 0, 1, 1], [], []>} : vector<256x16xbf16>, vector<16x16xbf16>, vector<256x16xf32> -> vector<256x16xf32>
    %29 = arith.addf %25, %28 : vector<256x16xf32>
    %c13 = arith.constant 13 : index
    %c0_47 = arith.constant 0 : index
    %c0_48 = arith.constant 0 : index
    %30 = vector.load %arg3[%c13, %c0_47, %c0_48] : memref<16x16x16xbf16, #tpu.memory_space<vmem>>, vector<1x16x16xbf16>
    %31 = vector.shape_cast %30 : vector<1x16x16xbf16> to vector<16x16xbf16>
    %cst_49 = arith.constant dense<0.000000e+00> : vector<256x16xf32>
    %32 = tpu.matmul %8, %31, %cst_49 {dimension_numbers = #tpu.dot_dimension_numbers<[1], [0], [0], [1], [0, 0, 1, 1], [], []>} : vector<256x16xbf16>, vector<16x16xbf16>, vector<256x16xf32> -> vector<256x16xf32>
    %33 = arith.addf %29, %32 : vector<256x16xf32>
    %c15 = arith.constant 15 : index
    %c0_50 = arith.constant 0 : index
    %c0_51 = arith.constant 0 : index
    %34 = vector.load %arg3[%c15, %c0_50, %c0_51] : memref<16x16x16xbf16, #tpu.memory_space<vmem>>, vector<1x16x16xbf16>
    %35 = vector.shape_cast %34 : vector<1x16x16xbf16> to vector<16x16xbf16>
    %cst_52 = arith.constant dense<0.000000e+00> : vector<256x16xf32>
    %36 = tpu.matmul %6, %35, %cst_52 {dimension_numbers = #tpu.dot_dimension_numbers<[1], [0], [0], [1], [0, 0, 1, 1], [], []>} : vector<256x16xbf16>, vector<16x16xbf16>, vector<256x16xf32> -> vector<256x16xf32>
    %37 = arith.addf %33, %36 : vector<256x16xf32>
    %c4 = arith.constant 4 : index
    %c0_53 = arith.constant 0 : index
    %c0_54 = arith.constant 0 : index
    %38 = vector.load %arg3[%c4, %c0_53, %c0_54] : memref<16x16x16xbf16, #tpu.memory_space<vmem>>, vector<1x16x16xbf16>
    %39 = vector.shape_cast %38 : vector<1x16x16xbf16> to vector<16x16xbf16>
    %cst_55 = arith.constant dense<0.000000e+00> : vector<256x16xf32>
    %40 = tpu.matmul %16, %39, %cst_55 {dimension_numbers = #tpu.dot_dimension_numbers<[1], [0], [0], [1], [0, 0, 1, 1], [], []>} : vector<256x16xbf16>, vector<16x16xbf16>, vector<256x16xf32> -> vector<256x16xf32>
    %c6 = arith.constant 6 : index
    %c0_56 = arith.constant 0 : index
    %c0_57 = arith.constant 0 : index
    %41 = vector.load %arg3[%c6, %c0_56, %c0_57] : memref<16x16x16xbf16, #tpu.memory_space<vmem>>, vector<1x16x16xbf16>
    %42 = vector.shape_cast %41 : vector<1x16x16xbf16> to vector<16x16xbf16>
    %cst_58 = arith.constant dense<0.000000e+00> : vector<256x16xf32>
    %43 = tpu.matmul %14, %42, %cst_58 {dimension_numbers = #tpu.dot_dimension_numbers<[1], [0], [0], [1], [0, 0, 1, 1], [], []>} : vector<256x16xbf16>, vector<16x16xbf16>, vector<256x16xf32> -> vector<256x16xf32>
    %44 = arith.addf %40, %43 : vector<256x16xf32>
    %c12 = arith.constant 12 : index
    %c0_59 = arith.constant 0 : index
    %c0_60 = arith.constant 0 : index
    %45 = vector.load %arg3[%c12, %c0_59, %c0_60] : memref<16x16x16xbf16, #tpu.memory_space<vmem>>, vector<1x16x16xbf16>
    %46 = vector.shape_cast %45 : vector<1x16x16xbf16> to vector<16x16xbf16>
    %cst_61 = arith.constant dense<0.000000e+00> : vector<256x16xf32>
    %47 = tpu.matmul %10, %46, %cst_61 {dimension_numbers = #tpu.dot_dimension_numbers<[1], [0], [0], [1], [0, 0, 1, 1], [], []>} : vector<256x16xbf16>, vector<16x16xbf16>, vector<256x16xf32> -> vector<256x16xf32>
    %48 = arith.addf %44, %47 : vector<256x16xf32>
    %c14 = arith.constant 14 : index
    %c0_62 = arith.constant 0 : index
    %c0_63 = arith.constant 0 : index
    %49 = vector.load %arg3[%c14, %c0_62, %c0_63] : memref<16x16x16xbf16, #tpu.memory_space<vmem>>, vector<1x16x16xbf16>
    %50 = vector.shape_cast %49 : vector<1x16x16xbf16> to vector<16x16xbf16>
    %cst_64 = arith.constant dense<0.000000e+00> : vector<256x16xf32>
    %51 = tpu.matmul %8, %50, %cst_64 {dimension_numbers = #tpu.dot_dimension_numbers<[1], [0], [0], [1], [0, 0, 1, 1], [], []>} : vector<256x16xbf16>, vector<16x16xbf16>, vector<256x16xf32> -> vector<256x16xf32>
    %52 = arith.addf %48, %51 : vector<256x16xf32>
    %c1_65 = arith.constant 1 : index
    %c0_66 = arith.constant 0 : index
    %c0_67 = arith.constant 0 : index
    %53 = vector.load %arg3[%c1_65, %c0_66, %c0_67] : memref<16x16x16xbf16, #tpu.memory_space<vmem>>, vector<1x16x16xbf16>
    %54 = vector.shape_cast %53 : vector<1x16x16xbf16> to vector<16x16xbf16>
    %cst_68 = arith.constant dense<0.000000e+00> : vector<256x16xf32>
    %55 = tpu.matmul %20, %54, %cst_68 {dimension_numbers = #tpu.dot_dimension_numbers<[1], [0], [0], [1], [0, 0, 1, 1], [], []>} : vector<256x16xbf16>, vector<16x16xbf16>, vector<256x16xf32> -> vector<256x16xf32>
    %c3 = arith.constant 3 : index
    %c0_69 = arith.constant 0 : index
    %c0_70 = arith.constant 0 : index
    %56 = vector.load %arg3[%c3, %c0_69, %c0_70] : memref<16x16x16xbf16, #tpu.memory_space<vmem>>, vector<1x16x16xbf16>
    %57 = vector.shape_cast %56 : vector<1x16x16xbf16> to vector<16x16xbf16>
    %cst_71 = arith.constant dense<0.000000e+00> : vector<256x16xf32>
    %58 = tpu.matmul %18, %57, %cst_71 {dimension_numbers = #tpu.dot_dimension_numbers<[1], [0], [0], [1], [0, 0, 1, 1], [], []>} : vector<256x16xbf16>, vector<16x16xbf16>, vector<256x16xf32> -> vector<256x16xf32>
    %59 = arith.addf %55, %58 : vector<256x16xf32>
    %c9 = arith.constant 9 : index
    %c0_72 = arith.constant 0 : index
    %c0_73 = arith.constant 0 : index
    %60 = vector.load %arg3[%c9, %c0_72, %c0_73] : memref<16x16x16xbf16, #tpu.memory_space<vmem>>, vector<1x16x16xbf16>
    %61 = vector.shape_cast %60 : vector<1x16x16xbf16> to vector<16x16xbf16>
    %cst_74 = arith.constant dense<0.000000e+00> : vector<256x16xf32>
    %62 = tpu.matmul %14, %61, %cst_74 {dimension_numbers = #tpu.dot_dimension_numbers<[1], [0], [0], [1], [0, 0, 1, 1], [], []>} : vector<256x16xbf16>, vector<16x16xbf16>, vector<256x16xf32> -> vector<256x16xf32>
    %63 = arith.addf %59, %62 : vector<256x16xf32>
    %c11 = arith.constant 11 : index
    %c0_75 = arith.constant 0 : index
    %c0_76 = arith.constant 0 : index
    %64 = vector.load %arg3[%c11, %c0_75, %c0_76] : memref<16x16x16xbf16, #tpu.memory_space<vmem>>, vector<1x16x16xbf16>
    %65 = vector.shape_cast %64 : vector<1x16x16xbf16> to vector<16x16xbf16>
    %cst_77 = arith.constant dense<0.000000e+00> : vector<256x16xf32>
    %66 = tpu.matmul %12, %65, %cst_77 {dimension_numbers = #tpu.dot_dimension_numbers<[1], [0], [0], [1], [0, 0, 1, 1], [], []>} : vector<256x16xbf16>, vector<16x16xbf16>, vector<256x16xf32> -> vector<256x16xf32>
    %67 = arith.addf %63, %66 : vector<256x16xf32>
    %c0_78 = arith.constant 0 : index
    %c0_79 = arith.constant 0 : index
    %c0_80 = arith.constant 0 : index
    %68 = vector.load %arg3[%c0_78, %c0_79, %c0_80] : memref<16x16x16xbf16, #tpu.memory_space<vmem>>, vector<1x16x16xbf16>
    %69 = vector.shape_cast %68 : vector<1x16x16xbf16> to vector<16x16xbf16>
    %cst_81 = arith.constant dense<0.000000e+00> : vector<256x16xf32>
    %70 = tpu.matmul %22, %69, %cst_81 {dimension_numbers = #tpu.dot_dimension_numbers<[1], [0], [0], [1], [0, 0, 1, 1], [], []>} : vector<256x16xbf16>, vector<16x16xbf16>, vector<256x16xf32> -> vector<256x16xf32>
    %c2_82 = arith.constant 2 : index
    %c0_83 = arith.constant 0 : index
    %c0_84 = arith.constant 0 : index
    %71 = vector.load %arg3[%c2_82, %c0_83, %c0_84] : memref<16x16x16xbf16, #tpu.memory_space<vmem>>, vector<1x16x16xbf16>
    %72 = vector.shape_cast %71 : vector<1x16x16xbf16> to vector<16x16xbf16>
    %cst_85 = arith.constant dense<0.000000e+00> : vector<256x16xf32>
    %73 = tpu.matmul %20, %72, %cst_85 {dimension_numbers = #tpu.dot_dimension_numbers<[1], [0], [0], [1], [0, 0, 1, 1], [], []>} : vector<256x16xbf16>, vector<16x16xbf16>, vector<256x16xf32> -> vector<256x16xf32>
    %74 = arith.addf %70, %73 : vector<256x16xf32>
    %c8 = arith.constant 8 : index
    %c0_86 = arith.constant 0 : index
    %c0_87 = arith.constant 0 : index
    %75 = vector.load %arg3[%c8, %c0_86, %c0_87] : memref<16x16x16xbf16, #tpu.memory_space<vmem>>, vector<1x16x16xbf16>
    %76 = vector.shape_cast %75 : vector<1x16x16xbf16> to vector<16x16xbf16>
    %cst_88 = arith.constant dense<0.000000e+00> : vector<256x16xf32>
    %77 = tpu.matmul %16, %76, %cst_88 {dimension_numbers = #tpu.dot_dimension_numbers<[1], [0], [0], [1], [0, 0, 1, 1], [], []>} : vector<256x16xbf16>, vector<16x16xbf16>, vector<256x16xf32> -> vector<256x16xf32>
    %78 = arith.addf %74, %77 : vector<256x16xf32>
    %c10 = arith.constant 10 : index
    %c0_89 = arith.constant 0 : index
    %c0_90 = arith.constant 0 : index
    %79 = vector.load %arg3[%c10, %c0_89, %c0_90] : memref<16x16x16xbf16, #tpu.memory_space<vmem>>, vector<1x16x16xbf16>
    %80 = vector.shape_cast %79 : vector<1x16x16xbf16> to vector<16x16xbf16>
    %cst_91 = arith.constant dense<0.000000e+00> : vector<256x16xf32>
    %81 = tpu.matmul %14, %80, %cst_91 {dimension_numbers = #tpu.dot_dimension_numbers<[1], [0], [0], [1], [0, 0, 1, 1], [], []>} : vector<256x16xbf16>, vector<16x16xbf16>, vector<256x16xf32> -> vector<256x16xf32>
    %82 = arith.addf %78, %81 : vector<256x16xf32>
    %c0_92 = arith.constant 0 : index
    %c0_93 = arith.constant 0 : index
    %83 = vector.load %arg4[%c0_92, %c0_93] : memref<1x16xf32, #tpu.memory_space<vmem>>, vector<1x16xf32>
    %84 = vector.broadcast %83 : vector<1x16xf32> to vector<256x16xf32>
    %85 = arith.mulf %37, %84 : vector<256x16xf32>
    %c0_94 = arith.constant 0 : index
    %c0_95 = arith.constant 0 : index
    %86 = vector.load %arg5[%c0_94, %c0_95] : memref<1x16xf32, #tpu.memory_space<vmem>>, vector<1x16xf32>
    %87 = vector.broadcast %86 : vector<1x16xf32> to vector<256x16xf32>
    %88 = arith.addf %85, %87 : vector<256x16xf32>
    %cst_96 = arith.constant 0.000000e+00 : f32
    %89 = vector.broadcast %cst_96 : f32 to vector<256x16xf32>
    %90 = arith.maximumf %88, %89 : vector<256x16xf32>
    %91 = vector.shape_cast %90 : vector<256x16xf32> to vector<1x16x16x16xf32>
    %92 = arith.truncf %91 : vector<1x16x16x16xf32> to vector<1x16x16x16xbf16>
    %c0_97 = arith.constant 0 : index
    %c0_98 = arith.constant 0 : index
    %c0_99 = arith.constant 0 : index
    %c0_100 = arith.constant 0 : index
    %c0_101 = arith.constant 0 : index
    %93 = vector.load %arg6[%c0_97, %c0_98, %c0_99, %c0_100, %c0_101] : memref<1x16x2x16x32xbf16, #tpu.memory_space<vmem>>, vector<1x16x1x16x16xbf16>
    %94 = vector.shape_cast %93 : vector<1x16x1x16x16xbf16> to vector<1x16x16x16xbf16>
    %95 = vector.shape_cast %92 : vector<1x16x16x16xbf16> to vector<1x16x1x16x16xbf16>
    tpu.vector_store %arg6[%c0_97, %c0_98, %c0_99, %c0_100, %c0_101], %95 {strides = array<i32>} : memref<1x16x2x16x32xbf16, #tpu.memory_space<vmem>>, vector<1x16x1x16x16xbf16>,
    %c0_102 = arith.constant 0 : index
    %c0_103 = arith.constant 0 : index
    %96 = vector.load %arg4[%c0_102, %c0_103] : memref<1x16xf32, #tpu.memory_space<vmem>>, vector<1x16xf32>
    %97 = vector.broadcast %96 : vector<1x16xf32> to vector<256x16xf32>
    %98 = arith.mulf %52, %97 : vector<256x16xf32>
    %c0_104 = arith.constant 0 : index
    %c0_105 = arith.constant 0 : index
    %99 = vector.load %arg5[%c0_104, %c0_105] : memref<1x16xf32, #tpu.memory_space<vmem>>, vector<1x16xf32>
    %100 = vector.broadcast %99 : vector<1x16xf32> to vector<256x16xf32>
    %101 = arith.addf %98, %100 : vector<256x16xf32>
    %cst_106 = arith.constant 0.000000e+00 : f32
    %102 = vector.broadcast %cst_106 : f32 to vector<256x16xf32>
    %103 = arith.maximumf %101, %102 : vector<256x16xf32>
    %104 = vector.shape_cast %103 : vector<256x16xf32> to vector<1x16x16x16xf32>
    %105 = arith.truncf %104 : vector<1x16x16x16xf32> to vector<1x16x16x16xbf16>
    %c0_107 = arith.constant 0 : index
    %c0_108 = arith.constant 0 : index
    %c0_109 = arith.constant 0 : index
    %c0_110 = arith.constant 0 : index
    %c16 = arith.constant 16 : index
    %106 = vector.load %arg6[%c0_107, %c0_108, %c0_109, %c0_110, %c16] : memref<1x16x2x16x32xbf16, #tpu.memory_space<vmem>>, vector<1x16x1x16x16xbf16>
    %107 = vector.shape_cast %106 : vector<1x16x1x16x16xbf16> to vector<1x16x16x16xbf16>
    %108 = vector.shape_cast %105 : vector<1x16x16x16xbf16> to vector<1x16x1x16x16xbf16>
    tpu.vector_store %arg6[%c0_107, %c0_108, %c0_109, %c0_110, %c16], %108 {strides = array<i32>} : memref<1x16x2x16x32xbf16, #tpu.memory_space<vmem>>, vector<1x16x1x16x16xbf16>,
    %c0_111 = arith.constant 0 : index
    %c0_112 = arith.constant 0 : index
    %109 = vector.load %arg4[%c0_111, %c0_112] : memref<1x16xf32, #tpu.memory_space<vmem>>, vector<1x16xf32>
    %110 = vector.broadcast %109 : vector<1x16xf32> to vector<256x16xf32>
    %111 = arith.mulf %67, %110 : vector<256x16xf32>
    %c0_113 = arith.constant 0 : index
    %c0_114 = arith.constant 0 : index
    %112 = vector.load %arg5[%c0_113, %c0_114] : memref<1x16xf32, #tpu.memory_space<vmem>>, vector<1x16xf32>
    %113 = vector.broadcast %112 : vector<1x16xf32> to vector<256x16xf32>
    %114 = arith.addf %111, %113 : vector<256x16xf32>
    %cst_115 = arith.constant 0.000000e+00 : f32
    %115 = vector.broadcast %cst_115 : f32 to vector<256x16xf32>
    %116 = arith.maximumf %114, %115 : vector<256x16xf32>
    %117 = vector.shape_cast %116 : vector<256x16xf32> to vector<1x16x16x16xf32>
    %118 = arith.truncf %117 : vector<1x16x16x16xf32> to vector<1x16x16x16xbf16>
    %c0_116 = arith.constant 0 : index
    %c0_117 = arith.constant 0 : index
    %c1_118 = arith.constant 1 : index
    %c0_119 = arith.constant 0 : index
    %c0_120 = arith.constant 0 : index
    %119 = vector.load %arg6[%c0_116, %c0_117, %c1_118, %c0_119, %c0_120] : memref<1x16x2x16x32xbf16, #tpu.memory_space<vmem>>, vector<1x16x1x16x16xbf16>
    %120 = vector.shape_cast %119 : vector<1x16x1x16x16xbf16> to vector<1x16x16x16xbf16>
    %121 = vector.shape_cast %118 : vector<1x16x16x16xbf16> to vector<1x16x1x16x16xbf16>
    tpu.vector_store %arg6[%c0_116, %c0_117, %c1_118, %c0_119, %c0_120], %121 {strides = array<i32>} : memref<1x16x2x16x32xbf16, #tpu.memory_space<vmem>>, vector<1x16x1x16x16xbf16>,
    %c0_121 = arith.constant 0 : index
    %c0_122 = arith.constant 0 : index
    %122 = vector.load %arg4[%c0_121, %c0_122] : memref<1x16xf32, #tpu.memory_space<vmem>>, vector<1x16xf32>
    %123 = vector.broadcast %122 : vector<1x16xf32> to vector<256x16xf32>
    %124 = arith.mulf %82, %123 : vector<256x16xf32>
    %c0_123 = arith.constant 0 : index
    %c0_124 = arith.constant 0 : index
    %125 = vector.load %arg5[%c0_123, %c0_124] : memref<1x16xf32, #tpu.memory_space<vmem>>, vector<1x16xf32>
    %126 = vector.broadcast %125 : vector<1x16xf32> to vector<256x16xf32>
    %127 = arith.addf %124, %126 : vector<256x16xf32>
    %cst_125 = arith.constant 0.000000e+00 : f32
    %128 = vector.broadcast %cst_125 : f32 to vector<256x16xf32>
    %129 = arith.maximumf %127, %128 : vector<256x16xf32>
    %130 = vector.shape_cast %129 : vector<256x16xf32> to vector<1x16x16x16xf32>
    %131 = arith.truncf %130 : vector<1x16x16x16xf32> to vector<1x16x16x16xbf16>
    %c0_126 = arith.constant 0 : index
    %c0_127 = arith.constant 0 : index
    %c1_128 = arith.constant 1 : index
    %c0_129 = arith.constant 0 : index
    %c16_130 = arith.constant 16 : index
    %132 = vector.load %arg6[%c0_126, %c0_127, %c1_128, %c0_129, %c16_130] : memref<1x16x2x16x32xbf16, #tpu.memory_space<vmem>>, vector<1x16x1x16x16xbf16>
    %133 = vector.shape_cast %132 : vector<1x16x1x16x16xbf16> to vector<1x16x16x16xbf16>
    %134 = vector.shape_cast %131 : vector<1x16x16x16xbf16> to vector<1x16x1x16x16xbf16>
    tpu.vector_store %arg6[%c0_126, %c0_127, %c1_128, %c0_129, %c16_130], %134 {strides = array<i32>} : memref<1x16x2x16x32xbf16, #tpu.memory_space<vmem>>, vector<1x16x1x16x16xbf16>,
    return
  }
  func.func @transform_0(%arg0: i32, %arg1: i32) -> (i32, i32, i32, i32) {
    %c0_i32 = arith.constant 0 : i32
    %c0_i32_0 = arith.constant 0 : i32
    %c0_i32_1 = arith.constant 0 : i32
    return %arg0, %c0_i32, %c0_i32_0, %arg1 : i32, i32, i32, i32
  }
  func.func @transform_1(%arg0: i32, %arg1: i32) -> (i32, i32, i32) {
    %c0_i32 = arith.constant 0 : i32
    %c0_i32_0 = arith.constant 0 : i32
    %c0_i32_1 = arith.constant 0 : i32
    return %c0_i32, %arg1, %c0_i32_0 : i32, i32, i32
  }
  func.func @transform_2(%arg0: i32, %arg1: i32) -> (i32, i32) {
    %c0_i32 = arith.constant 0 : i32
    %c0_i32_0 = arith.constant 0 : i32
    %c0_i32_1 = arith.constant 0 : i32
    return %c0_i32, %c0_i32_0 : i32, i32
  }
  func.func @transform_3(%arg0: i32, %arg1: i32) -> (i32, i32) {
    %c0_i32 = arith.constant 0 : i32
    %c0_i32_0 = arith.constant 0 : i32
    %c0_i32_1 = arith.constant 0 : i32
    return %c0_i32, %c0_i32_0 : i32, i32
  }
  func.func @transform_4(%arg0: i32, %arg1: i32) -> (i32, i32, i32, i32, i32) {
    %c0_i32 = arith.constant 0 : i32
    %c0_i32_0 = arith.constant 0 : i32
    %c0_i32_1 = arith.constant 0 : i32
    %c0_i32_2 = arith.constant 0 : i32
    %c0_i32_3 = arith.constant 0 : i32
    return %arg0, %c0_i32, %c0_i32_0, %c0_i32_1, %c0_i32_2 : i32, i32, i32, i32, i32
  }
}

module attributes {stable_mosaic.version = 11 : i64} {
  func.func @_conv1x1_kernel(%arg0: i32, %arg1: i32, %arg2: memref<1x1024x16xbf16, #tpu.memory_space<vmem>>, %arg3: memref<128x16xbf16, #tpu.memory_space<vmem>>, %arg4: memref<128x1xf32, #tpu.memory_space<vmem>>, %arg5: memref<1x128x1024xf32, #tpu.memory_space<vmem>>) attributes {dimension_semantics = [#tpu.dimension_semantics<parallel>, #tpu.dimension_semantics<parallel>], iteration_bounds = array<i64: 2, 1>, scalar_prefetch = 0 : i64, scratch_operands = 0 : i64, tpu.core_type = #tpu.core_type<tc>, window_params = [{transform_indices = @transform_0, window_bounds = array<i64: 1, 1024, 16>}, {pipeline_mode = #tpu.pipeline_mode<synchronous>, transform_indices = @transform_1, window_bounds = array<i64: 128, 16>}, {pipeline_mode = #tpu.pipeline_mode<synchronous>, transform_indices = @transform_2, window_bounds = array<i64: 128, 1>}, {transform_indices = @transform_3, window_bounds = array<i64: 1, 128, 1024>}]} {
    %c0 = arith.constant 0 : index
    %c0_0 = arith.constant 0 : index
    %0 = vector.load %arg3[%c0, %c0_0] : memref<128x16xbf16, #tpu.memory_space<vmem>>, vector<128x16xbf16>
    %c0_1 = arith.constant 0 : index
    %c0_2 = arith.constant 0 : index
    %c0_3 = arith.constant 0 : index
    %1 = vector.load %arg2[%c0_1, %c0_2, %c0_3] : memref<1x1024x16xbf16, #tpu.memory_space<vmem>>, vector<1x1024x16xbf16>
    %2 = vector.shape_cast %1 : vector<1x1024x16xbf16> to vector<1024x16xbf16>
    %cst = arith.constant dense<0.000000e+00> : vector<128x1024xf32>
    %3 = tpu.matmul %0, %2, %cst {dimension_numbers = #tpu.dot_dimension_numbers<[1], [1], [0], [0], [0, 0, 1, 0], [], []>} : vector<128x16xbf16>, vector<1024x16xbf16>, vector<128x1024xf32> -> vector<128x1024xf32>
    %c0_4 = arith.constant 0 : index
    %c0_5 = arith.constant 0 : index
    %4 = vector.load %arg4[%c0_4, %c0_5] : memref<128x1xf32, #tpu.memory_space<vmem>>, vector<128x1xf32>
    %5 = vector.broadcast %4 : vector<128x1xf32> to vector<128x1024xf32>
    %6 = arith.addf %3, %5 : vector<128x1024xf32>
    %c0_6 = arith.constant 0 : index
    %c0_7 = arith.constant 0 : index
    %c0_8 = arith.constant 0 : index
    %7 = vector.load %arg5[%c0_6, %c0_7, %c0_8] : memref<1x128x1024xf32, #tpu.memory_space<vmem>>, vector<1x128x1024xf32>
    %8 = vector.shape_cast %7 : vector<1x128x1024xf32> to vector<128x1024xf32>
    %9 = vector.shape_cast %6 : vector<128x1024xf32> to vector<1x128x1024xf32>
    tpu.vector_store %arg5[%c0_6, %c0_7, %c0_8], %9 {strides = array<i32>} : memref<1x128x1024xf32, #tpu.memory_space<vmem>>, vector<1x128x1024xf32>,
    return
  }
  func.func @transform_0(%arg0: i32, %arg1: i32) -> (i32, i32, i32) {
    %c0_i32 = arith.constant 0 : i32
    %c0_i32_0 = arith.constant 0 : i32
    return %arg0, %arg1, %c0_i32 : i32, i32, i32
  }
  func.func @transform_1(%arg0: i32, %arg1: i32) -> (i32, i32) {
    %c0_i32 = arith.constant 0 : i32
    %c0_i32_0 = arith.constant 0 : i32
    %c0_i32_1 = arith.constant 0 : i32
    return %c0_i32, %c0_i32_0 : i32, i32
  }
  func.func @transform_2(%arg0: i32, %arg1: i32) -> (i32, i32) {
    %c0_i32 = arith.constant 0 : i32
    %c0_i32_0 = arith.constant 0 : i32
    %c0_i32_1 = arith.constant 0 : i32
    return %c0_i32, %c0_i32_0 : i32, i32
  }
  func.func @transform_3(%arg0: i32, %arg1: i32) -> (i32, i32, i32) {
    %c0_i32 = arith.constant 0 : i32
    %c0_i32_0 = arith.constant 0 : i32
    return %arg0, %c0_i32, %arg1 : i32, i32, i32
  }
}

</mosaic_0001>

<bundles_post_ra>
// kernel: a_call__.4
= control target key start
LH: loop header
LB: loop body
LE: loop exit
PB: predicated region body
PF: predicated region fallthrough
CT: control target
= control target key end

     0   :  { %9 = vsyncpa [#allocation4], 0  ;;  %s2789_s15 = smov 0   ;;  %s2791_s16 = smov 0   ;;  %s3138_s0 = inlined_call_operand.vmem [shape: bf16[2,4,4,32], index: 0, kind: input, shape index: {}]   ;;  %s3139_s1 = inlined_call_operand.hbm [shape: bf16[16,32,16], index: 1, kind: input, shape index: {}]   ;;  %s3140_s2 = inlined_call_operand.vmem [shape: f32[1,16], index: 2, kind: input, shape index: {}]   ;;  %s3141_s3 = inlined_call_operand.vmem [shape: f32[1,16], index: 3, kind: input, shape index: {}]   ;;  %s3142_s4 = inlined_call_operand.vmem [shape: bf16[2,4,2,4,32], index: 4, kind: output, shape index: {}]  }
   0x1   :  { %s2793_s17 = smov 0  }
   0x2 LB: > { %s2271_s18 = sadd.s32 4294967295, %s2754_s17   ;;  %s27_s19 = sadd.s32 1, %s2750_s16  ;;  %s2754_s17 = sphi %s2793_s17, %s15_s17   ;;  %s2750_s16 = sphi %s2791_s16, %s3160_s16   ;;  %s2746_s15 = sphi %s2789_s15, %s3159_s15  }
   0x3   : > { %p29_p0 = scmp.ge.s32.totalorder %s27_s19, 2  ;;  %p2273_p1 = scmp.ge.s32.totalorder %s2754_s17, 1 }
   0x4   : > { %p154_p2 = scmp.lt.s32.totalorder %s2754_s17, 3  ;;  %p2814_p4 = scmp.eq.s32.totalorder %s2271_s18, 0 }
   0x5   : > { %s3162_s19 = smov (%p29_p0, %s27_s19), 0  ;;  %s2756_s22 = smov [#allocation3]  }
   0x6   : > { %p2810_p3 = pnand %p2273_p1, %p154_p2  ;;  %s169_s23 = sshll.u32 %s2756_s22, 4  ;;  %s170_s23 = int_to_ptr.vmem [resolvable:$true] %s169_s23 }
   0x7   : > { %s3147_s21 = scalar_select %p2814_p4, 1, 0 }
   0x8   : > { %s3146_s20 = scalar_select %p2810_p3, 1, 0 }
   0x9   : > { %p2618_p5 = pneg %p2810_p3  ;;  %s2700_s27 = scalar_lea.hbm %s3139_s1, 4096 }
   0xa   : > { %p2701_p7 = scmp.ne.s32.totalorder %s3139_s1, %s2700_s27  ;;  %p2707_p11 = scmp.lt.u32.totalorder %s2700_s27, %s3139_s1 }
   0xb   : > { %p2822_p6 = pnand %p2814_p4, %p2618_p5 }
   0xd   : > { %p2702_p8 = pneg %p2822_p6 }
   0xf   : > { %p2703_p9 = pnand %p2702_p8, %p2701_p7 }
  0x11   : > { %p2704_p10 = pneg %p2703_p9 }
  0x13   : > { %p2709_p12 = pnand %p2707_p11, %p2704_p10 }
  0x15   : > { %2712 = shalt.err (!%p2709_p12)
}
  0x16   : > { %s2713_s6 = scalar_lea.vmem %s170_s23, 4096  ;;  %p2721_p2 = scmp.lt.s32.totalorder %s170_s23, %s170_s23 }
  0x17   : > { %p2714_p13 = scmp.ne.s32.totalorder %s170_s23, %s2713_s6  ;;  %p2722_p5 = scmp.lt.s32.totalorder %s2713_s6, %s2713_s6 }
  0x19   : > { %p2716_p0 = pnand %p2714_p13, %p2702_p8  ;;  %p2723_p4 = por %p2722_p5, %p2721_p2 }
  0x1b   : > { %p2717_p1 = pneg %p2716_p0 }
  0x1d   : > { %p2724_p3 = pnand %p2723_p4, %p2717_p1 }
  0x1f   : > { %2727 = shalt.err (!%p2724_p3)
}
  0x20   : > { %s2757_s7 = smov 64   ;;  %s2758_s8 = smov 4  }
  0x21   : > { %2621 = dma.hbm_to_vmem [thread:$0]  (!%p2822_p6), %s3139_s1, 4096, %s170_s23, [#allocation4], %s2757_s7, %s2757_s7, %s2758_s8  }
  0x22   : > { %p3149_p7 = scmp.ne.s32.totalorder %s3146_s20, 0 }
  0x23   : > { %p3150_p9 = scmp.ne.s32.totalorder (!%p3149_p7), %s3147_s21, 0 }
  0x24   : > { %202 = sbr.rel (%p3149_p7) target bundleno = 511 (0x1ff), region = 36 }
  0x2b   : > { %2741 = dma.done.wait (%p3150_p9), [#allocation4], 4096  }
  0x2c   : > { %2743 = vsyncadd (%p3150_p9), [#allocation4], 4294963200  ;;  %p231_p3 = scmp.lt.s32.totalorder %s2746_s15, 1  ;;  %vm250_vm0 = vcmask 256000   ;;  %v2759_v0 = vmov 0.0   ;;  %vm2760_vm1 = vmmov 0   ;;  %v843_v31 = vlaneseq }
  0x2d   : > { %2470 = vmatprep.subr.bf16.mxu1 %v2759_v0  ;;  %2474 = vmatprep.mubr.msk.bf16.mxu1 %vm2760_vm1, %v2759_v0  ;;  %v2761_v1 = vmov 0   ;;  %v2656_v2 = vld [vmem:[#allocation3 + $0x60] sm:$0xff]   ;;  %vm327_vm2 = vsmask.f32 2306  ;;  %v2657_v3 = vld [vmem:[#allocation3 + $0x68] sm:$0xff]   ;;  %vm488_vm8 = vcmask 1040384  }
  0x2e   : > { %s3164_s15 = smov (!%p231_p3, %s2746_s15), 1  ;;  %252 = vst.msk [vmem:[#allocation2 + $0x4] sm:$0x7] %vm250_vm0, %v2761_v1  ;;  %253 = vst.msk [vmem:[#allocation2 + $0x8] sm:$0x7] %vm250_vm0, %v2761_v1  ;;  %2438 = vmatprep.subr.bf16.mxu0 %v2759_v0  ;;  %2442 = vmatprep.mubr.msk.bf16.mxu0 %vm2760_vm1, %v2759_v0  ;;  %v844_v34 = vshrl.u32 %v843_v31, 7 }
  0x2f   : > { %254 = vst.msk [vmem:[#allocation2 + $0xc] sm:$0x7] %vm250_vm0, %v2761_v1  ;;  %255 = vst.msk [vmem:[#allocation2 + $0x10] sm:$0x7] %vm250_vm0, %v2761_v1  ;;  %s2388_s11 = sshll.u32 %s3164_s15, 3  ;;  %2471 = vmatpush3.bf16.msra.mxu1 %v2656_v2  ;;  %vm489_vm9 = vcmask 1042434  }
  0x30   : > { %251 = vst.msk [vmem:[#allocation2] sm:$0x7] %vm250_vm0, %v2761_v1  ;;  %256 = vst.msk [vmem:[#allocation2 + $0x14] sm:$0x7] %vm250_vm0, %v2761_v1  ;;  %s238_s14 = scalar_lea.vmem %s3138_s0, %s2388_s11  ;;  %2472 = vmatprep.subr.bf16.mxu1 %v2759_v0  ;;  %vm385_vm4 = vsmask.f32 1280 }
  0x31   : > { %v2282_v4 = vld.sshfl [vmem:[%s238_s14] sm:$0x3 pattern:$0x76325410]  ;;  %vm2871_vm3 = vmand %vm250_vm0, %vm327_vm2  ;;  %vm386_vm5 = vsmask.f32 3336 }
  0x32   : > { %v2283_v5 = vld.sshfl [vmem:[%s238_s14 + $0x2] sm:$0x3 pattern:$0x76325410]  ;;  %v294_v6 = vshrl.u32 %v2282_v4, 16  ;;  %v297_v7 = vshll.u32 %v2282_v4, 16  ;;  %vm2884_vm10 = vmor %vm385_vm4, %vm386_vm5 }
  0x33   : > { %v2284_v8 = vld.sshfl [vmem:[%s238_s14 + $0x4] sm:$0x3 pattern:$0x76325410]  ;;  %v301_v9 = vshrl.u32 %v2283_v5, 16  ;;  %v304_v10 = vshll.u32 %v2283_v5, 16  ;;  %2473 = vmatpush3.bf16.msra.mxu1 %v2657_v3  ;;  %vm490_vm14 = vmor %vm488_vm8, %vm489_vm9 }
  0x34   : > { %v2285_v12 = vld.sshfl [vmem:[%s238_s14 + $0x6] sm:$0x3 pattern:$0x76325410]  ;;  %v296_v13 = vrot.slane %v294_v6, 7  ;;  %v308_v14 = vshrl.u32 %v2284_v8, 16  ;;  %2478 = vmatprep.subr.bf16.mxu1 %v2759_v0 }
  0x35   : > { %v329_v11 = vld [vmem:[#allocation2 + $0x4] sm:$0x7]  ;;  %v303_v15 = vrot.slane %v301_v9, 7  ;;  %v311_v16 = vshll.u32 %v2284_v8, 16  ;;  %v315_v17 = vshrl.u32 %v2285_v12, 16  ;;  %v318_v18 = vshll.u32 %v2285_v12, 16 }
  0x36   : > { %v332_v20 = vld [vmem:[#allocation2 + $0x8] sm:$0x7]  ;;  %v299_v21 = vor.u32 %v297_v7, %v296_v13  ;;  %v310_v22 = vrot.slane %v308_v14, 7  ;;  %v335_v23 = vld [vmem:[#allocation2 + $0xc] sm:$0x7]  ;;  %vm491_vm13 = vcmask 1044484  }
  0x37   : > { %v338_v24 = vld [vmem:[#allocation2 + $0x10] sm:$0x7]  ;;  %v306_v25 = vor.u32 %v304_v10, %v303_v15  ;;  %v317_v26 = vrot.slane %v315_v17, 7  ;;  %vm388_vm6 = vsmask.f32 5392  ;;  %vm492_vm15 = vmor %vm490_vm14, %vm491_vm13  ;;  %vm493_vm0 = vcmask 1046534  }
  0x38   : > { %v313_v27 = vor.u32 %v311_v16, %v310_v22  ;;  %v330_v28 = vsel %vm2871_vm3, %v299_v21, %v329_v11  ;;  %vm390_vm7 = vsmask.f32 7448  ;;  %v2762_v49 = vmov 1983009808   ;;  %vm389_vm11 = vmor %vm2884_vm10, %vm388_vm6  ;;  %s2389_s23 = sshll.u32 %s3164_s15, 4  ;;  %s2763_s24 = smov 16  }
  0x39   : > { %v320_v29 = vor.u32 %v318_v18, %v317_v26  ;;  %331 = vst [vmem:[#allocation2 + $0x4] sm:$0x7] %v330_v28  ;;  %v333_v30 = vsel %vm2871_vm3, %v306_v25, %v332_v20  ;;  %v841_v50 = vunpack.c.l.s4 %v2762_v49  ;;  %vm2892_vm12 = vmor %vm389_vm11, %vm390_vm7  ;;  %s3076_s27 = scalar_lea.vmem %s3142_s4, %s2389_s23  ;;  %vm2069_vm4 = vcmask 255104  }
  0x3a   : > { %334 = vst [vmem:[#allocation2 + $0x8] sm:$0x7] %v333_v30  ;;  %v336_v32 = vsel %vm2871_vm3, %v313_v27, %v335_v23  ;;  %vm2915_vm2 = vmor %vm492_vm15, %vm493_vm0 }
  0x3b   : > { %337 = vst [vmem:[#allocation2 + $0xc] sm:$0x7] %v336_v32  ;;  %v339_v33 = vsel %vm2871_vm3, %v320_v29, %v338_v24  ;;  %v842_v11 = vunpack.c.0.s8 %v841_v50  ;;  %vm867_vm3 = vcmask 261120  }
  0x3c   : > { %340 = vst [vmem:[#allocation2 + $0x10] sm:$0x7] %v339_v33 }
  0x3d   : > { %v2907_v25 = vsub.s32 %v842_v11, %v844_v34 }
  0x40   : > { %v2298_v35 = vld.sshfl [vmem:[#allocation2 + $0x4] sm:$0x13 pattern:$0x76325410] }
  0x41   : > { %v2299_v37 = vld.sshfl [vmem:[#allocation2 + $0x8] sm:$0x13 pattern:$0x76325410]  ;;  %v530_v38 = vcombine.high %v2298_v35, %v2298_v35  ;;  %v556_v39 = vshrl.u32 %v2298_v35, 16  ;;  %v559_v40 = vshll.u32 %v2298_v35, 16 }
  0x42   : > { %v2300_v41 = vld.sshfl [vmem:[#allocation2 + $0xc] sm:$0x13 pattern:$0x76325410]  ;;  %v538_v42 = vcombine.high %v2299_v37, %v2299_v37  ;;  %v570_v43 = vshrl.u32 %v2299_v37, 16  ;;  %v573_v44 = vshll.u32 %v2299_v37, 16 }
  0x43   : > { %v2301_v45 = vld.sshfl [vmem:[#allocation2 + $0x10] sm:$0x13 pattern:$0x76325410]  ;;  %v546_v46 = vcombine.high %v2300_v41, %v2300_v41  ;;  %v558_v47 = vrot.slane %v556_v39, 6  ;;  %v561_v48 = vrot.slane %v559_v40, 7 }
  0x44   : > { %v554_v51 = vcombine.high %v2301_v45, %v2301_v45  ;;  %v565_v52 = vshll.u32 %v530_v38, 16  ;;  %v572_v53 = vrot.slane %v570_v43, 6  ;;  %v575_v54 = vrot.slane %v573_v44, 7 }
  0x45   : > { %v562_v55 = vor.u32 %v561_v48, %v558_v47  ;;  %v579_v56 = vshll.u32 %v538_v42, 16  ;;  %v584_v57 = vshrl.u32 %v2300_v41, 16  ;;  %v587_v58 = vshll.u32 %v2300_v41, 16  ;;  %v2671_v42 = vld [vmem:[#allocation3 + $0x70] sm:$0xff]   ;;  %v2658_v47 = vld [vmem:[#allocation3 + $0x40] sm:$0xff]  }
  0x46   : > { %v567_v59 = vrot.slane %v565_v52, 7  ;;  %v576_v60 = vor.u32 %v575_v54, %v572_v53  ;;  %v593_v61 = vshll.u32 %v546_v46, 16  ;;  %v598_v62 = vshrl.u32 %v2301_v45, 16  ;;  %2439 = vmatpush3.bf16.msra.mxu0 %v2671_v42  ;;  %v2673_v46 = vld [vmem:[#allocation3 + $0x78] sm:$0xff]  }
  0x47   : > { %v563_v1 = vrot.slane %v562_v55, 2  ;;  %v581_v2 = vrot.slane %v579_v56, 7  ;;  %v586_v3 = vrot.slane %v584_v57, 6  ;;  %v589_v4 = vrot.slane %v587_v58, 7  ;;  %2440 = vmatprep.subr.bf16.mxu0 %v2759_v0 }
  0x48   : > { %v577_v5 = vrot.slane %v576_v60, 2  ;;  %v600_v6 = vrot.slane %v598_v62, 6  ;;  %v601_v7 = vshll.u32 %v2301_v45, 16  ;;  %v595_v9 = vrot.slane %v593_v61, 7  ;;  %v2659_v60 = vld [vmem:[#allocation3 + $0x48] sm:$0xff]  }
  0x49   : > { %v590_v8 = vor.u32 %v589_v4, %v586_v3  ;;  %v607_v10 = vshll.u32 %v554_v51, 16  ;;  %v2302_v12 = vld.sshfl [vmem:[#allocation2 + $0x4] sm:$0x12 pattern:$0x76325410]  ;;  %v2900_v13 = vsel %vm2892_vm12, %v563_v1, %v567_v59  ;;  %v2676_v3 = vld [vmem:[#allocation3 + $0x50] sm:$0xff]  }
  0x4a   : > { %v2904_v14 = vsel %vm2892_vm12, %v577_v5, %v581_v2  ;;  %v603_v15 = vrot.slane %v601_v7, 7  ;;  %v2303_v16 = vld.sshfl [vmem:[#allocation2 + $0x8] sm:$0x12 pattern:$0x76325410]  ;;  %v626_v17 = vcombine.high %v2302_v12, %v2302_v12  ;;  %v2306_v28 = vrot.slane %v2302_v12, 9  ;;  %2441 = vmatpush3.bf16.msra.mxu0 %v2673_v46 }
  0x4b   : > { %v591_v18 = vrot.slane %v590_v8, 2  ;;  %v2304_v19 = vld.sshfl [vmem:[#allocation2 + $0xc] sm:$0x12 pattern:$0x76325410]  ;;  %v634_v20 = vcombine.high %v2303_v16, %v2303_v16  ;;  %v609_v22 = vrot.slane %v607_v10, 7  ;;  %v912_v26 = vcombine.low %v2900_v13, %v2904_v14  ;;  %2446 = vmatprep.subr.bf16.mxu0 %v2759_v0 }
  0x4c   : > { %v604_v21 = vor.u32 %v603_v15, %v600_v6  ;;  %v2305_v23 = vld.sshfl [vmem:[#allocation2 + $0x10] sm:$0x12 pattern:$0x76325410]  ;;  %v642_v24 = vcombine.high %v2304_v19, %v2304_v19  ;;  %v653_v31 = vrot.slane %v626_v17, 7  ;;  %v2307_v32 = vrot.slane %v2303_v16, 9 }
  0x4d   : > { %v650_v27 = vcombine.high %v2305_v23, %v2305_v23  ;;  %v2913_v29 = vsel %vm2892_vm12, %v591_v18, %v595_v9  ;;  %v657_v35 = vrot.slane %v634_v20, 7  ;;  %v2308_v36 = vrot.slane %v2304_v19, 9  ;;  %v2290_v40 = vld.sshfl [vmem:[#allocation2] sm:$0x12 pattern:$0x76325410] }
  0x4e   : > { %v605_v30 = vrot.slane %v604_v21, 2  ;;  %v661_v34 = vrot.slane %v642_v24, 7  ;;  %v2309_v37 = vrot.slane %v2305_v23, 9  ;;  %v920_v44 = vrot.slane %v912_v26, %v2907_v25  ;;  %v2677_v8 = vld [vmem:[#allocation3 + $0x58] sm:$0xff]   ;;  %v2660_v15 = vld [vmem:[#allocation3 + $0xc0] sm:$0xff]   ;;  %v2661_v17 = vld [vmem:[#allocation3 + $0xc8] sm:$0xff]  }
  0x4f   : > { %v665_v39 = vrot.slane %v650_v27, 7  ;;  %v2286_v41 = vld.sshfl [vmem:[#allocation2] sm:$0x13 pattern:$0x76325410]  ;;  %v654_v48 = vsel %vm2915_vm2, %v2306_v28, %v653_v31  ;;  %v658_v49 = vsel %vm2915_vm2, %v2307_v32, %v657_v35  ;;  %v463_v53 = vcombine.high %v2290_v40, %v2290_v40  ;;  %v2678_v24 = vld [vmem:[#allocation3 + $0xd0] sm:$0xff]  }
  0x50   : > { %v2921_v38 = vsel %vm2892_vm12, %v605_v30, %v609_v22  ;;  %v662_v50 = vsel %vm2915_vm2, %v2308_v36, %v661_v34  ;;  %v393_v54 = vshrl.u32 %v2286_v41, 16  ;;  %v396_v55 = vshll.u32 %v2286_v41, 16  ;;  %v2694_v56 = vld.sshfl [vmem:[#allocation2 + $0x4] sm:$0xf pattern:$0x76325410] }
  0x51   : > { %v913_v43 = vcombine.low %v2913_v29, %v2921_v38  ;;  %v2936_v51 = vsel %vm2915_vm2, %v2309_v37, %v665_v39  ;;  %v1212_v57 = vcombine.low %v654_v48, %v658_v49  ;;  %v2695_v59 = vld.sshfl [vmem:[#allocation2 + $0xc] sm:$0xf pattern:$0x76325410]  ;;  %v2294_v61 = vrot.slane %v2290_v40, 9  ;;  %v2662_v39 = vld [vmem:[#allocation3 + $0xe0] sm:$0xff]  }
  0x52   : > { %v1213_v58 = vcombine.low %v662_v50, %v2936_v51  ;;  %v497_v62 = vrot.slane %v463_v53, 7  ;;  %v395_v1 = vrot.slane %v393_v54, 6  ;;  %v398_v2 = vrot.slane %v396_v55, 7  ;;  %v2679_v35 = vld [vmem:[#allocation3 + $0xd8] sm:$0xff]   ;;  %v2664_v54 = vld [vmem:[#allocation3 + $0x20] sm:$0xff]  }
  0x53   : > { %v927_v45 = vrot.slane %v913_v43, %v2907_v25  ;;  %v1220_v4 = vrot.slane %v1212_v57, %v2907_v25  ;;  %v360_v6 = vcombine.high %v2286_v41, %v2286_v41  ;;  %v2949_v7 = vcombine.low %v2694_v56, %v2695_v59  ;;  %v2313_v12 = vld.sshfl [vmem:[#allocation2 + $0x14] sm:$0x13 pattern:$0x76325410]  ;;  %v2665_v56 = vld [vmem:[#allocation3 + $0x28] sm:$0xff]  }
  0x54   : > { %v1227_v5 = vrot.slane %v1213_v58, %v2907_v25  ;;  %v399_v10 = vor.u32 %v398_v2, %v395_v1  ;;  %v498_v16 = vsel %vm2915_vm2, %v2294_v61, %v497_v62  ;;  %v1291_v19 = vcombine.low %v658_v49, %v662_v50  ;;  %v2697_v49 = vld.sshfl [vmem:[#allocation2 + $0x8] sm:$0xf pattern:$0x76325410]  ;;  %v2681_v50 = vld [vmem:[#allocation3 + $0xf8] sm:$0xff]   ;;  %v2666_v1 = vld [vmem:[#allocation3] sm:$0xff]  }
  0x55   : > { %v2938_v52 = vcombine.low %v920_v44, %v927_v45  ;;  %2443 = vmatmul.mubr.msk.bf16.vlgmr.msra.gmra.mrb[0].mxu0 %vm867_vm3, %v2949_v7  ;;  %v402_v11 = vshll.u32 %v360_v6, 16  ;;  %v1290_v18 = vcombine.low %v498_v16, %v654_v48  ;;  %v755_v22 = vshrl.u32 %v2313_v12, 16  ;;  %v2663_v44 = vld [vmem:[#allocation3 + $0xe8] sm:$0xff]   ;;  %v2684_v61 = vld [vmem:[#allocation3 + $0x30] sm:$0xff]   ;;  %v2691_v16 = vld [vmem:[#allocation3 + $0x98] sm:$0xff]  }
  0x56   : > { %2447 = vmatpush3.bf16.msra.mxu0 %v2676_v3  ;;  %2450 = vmatprep.mubr.msk.bf16.mxu0 %vm2760_vm1, %v2759_v0  ;;  %v2956_v9 = vcombine.low %v1220_v4, %v1227_v5  ;;  %v400_v20 = vrot.slane %v399_v10, 2  ;;  %v758_v23 = vshll.u32 %v2313_v12, 16  ;;  %v2969_v27 = vrot.slane %v1291_v19, %v2907_v25  ;;  %v2696_v48 = vld.sshfl [vmem:[#allocation2] sm:$0xf pattern:$0x76325410] }
  0x57   : > { %2475 = vmatmul.mubr.msk.bf16.vlgmr.msra.gmra.mrb[0].mxu1 %vm867_vm3, %v2938_v52  ;;  %2448 = vmatprep.subr.bf16.mxu0 %v2759_v0  ;;  %v404_v21 = vrot.slane %v402_v11, 7  ;;  %v1298_v26 = vrot.slane %v1290_v18, %v2907_v25  ;;  %v711_v30 = vcombine.high %v2313_v12, %v2313_v12  ;;  %v757_v31 = vrot.slane %v755_v22, 6  ;;  %v2698_v59 = vld.sshfl [vmem:[#allocation2 + $0x8] sm:$0xf pattern:$0x76325410] }
  0x58   : > { %2479 = vmatpush3.bf16.msra.mxu1 %v2658_v47  ;;  %2482 = vmatprep.mubr.msk.bf16.mxu1 %vm2760_vm1, %v2759_v0  ;;  %v760_v32 = vrot.slane %v758_v23, 7  ;;  %v991_v37 = vcombine.low %v2904_v14, %v2913_v29  ;;  %v2680_v29 = vld [vmem:[#allocation3 + $0xf0] sm:$0xff]   ;;  %v2317_v47 = vld.sshfl [vmem:[#allocation2 + $0x14] sm:$0x12 pattern:$0x76325410] }
  0x59   : > { %2480 = vmatprep.subr.bf16.mxu1 %v2759_v0  ;;  %v405_v28 = vsel %vm2892_vm12, %v400_v20, %v404_v21  ;;  %v1306_v36 = vcombine.low %v1298_v26, %v2969_v27  ;;  %v764_v41 = vshll.u32 %v711_v30, 16  ;;  %v807_v55 = vcombine.high %v2317_v47, %v2317_v47  ;;  %v2685_v3 = vld [vmem:[#allocation3 + $0x38] sm:$0xff]   ;;  %v2667_v5 = vld [vmem:[#allocation3 + $0x8] sm:$0xff]   ;;  %v2688_v6 = vld [vmem:[#allocation3 + $0x10] sm:$0xff]  }
  0x5a   : > { %2449 = vmatpush3.bf16.msra.mxu0 %v2677_v8  ;;  %v990_v34 = vcombine.low %v405_v28, %v2900_v13  ;;  %v761_v40 = vor.u32 %v760_v32, %v757_v31  ;;  %v1005_v43 = vrot.slane %v991_v37, %v2907_v25  ;;  %v2321_v57 = vrot.slane %v2317_v47, 9  ;;  %v2668_v11 = vld [vmem:[#allocation3 + $0x80] sm:$0xff]   ;;  %v2669_v12 = vld [vmem:[#allocation3 + $0x88] sm:$0xff]   ;;  %v2692_v19 = vld [vmem:[#allocation3 + $0xb0] sm:$0xff]  }
  0x5b   : > { %2454 = vmatprep.subr.bf16.mxu0 %v2759_v0  ;;  %v766_v14 = vrot.slane %v764_v41, 7  ;;  %v822_v58 = vrot.slane %v807_v55, 7  ;;  %v2672_v18 = vld [vmem:[#allocation3 + $0xa8] sm:$0xff]   ;;  %v2693_v20 = vld [vmem:[#allocation3 + $0xb8] sm:$0xff]  }
  0x5c   : > { %2481 = vmatpush3.bf16.msra.mxu1 %v2659_v60  ;;  %v998_v42 = vrot.slane %v990_v34, %v2907_v25  ;;  %v762_v13 = vrot.slane %v761_v40, 2  ;;  %v2699_v60 = vld.sshfl [vmem:[#allocation2 + $0x10] sm:$0xf pattern:$0x76325410] }
  0x5d   : > { %2486 = vmatprep.subr.bf16.mxu1 %v2759_v0  ;;  %v823_v2 = vsel %vm2915_vm2, %v2321_v57, %v822_v58  ;;  %v1455_v33 = vcombine.low %v2698_v59, %v2699_v60  ;;  %v3057_v22 = vld [vmem:[%s3141_s3] ss:$0 sm:$0xff] }
  0x5e   : > { %v1006_v45 = vcombine.low %v998_v42, %v1005_v43  ;;  %v767_v46 = vsel %vm2892_vm12, %v762_v13, %v766_v14  ;;  %v1768_v4 = vcombine.low %v2936_v51, %v823_v2  ;;  %v2689_v51 = vld [vmem:[#allocation3 + $0x18] sm:$0xff]  }
  0x5f   : > { %v1513_v53 = vcombine.low %v2921_v38, %v767_v46  ;;  %v1090_v38 = vcombine.low %v2696_v48, %v2697_v49 }
  0x60   : > { %v1782_v8 = vrot.slane %v1768_v4, %v2907_v25 }
  0x61   : > { %2451 = vmatmul.mubr.msk.bf16.vlgmr.msra.gmra.mrb[0].mxu0 %vm867_vm3, %v2938_v52  ;;  %v1527_v63 = vrot.slane %v1513_v53, %v2907_v25 }
  0x62   : > { %2455 = vmatpush3.bf16.msra.mxu0 %v2678_v24  ;;  %2458 = vmatprep.mubr.msk.bf16.mxu0 %vm2760_vm1, %v2759_v0  ;;  %v1783_v10 = vcombine.low %v2969_v27, %v1782_v8 }
  0x63   : > { %2483 = vmatmul.mubr.msk.bf16.vlgmr.msra.gmra.mrb[0].mxu1 %vm867_vm3, %v2956_v9  ;;  %2456 = vmatprep.subr.bf16.mxu0 %v2759_v0  ;;  %v1528_v62 = vcombine.low %v1005_v43, %v1527_v63 }
  0x64   : > { %2487 = vmatpush3.bf16.msra.mxu1 %v2660_v15  ;;  %2490 = vmatprep.mubr.msk.bf16.mxu1 %vm2760_vm1, %v2759_v0  ;;  %v2690_v15 = vld [vmem:[#allocation3 + $0x90] sm:$0xff]  }
  0x65   : > { %2488 = vmatprep.subr.bf16.mxu1 %v2759_v0 }
  0x66   : > { %2457 = vmatpush3.bf16.msra.mxu0 %v2679_v35 }
  0x67   : > { %2462 = vmatprep.subr.bf16.mxu0 %v2759_v0 }
  0x68   : > { %2489 = vmatpush3.bf16.msra.mxu1 %v2661_v17  ;;  %v2670_v17 = vld [vmem:[#allocation3 + $0xa0] sm:$0xff]  }
  0x69   : > { %2494 = vmatprep.subr.bf16.mxu1 %v2759_v0 }
  0x6d   : > { %2459 = vmatmul.mubr.msk.bf16.vlgmr.msra.gmra.mrb[0].mxu0 %vm867_vm3, %v1006_v45 }
  0x6e   : > { %2463 = vmatpush3.bf16.msra.mxu0 %v2680_v29  ;;  %2466 = vmatprep.mubr.msk.bf16.mxu0 %vm2760_vm1, %v2759_v0 }
  0x6f   : > { %2491 = vmatmul.mubr.msk.bf16.vlgmr.msra.gmra.mrb[0].mxu1 %vm867_vm3, %v1306_v36  ;;  %2464 = vmatprep.subr.bf16.mxu0 %v2759_v0 }
  0x70   : > { %2495 = vmatpush3.bf16.msra.mxu1 %v2662_v39  ;;  %2498 = vmatprep.mubr.msk.bf16.mxu1 %vm2760_vm1, %v2759_v0 }
  0x71   : > { %2496 = vmatprep.subr.bf16.mxu1 %v2759_v0 }
  0x72   : > { %2465 = vmatpush3.bf16.msra.mxu0 %v2681_v50 }
  0x73   : > { %2502 = vmatprep.subr.bf16.mxu0 %v2759_v0 }
  0x74   : > { %2497 = vmatpush3.bf16.msra.mxu1 %v2663_v44 }
  0x75   : > { %2534 = vmatprep.subr.bf16.mxu1 %v2759_v0 }
  0x79   : > { %2467 = vmatmul.mubr.msk.bf16.vlgmr.msra.gmra.mrb[0].mxu0 %vm867_vm3, %v1090_v38 }
  0x7a   : > { %2503 = vmatpush3.bf16.msra.mxu0 %v2684_v61  ;;  %2506 = vmatprep.mubr.msk.bf16.mxu0 %vm2760_vm1, %v2759_v0 }
  0x7b   : > { %2499 = vmatmul.mubr.msk.bf16.vlgmr.msra.gmra.mrb[0].mxu1 %vm867_vm3, %v1006_v45  ;;  %2504 = vmatprep.subr.bf16.mxu0 %v2759_v0 }
  0x7c   : > { %2535 = vmatpush3.bf16.msra.mxu1 %v2664_v54  ;;  %2538 = vmatprep.mubr.msk.bf16.mxu1 %vm2760_vm1, %v2759_v0 }
  0x7d   : > { %2536 = vmatprep.subr.bf16.mxu1 %v2759_v0 }
  0x7e   : > { %2505 = vmatpush3.bf16.msra.mxu0 %v2685_v3 }
  0x7f   : > { %2510 = vmatprep.subr.bf16.mxu0 %v2759_v0 }
  0x80   : > { %2537 = vmatpush3.bf16.msra.mxu1 %v2665_v56 }
  0x81   : > { %2542 = vmatprep.subr.bf16.mxu1 %v2759_v0  ;;  %2507 = vmatmul.mubr.msk.bf16.vlgmr.msra.gmra.mrb[4].mxu0 %vm867_vm3, %v1455_v33 }
  0x82   : > { %2511 = vmatpush3.bf16.msra.mxu0 %v2688_v6  ;;  %2514 = vmatprep.mubr.msk.bf16.mxu0 %vm2760_vm1, %v2759_v0 }
  0x83   : > { %2539 = vmatmul.mubr.msk.bf16.vlgmr.msra.gmra.mrb[4].mxu1 %vm867_vm3, %v1528_v62  ;;  %2512 = vmatprep.subr.bf16.mxu0 %v2759_v0 }
  0x84   : > { %2543 = vmatpush3.bf16.msra.mxu1 %v2666_v1  ;;  %2546 = vmatprep.mubr.msk.bf16.mxu1 %vm2760_vm1, %v2759_v0 }
  0x85   : > { %2544 = vmatprep.subr.bf16.mxu1 %v2759_v0 }
  0x86   : > { %2513 = vmatpush3.bf16.msra.mxu0 %v2689_v51 }
  0x87   : > { %2518 = vmatprep.subr.bf16.mxu0 %v2759_v0 }
  0x88   : > { %2545 = vmatpush3.bf16.msra.mxu1 %v2667_v5 }
  0x89   : > { %2550 = vmatprep.subr.bf16.mxu1 %v2759_v0 }
  0x8d   : > { %2515 = vmatmul.mubr.msk.bf16.vlgmr.msra.gmra.mrb[4].mxu0 %vm867_vm3, %v1528_v62 }
  0x8e   : > { %2519 = vmatpush3.bf16.msra.mxu0 %v2690_v15  ;;  %2522 = vmatprep.mubr.msk.bf16.mxu0 %vm2760_vm1, %v2759_v0 }
  0x8f   : > { %2547 = vmatmul.mubr.msk.bf16.vlgmr.msra.gmra.mrb[4].mxu1 %vm867_vm3, %v1783_v10  ;;  %2520 = vmatprep.subr.bf16.mxu0 %v2759_v0 }
  0x90   : > { %2551 = vmatpush3.bf16.msra.mxu1 %v2668_v11  ;;  %2554 = vmatprep.mubr.msk.bf16.mxu1 %vm2760_vm1, %v2759_v0 }
  0x91   : > { %2552 = vmatprep.subr.bf16.mxu1 %v2759_v0 }
  0x92   : > { %2521 = vmatpush3.bf16.msra.mxu0 %v2691_v16 }
  0x93   : > { %2526 = vmatprep.subr.bf16.mxu0 %v2759_v0 }
  0x94   : > { %2553 = vmatpush3.bf16.msra.mxu1 %v2669_v12 }
  0x95   : > { %2558 = vmatprep.subr.bf16.mxu1 %v2759_v0 }
  0x99   : > { %2523 = vmatmul.mubr.msk.bf16.vlgmr.msra.gmra.mrb[4].mxu0 %vm867_vm3, %v2938_v52 }
  0x9a   : > { %2527 = vmatpush3.bf16.msra.mxu0 %v2692_v19  ;;  %2530 = vmatprep.mubr.msk.bf16.mxu0 %vm2760_vm1, %v2759_v0 }
  0x9b   : > { %2555 = vmatmul.mubr.msk.bf16.vlgmr.msra.gmra.mrb[4].mxu1 %vm867_vm3, %v2956_v9  ;;  %2528 = vmatprep.subr.bf16.mxu0 %v2759_v0  ;;  %v3052_v9 = vld [vmem:[%s3140_s2] ss:$0 sm:$0xff] }
  0x9c   : > { %2559 = vmatpush3.bf16.msra.mxu1 %v2670_v17  ;;  %2562 = vmatprep.mubr.msk.bf16.mxu1 %vm2760_vm1, %v2759_v0  ;;  %vm1990_vm1 = vcmask 123904  }
  0x9d   : > { %2560 = vmatprep.subr.bf16.mxu1 %v2759_v0 }
  0x9e   : > { %2529 = vmatpush3.bf16.msra.mxu0 %v2693_v20 }
  0xa0   : > { %2561 = vmatpush3.bf16.msra.mxu1 %v2672_v18 }
  0xa5   : > { %2531 = vmatmul.mubr.msk.bf16.vlgmr.msra.gmra.mrb[4].mxu0 %vm867_vm3, %v2949_v7 }
  0xa7   : > { %2563 = vmatmul.mubr.msk.bf16.vlgmr.msra.gmra.mrb[4].mxu1 %vm867_vm3, %v2938_v52 }
 0x14c   : > { %v1140_v30 = vpop.f32.mrb[0].mxu0 }
 0x14d   : > { %v1967_v36 = vmul.f32 %v3052_v9, %v1140_v30  ;;  %v2468_v34 = vpop.f32.mrb[1].mxu0 }
 0x14e   : > { %v1416_v21 = vpop.f32.mrb[0].mxu1  ;;  %v1143_v37 = vpop.f32.mrb[2].mxu0 }
 0x14f   : > { %v2002_v0 = vmul.f32 %v3052_v9, %v1416_v21  ;;  %v2500_v23 = vpop.f32.mrb[1].mxu1  ;;  %v2469_v43 = vpop.f32.mrb[3].mxu0  ;;  %v1976_v44 = vadd.f32 %v3057_v22, %v1967_v36  ;;  %v1968_v13 = vmul.f32 %v3052_v9, %v1143_v37 }
 0x150   : > { %v1419_v24 = vpop.f32.mrb[2].mxu1 }
 0x151   : > { %v2011_v52 = vadd.f32 %v3057_v22, %v2002_v0  ;;  %v2003_v26 = vmul.f32 %v3052_v9, %v1419_v24  ;;  %v2501_v7 = vpop.f32.mrb[3].mxu1  ;;  %v1978_v45 = vmax.f32 %v1976_v44, 0.0  ;;  %v1977_v46 = vadd.f32 %v3057_v22, %v1968_v13 }
 0x153   : > { %v2013_v27 = vmax.f32 %v2011_v52, 0.0  ;;  %v2012_v28 = vadd.f32 %v3057_v22, %v2003_v26  ;;  %v1982_v48 = vcombine.high %v1978_v45, %v1978_v45  ;;  %v1986_v49 = vpack.c.bf16 %v1978_v45, %v1978_v45 }
 0x154   : > { %v1979_v50 = vmax.f32 %v1977_v46, 0.0 }
 0x155   : > { %v2017_v31 = vcombine.high %v2013_v27, %v2013_v27  ;;  %v2014_v32 = vmax.f32 %v2012_v28, 0.0  ;;  %v2021_v35 = vpack.c.bf16 %v2013_v27, %v2013_v27  ;;  %v1987_v54 = vpack.c.bf16 %v1982_v48, %v1982_v48  ;;  %1991 = vst.msk [vmem:[%s3076_s27] sm:$0x3] %vm1990_vm1, %v1986_v49 }
 0x156   : > { %v1983_v55 = vcombine.high %v1979_v50, %v1979_v50  ;;  %v1988_v63 = vpack.c.bf16 %v1979_v50, %v1979_v50 }
 0x157   : > { %v2022_v39 = vpack.c.bf16 %v2017_v31, %v2017_v31  ;;  %v2018_v40 = vcombine.high %v2014_v32, %v2014_v32  ;;  %v2035_v41 = vrot.slane %v2021_v35, %v2907_v25  ;;  %v2023_v42 = vpack.c.bf16 %v2014_v32, %v2014_v32  ;;  %1992 = vst.msk [vmem:[%s3076_s27 + $0x4] sm:$0x3] %vm1990_vm1, %v1987_v54 }
 0x158   : > { %v1989_v56 = vpack.c.bf16 %v1983_v55, %v1983_v55  ;;  %1993 = vst.msk [vmem:[%s3076_s27 + $0x8] sm:$0x3] %vm1990_vm1, %v1988_v63 }
 0x159   : > { %v2024_v14 = vpack.c.bf16 %v2018_v40, %v2018_v40  ;;  %2057 = vrot.lane.b32.xlu0 %v2035_v41, %s2763_s24  ;;  %v2049_v29 = vrot.slane %v2023_v42, %v2907_v25  ;;  %v2042_v47 = vrot.slane %v2022_v39, %v2907_v25 }
 0x15a   : > { %1994 = vst.msk [vmem:[%s3076_s27 + $0xc] sm:$0x3] %vm1990_vm1, %v1989_v56 }
 0x15b   : > { %2061 = vrot.lane.b32.xlu1 %v2049_v29, %s2763_s24  ;;  %v2056_v53 = vrot.slane %v2024_v14, %v2907_v25 }
 0x15d   : > { %2059 = vrot.lane.b32.xlu0 %v2042_v47, %s2763_s24 }
 0x15f   : > { %2063 = vrot.lane.b32.xlu1 %v2056_v53, %s2763_s24 }
 0x178   : > { %v1696_v3 = vpop.f32.mrb[4].mxu0 }
 0x179   : > { %v2081_v6 = vmul.f32 %v3052_v9, %v1696_v3  ;;  %v2532_v8 = vpop.f32.mrb[5].mxu0 }
 0x17a   : > { %v1951_v57 = vpop.f32.mrb[4].mxu1  ;;  %v1699_v51 = vpop.f32.mrb[6].mxu0 }
 0x17b   : > { %v2116_v58 = vmul.f32 %v3052_v9, %v1951_v57  ;;  %v2564_v38 = vpop.f32.mrb[5].mxu1  ;;  %v2533_v16 = vpop.f32.mrb[7].mxu0  ;;  %v2090_v17 = vadd.f32 %v3057_v22, %v2081_v6  ;;  %v2082_v18 = vmul.f32 %v3052_v9, %v1699_v51 }
 0x17c   : > { %v1954_v59 = vpop.f32.mrb[6].mxu1 }
 0x17d   : > { %v2125_v60 = vadd.f32 %v3057_v22, %v2116_v58  ;;  %v2117_v61 = vmul.f32 %v3052_v9, %v1954_v59  ;;  %v2565_v62 = vpop.f32.mrb[7].mxu1  ;;  %v2092_v21 = vmax.f32 %v2090_v17, 0.0  ;;  %v2091_v0 = vadd.f32 %v3057_v22, %v2082_v18 }
 0x17f   : > { %v2127_v1 = vmax.f32 %v2125_v60, 0.0  ;;  %v2126_v2 = vadd.f32 %v3057_v22, %v2117_v61  ;;  %v2096_v24 = vcombine.high %v2092_v21, %v2092_v21  ;;  %v2100_v52 = vpack.c.bf16 %v2092_v21, %v2092_v21 }
 0x180   : > { %v2093_v26 = vmax.f32 %v2091_v0, 0.0 }
 0x181   : > { %v2131_v4 = vcombine.high %v2127_v1, %v2127_v1  ;;  %v2135_v5 = vpack.c.bf16 %v2127_v1, %v2127_v1  ;;  %v2128_v33 = vmax.f32 %v2126_v2, 0.0  ;;  %v2101_v7 = vpack.c.bf16 %v2096_v24, %v2096_v24  ;;  %2376 = vst.msk [vmem:[%s3076_s27 + $0x2] sm:$0x3] %vm1990_vm1, %v2100_v52 }
 0x182   : > { %v2097_v22 = vcombine.high %v2093_v26, %v2093_v26  ;;  %v2102_v27 = vpack.c.bf16 %v2093_v26, %v2093_v26 }
 0x183   : > { %v2136_v10 = vpack.c.bf16 %v2131_v4, %v2131_v4  ;;  %v2132_v11 = vcombine.high %v2128_v33, %v2128_v33  ;;  %v2137_v12 = vpack.c.bf16 %v2128_v33, %v2128_v33  ;;  %v2149_v15 = vrot.slane %v2135_v5, %v2907_v25  ;;  %2377 = vst.msk [vmem:[%s3076_s27 + $0x6] sm:$0x3] %vm1990_vm1, %v2101_v7 }
 0x184   : > { %v2103_v28 = vpack.c.bf16 %v2097_v22, %v2097_v22  ;;  %2378 = vst.msk [vmem:[%s3076_s27 + $0xa] sm:$0x3] %vm1990_vm1, %v2102_v27 }
 0x185   : > { %v2138_v19 = vpack.c.bf16 %v2132_v11, %v2132_v11  ;;  %2171 = vrot.lane.b32.xlu0 %v2149_v15, %s2763_s24  ;;  %v2156_v20 = vrot.slane %v2136_v10, %v2907_v25  ;;  %v2163_v23 = vrot.slane %v2137_v12, %v2907_v25 }
 0x186   : > { %2379 = vst.msk [vmem:[%s3076_s27 + $0xe] sm:$0x3] %vm1990_vm1, %v2103_v28 }
 0x187   : > { %2173 = vrot.lane.b32.xlu1 %v2156_v20, %s2763_s24  ;;  %v2170_v9 = vrot.slane %v2138_v19, %v2907_v25 }
 0x189   : > { %2175 = vrot.lane.b32.xlu0 %v2163_v23, %s2763_s24 }
 0x18b   : > { %2177 = vrot.lane.b32.xlu1 %v2170_v9, %s2763_s24 }
 0x1cb   : > { %v2058_v25 = vpop.permute.xlu0 %2057 }
 0x1cc   : > { %2070 = vst.msk [vmem:[%s3076_s27] sm:$0x3] %vm2069_vm4, %v2058_v25 }
 0x1cd   : > { %v2062_v30 = vpop.permute.xlu1 %2061 }
 0x1ce   : > { %2072 = vst.msk [vmem:[%s3076_s27 + $0x8] sm:$0x3] %vm2069_vm4, %v2062_v30 }
 0x1cf   : > { %v2060_v31 = vpop.permute.xlu0 %2059 }
 0x1d0   : > { %2071 = vst.msk [vmem:[%s3076_s27 + $0x4] sm:$0x3] %vm2069_vm4, %v2060_v31 }
 0x1d1   : > { %v2064_v32 = vpop.permute.xlu1 %2063 }
 0x1d2   : > { %2073 = vst.msk [vmem:[%s3076_s27 + $0xc] sm:$0x3] %vm2069_vm4, %v2064_v32 }
 0x1f7   : > { %v2172_v35 = vpop.permute.xlu0 %2171 }
 0x1f8   : > { %2382 = vst.msk [vmem:[%s3076_s27 + $0x2] sm:$0x3] %vm2069_vm4, %v2172_v35 }
 0x1f9   : > { %v2174_v36 = vpop.permute.xlu1 %2173 }
 0x1fa   : > { %2383 = vst.msk [vmem:[%s3076_s27 + $0x6] sm:$0x3] %vm2069_vm4, %v2174_v36 }
 0x1fb   : > { %v2176_v34 = vpop.permute.xlu0 %2175 }
 0x1fc   : > { %2384 = vst.msk [vmem:[%s3076_s27 + $0xa] sm:$0x3] %vm2069_vm4, %v2176_v34 }
 0x1fd   : > { %v2178_v37 = vpop.permute.xlu1 %2177 }
 0x1fe   : > { %2385 = vst.msk [vmem:[%s3076_s27 + $0xe] sm:$0x3] %vm2069_vm4, %v2178_v37 }
 0x1ff PF: > { %s15_s17 = sadd.s32 1, %s2754_s17   ;;  %s3159_s15 = smov %s2750_s16 }
 0x200   : > { %p12_p4 = scmp.ge.s32.totalorder %s15_s17, 4   ;;  %s3160_s16 = smov %s3162_s19 }
 0x202   :  { %14 = sbr.rel (!%p12_p4) target bundleno = 2 (0x2), region = 94 }
 0x209   :  { %2208 = vsyncpa [#allocation4], 1 }
 0x20a   :  { %2210 = vsyncpa [#allocation4 + $0x1], 1 }

// kernel: a_call__.5
= control target key start
LH: loop header
LB: loop body
LE: loop exit
PB: predicated region body
PF: predicated region fallthrough
CT: control target
= control target key end

     0   :  { %s3540_s15 = smov 0   ;;  %s3542_s16 = smov 0   ;;  %s4395_s0 = inlined_call_operand.vmem [shape: bf16[2,8,8,16], index: 0, kind: input, shape index: {}]   ;;  %s4396_s1 = inlined_call_operand.vmem [shape: bf16[16,16,16], index: 1, kind: input, shape index: {}]   ;;  %s4397_s2 = inlined_call_operand.vmem [shape: f32[1,16], index: 2, kind: input, shape index: {}]   ;;  %s4398_s3 = inlined_call_operand.vmem [shape: f32[1,16], index: 3, kind: input, shape index: {}]   ;;  %s4399_s4 = inlined_call_operand.vmem [shape: bf16[2,8,2,8,32], index: 4, kind: output, shape index: {}]  }
   0x1   :  { %s3544_s17 = smov 0  }
   0x2 LB: > { %s26_s18 = sadd.s32 1, %s3507_s16  ;;  %p2865_p0 = scmp.ge.s32.totalorder %s3511_s17, 1  ;;  %s3511_s17 = sphi %s3544_s17, %s14_s17   ;;  %s3507_s16 = sphi %s3542_s16, %s4430_s16   ;;  %s3503_s15 = sphi %s3540_s15, %s4429_s15  }
   0x3   : > { %p28_p1 = scmp.ge.s32.totalorder %s26_s18, 2  ;;  %p190_p2 = scmp.lt.s32.totalorder %s3511_s17, 3 }
   0x5   : > { %s4432_s18 = smov (%p28_p1, %s26_s18), 0  ;;  %p191_p3 = pnand %p2865_p0, %p190_p2 }
   0x7   : > { %194 = sbr.rel (%p191_p3) target bundleno = 526 (0x20e), region = 36 }
   0xe   : > { %v3462_v0 = vld [vmem:[%s4396_s1 + $0x30] sm:$0xff]   ;;  %p224_p4 = scmp.lt.s32.totalorder %s3503_s15, 1  ;;  %vm248_vm0 = vcmask 125952   ;;  %vm250_vm1 = vcmask 122880   ;;  %v3564_v1 = vld [vmem:[%s4396_s1 + $0x20] sm:$0xff]   ;;  %v3513_v2 = vmov 0  }
   0xf   : > { %3220 = vmatprep.subr.bf16.mxu1 %v3462_v0  ;;  %252 = vst.msk [vmem:[#allocation2 + $0x8] sm:$0xf] %vm248_vm0, %v3513_v2  ;;  %254 = vst.msk [vmem:[#allocation2 + $0x10] sm:$0xf] %vm248_vm0, %v3513_v2  ;;  %vm360_vm2 = vsmask.f32 7938 }
  0x10   : > { %s4434_s15 = smov (!%p224_p4, %s3503_s15), 1  ;;  %253 = vst.msk [vmem:[#allocation2 + $0xc] sm:$0x1] %vm250_vm1, %v3513_v2  ;;  %255 = vst.msk [vmem:[#allocation2 + $0x14] sm:$0x1] %vm250_vm1, %v3513_v2  ;;  %3221 = vmatpush3.bf16.msra.mxu1 %v3462_v0  ;;  %vm1004_vm8 = vcmask 130048  }
  0x11   : > { %249 = vst.msk [vmem:[#allocation2] sm:$0xf] %vm248_vm0, %v3513_v2  ;;  %256 = vst.msk [vmem:[#allocation2 + $0x18] sm:$0xf] %vm248_vm0, %v3513_v2  ;;  %s3082_s23 = sshll.u32 %s4434_s15, 5  ;;  %3230 = vmatprep.subr.bf16.mxu1 %v3564_v1  ;;  %vm568_vm10 = vcmask 1042432  }
  0x12   : > { %251 = vst.msk [vmem:[#allocation2 + $0x4] sm:$0x1] %vm250_vm1, %v3513_v2  ;;  %257 = vst.msk [vmem:[#allocation2 + $0x1c] sm:$0x1] %vm250_vm1, %v3513_v2  ;;  %s3593_s26 = scalar_lea.vmem %s4395_s0, %s3082_s23  ;;  %vm366_vm3 = vsmask.f32 256 }
  0x13   : > { %258 = vst.msk [vmem:[#allocation2 + $0x20] sm:$0xf] %vm248_vm0, %v3513_v2  ;;  %260 = vst.msk [vmem:[#allocation2 + $0x28] sm:$0xf] %vm248_vm0, %v3513_v2  ;;  %v270_v3 = vld [vmem:[%s3593_s26] sm:$0xf] }
  0x14   : > { %259 = vst.msk [vmem:[#allocation2 + $0x24] sm:$0x1] %vm250_vm1, %v3513_v2  ;;  %261 = vst.msk [vmem:[#allocation2 + $0x2c] sm:$0x1] %vm250_vm1, %v3513_v2  ;;  %v271_v4 = vld [vmem:[%s3593_s26 + $0x4] sm:$0xf] }
  0x15   : > { %262 = vst.msk [vmem:[#allocation2 + $0x30] sm:$0xf] %vm248_vm0, %v3513_v2  ;;  %264 = vst.msk [vmem:[#allocation2 + $0x38] sm:$0xf] %vm248_vm0, %v3513_v2  ;;  %v272_v5 = vld [vmem:[%s3593_s26 + $0x8] sm:$0xf] }
  0x16   : > { %263 = vst.msk [vmem:[#allocation2 + $0x34] sm:$0x1] %vm250_vm1, %v3513_v2  ;;  %265 = vst.msk [vmem:[#allocation2 + $0x3c] sm:$0x1] %vm250_vm1, %v3513_v2  ;;  %v279_v6 = vshrl.u32 %v270_v3, 16  ;;  %v282_v7 = vshll.u32 %v270_v3, 16 }
  0x17   : > { %266 = vst.msk [vmem:[#allocation2 + $0x40] sm:$0xf] %vm248_vm0, %v3513_v2  ;;  %268 = vst.msk [vmem:[#allocation2 + $0x48] sm:$0xf] %vm248_vm0, %v3513_v2  ;;  %v287_v8 = vshrl.u32 %v271_v4, 16  ;;  %v290_v9 = vshll.u32 %v271_v4, 16 }
  0x18   : > { %267 = vst.msk [vmem:[#allocation2 + $0x44] sm:$0x1] %vm250_vm1, %v3513_v2  ;;  %269 = vst.msk [vmem:[#allocation2 + $0x4c] sm:$0x1] %vm250_vm1, %v3513_v2  ;;  %v273_v10 = vld [vmem:[%s3593_s26 + $0xc] sm:$0xf] }
  0x19   : > { %v295_v11 = vshrl.u32 %v272_v5, 16  ;;  %v298_v12 = vshll.u32 %v272_v5, 16  ;;  %v303_v13 = vshrl.u32 %v273_v10, 16  ;;  %v306_v14 = vshll.u32 %v273_v10, 16  ;;  %vm3601_vm4 = vmand %vm248_vm0, %vm360_vm2  ;;  %v362_v18 = vld [vmem:[#allocation2 + $0x8] sm:$0xf] }
  0x1a   : > { %v281_v15 = vrot.slane %v279_v6, 7  ;;  %v289_v16 = vrot.slane %v287_v8, 7  ;;  %v368_v19 = vld [vmem:[#allocation2 + $0xc] sm:$0x1]  ;;  %vm3607_vm5 = vmand %vm250_vm1, %vm366_vm3  ;;  %v371_v21 = vld [vmem:[#allocation2 + $0x10] sm:$0xf] }
  0x1b   : > { %v374_v22 = vld [vmem:[#allocation2 + $0x14] sm:$0x1]  ;;  %v297_v23 = vrot.slane %v295_v11, 7  ;;  %v305_v24 = vrot.slane %v303_v13, 7  ;;  %v274_v25 = vld [vmem:[%s3593_s26 + $0x10] sm:$0xf] }
  0x1c   : > { %v284_v26 = vor.u32 %v282_v7, %v281_v15  ;;  %v285_v27 = vrot.slane %v281_v15, 4  ;;  %v292_v28 = vor.u32 %v290_v9, %v289_v16  ;;  %v293_v29 = vrot.slane %v289_v16, 4  ;;  %v377_v30 = vld [vmem:[#allocation2 + $0x18] sm:$0xf]  ;;  %v380_v31 = vld [vmem:[#allocation2 + $0x1c] sm:$0x1] }
  0x1d   : > { %v300_v32 = vor.u32 %v298_v12, %v297_v23  ;;  %v301_v33 = vrot.slane %v297_v23, 4  ;;  %v308_v34 = vor.u32 %v306_v14, %v305_v24  ;;  %v309_v35 = vrot.slane %v305_v24, 4  ;;  %v383_v36 = vld [vmem:[#allocation2 + $0x20] sm:$0xf]  ;;  %v386_v37 = vld [vmem:[#allocation2 + $0x24] sm:$0x1] }
  0x1e   : > { %v363_v38 = vsel %vm3601_vm4, %v284_v26, %v362_v18  ;;  %v369_v39 = vsel %vm3607_vm5, %v285_v27, %v368_v19  ;;  %v372_v40 = vsel %vm3601_vm4, %v292_v28, %v371_v21  ;;  %v375_v41 = vsel %vm3607_vm5, %v293_v29, %v374_v22  ;;  %v275_v42 = vld [vmem:[%s3593_s26 + $0x14] sm:$0xf]  ;;  %v276_v47 = vld [vmem:[%s3593_s26 + $0x18] sm:$0xf]  ;;  %v3631_v52 = vld [vmem:[%s3593_s26 + $0x1c] sm:$0xf] }
  0x1f   : > { %364 = vst [vmem:[#allocation2 + $0x8] sm:$0xf] %v363_v38  ;;  %370 = vst [vmem:[#allocation2 + $0xc] sm:$0x1] %v369_v39  ;;  %v378_v43 = vsel %vm3601_vm4, %v300_v32, %v377_v30  ;;  %v381_v44 = vsel %vm3607_vm5, %v301_v33, %v380_v31  ;;  %v384_v45 = vsel %vm3601_vm4, %v308_v34, %v383_v36  ;;  %v311_v48 = vshrl.u32 %v274_v25, 16  ;;  %s3514_s11 = smov 16  }
  0x20   : > { %373 = vst [vmem:[#allocation2 + $0x10] sm:$0xf] %v372_v40  ;;  %376 = vst [vmem:[#allocation2 + $0x14] sm:$0x1] %v375_v41  ;;  %v387_v46 = vsel %vm3607_vm5, %v309_v35, %v386_v37  ;;  %v314_v49 = vshll.u32 %v274_v25, 16  ;;  %v319_v50 = vshrl.u32 %v275_v42, 16 }
  0x21   : > { %379 = vst [vmem:[#allocation2 + $0x18] sm:$0xf] %v378_v43  ;;  %382 = vst [vmem:[#allocation2 + $0x1c] sm:$0x1] %v381_v44  ;;  %v322_v51 = vshll.u32 %v275_v42, 16  ;;  %v327_v53 = vshrl.u32 %v276_v47, 16 }
  0x22   : > { %385 = vst [vmem:[#allocation2 + $0x20] sm:$0xf] %v384_v45  ;;  %388 = vst [vmem:[#allocation2 + $0x24] sm:$0x1] %v387_v46  ;;  %vm429_vm6 = vsmask.f32 3328 }
  0x23   : > { %vm430_vm7 = vsmask.f32 7440  ;;  %v330_v54 = vshll.u32 %v276_v47, 16  ;;  %v335_v55 = vshrl.u32 %v3631_v52, 16  ;;  %v313_v56 = vrot.slane %v311_v48, 7  ;;  %v3467_v44 = vld [vmem:[%s4396_s1 + $0x38] sm:$0xff]  }
  0x24   : > { %v321_v57 = vrot.slane %v319_v50, 7  ;;  %v389_v58 = vld [vmem:[#allocation2 + $0x28] sm:$0xf]  ;;  %v392_v59 = vld [vmem:[#allocation2 + $0x2c] sm:$0x1]  ;;  %v329_v62 = vrot.slane %v327_v53, 7  ;;  %vm3681_vm9 = vmor %vm429_vm6, %vm430_vm7  ;;  %3180 = vmatprep.subr.bf16.mxu0 %v3467_v44 }
  0x25   : > { %v395_v60 = vld [vmem:[#allocation2 + $0x30] sm:$0xf]  ;;  %v398_v61 = vld [vmem:[#allocation2 + $0x34] sm:$0x1]  ;;  %v338_v63 = vshll.u32 %v3631_v52, 16  ;;  %v316_v0 = vor.u32 %v314_v49, %v313_v56  ;;  %v317_v2 = vrot.slane %v313_v56, 4  ;;  %3181 = vmatpush3.bf16.msra.mxu0 %v3467_v44 }
  0x26   : > { %v324_v3 = vor.u32 %v322_v51, %v321_v57  ;;  %v325_v4 = vrot.slane %v321_v57, 4  ;;  %v401_v5 = vld [vmem:[#allocation2 + $0x38] sm:$0xf]  ;;  %v332_v6 = vor.u32 %v330_v54, %v329_v62  ;;  %v333_v7 = vrot.slane %v329_v62, 4  ;;  %v404_v9 = vld [vmem:[#allocation2 + $0x3c] sm:$0x1] }
  0x27   : > { %v3635_v8 = vrot.slane %v335_v55, 7  ;;  %v3637_v10 = vld [vmem:[#allocation2 + $0x8] sm:$0xf]  ;;  %v3639_v11 = vld [vmem:[#allocation2 + $0x10] sm:$0xf]  ;;  %v390_v13 = vsel %vm3601_vm4, %v316_v0, %v389_v58  ;;  %v393_v14 = vsel %vm3607_vm5, %v317_v2, %v392_v59  ;;  %vm569_vm11 = vcmask 1046532  }
  0x28   : > { %v3641_v12 = vld [vmem:[#allocation2 + $0xc] sm:$0x1]  ;;  %v396_v15 = vsel %vm3601_vm4, %v324_v3, %v395_v60  ;;  %v399_v16 = vsel %vm3607_vm5, %v325_v4, %v398_v61  ;;  %v3651_v18 = vld [vmem:[#allocation2 + $0x14] sm:$0x1]  ;;  %v620_v19 = vshrl.u32 %v3637_v10, 16  ;;  %v623_v21 = vshll.u32 %v3637_v10, 16  ;;  %vm3757_vm12 = vmor %vm568_vm10, %vm569_vm11 }
  0x29   : > { %v629_v22 = vshll.u32 %v3641_v12, 16  ;;  %v634_v23 = vshrl.u32 %v3639_v11, 16  ;;  %391 = vst [vmem:[#allocation2 + $0x28] sm:$0xf] %v390_v13  ;;  %394 = vst [vmem:[#allocation2 + $0x2c] sm:$0x1] %v393_v14  ;;  %v402_v28 = vsel %vm3601_vm4, %v332_v6, %v401_v5  ;;  %v405_v29 = vsel %vm3607_vm5, %v333_v7, %v404_v9 }
  0x2a   : > { %397 = vst [vmem:[#allocation2 + $0x30] sm:$0xf] %v396_v15  ;;  %400 = vst [vmem:[#allocation2 + $0x34] sm:$0x1] %v399_v16  ;;  %v637_v24 = vshll.u32 %v3639_v11, 16  ;;  %v643_v25 = vshll.u32 %v3651_v18, 16  ;;  %v340_v53 = vor.u32 %v338_v63, %v3635_v8 }
  0x2b   : > { %v3659_v26 = vld [vmem:[#allocation2 + $0x18] sm:$0xf]  ;;  %v3661_v27 = vld [vmem:[#allocation2 + $0x20] sm:$0xf]  ;;  %v622_v30 = vrot.slane %v620_v19, 4  ;;  %v625_v31 = vrot.slane %v623_v21, 5 }
  0x2c   : > { %v631_v32 = vrot.slane %v629_v22, 5  ;;  %v636_v33 = vrot.slane %v634_v23, 4  ;;  %v3667_v34 = vld [vmem:[#allocation2 + $0x1c] sm:$0x1]  ;;  %403 = vst [vmem:[#allocation2 + $0x38] sm:$0xf] %v402_v28 }
  0x2d   : > { %406 = vst [vmem:[#allocation2 + $0x3c] sm:$0x1] %v405_v29  ;;  %v639_v35 = vrot.slane %v637_v24, 5  ;;  %v645_v36 = vrot.slane %v643_v25, 5  ;;  %v3669_v37 = vld [vmem:[#allocation2 + $0x24] sm:$0x1]  ;;  %v626_v40 = vor.u32 %v625_v31, %v622_v30 }
  0x2e   : > { %v648_v38 = vshrl.u32 %v3659_v26, 16  ;;  %v651_v39 = vshll.u32 %v3659_v26, 16  ;;  %v657_v41 = vshll.u32 %v3667_v34, 16  ;;  %v662_v42 = vshrl.u32 %v3661_v27, 16  ;;  %v407_v59 = vld [vmem:[#allocation2 + $0x40] sm:$0xf] }
  0x2f   : > { %v665_v43 = vshll.u32 %v3661_v27, 16  ;;  %v640_v46 = vor.u32 %v639_v35, %v636_v33  ;;  %v671_v49 = vshll.u32 %v3669_v37, 16  ;;  %v627_v50 = vrot.slane %v626_v40, 4  ;;  %v3693_v60 = vld [vmem:[%s4396_s1 + $0x28] sm:$0xff]   ;;  %v410_v16 = vld [vmem:[#allocation2 + $0x44] sm:$0x1] }
  0x30   : > { %v650_v47 = vrot.slane %v648_v38, 4  ;;  %v653_v48 = vrot.slane %v651_v39, 5  ;;  %v664_v51 = vrot.slane %v662_v42, 4  ;;  %v659_v56 = vrot.slane %v657_v41, 5  ;;  %v3687_v57 = vld [vmem:[#allocation2 + $0x28] sm:$0xf]  ;;  %3190 = vmatprep.subr.bf16.mxu0 %v3693_v60 }
  0x31   : > { %v667_v52 = vrot.slane %v665_v43, 5  ;;  %v641_v54 = vrot.slane %v640_v46, 4  ;;  %v341_v58 = vrot.slane %v3635_v8, 4  ;;  %v632_v61 = vsel %vm3681_vm9, %v627_v50, %v631_v32  ;;  %v3697_v0 = vld [vmem:[#allocation2 + $0x30] sm:$0xf]  ;;  %s3083_s12 = sshll.u32 %s4434_s15, 6 }
  0x32   : > { %v654_v55 = vor.u32 %v653_v48, %v650_v47  ;;  %v673_v63 = vrot.slane %v671_v49, 5  ;;  %v3699_v2 = vld [vmem:[#allocation2 + $0x2c] sm:$0x1]  ;;  %v676_v3 = vshrl.u32 %v3687_v57, 16  ;;  %v3704_v6 = vld [vmem:[#allocation2 + $0x34] sm:$0x1]  ;;  %v408_v30 = vsel %vm3601_vm4, %v340_v53, %v407_v59  ;;  %s4271_s19 = scalar_lea.vmem %s4399_s4, %s3083_s12 }
  0x33   : > { %v668_v62 = vor.u32 %v667_v52, %v664_v51  ;;  %v646_v4 = vsel %vm3681_vm9, %v641_v54, %v645_v36  ;;  %v679_v7 = vshll.u32 %v3687_v57, 16  ;;  %v685_v8 = vshll.u32 %v3699_v2, 16  ;;  %v3715_v24 = vld [vmem:[#allocation2 + $0x38] sm:$0xf]  ;;  %409 = vst [vmem:[#allocation2 + $0x40] sm:$0xf] %v408_v30 }
  0x34   : > { %v655_v5 = vrot.slane %v654_v55, 4  ;;  %v3709_v9 = vcombine.low %v632_v61, %v646_v4  ;;  %v678_v14 = vrot.slane %v676_v3, 4  ;;  %v690_v15 = vshrl.u32 %v3697_v0, 16  ;;  %v3731_v36 = vld [vmem:[%s4396_s1 + $0x60] sm:$0xff]   ;;  %v3738_v20 = vld [vmem:[#allocation2 + $0x3c] sm:$0x1] }
  0x35   : > { %v669_v13 = vrot.slane %v668_v62, 4  ;;  %v681_v21 = vrot.slane %v679_v7, 5  ;;  %v687_v22 = vrot.slane %v685_v8, 5  ;;  %v693_v23 = vshll.u32 %v3697_v0, 16  ;;  %v731_v47 = vld [vmem:[#allocation2 + $0x8] sm:$0xe] }
  0x36   : > { %v660_v19 = vsel %vm3681_vm9, %v655_v5, %v659_v56  ;;  %3222 = vmatprep.mubr.msk.bf16.mxu1 %vm1004_vm8, %v3709_v9  ;;  %v692_v28 = vrot.slane %v690_v15, 4  ;;  %v699_v29 = vshll.u32 %v3704_v6, 16  ;;  %v411_v35 = vsel %vm3607_vm5, %v341_v58, %v410_v16  ;;  %v732_v51 = vld [vmem:[#allocation2 + $0x10] sm:$0xe]  ;;  %v733_v8 = vld [vmem:[#allocation2 + $0x18] sm:$0xe] }
  0x37   : > { %v674_v25 = vsel %vm3681_vm9, %v669_v13, %v673_v63  ;;  %v682_v32 = vor.u32 %v681_v21, %v678_v14  ;;  %v695_v33 = vrot.slane %v693_v23, 5  ;;  %412 = vst [vmem:[#allocation2 + $0x44] sm:$0x1] %v411_v35  ;;  %v704_v38 = vshrl.u32 %v3715_v24, 16  ;;  %v734_v13 = vld [vmem:[#allocation2 + $0x20] sm:$0xe] }
  0x38   : > { %v3724_v31 = vcombine.low %v660_v19, %v674_v25  ;;  %v707_v39 = vshll.u32 %v3715_v24, 16  ;;  %v701_v41 = vrot.slane %v699_v29, 5  ;;  %v713_v50 = vshll.u32 %v3738_v20, 16  ;;  %v735_v16 = vld [vmem:[#allocation2 + $0x28] sm:$0xe] }
  0x39   : > { %v683_v17 = vrot.slane %v682_v32, 4  ;;  %v696_v40 = vor.u32 %v695_v33, %v692_v28  ;;  %v706_v42 = vrot.slane %v704_v38, 4  ;;  %v2878_v56 = vrot.slane %v731_v47, 9  ;;  %v736_v19 = vld [vmem:[#allocation2 + $0x30] sm:$0xe]  ;;  %v3486_v7 = vld [vmem:[%s4396_s1 + $0x8] sm:$0xff]  }
  0x3a   : > { %3223 = vmatmul.mubr.msk.bf16.vlgmr.msra.gmra.mrb[0].mxu1 %vm1004_vm8, %v3724_v31  ;;  %v709_v43 = vrot.slane %v707_v39, 5  ;;  %v757_v59 = vrot.slane %v3641_v12, 5  ;;  %v2879_v61 = vrot.slane %v732_v51, 9  ;;  %v761_v62 = vrot.slane %v3651_v18, 5  ;;  %v737_v23 = vld [vmem:[#allocation2 + $0x38] sm:$0xe] }
  0x3b   : > { %3231 = vmatpush3.bf16.msra.mxu1 %v3564_v1  ;;  %v688_v44 = vsel %vm3681_vm9, %v683_v17, %v687_v22  ;;  %v697_v46 = vrot.slane %v696_v40, 4  ;;  %v3748_v1 = vld [vmem:[#allocation2 + $0x40] sm:$0xf]  ;;  %v715_v3 = vrot.slane %v713_v50, 5  ;;  %v765_v12 = vrot.slane %v3667_v34, 5 }
  0x3c   : > { %3240 = vmatprep.subr.bf16.mxu1 %v3731_v36  ;;  %v710_v49 = vor.u32 %v709_v43, %v706_v42  ;;  %v718_v54 = vshrl.u32 %v3748_v1, 16  ;;  %v721_v55 = vshll.u32 %v3748_v1, 16  ;;  %v769_v21 = vrot.slane %v3669_v37, 5  ;;  %v738_v30 = vld [vmem:[#allocation2 + $0x40] sm:$0xe] }
  0x3d   : > { %v702_v48 = vsel %vm3681_vm9, %v697_v46, %v701_v41  ;;  %v758_v18 = vsel %vm3757_vm12, %v2878_v56, %v757_v59  ;;  %v762_v22 = vsel %vm3757_vm12, %v2879_v61, %v761_v62  ;;  %v2880_v29 = vrot.slane %v733_v8, 9  ;;  %v3780_v46 = vld [vmem:[#allocation2 + $0xc] sm:$0x1]  ;;  %v545_v47 = vld [vmem:[#allocation2 + $0x8] sm:$0xe] }
  0x3e   : > { %v3746_v52 = vcombine.low %v688_v44, %v702_v48  ;;  %v618_v53 = vld [vmem:[#allocation2 + $0x44] sm:$0x1]  ;;  %v711_v63 = vrot.slane %v710_v49, 4  ;;  %v720_v4 = vrot.slane %v718_v54, 4  ;;  %v723_v5 = vrot.slane %v721_v55, 5 }
  0x3f   : > { %v727_v58 = vshll.u32 %v618_v53, 16  ;;  %v2881_v32 = vrot.slane %v734_v13, 9  ;;  %v2882_v33 = vrot.slane %v735_v16, 9  ;;  %v773_v35 = vrot.slane %v3699_v2, 5  ;;  %v3778_v44 = vld [vmem:[#allocation2 + $0x4] sm:$0x1] }
  0x40   : > { %3226 = vmatprep.mubr.msk.bf16.mxu1 %vm1004_vm8, %v3746_v52  ;;  %v724_v14 = vor.u32 %v723_v5, %v720_v4  ;;  %v716_v25 = vsel %vm3681_vm9, %v711_v63, %v715_v3  ;;  %v2883_v34 = vrot.slane %v736_v19, 9  ;;  %v3772_v38 = vcombine.low %v758_v18, %v762_v22  ;;  %v544_v2 = vld [vmem:[#allocation2] sm:$0xe]  ;;  %v3784_v48 = vld [vmem:[#allocation2 + $0x14] sm:$0x1] }
  0x41   : > { %v729_v15 = vrot.slane %v727_v58, 5  ;;  %v777_v39 = vrot.slane %v3704_v6, 5  ;;  %v2884_v17 = vrot.slane %v737_v23, 9  ;;  %v781_v41 = vrot.slane %v3738_v20, 5  ;;  %v546_v49 = vld [vmem:[#allocation2 + $0x10] sm:$0xe] }
  0x42   : > { %v725_v28 = vrot.slane %v724_v14, 4  ;;  %v2885_v42 = vrot.slane %v738_v30, 9  ;;  %v785_v43 = vrot.slane %v618_v53, 5  ;;  %v766_v6 = vsel %vm3757_vm12, %v2880_v29, %v765_v12  ;;  %v3796_v53 = vld [vmem:[#allocation2 + $0x1c] sm:$0x1]  ;;  %v3816_v14 = vld [vmem:[%s4396_s1 + $0x70] sm:$0xff]  }
  0x43   : > { %v770_v20 = vsel %vm3757_vm12, %v2881_v32, %v769_v21  ;;  %v774_v50 = vsel %vm3757_vm12, %v2882_v33, %v773_v35  ;;  %v778_v51 = vsel %vm3757_vm12, %v2883_v34, %v777_v39  ;;  %v547_v54 = vld [vmem:[#allocation2 + $0x18] sm:$0xe]  ;;  %v782_v55 = vsel %vm3757_vm12, %v2884_v17, %v781_v41  ;;  %v3803_v61 = vld [vmem:[#allocation2] sm:$0xf]  ;;  %v3807_v5 = vld [vmem:[#allocation2 + $0x24] sm:$0x1] }
  0x44   : > { %v730_v37 = vsel %vm3681_vm9, %v725_v28, %v729_v15  ;;  %v786_v56 = vsel %vm3757_vm12, %v2885_v42, %v785_v43  ;;  %v2870_v58 = vrot.slane %v544_v2, 9  ;;  %v573_v59 = vrot.slane %v3778_v44, 5  ;;  %v3809_v8 = vld [vmem:[#allocation2 + $0x8] sm:$0xf]  ;;  %v548_v19 = vld [vmem:[#allocation2 + $0x20] sm:$0xe] }
  0x45   : > { %v3775_v40 = vcombine.low %v716_v25, %v730_v37  ;;  %v2871_v62 = vrot.slane %v545_v47, 9  ;;  %v577_v63 = vrot.slane %v3780_v46, 5  ;;  %v2872_v3 = vrot.slane %v546_v49, 9  ;;  %v3823_v22 = vld [vmem:[#allocation2 + $0x10] sm:$0xf] }
  0x46   : > { %v581_v4 = vrot.slane %v3784_v48, 5  ;;  %v3811_v13 = vcombine.low %v766_v6, %v770_v20  ;;  %v2873_v15 = vrot.slane %v547_v54, 9  ;;  %v585_v16 = vrot.slane %v3796_v53, 5  ;;  %v3827_v25 = vld [vmem:[#allocation2 + $0x2c] sm:$0x1] }
  0x47   : > { %3227 = vmatmul.mubr.msk.bf16.gmra.mrb[4].mxu1 %vm1004_vm8, %v3775_v40  ;;  %v3819_v12 = vcombine.low %v774_v50, %v778_v51  ;;  %v433_v21 = vshrl.u32 %v3803_v61, 16  ;;  %v436_v18 = vshll.u32 %v3803_v61, 16  ;;  %v3825_v23 = vcombine.low %v782_v55, %v786_v56  ;;  %v549_v28 = vld [vmem:[#allocation2 + $0x28] sm:$0xe]  ;;  %v3839_v37 = vld [vmem:[#allocation2 + $0x34] sm:$0x1] }
  0x48   : > { %3232 = vmatprep.mubr.msk.bf16.mxu1 %vm1004_vm8, %v3772_v38  ;;  %v447_v29 = vshrl.u32 %v3809_v8, 16  ;;  %v450_v30 = vshll.u32 %v3809_v8, 16  ;;  %v574_v32 = vsel %vm3757_vm12, %v2870_v58, %v573_v59  ;;  %v578_v33 = vsel %vm3757_vm12, %v2871_v62, %v577_v63  ;;  %v3841_v39 = vld [vmem:[#allocation2 + $0x18] sm:$0xf]  ;;  %v550_v42 = vld [vmem:[#allocation2 + $0x30] sm:$0xe] }
  0x49   : > { %4415 = vst [vmem:[#allocation3_spill] sm:$0xff] %v3819_v12  ;;  %4416 = vst [vmem:[#allocation4_spill] sm:$0xff] %v3825_v23  ;;  %v3837_v35 = vsel %vm3757_vm12, %v2872_v3, %v581_v4  ;;  %v2874_v34 = vrot.slane %v548_v19, 9  ;;  %v3847_v17 = vsel %vm3757_vm12, %v2873_v15, %v585_v16  ;;  %v589_v41 = vrot.slane %v3807_v5, 5  ;;  %v551_v6 = vld [vmem:[#allocation2 + $0x38] sm:$0xe] }
  0x4a   : > { %v461_v43 = vshrl.u32 %v3823_v22, 16  ;;  %v464_v2 = vshll.u32 %v3823_v22, 16  ;;  %v2875_v47 = vrot.slane %v549_v28, 9  ;;  %v593_v49 = vrot.slane %v3827_v25, 5  ;;  %v3862_v63 = vld [vmem:[#allocation2 + $0x20] sm:$0xf] }
  0x4b   : > { %v435_v20 = vrot.slane %v433_v21, 4  ;;  %v438_v50 = vrot.slane %v436_v18, 5  ;;  %v449_v51 = vrot.slane %v447_v29, 4  ;;  %v452_v54 = vrot.slane %v450_v30, 5  ;;  %v3868_v19 = vld [vmem:[#allocation2 + $0x28] sm:$0xf] }
  0x4c   : > { %v475_v55 = vshrl.u32 %v3841_v39, 16  ;;  %v478_v56 = vshll.u32 %v3841_v39, 16  ;;  %v2958_v58 = vcombine.low %v574_v32, %v578_v33  ;;  %v2876_v59 = vrot.slane %v550_v42, 9  ;;  %v3872_v18 = vld [vmem:[#allocation2 + $0x3c] sm:$0x1] }
  0x4d   : > { %v597_v62 = vrot.slane %v3839_v37, 5  ;;  %v3866_v3 = vsel %vm3757_vm12, %v2874_v34, %v589_v41  ;;  %v2877_v4 = vrot.slane %v551_v6, 9  ;;  %v463_v15 = vrot.slane %v461_v43, 4 }
  0x4e   : > { %v466_v16 = vrot.slane %v464_v2, 5  ;;  %v594_v21 = vsel %vm3757_vm12, %v2875_v47, %v593_v49  ;;  %v439_v28 = vor.u32 %v438_v50, %v435_v20  ;;  %v442_v29 = vshll.u32 %v3778_v44, 16  ;;  %v3889_v47 = vld [vmem:[#allocation2 + $0x30] sm:$0xf]  ;;  %v3891_v49 = vld [vmem:[#allocation2 + $0x38] sm:$0xf] }
  0x4f   : > { %3233 = vmatmul.mubr.msk.bf16.vlgmr.msra.gmra.mrb[0].mxu1 %vm1004_vm8, %v3811_v13  ;;  %v456_v30 = vshll.u32 %v3780_v46, 16  ;;  %v453_v32 = vor.u32 %v452_v54, %v449_v51  ;;  %v470_v33 = vshll.u32 %v3784_v48, 16  ;;  %v480_v34 = vrot.slane %v478_v56, 5 }
  0x50   : > { %3241 = vmatpush3.bf16.msra.mxu1 %v3731_v36  ;;  %3236 = vmatprep.mubr.msk.bf16.mxu1 %vm1004_vm8, %v3819_v12  ;;  %v2959_v36 = vcombine.low %v3837_v35, %v3847_v17  ;;  %v477_v35 = vrot.slane %v475_v55, 4  ;;  %v489_v17 = vshrl.u32 %v3862_v63, 16  ;;  %v492_v41 = vshll.u32 %v3862_v63, 16 }
  0x51   : > { %3250 = vmatprep.subr.bf16.mxu1 %v3816_v14  ;;  %v503_v42 = vshrl.u32 %v3868_v19, 16  ;;  %v506_v43 = vshll.u32 %v3868_v19, 16  ;;  %v3885_v44 = vsel %vm3757_vm12, %v2876_v59, %v597_v62  ;;  %v601_v46 = vrot.slane %v3872_v18, 5 }
  0x52   : > { %v467_v48 = vor.u32 %v466_v16, %v463_v15  ;;  %v484_v2 = vshll.u32 %v3796_v53, 16  ;;  %v2960_v6 = vcombine.low %v3866_v3, %v594_v21  ;;  %v440_v20 = vrot.slane %v439_v28, 4  ;;  %v3906_v28 = vld [vmem:[#allocation2 + $0x18] sm:$0xf] }
  0x53   : > { %v444_v50 = vrot.slane %v442_v29, 5  ;;  %v458_v51 = vrot.slane %v456_v30, 5  ;;  %v454_v54 = vrot.slane %v453_v32, 4  ;;  %v3895_v55 = vrot.slane %v470_v33, 5 }
  0x54   : > { %v481_v56 = vor.u32 %v480_v34, %v477_v35  ;;  %v498_v59 = vshll.u32 %v3807_v5, 16  ;;  %v491_v62 = vrot.slane %v489_v17, 4  ;;  %v494_v15 = vrot.slane %v492_v41, 5  ;;  %v3919_v35 = vld [vmem:[%s4396_s1 + $0x10] sm:$0xff]  }
  0x55   : > { %v505_v53 = vrot.slane %v503_v42, 4  ;;  %v508_v16 = vrot.slane %v506_v43, 5  ;;  %v3900_v12 = vrot.slane %v467_v48, 4  ;;  %v517_v3 = vshrl.u32 %v3889_v47, 16 }
  0x56   : > { %v520_v21 = vshll.u32 %v3889_v47, 16  ;;  %v602_v29 = vsel %vm3757_vm12, %v2877_v4, %v601_v46  ;;  %v445_v5 = vsel %vm3681_vm9, %v440_v20, %v444_v50  ;;  %v531_v30 = vshrl.u32 %v3891_v49, 16 }
  0x57   : > { %3237 = vmatmul.mubr.msk.bf16.gmra.mrb[4].mxu1 %vm1004_vm8, %v3825_v23  ;;  %v3898_v23 = vld [vmem:[#allocation2 + $0x10] sm:$0xf]  ;;  %v534_v32 = vshll.u32 %v3891_v49, 16  ;;  %v459_v33 = vsel %vm3681_vm9, %v454_v54, %v458_v51  ;;  %v3921_v34 = vrot.slane %v498_v59, 5  ;;  %v3925_v41 = vrot.slane %v481_v56, 4 }
  0x58   : > { %3242 = vmatprep.mubr.msk.bf16.mxu1 %vm1004_vm8, %v2958_v58  ;;  %v3902_v58 = vrot.slane %v484_v2, 5  ;;  %v805_v17 = vshrl.u32 %v3898_v23, 16  ;;  %v808_v4 = vshll.u32 %v3898_v23, 16  ;;  %v495_v42 = vor.u32 %v494_v15, %v491_v62  ;;  %v3935_v62 = vld [vmem:[#allocation2 + $0x14] sm:$0x1] }
  0x59   : > { %v509_v43 = vor.u32 %v508_v16, %v505_v53  ;;  %v512_v46 = vshll.u32 %v3827_v25, 16  ;;  %v519_v48 = vrot.slane %v517_v3, 4  ;;  %v526_v2 = vshll.u32 %v3839_v37, 16  ;;  %v3939_v37 = vld [vmem:[#allocation2 + $0x1c] sm:$0x1] }
  0x5a   : > { %v819_v20 = vshrl.u32 %v3906_v28, 16  ;;  %v822_v50 = vshll.u32 %v3906_v28, 16  ;;  %v522_v51 = vrot.slane %v520_v21, 5  ;;  %v533_v54 = vrot.slane %v531_v30, 4  ;;  %v3941_v53 = vld [vmem:[#allocation2 + $0x20] sm:$0xf] }
  0x5b   : > { %v536_v56 = vrot.slane %v534_v32, 5  ;;  %v540_v59 = vshll.u32 %v3872_v18, 16  ;;  %v2961_v25 = vcombine.low %v3885_v44, %v602_v29  ;;  %v810_v15 = vrot.slane %v808_v4, 5  ;;  %v3945_v21 = vld [vmem:[#allocation2 + $0x28] sm:$0xf] }
  0x5c   : > { %v510_v16 = vrot.slane %v509_v43, 4  ;;  %v514_v3 = vrot.slane %v512_v46, 5  ;;  %v821_v18 = vrot.slane %v819_v20, 4  ;;  %v824_v30 = vrot.slane %v822_v50, 5  ;;  %v3964_v4 = vld [vmem:[#allocation2 + $0x30] sm:$0xf] }
  0x5d   : > { %v3949_v44 = vcombine.low %v3637_v10, %v3639_v11  ;;  %v3953_v29 = vcombine.low %v3659_v26, %v3661_v27  ;;  %v487_v32 = vsel %vm3681_vm9, %v3925_v41, %v3902_v58  ;;  %v3969_v10 = vld [vmem:[%s4396_s1 + $0x68] sm:$0xff]   ;;  %v3971_v11 = vrot.slane %v526_v2, 5 }
  0x5e   : > { %v537_v26 = vor.u32 %v536_v56, %v533_v54  ;;  %v3973_v27 = vrot.slane %v540_v59, 5  ;;  %v515_v41 = vsel %vm3681_vm9, %v510_v16, %v514_v3  ;;  %v833_v43 = vshrl.u32 %v3941_v53, 16  ;;  %v4002_v3 = vld [vmem:[#allocation2 + $0x24] sm:$0x1] }
  0x5f   : > { %3243 = vmatmul.mubr.msk.bf16.vlgmr.msra.gmra.mrb[0].mxu1 %vm1004_vm8, %v2959_v36  ;;  %v807_v36 = vrot.slane %v805_v17, 4  ;;  %4417 = vst [vmem:[#allocation5_spill] sm:$0xff] %v3949_v44  ;;  %4418 = vst [vmem:[#allocation6_spill] sm:$0xff] %v3953_v29  ;;  %v814_v17 = vshll.u32 %v3935_v62, 16  ;;  %3182 = vmatprep.mubr.msk.bf16.mxu0 %vm1004_vm8, %v3949_v44  ;;  %v825_v46 = vor.u32 %v824_v30, %v821_v18  ;;  %v847_v2 = vshrl.u32 %v3945_v21, 16 }
  0x60   : > { %3251 = vmatpush3.bf16.msra.mxu1 %v3816_v14  ;;  %3246 = vmatprep.mubr.msk.bf16.mxu1 %vm1004_vm8, %v2960_v6  ;;  %v3943_v14 = vcombine.low %v445_v5, %v459_v33  ;;  %v496_v6 = vrot.slane %v495_v42, 4  ;;  %v473_v5 = vsel %vm3681_vm9, %v3900_v12, %v3895_v55  ;;  %v523_v33 = vor.u32 %v522_v51, %v519_v48  ;;  %v3977_v55 = vld [vmem:[#allocation2 + $0x38] sm:$0xf] }
  0x61   : > { %3300 = vmatprep.subr.bf16.mxu1 %v3919_v35  ;;  %v811_v12 = vor.u32 %v810_v15, %v807_v36  ;;  %v828_v42 = vshll.u32 %v3939_v37, 16  ;;  %3183 = vmatmul.mubr.msk.bf16.vlgmr.msra.gmra.mrb[0].mxu0 %vm1004_vm8, %v3953_v29  ;;  %v836_v48 = vshll.u32 %v3941_v53, 16  ;;  %v850_v20 = vshll.u32 %v3945_v21, 16 }
  0x62   : > { %v501_v58 = vsel %vm3681_vm9, %v496_v6, %v3921_v34  ;;  %3191 = vmatpush3.bf16.msra.mxu0 %v3693_v60  ;;  %v524_v34 = vrot.slane %v523_v33, 4  ;;  %v816_v50 = vrot.slane %v814_v17, 5  ;;  %v861_v51 = vshrl.u32 %v3964_v4, 16 }
  0x63   : > { %v864_v54 = vshll.u32 %v3964_v4, 16  ;;  %3200 = vmatprep.subr.bf16.mxu0 %v3969_v10  ;;  %v538_v56 = vrot.slane %v537_v26, 4  ;;  %v812_v59 = vrot.slane %v811_v12, 4  ;;  %v878_v36 = vshll.u32 %v3977_v55, 16  ;;  %v4009_v26 = vld [vmem:[%s4396_s1] sm:$0xff]  }
  0x64   : > { %v4000_v15 = vcombine.low %v473_v5, %v487_v32  ;;  %v830_v60 = vrot.slane %v828_v42, 5  ;;  %v835_v6 = vrot.slane %v833_v43, 4  ;;  %v826_v16 = vrot.slane %v825_v46, 4  ;;  %v4011_v12 = vld [vmem:[#allocation2 + $0x2c] sm:$0x1] }
  0x65   : > { %v838_v18 = vrot.slane %v836_v48, 5  ;;  %v849_v30 = vrot.slane %v847_v2, 4  ;;  %v852_v33 = vrot.slane %v850_v20, 5  ;;  %v4004_v17 = vcombine.low %v501_v58, %v515_v41  ;;  %v4013_v43 = vld [vmem:[#allocation2 + $0x40] sm:$0xf] }
  0x66   : > { %v863_v29 = vrot.slane %v861_v51, 4  ;;  %v866_v5 = vrot.slane %v864_v54, 5  ;;  %v880_v42 = vrot.slane %v878_v36, 5  ;;  %4419 = vst [vmem:[#allocation7_spill] sm:$0xff] %v4013_v43  ;;  %v4015_v46 = vld [vmem:[#allocation2 + $0x48] sm:$0xf]  ;;  %v4019_v48 = vcombine.low %v3687_v57, %v3697_v0 }
  0x67   : > { %3247 = vmatmul.mubr.msk.bf16.gmra.mrb[4].mxu1 %vm1004_vm8, %v2961_v25  ;;  %v875_v25 = vshrl.u32 %v3977_v55, 16  ;;  %v4023_v58 = vcombine.low %v3715_v24, %v3748_v1  ;;  %v529_v41 = vsel %vm3681_vm9, %v524_v34, %v3971_v11  ;;  %v543_v2 = vsel %vm3681_vm9, %v538_v56, %v3973_v27  ;;  %v4034_v54 = vld [vmem:[#allocation2 + $0x34] sm:$0x1]  ;;  %v4036_v57 = vld [vmem:[#allocation2 + $0x3c] sm:$0x1] }
  0x68   : > { %3252 = vmatprep.mubr.msk.bf16.mxu1 %vm1004_vm8, %v3943_v14  ;;  %4420 = vst [vmem:[#allocation8_spill] sm:$0xff] %v4019_v48  ;;  %v817_v20 = vsel %vm3681_vm9, %v812_v59, %v816_v50  ;;  %v842_v51 = vshll.u32 %v4002_v3, 16  ;;  %v831_v0 = vsel %vm3681_vm9, %v826_v16, %v830_v60  ;;  %v839_v24 = vor.u32 %v838_v18, %v835_v6 }
  0x69   : > { %v877_v32 = vrot.slane %v875_v25, 4  ;;  %4421 = vst [vmem:[#allocation9_spill] sm:$0xff] %v4023_v58  ;;  %v853_v1 = vor.u32 %v852_v33, %v849_v30  ;;  %v856_v11 = vshll.u32 %v4011_v12, 16  ;;  %3186 = vmatprep.mubr.msk.bf16.mxu0 %vm1004_vm8, %v4019_v48  ;;  %v889_v27 = vshrl.u32 %v4013_v43, 16 }
  0x6a   : > { %v892_v34 = vshll.u32 %v4013_v43, 16  ;;  %v903_v50 = vshrl.u32 %v4015_v46, 16  ;;  %v906_v56 = vshll.u32 %v4015_v46, 16  ;;  %v867_v59 = vor.u32 %v866_v5, %v863_v29  ;;  %3187 = vmatmul.mubr.msk.bf16.gmra.mrb[4].mxu0 %vm1004_vm8, %v4023_v58  ;;  %v4063_v29 = vld [vmem:[#allocation2 + $0x44] sm:$0x1] }
  0x6b   : > { %v870_v25 = vshll.u32 %v4034_v54, 16  ;;  %v881_v36 = vor.u32 %v880_v42, %v877_v32  ;;  %v884_v60 = vshll.u32 %v4036_v57, 16  ;;  %v844_v6 = vrot.slane %v842_v51, 5  ;;  %3192 = vmatprep.mubr.msk.bf16.mxu0 %vm1004_vm8, %v3709_v9 }
  0x6c   : > { %v4061_v16 = vcombine.low %v817_v20, %v831_v0  ;;  %v840_v18 = vrot.slane %v839_v24, 4  ;;  %v854_v30 = vrot.slane %v853_v1, 4  ;;  %v858_v33 = vrot.slane %v856_v11, 5  ;;  %v3476_v0 = vld [vmem:[%s4396_s1 + $0x78] sm:$0xff]  }
  0x6d   : > { %v891_v5 = vrot.slane %v889_v27, 4  ;;  %v894_v32 = vrot.slane %v892_v34, 5  ;;  %v905_v42 = vrot.slane %v903_v50, 4  ;;  %v908_v48 = vrot.slane %v906_v56, 5  ;;  %v916_v56 = vld [vmem:[#allocation2 + $0x10] sm:$0xe] }
  0x6e   : > { %v868_v44 = vrot.slane %v867_v59, 4  ;;  %v872_v43 = vrot.slane %v870_v25, 5  ;;  %v882_v58 = vrot.slane %v881_v36, 4  ;;  %v845_v20 = vsel %vm3681_vm9, %v840_v18, %v844_v6  ;;  %v917_v59 = vld [vmem:[#allocation2 + $0x18] sm:$0xe] }
  0x6f   : > { %3253 = vmatmul.mubr.msk.bf16.vlgmr.msra.gmra.mrb[0].mxu1 %vm1004_vm8, %v4000_v15  ;;  %v898_v51 = vshll.u32 %v4063_v29, 16  ;;  %v859_v24 = vsel %vm3681_vm9, %v854_v30, %v858_v33  ;;  %v895_v1 = vor.u32 %v894_v32, %v891_v5  ;;  %v909_v11 = vor.u32 %v908_v48, %v905_v42  ;;  %v3473_v33 = vld [vmem:[%s4396_s1 + $0x40] sm:$0xff]   ;;  %v919_v42 = vld [vmem:[#allocation2 + $0x28] sm:$0xe] }
  0x70   : > { %3301 = vmatpush3.bf16.msra.mxu1 %v3919_v35  ;;  %3256 = vmatprep.mubr.msk.bf16.mxu1 %vm1004_vm8, %v4004_v17  ;;  %v4057_v35 = vcombine.low %v529_v41, %v543_v2  ;;  %v886_v41 = vrot.slane %v884_v60, 5  ;;  %v4065_v2 = vld [vmem:[#allocation2 + $0x4c] sm:$0x1]  ;;  %v873_v34 = vsel %vm3681_vm9, %v868_v44, %v872_v43  ;;  %v4089_v25 = vcombine.low %v845_v20, %v859_v24  ;;  %v918_v5 = vld [vmem:[#allocation2 + $0x20] sm:$0xe] }
  0x71   : > { %3310 = vmatprep.subr.bf16.mxu1 %v4009_v26  ;;  %v912_v27 = vshll.u32 %v4065_v2, 16  ;;  %v900_v48 = vrot.slane %v898_v51, 5  ;;  %v896_v44 = vrot.slane %v895_v1, 4  ;;  %v910_v43 = vrot.slane %v909_v11, 4 }
  0x72   : > { %v887_v50 = vsel %vm3681_vm9, %v882_v58, %v886_v41  ;;  %3193 = vmatmul.mubr.msk.bf16.vlgmr.msra.gmra.mrb[0].mxu0 %vm1004_vm8, %v3724_v31  ;;  %v2886_v58 = vrot.slane %v916_v56, 9  ;;  %v942_v6 = vrot.slane %v3935_v62, 5  ;;  %v2887_v18 = vrot.slane %v917_v59, 9  ;;  %v921_v41 = vld [vmem:[#allocation2 + $0x38] sm:$0xe] }
  0x73   : > { %3196 = vmatprep.mubr.msk.bf16.mxu0 %vm1004_vm8, %v3746_v52  ;;  %3201 = vmatpush3.bf16.msra.mxu0 %v3969_v10  ;;  %v4091_v36 = vcombine.low %v873_v34, %v887_v50  ;;  %v914_v60 = vrot.slane %v912_v27, 5  ;;  %v946_v30 = vrot.slane %v3939_v37, 5  ;;  %v901_v10 = vsel %vm3681_vm9, %v896_v44, %v900_v48  ;;  %v922_v59 = vld [vmem:[#allocation2 + $0x40] sm:$0xe]  ;;  %v923_v48 = vld [vmem:[#allocation2 + $0x48] sm:$0xe] }
  0x74   : > { %3210 = vmatprep.subr.bf16.mxu0 %v3476_v0  ;;  %v943_v37 = vsel %vm3757_vm12, %v2886_v58, %v942_v6  ;;  %v2888_v45 = vrot.slane %v918_v5, 9  ;;  %v950_v24 = vrot.slane %v4002_v3, 5  ;;  %v2889_v1 = vrot.slane %v919_v42, 9 }
  0x75   : > { %v915_v62 = vsel %vm3681_vm9, %v910_v43, %v914_v60  ;;  %v947_v32 = vsel %vm3757_vm12, %v2887_v18, %v946_v30  ;;  %v954_v11 = vrot.slane %v4011_v12, 5  ;;  %v958_v34 = vrot.slane %v4034_v54, 5  ;;  %v3475_v30 = vld [vmem:[%s4396_s1 + $0x50] sm:$0xff]  }
  0x76   : > { %v4115_v20 = vcombine.low %v901_v10, %v915_v62  ;;  %v3017_v51 = vcombine.low %v943_v37, %v947_v32  ;;  %v2891_v50 = vrot.slane %v921_v41, 9  ;;  %v962_v56 = vrot.slane %v4036_v57, 5 }
  0x77   : > { %3257 = vmatmul.mubr.msk.bf16.gmra.mrb[4].mxu1 %vm1004_vm8, %v4057_v35  ;;  %v951_v3 = vsel %vm3757_vm12, %v2888_v45, %v950_v24  ;;  %v955_v12 = vsel %vm3757_vm12, %v2889_v1, %v954_v11  ;;  %v2892_v43 = vrot.slane %v922_v59, 9  ;;  %v966_v58 = vrot.slane %v4063_v29, 5 }
  0x78   : > { %3302 = vmatprep.mubr.msk.bf16.mxu1 %vm1004_vm8, %v4061_v16  ;;  %v963_v57 = vsel %vm3757_vm12, %v2891_v50, %v962_v56  ;;  %v3018_v44 = vcombine.low %v951_v3, %v955_v12  ;;  %v2893_v6 = vrot.slane %v923_v48, 9  ;;  %v970_v18 = vrot.slane %v4065_v2, 5 }
  0x79   : > { %vm2609_vm13 = vcmask 257152  }
  0x7a   : > { %3197 = vmatmul.mubr.msk.bf16.gmra.mrb[4].mxu0 %vm1004_vm8, %v3775_v40  ;;  %v971_v29 = vsel %vm3757_vm12, %v2893_v6, %v970_v18 }
  0x7b   : > { %3202 = vmatprep.mubr.msk.bf16.mxu0 %vm1004_vm8, %v3943_v14  ;;  %v3481_v14 = vld [vmem:[%s4396_s1 + $0x18] sm:$0xff]  }
  0x7f   : > { %3303 = vmatmul.mubr.msk.bf16.vlgmr.msra.gmra.mrb[8].mxu1 %vm1004_vm8, %v4089_v25 }
  0x80   : > { %3311 = vmatpush3.bf16.msra.mxu1 %v4009_v26  ;;  %3306 = vmatprep.mubr.msk.bf16.mxu1 %vm1004_vm8, %v4091_v36  ;;  %v920_v26 = vld [vmem:[#allocation2 + $0x30] sm:$0xe] }
  0x81   : > { %3320 = vmatprep.subr.bf16.mxu1 %v3473_v33  ;;  %v2890_v27 = vrot.slane %v920_v26, 9 }
  0x82   : > { %3203 = vmatmul.mubr.msk.bf16.vlgmr.msra.gmra.mrb[0].mxu0 %vm1004_vm8, %v4000_v15  ;;  %v2929_v15 = vcombine.low %v3803_v61, %v3809_v8  ;;  %v2930_v61 = vcombine.low %v3823_v22, %v3841_v39  ;;  %v2931_v8 = vcombine.low %v3862_v63, %v3868_v19  ;;  %v2932_v22 = vcombine.low %v3889_v47, %v3891_v49  ;;  %v4422_v63 = vld [vmem:[#allocation3_spill] sm:$0xff]  ;;  %v4423_v47 = vld [vmem:[#allocation4_spill] sm:$0xff] }
  0x83   : > { %v959_v54 = vsel %vm3757_vm12, %v2890_v27, %v958_v34  ;;  %3206 = vmatprep.mubr.msk.bf16.mxu0 %vm1004_vm8, %v4004_v17  ;;  %3211 = vmatpush3.bf16.msra.mxu0 %v3476_v0  ;;  %v967_v17 = vsel %vm3757_vm12, %v2892_v43, %v966_v58  ;;  %v2978_v39 = vcombine.low %v3898_v23, %v3906_v28  ;;  %v4424_v23 = vld [vmem:[#allocation7_spill] sm:$0xff]  ;;  %v3488_v28 = vld [vmem:[%s4396_s1 + $0x58] sm:$0xff]  }
  0x84   : > { %3260 = vmatprep.subr.bf16.mxu0 %v3481_v14  ;;  %v3019_v60 = vcombine.low %v959_v54, %v963_v57  ;;  %v3020_v2 = vcombine.low %v967_v17, %v971_v29  ;;  %v2980_v19 = vcombine.low %v3964_v4, %v3977_v55  ;;  %v2981_v49 = vcombine.low %v4424_v23, %v4015_v46  ;;  %v4427_v4 = vld [vmem:[#allocation8_spill] sm:$0xff] }
  0x87   : > { %3307 = vmatmul.mubr.msk.bf16.gmra.mrb[12].mxu1 %vm1004_vm8, %v4115_v20 }
  0x88   : > { %3312 = vmatprep.mubr.msk.bf16.mxu1 %vm1004_vm8, %v3017_v51 }
  0x8a   : > { %3207 = vmatmul.mubr.msk.bf16.gmra.mrb[4].mxu0 %vm1004_vm8, %v4057_v35 }
  0x8b   : > { %3212 = vmatprep.mubr.msk.bf16.mxu0 %vm1004_vm8, %v2929_v15 }
  0x8f   : > { %3313 = vmatmul.mubr.msk.bf16.vlgmr.msra.gmra.mrb[8].mxu1 %vm1004_vm8, %v3018_v44 }
  0x90   : > { %3321 = vmatpush3.bf16.msra.mxu1 %v3473_v33  ;;  %3316 = vmatprep.mubr.msk.bf16.mxu1 %vm1004_vm8, %v3019_v60 }
  0x91   : > { %3330 = vmatprep.subr.bf16.mxu1 %v3475_v30 }
  0x92   : > { %3213 = vmatmul.mubr.msk.bf16.vlgmr.msra.gmra.mrb[0].mxu0 %vm1004_vm8, %v2930_v61 }
  0x93   : > { %3216 = vmatprep.mubr.msk.bf16.mxu0 %vm1004_vm8, %v2931_v8  ;;  %3261 = vmatpush3.bf16.msra.mxu0 %v3481_v14 }
  0x94   : > { %3270 = vmatprep.subr.bf16.mxu0 %v3486_v7 }
  0x97   : > { %3317 = vmatmul.mubr.msk.bf16.gmra.mrb[12].mxu1 %vm1004_vm8, %v3020_v2 }
  0x98   : > { %3322 = vmatprep.mubr.msk.bf16.mxu1 %vm1004_vm8, %v3772_v38  ;;  %v2979_v38 = vcombine.low %v3941_v53, %v3945_v21  ;;  %v4425_v53 = vld [vmem:[#allocation5_spill] sm:$0xff]  ;;  %v4426_v21 = vld [vmem:[#allocation6_spill] sm:$0xff] }
  0x9a   : > { %3217 = vmatmul.mubr.msk.bf16.gmra.mrb[4].mxu0 %vm1004_vm8, %v2932_v22 }
  0x9b   : > { %3262 = vmatprep.mubr.msk.bf16.mxu0 %vm1004_vm8, %v2978_v39 }
  0x9f   : > { %3323 = vmatmul.mubr.msk.bf16.vlgmr.msra.gmra.mrb[8].mxu1 %vm1004_vm8, %v3811_v13  ;;  %v3487_v13 = vld [vmem:[%s4396_s1 + $0x48] sm:$0xff]  }
  0xa0   : > { %3331 = vmatpush3.bf16.msra.mxu1 %v3475_v30  ;;  %3326 = vmatprep.mubr.msk.bf16.mxu1 %vm1004_vm8, %v4422_v63 }
  0xa2   : > { %3263 = vmatmul.mubr.msk.bf16.vlgmr.msra.gmra.mrb[8].mxu0 %vm1004_vm8, %v2979_v38 }
  0xa3   : > { %3266 = vmatprep.mubr.msk.bf16.mxu0 %vm1004_vm8, %v2980_v19  ;;  %3271 = vmatpush3.bf16.msra.mxu0 %v3486_v7 }
  0xa4   : > { %3280 = vmatprep.subr.bf16.mxu0 %v3487_v13 }
  0xa7   : > { %3327 = vmatmul.mubr.msk.bf16.gmra.mrb[12].mxu1 %vm1004_vm8, %v4423_v47 }
  0xa8   : > { %3332 = vmatprep.mubr.msk.bf16.mxu1 %vm1004_vm8, %v3709_v9 }
  0xaa   : > { %3267 = vmatmul.mubr.msk.bf16.gmra.mrb[12].mxu0 %vm1004_vm8, %v2981_v49 }
  0xab   : > { %3272 = vmatprep.mubr.msk.bf16.mxu0 %vm1004_vm8, %v4061_v16 }
  0xaf   : > { %3333 = vmatmul.mubr.msk.bf16.vlgmr.msra.gmra.mrb[8].mxu1 %vm1004_vm8, %v3724_v31 }
  0xb0   : > { %3336 = vmatprep.mubr.msk.bf16.mxu1 %vm1004_vm8, %v3746_v52 }
  0xb2   : > { %3273 = vmatmul.mubr.msk.bf16.vlgmr.msra.gmra.mrb[8].mxu0 %vm1004_vm8, %v4089_v25 }
  0xb3   : > { %3276 = vmatprep.mubr.msk.bf16.mxu0 %vm1004_vm8, %v4091_v36  ;;  %3281 = vmatpush3.bf16.msra.mxu0 %v3487_v13 }
  0xb4   : > { %3290 = vmatprep.subr.bf16.mxu0 %v3488_v28 }
  0xb7   : > { %3337 = vmatmul.mubr.msk.bf16.gmra.mrb[12].mxu1 %vm1004_vm8, %v3775_v40 }
  0xba   : > { %3277 = vmatmul.mubr.msk.bf16.gmra.mrb[12].mxu0 %vm1004_vm8, %v4115_v20 }
  0xbb   : > { %3282 = vmatprep.mubr.msk.bf16.mxu0 %vm1004_vm8, %v3709_v9  ;;  %v4428_v9 = vld [vmem:[#allocation9_spill] sm:$0xff] }
  0xc2   : > { %3283 = vmatmul.mubr.msk.bf16.vlgmr.msra.gmra.mrb[8].mxu0 %vm1004_vm8, %v3724_v31  ;;  %v4229_v31 = vld [vmem:[%s4397_s2] ss:$0 sm:$0xff] }
  0xc3   : > { %3286 = vmatprep.mubr.msk.bf16.mxu0 %vm1004_vm8, %v3746_v52  ;;  %3291 = vmatpush3.bf16.msra.mxu0 %v3488_v28 }
  0xca   : > { %3287 = vmatmul.mubr.msk.bf16.gmra.mrb[12].mxu0 %vm1004_vm8, %v3775_v40  ;;  %v4234_v40 = vld [vmem:[%s4398_s3] ss:$0 sm:$0xff] }
  0xcb   : > { %3292 = vmatprep.mubr.msk.bf16.mxu0 %vm1004_vm8, %v4425_v53 }
  0xd2   : > { %3293 = vmatmul.mubr.msk.bf16.vlgmr.msra.gmra.mrb[8].mxu0 %vm1004_vm8, %v4426_v21 }
  0xd3   : > { %3296 = vmatprep.mubr.msk.bf16.mxu0 %vm1004_vm8, %v4427_v4 }
  0xda   : > { %3297 = vmatmul.mubr.msk.bf16.gmra.mrb[12].mxu0 %vm1004_vm8, %v4428_v9 }
 0x142   : > { %v3254_v52 = vpop.f32.mrb[0].mxu1 }
 0x143   : > { %v2524_v55 = vmul.f32 %v3254_v52, %v4229_v31  ;;  %v1718_v46 = vpop.f32.mrb[1].mxu1 }
 0x144   : > { %v2522_v35 = vmul.f32 %v4229_v31, %v1718_v46  ;;  %v3255_v16 = vpop.f32.mrb[2].mxu1 }
 0x145   : > { %v2525_v0 = vmul.f32 %v3255_v16, %v4229_v31  ;;  %v1721_v25 = vpop.f32.mrb[3].mxu1  ;;  %v2539_v36 = vadd.f32 %v4234_v40, %v2524_v55 }
 0x146   : > { %v2523_v33 = vmul.f32 %v4229_v31, %v1721_v25  ;;  %v2537_v10 = vadd.f32 %v4234_v40, %v2522_v35 }
 0x147   : > { %v2540_v62 = vadd.f32 %v4234_v40, %v2525_v0  ;;  %v2547_v5 = vmax.f32 %v2539_v36, 0.0 }
 0x148   : > { %v2538_v37 = vadd.f32 %v4234_v40, %v2523_v33  ;;  %v2545_v32 = vmax.f32 %v2537_v10, 0.0 }
 0x149   : > { %v2548_v42 = vmax.f32 %v2540_v62, 0.0  ;;  %v3086_v26 = vpack.c.bf16 %v2547_v5, %v2547_v5 }
 0x14a   : > { %v2546_v41 = vmax.f32 %v2538_v37, 0.0  ;;  %v3258_v20 = vpop.f32.mrb[4].mxu1  ;;  %v3084_v45 = vpack.c.bf16 %v2545_v32, %v2545_v32 }
 0x14b   : > { %v2528_v51 = vmul.f32 %v3258_v20, %v4229_v31  ;;  %2589 = vrot.lane.b32.xlu1 %v3086_v26, %s3514_s11  ;;  %v1734_v24 = vpop.f32.mrb[5].mxu1  ;;  %v3087_v27 = vpack.c.bf16 %v2548_v42, %v2548_v42 }
 0x14c   : > { %v2526_v1 = vmul.f32 %v4229_v31, %v1734_v24  ;;  %2585 = vrot.lane.b32.xlu0 %v3084_v45, %s3514_s11  ;;  %v3259_v11 = vpop.f32.mrb[6].mxu1  ;;  %v3085_v14 = vpack.c.bf16 %v2546_v41, %v2546_v41 }
 0x14d   : > { %v2543_v34 = vadd.f32 %v4234_v40, %v2528_v51  ;;  %v2529_v50 = vmul.f32 %v3259_v11, %v4229_v31  ;;  %v1737_v56 = vpop.f32.mrb[7].mxu1 }
 0x14e   : > { %v2541_v3 = vadd.f32 %v4234_v40, %v2526_v1  ;;  %v2527_v12 = vmul.f32 %v4229_v31, %v1737_v56 }
 0x14f   : > { %v2551_v59 = vmax.f32 %v2543_v34, 0.0  ;;  %v2544_v54 = vadd.f32 %v4234_v40, %v2529_v50  ;;  %2591 = vrot.lane.b32.xlu1 %v3087_v27, %s3514_s11 }
 0x150   : > { %v2542_v57 = vadd.f32 %v4234_v40, %v2527_v12  ;;  %2587 = vrot.lane.b32.xlu0 %v3085_v14, %s3514_s11  ;;  %v2549_v43 = vmax.f32 %v2541_v3, 0.0 }
 0x151   : > { %v3090_v48 = vpack.c.bf16 %v2551_v59, %v2551_v59  ;;  %v2552_v44 = vmax.f32 %v2544_v54, 0.0 }
 0x152   : > { %v2550_v58 = vmax.f32 %v2542_v57, 0.0  ;;  %v3088_v6 = vpack.c.bf16 %v2549_v43, %v2549_v43 }
 0x153   : > { %v3091_v60 = vpack.c.bf16 %v2552_v44, %v2552_v44 }
 0x154   : > { %2597 = vrot.lane.b32.xlu0 %v3090_v48, %s3514_s11  ;;  %v3089_v18 = vpack.c.bf16 %v2550_v58, %v2550_v58 }
 0x155   : > { %2599 = vrot.lane.b32.xlu1 %v3091_v60, %s3514_s11 }
 0x158   : > { %2593 = vrot.lane.b32.xlu0 %v3088_v6, %s3514_s11 }
 0x159   : > { %2595 = vrot.lane.b32.xlu1 %v3089_v18, %s3514_s11 }
 0x165   : > { %v3214_v30 = vpop.f32.mrb[0].mxu0 }
 0x166   : > { %v2469_v15 = vmul.f32 %v3214_v30, %v4229_v31  ;;  %v1358_v17 = vpop.f32.mrb[1].mxu0 }
 0x167   : > { %v2467_v29 = vmul.f32 %v4229_v31, %v1358_v17  ;;  %v3215_v2 = vpop.f32.mrb[2].mxu0 }
 0x168   : > { %v2484_v61 = vadd.f32 %v4234_v40, %v2469_v15  ;;  %v2470_v8 = vmul.f32 %v3215_v2, %v4229_v31  ;;  %v1361_v7 = vpop.f32.mrb[3].mxu0 }
 0x169   : > { %v2482_v22 = vadd.f32 %v4234_v40, %v2467_v29  ;;  %v2468_v39 = vmul.f32 %v4229_v31, %v1361_v7 }
 0x16a   : > { %v2492_v63 = vmax.f32 %v2484_v61, 0.0  ;;  %v2485_v38 = vadd.f32 %v4234_v40, %v2470_v8 }
 0x16b   : > { %v2490_v19 = vmax.f32 %v2482_v22, 0.0  ;;  %v2483_v47 = vadd.f32 %v4234_v40, %v2468_v39 }
 0x16c   : > { %v2500_v13 = vpack.c.bf16 %v2492_v63, %v2492_v63  ;;  %v2493_v23 = vmax.f32 %v2485_v38, 0.0 }
 0x16d   : > { %v2498_v49 = vpack.c.bf16 %v2490_v19, %v2490_v19  ;;  %v2491_v28 = vmax.f32 %v2483_v47, 0.0  ;;  %v3218_v53 = vpop.f32.mrb[4].mxu0 }
 0x16e   : > { %2509 = vst.msk [vmem:[%s4271_s19 + $0x10] sm:$0xf] %vm248_vm0, %v2500_v13  ;;  %v2501_v21 = vpack.c.bf16 %v2493_v23, %v2493_v23  ;;  %v2473_v4 = vmul.f32 %v3218_v53, %v4229_v31  ;;  %v1374_v9 = vpop.f32.mrb[5].mxu0 }
 0x16f   : > { %2507 = vst.msk [vmem:[%s4271_s19] sm:$0xf] %vm248_vm0, %v2498_v49  ;;  %v2499_v52 = vpack.c.bf16 %v2491_v28, %v2491_v28  ;;  %v2471_v55 = vmul.f32 %v4229_v31, %v1374_v9  ;;  %v3219_v46 = vpop.f32.mrb[6].mxu0 }
 0x170   : > { %2510 = vst.msk [vmem:[%s4271_s19 + $0x18] sm:$0xf] %vm248_vm0, %v2501_v21  ;;  %v2488_v35 = vadd.f32 %v4234_v40, %v2473_v4  ;;  %v2474_v16 = vmul.f32 %v3219_v46, %v4229_v31  ;;  %v1377_v0 = vpop.f32.mrb[7].mxu0 }
 0x171   : > { %2508 = vst.msk [vmem:[%s4271_s19 + $0x8] sm:$0xf] %vm248_vm0, %v2499_v52  ;;  %v2486_v25 = vadd.f32 %v4234_v40, %v2471_v55  ;;  %v2472_v36 = vmul.f32 %v4229_v31, %v1377_v0 }
 0x172   : > { %v2496_v33 = vmax.f32 %v2488_v35, 0.0  ;;  %v2489_v10 = vadd.f32 %v4234_v40, %v2474_v16 }
 0x173   : > { %v2494_v62 = vmax.f32 %v2486_v25, 0.0  ;;  %v2487_v5 = vadd.f32 %v4234_v40, %v2472_v36 }
 0x174   : > { %v2504_v37 = vpack.c.bf16 %v2496_v33, %v2496_v33  ;;  %v2497_v32 = vmax.f32 %v2489_v10, 0.0 }
 0x175   : > { %v2502_v42 = vpack.c.bf16 %v2494_v62, %v2494_v62  ;;  %v2495_v26 = vmax.f32 %v2487_v5, 0.0 }
 0x176   : > { %2513 = vst.msk [vmem:[%s4271_s19 + $0x30] sm:$0xf] %vm248_vm0, %v2504_v37  ;;  %v2505_v41 = vpack.c.bf16 %v2497_v32, %v2497_v32 }
 0x177   : > { %2511 = vst.msk [vmem:[%s4271_s19 + $0x20] sm:$0xf] %vm248_vm0, %v2502_v42  ;;  %v2503_v20 = vpack.c.bf16 %v2495_v26, %v2495_v26 }
 0x178   : > { %2514 = vst.msk [vmem:[%s4271_s19 + $0x38] sm:$0xf] %vm248_vm0, %v2505_v41 }
 0x179   : > { %2512 = vst.msk [vmem:[%s4271_s19 + $0x28] sm:$0xf] %vm248_vm0, %v2503_v20 }
 0x182   : > { %v3334_v45 = vpop.f32.mrb[8].mxu1 }
 0x183   : > { %v2682_v51 = vmul.f32 %v3334_v45, %v4229_v31  ;;  %v2421_v24 = vpop.f32.mrb[9].mxu1 }
 0x184   : > { %v2680_v1 = vmul.f32 %v4229_v31, %v2421_v24  ;;  %v3335_v11 = vpop.f32.mrb[10].mxu1 }
 0x185   : > { %v2697_v27 = vadd.f32 %v4234_v40, %v2682_v51  ;;  %v2683_v34 = vmul.f32 %v3335_v11, %v4229_v31  ;;  %v2424_v50 = vpop.f32.mrb[11].mxu1 }
 0x186   : > { %v2695_v56 = vadd.f32 %v4234_v40, %v2680_v1  ;;  %v2681_v14 = vmul.f32 %v4229_v31, %v2424_v50 }
 0x187   : > { %v2705_v3 = vmax.f32 %v2697_v27, 0.0  ;;  %v2698_v12 = vadd.f32 %v4234_v40, %v2683_v34 }
 0x188   : > { %v2696_v59 = vadd.f32 %v4234_v40, %v2681_v14  ;;  %v2703_v57 = vmax.f32 %v2695_v56, 0.0 }
 0x189   : > { %v3094_v54 = vpack.c.bf16 %v2705_v3, %v2705_v3  ;;  %v2706_v48 = vmax.f32 %v2698_v12, 0.0 }
 0x18a   : > { %v3338_v44 = vpop.f32.mrb[12].mxu1  ;;  %v2704_v60 = vmax.f32 %v2696_v59, 0.0  ;;  %v3092_v15 = vpack.c.bf16 %v2703_v57, %v2703_v57 }
 0x18b   : > { %v3095_v43 = vpack.c.bf16 %v2706_v48, %v2706_v48  ;;  %v2686_v58 = vmul.f32 %v3338_v44, %v4229_v31  ;;  %2747 = vrot.lane.b32.xlu0 %v3094_v54, %s3514_s11  ;;  %v2437_v6 = vpop.f32.mrb[13].mxu1 }
 0x18c   : > { %v2684_v18 = vmul.f32 %v4229_v31, %v2437_v6  ;;  %v3339_v30 = vpop.f32.mrb[14].mxu1  ;;  %v3093_v7 = vpack.c.bf16 %v2704_v60, %v2704_v60 }
 0x18d   : > { %v2687_v17 = vmul.f32 %v3339_v30, %v4229_v31  ;;  %2749 = vrot.lane.b32.xlu1 %v3095_v43, %s3514_s11  ;;  %v2440_v29 = vpop.f32.mrb[15].mxu1  ;;  %v2701_v2 = vadd.f32 %v4234_v40, %v2686_v58 }
 0x18e   : > { %v2699_v61 = vadd.f32 %v4234_v40, %v2684_v18  ;;  %v2685_v8 = vmul.f32 %v4229_v31, %v2440_v29 }
 0x18f   : > { %2743 = vrot.lane.b32.xlu0 %v3092_v15, %s3514_s11  ;;  %v2702_v39 = vadd.f32 %v4234_v40, %v2687_v17  ;;  %v2709_v38 = vmax.f32 %v2701_v2, 0.0 }
 0x190   : > { %v2707_v22 = vmax.f32 %v2699_v61, 0.0  ;;  %v2700_v63 = vadd.f32 %v4234_v40, %v2685_v8 }
 0x191   : > { %2745 = vrot.lane.b32.xlu1 %v3093_v7, %s3514_s11  ;;  %v2710_v13 = vmax.f32 %v2702_v39, 0.0  ;;  %v3098_v49 = vpack.c.bf16 %v2709_v38, %v2709_v38 }
 0x192   : > { %v3096_v19 = vpack.c.bf16 %v2707_v22, %v2707_v22  ;;  %v2708_v47 = vmax.f32 %v2700_v63, 0.0 }
 0x193   : > { %v3099_v28 = vpack.c.bf16 %v2710_v13, %v2710_v13 }
 0x194   : > { %v3097_v23 = vpack.c.bf16 %v2708_v47, %v2708_v47  ;;  %2751 = vrot.lane.b32.xlu0 %v3096_v19, %s3514_s11 }
 0x196   : > { %2753 = vrot.lane.b32.xlu1 %v3097_v23, %s3514_s11 }
 0x198   : > { %2755 = vrot.lane.b32.xlu0 %v3098_v49, %s3514_s11 }
 0x19a   : > { %2757 = vrot.lane.b32.xlu1 %v3099_v28, %s3514_s11 }
 0x1a5   : > { %v3294_v53 = vpop.f32.mrb[8].mxu0 }
 0x1a6   : > { %v2627_v21 = vmul.f32 %v3294_v53, %v4229_v31  ;;  %v2086_v4 = vpop.f32.mrb[9].mxu0 }
 0x1a7   : > { %v2625_v9 = vmul.f32 %v4229_v31, %v2086_v4  ;;  %v3295_v52 = vpop.f32.mrb[10].mxu0 }
 0x1a8   : > { %v2642_v55 = vadd.f32 %v4234_v40, %v2627_v21  ;;  %v2628_v46 = vmul.f32 %v3295_v52, %v4229_v31  ;;  %v2089_v35 = vpop.f32.mrb[11].mxu0 }
 0x1a9   : > { %v2640_v16 = vadd.f32 %v4234_v40, %v2625_v9  ;;  %v2626_v0 = vmul.f32 %v4229_v31, %v2089_v35 }
 0x1aa   : > { %v2650_v25 = vmax.f32 %v2642_v55, 0.0  ;;  %v2643_v36 = vadd.f32 %v4234_v40, %v2628_v46 }
 0x1ab   : > { %v2648_v33 = vmax.f32 %v2640_v16, 0.0  ;;  %v2641_v10 = vadd.f32 %v4234_v40, %v2626_v0 }
 0x1ac   : > { %v2658_v62 = vpack.c.bf16 %v2650_v25, %v2650_v25  ;;  %v2651_v5 = vmax.f32 %v2643_v36, 0.0 }
 0x1ad   : > { %v2656_v37 = vpack.c.bf16 %v2648_v33, %v2648_v33  ;;  %v2649_v32 = vmax.f32 %v2641_v10, 0.0  ;;  %v3298_v42 = vpop.f32.mrb[12].mxu0 }
 0x1ae   : > { %3056 = vst.msk [vmem:[%s4271_s19 + $0x14] sm:$0xf] %vm248_vm0, %v2658_v62  ;;  %v2659_v26 = vpack.c.bf16 %v2651_v5, %v2651_v5  ;;  %v2631_v41 = vmul.f32 %v3298_v42, %v4229_v31  ;;  %v2102_v20 = vpop.f32.mrb[13].mxu0 }
 0x1af   : > { %3054 = vst.msk [vmem:[%s4271_s19 + $0x4] sm:$0xf] %vm248_vm0, %v2656_v37  ;;  %v2657_v45 = vpack.c.bf16 %v2649_v32, %v2649_v32  ;;  %v2629_v51 = vmul.f32 %v4229_v31, %v2102_v20  ;;  %v3299_v24 = vpop.f32.mrb[14].mxu0 }
 0x1b0   : > { %3057 = vst.msk [vmem:[%s4271_s19 + $0x1c] sm:$0xf] %vm248_vm0, %v2659_v26  ;;  %v2646_v1 = vadd.f32 %v4234_v40, %v2631_v41  ;;  %v2632_v11 = vmul.f32 %v3299_v24, %v4229_v31  ;;  %v2105_v27 = vpop.f32.mrb[15].mxu0 }
 0x1b1   : > { %3055 = vst.msk [vmem:[%s4271_s19 + $0xc] sm:$0xf] %vm248_vm0, %v2657_v45  ;;  %v2644_v34 = vadd.f32 %v4234_v40, %v2629_v51  ;;  %v2630_v50 = vmul.f32 %v4229_v31, %v2105_v27 }
 0x1b2   : > { %v2654_v56 = vmax.f32 %v2646_v1, 0.0  ;;  %v2647_v14 = vadd.f32 %v4234_v40, %v2632_v11 }
 0x1b3   : > { %v2652_v3 = vmax.f32 %v2644_v34, 0.0  ;;  %v2645_v12 = vadd.f32 %v4234_v40, %v2630_v50 }
 0x1b4   : > { %v2662_v59 = vpack.c.bf16 %v2654_v56, %v2654_v56  ;;  %v2655_v54 = vmax.f32 %v2647_v14, 0.0 }
 0x1b5   : > { %v2660_v57 = vpack.c.bf16 %v2652_v3, %v2652_v3  ;;  %v2653_v48 = vmax.f32 %v2645_v12, 0.0 }
 0x1b6   : > { %3060 = vst.msk [vmem:[%s4271_s19 + $0x34] sm:$0xf] %vm248_vm0, %v2662_v59  ;;  %v2663_v31 = vpack.c.bf16 %v2655_v54, %v2655_v54 }
 0x1b7   : > { %3058 = vst.msk [vmem:[%s4271_s19 + $0x24] sm:$0xf] %vm248_vm0, %v2660_v57  ;;  %v2661_v40 = vpack.c.bf16 %v2653_v48, %v2653_v48 }
 0x1b8   : > { %3061 = vst.msk [vmem:[%s4271_s19 + $0x3c] sm:$0xf] %vm248_vm0, %v2663_v31 }
 0x1b9   : > { %3059 = vst.msk [vmem:[%s4271_s19 + $0x2c] sm:$0xf] %vm248_vm0, %v2661_v40 }
 0x1bd   : > { %v2590_v44 = vpop.permute.xlu1 %2589 }
 0x1be   : > { %2612 = vst.msk [vmem:[%s4271_s19 + $0x10] sm:$0xf] %vm2609_vm13, %v2590_v44  ;;  %v2586_v43 = vpop.permute.xlu0 %2585 }
 0x1bf   : > { %2610 = vst.msk [vmem:[%s4271_s19] sm:$0xf] %vm2609_vm13, %v2586_v43 }
 0x1c1   : > { %v2592_v60 = vpop.permute.xlu1 %2591 }
 0x1c2   : > { %2613 = vst.msk [vmem:[%s4271_s19 + $0x18] sm:$0xf] %vm2609_vm13, %v2592_v60  ;;  %v2588_v58 = vpop.permute.xlu0 %2587 }
 0x1c3   : > { %2611 = vst.msk [vmem:[%s4271_s19 + $0x8] sm:$0xf] %vm2609_vm13, %v2588_v58 }
 0x1c6   : > { %v2598_v6 = vpop.permute.xlu0 %2597 }
 0x1c7   : > { %2616 = vst.msk [vmem:[%s4271_s19 + $0x30] sm:$0xf] %vm2609_vm13, %v2598_v6  ;;  %v2600_v18 = vpop.permute.xlu1 %2599 }
 0x1c8   : > { %2617 = vst.msk [vmem:[%s4271_s19 + $0x38] sm:$0xf] %vm2609_vm13, %v2600_v18 }
 0x1ca   : > { %v2594_v30 = vpop.permute.xlu0 %2593 }
 0x1cb   : > { %2614 = vst.msk [vmem:[%s4271_s19 + $0x20] sm:$0xf] %vm2609_vm13, %v2594_v30  ;;  %v2596_v15 = vpop.permute.xlu1 %2595 }
 0x1cc   : > { %2615 = vst.msk [vmem:[%s4271_s19 + $0x28] sm:$0xf] %vm2609_vm13, %v2596_v15 }
 0x1fd   : > { %v2748_v17 = vpop.permute.xlu0 %2747 }
 0x1fe   : > { %3074 = vst.msk [vmem:[%s4271_s19 + $0x14] sm:$0xf] %vm2609_vm13, %v2748_v17 }
 0x1ff   : > { %v2750_v29 = vpop.permute.xlu1 %2749 }
 0x200   : > { %3075 = vst.msk [vmem:[%s4271_s19 + $0x1c] sm:$0xf] %vm2609_vm13, %v2750_v29 }
 0x201   : > { %v2744_v2 = vpop.permute.xlu0 %2743 }
 0x202   : > { %3072 = vst.msk [vmem:[%s4271_s19 + $0x4] sm:$0xf] %vm2609_vm13, %v2744_v2 }
 0x203   : > { %v2746_v61 = vpop.permute.xlu1 %2745 }
 0x204   : > { %3073 = vst.msk [vmem:[%s4271_s19 + $0xc] sm:$0xf] %vm2609_vm13, %v2746_v61 }
 0x206   : > { %v2752_v8 = vpop.permute.xlu0 %2751 }
 0x207   : > { %3076 = vst.msk [vmem:[%s4271_s19 + $0x24] sm:$0xf] %vm2609_vm13, %v2752_v8 }
 0x208   : > { %v2754_v7 = vpop.permute.xlu1 %2753 }
 0x209   : > { %3077 = vst.msk [vmem:[%s4271_s19 + $0x2c] sm:$0xf] %vm2609_vm13, %v2754_v7 }
 0x20a   : > { %v2756_v22 = vpop.permute.xlu0 %2755 }
 0x20b   : > { %3078 = vst.msk [vmem:[%s4271_s19 + $0x34] sm:$0xf] %vm2609_vm13, %v2756_v22 }
 0x20c   : > { %v2758_v39 = vpop.permute.xlu1 %2757 }
 0x20d   : > { %3079 = vst.msk [vmem:[%s4271_s19 + $0x3c] sm:$0xf] %vm2609_vm13, %v2758_v39 }
 0x20e PF: > { %s14_s17 = sadd.s32 1, %s3511_s17   ;;  %s4429_s15 = smov %s3507_s16 }
 0x20f   : > { %p11_p5 = scmp.ge.s32.totalorder %s14_s17, 4   ;;  %s4430_s16 = smov %s4432_s18 }
 0x211   :  { %13 = sbr.rel (!%p11_p5) target bundleno = 2 (0x2), region = 91 }

// kernel: a_call__.7
= control target key start
LH: loop header
LB: loop body
LE: loop exit
PB: predicated region body
PF: predicated region fallthrough
CT: control target
= control target key end

     0   :  { %s2116_s12 = smov 0   ;;  %s2118_s13 = smov 0   ;;  %s2769_s0 = inlined_call_operand.vmem [shape: bf16[2,1024,16], index: 0, kind: input, shape index: {}]   ;;  %s2770_s1 = inlined_call_operand.vmem [shape: bf16[128,16], index: 1, kind: input, shape index: {}]   ;;  %s2771_s2 = inlined_call_operand.vmem [shape: f32[128,1], index: 2, kind: input, shape index: {}]   ;;  %s2772_s3 = inlined_call_operand.vmem [shape: f32[2,128,1024], index: 3, kind: output, shape index: {}]  }
   0x1   :  { %s2120_s14 = smov 0  }
   0x2 LB: > { %s25_s15 = sadd.s32 1, %s2089_s13  ;;  %p1699_p0 = scmp.ge.s32.totalorder %s2093_s14, 1  ;;  %s2093_s14 = sphi %s2120_s14, %s13_s14   ;;  %s2089_s13 = sphi %s2118_s13, %s2774_s13   ;;  %s2085_s12 = sphi %s2116_s12, %s2773_s12  }
   0x3   : > { %p27_p1 = scmp.ge.s32.totalorder %s25_s15, 2  ;;  %p158_p2 = scmp.lt.s32.totalorder %s2093_s14, 3 }
   0x5   : > { %s2776_s15 = smov (%p27_p1, %s25_s15), 0  ;;  %p159_p3 = pnand %p1699_p0, %p158_p2 }
   0x6   : > { %p191_p4 = scmp.lt.s32.totalorder (!%p159_p3), %s2085_s12, 1  ;;  %v2137_v0 = vld [vmem:[%s2770_s1] sm:$0xff] (!%p159_p3)   ;;  %vm811_vm0 = vcmask (!%p159_p3), 130048   ;;  %v2095_v23 = vmov (!%p159_p3), 0   ;;  %v2225_v55 = vld [vmem:[%s2770_s1 + $0x8] sm:$0xff] (!%p159_p3)   ;;  %v357_v59 = vld [vmem:[%s2771_s2 + $0x10] sm:$0xff] (!%p159_p3) }
   0x7   : > { %162 = sbr.rel (%p159_p3) target bundleno = 423 (0x1a7), region = 32  ;;  %1828 = vmatprep.mubr.msk.bf16.mxu0 (!%p159_p3), %vm811_vm0, %v2137_v0  ;;  %1860 = vmatprep.mubr.msk.bf16.mxu1 (!%p159_p3), %vm811_vm0, %v2137_v0  ;;  %v355_v56 = vld [vmem:[%s2771_s2] sm:$0xff] (!%p159_p3)  ;;  %v356_v61 = vld [vmem:[%s2771_s2 + $0x8] sm:$0xff] (!%p159_p3)  ;;  %v358_v63 = vld [vmem:[%s2771_s2 + $0x18] sm:$0xff] (!%p159_p3) }
   0x8   : > { %1997 = vset.pattern.permute.xlu0 (!%p159_p3), %v2095_v23  ;;  %1998 = vset.pattern.permute.xlu1 (!%p159_p3), %v2095_v23 }
   0x9   : > { %373 = vperm.xlu0 (!%p159_p3), %1997, %v355_v56   ;;  %383 = vperm.xlu1 (!%p159_p3), %1998, %v357_v59  }
   0xd   : > { %378 = vperm.xlu0 (!%p159_p3), %1997, %v356_v61   ;;  %388 = vperm.xlu1 (!%p159_p3), %1998, %v358_v63  }
   0xe   : > { %s2778_s12 = smov (!%p191_p4, %s2085_s12), 1 }
   0xf   : > { %s1810_s18 = sshll.u32 %s2778_s12, 9 }
  0x10   : > { %s2149_s21 = scalar_lea.vmem %s2769_s0, %s1810_s18 }
  0x11   : > { %v1999_v1 = vld [vmem:[%s2149_s21 + $0x40] sm:$0xff]   ;;  %v2003_v6 = vld [vmem:[%s2149_s21 + $0x48] sm:$0xff]   ;;  %v2007_v12 = vld [vmem:[%s2149_s21 + $0x50] sm:$0xff]  }
  0x12   : > { %v2000_v2 = vld [vmem:[%s2149_s21 + $0xc0] sm:$0xff]   ;;  %1940 = vmatprep.subr.msk.bf16.mxu0 %vm811_vm0, %v1999_v1  ;;  %v2004_v8 = vld [vmem:[%s2149_s21 + $0xc8] sm:$0xff]   ;;  %v2008_v14 = vld [vmem:[%s2149_s21 + $0xd0] sm:$0xff]  }
  0x13   : > { %v2001_v3 = vld [vmem:[%s2149_s21] sm:$0xff]   ;;  %1948 = vmatprep.subr.msk.bf16.mxu1 %vm811_vm0, %v2000_v2  ;;  %v2005_v9 = vld [vmem:[%s2149_s21 + $0x8] sm:$0xff]   ;;  %v2009_v15 = vld [vmem:[%s2149_s21 + $0x10] sm:$0xff]  }
  0x14   : > { %v2002_v4 = vld [vmem:[%s2149_s21 + $0x80] sm:$0xff]   ;;  %v837_v5 = vsel %vm811_vm0, %v2001_v3, 0  ;;  %v2006_v10 = vld [vmem:[%s2149_s21 + $0x88] sm:$0xff]   ;;  %v840_v11 = vsel %vm811_vm0, %v2005_v9, 0  ;;  %v2010_v16 = vld [vmem:[%s2149_s21 + $0x90] sm:$0xff]   ;;  %v843_v17 = vsel %vm811_vm0, %v2009_v15, 0 }
  0x15   : > { %1813 = vmatpush3.bf16.xpose.msra.mxu0 %v837_v5  ;;  %v885_v7 = vsel %vm811_vm0, %v2002_v4, 0  ;;  %v888_v13 = vsel %vm811_vm0, %v2006_v10, 0  ;;  %v2011_v18 = vld [vmem:[%s2149_s21 + $0x58] sm:$0xff]   ;;  %v891_v19 = vsel %vm811_vm0, %v2010_v16, 0  ;;  %v2015_v25 = vld [vmem:[%s2149_s21 + $0x60] sm:$0xff]   ;;  %v2019_v31 = vld [vmem:[%s2149_s21 + $0x68] sm:$0xff]  }
  0x16   : > { %1845 = vmatpush3.bf16.xpose.msra.mxu1 %v885_v7  ;;  %1941 = vmatprep.subr.msk.bf16.mxu0 %vm811_vm0, %v2003_v6  ;;  %v2012_v20 = vld [vmem:[%s2149_s21 + $0xd8] sm:$0xff]   ;;  %v2016_v27 = vld [vmem:[%s2149_s21 + $0xe0] sm:$0xff]   ;;  %v2020_v33 = vld [vmem:[%s2149_s21 + $0xe8] sm:$0xff]  }
  0x17   : > { %1949 = vmatprep.subr.msk.bf16.mxu1 %vm811_vm0, %v2004_v8  ;;  %v2013_v21 = vld [vmem:[%s2149_s21 + $0x18] sm:$0xff]   ;;  %v2017_v28 = vld [vmem:[%s2149_s21 + $0x20] sm:$0xff]   ;;  %v2021_v34 = vld [vmem:[%s2149_s21 + $0x28] sm:$0xff]  }
  0x18   : > { %v2014_v22 = vld [vmem:[%s2149_s21 + $0x98] sm:$0xff]   ;;  %v846_v24 = vsel %vm811_vm0, %v2013_v21, 0  ;;  %v2018_v29 = vld [vmem:[%s2149_s21 + $0xa0] sm:$0xff]   ;;  %v849_v30 = vsel %vm811_vm0, %v2017_v28, 0  ;;  %v2022_v35 = vld [vmem:[%s2149_s21 + $0xa8] sm:$0xff]   ;;  %v852_v36 = vsel %vm811_vm0, %v2021_v34, 0 }
  0x19   : > { %v894_v26 = vsel %vm811_vm0, %v2014_v22, 0  ;;  %v897_v32 = vsel %vm811_vm0, %v2018_v29, 0  ;;  %v2023_v37 = vld [vmem:[%s2149_s21 + $0x70] sm:$0xff]   ;;  %v900_v38 = vsel %vm811_vm0, %v2022_v35, 0  ;;  %v2027_v43 = vld [vmem:[%s2149_s21 + $0x78] sm:$0xff]   ;;  %v2032_v49 = vld [vmem:[%s2149_s21 + $0x140] sm:$0xff]  }
  0x1a   : > { %v2024_v39 = vld [vmem:[%s2149_s21 + $0xf0] sm:$0xff]   ;;  %v2028_v45 = vld [vmem:[%s2149_s21 + $0xf8] sm:$0xff]   ;;  %v2033_v51 = vld [vmem:[%s2149_s21 + $0x1c0] sm:$0xff]  }
  0x1b   : > { %v2025_v40 = vld [vmem:[%s2149_s21 + $0x30] sm:$0xff]   ;;  %v2029_v46 = vld [vmem:[%s2149_s21 + $0x38] sm:$0xff]   ;;  %v2034_v52 = vld [vmem:[%s2149_s21 + $0x100] sm:$0xff]  }
  0x1c   : > { %v2026_v41 = vld [vmem:[%s2149_s21 + $0xb0] sm:$0xff]   ;;  %v855_v42 = vsel %vm811_vm0, %v2025_v40, 0  ;;  %v2030_v47 = vld [vmem:[%s2149_s21 + $0xb8] sm:$0xff]   ;;  %v858_v48 = vsel %vm811_vm0, %v2029_v46, 0  ;;  %v2035_v53 = vld [vmem:[%s2149_s21 + $0x180] sm:$0xff]   ;;  %v933_v54 = vsel %vm811_vm0, %v2034_v52, 0 }
  0x1d   : > { %1815 = vmatpush3.bf16.xpose.msra.mxu0 %v840_v11  ;;  %v903_v44 = vsel %vm811_vm0, %v2026_v41, 0  ;;  %v906_v50 = vsel %vm811_vm0, %v2030_v47, 0  ;;  %v981_v57 = vsel %vm811_vm0, %v2035_v53, 0  ;;  %v2037_v58 = vld [vmem:[%s2149_s21 + $0x148] sm:$0xff]   ;;  %v359_v2 = vld [vmem:[%s2771_s2 + $0x20] sm:$0xff]  ;;  %v2261_v4 = vld [vmem:[%s2770_s1 + $0x10] sm:$0xff]  }
  0x1e   : > { %1847 = vmatpush3.bf16.xpose.msra.mxu1 %v888_v13  ;;  %1942 = vmatprep.subr.msk.bf16.mxu0 %vm811_vm0, %v2007_v12  ;;  %v2038_v60 = vld [vmem:[%s2149_s21 + $0x1c8] sm:$0xff]   ;;  %v2042_v6 = vld [vmem:[%s2149_s21 + $0x150] sm:$0xff]   ;;  %v362_v12 = vld [vmem:[%s2771_s2 + $0x38] sm:$0xff] }
  0x1f   : > { %1950 = vmatprep.subr.msk.bf16.mxu1 %vm811_vm0, %v2008_v14  ;;  %v2039_v62 = vld [vmem:[%s2149_s21 + $0x108] sm:$0xff]   ;;  %v2043_v7 = vld [vmem:[%s2149_s21 + $0x1d0] sm:$0xff]   ;;  %393 = vperm.xlu0 %1997, %v359_v2   ;;  %v2291_v14 = vld [vmem:[%s2770_s1 + $0x18] sm:$0xff]  }
  0x20   : > { %v2040_v1 = vld [vmem:[%s2149_s21 + $0x188] sm:$0xff]   ;;  %v936_v3 = vsel %vm811_vm0, %v2039_v62, 0  ;;  %v2044_v9 = vld [vmem:[%s2149_s21 + $0x110] sm:$0xff]   ;;  %v2047_v16 = vld [vmem:[%s2149_s21 + $0x158] sm:$0xff]  }
  0x21   : > { %v984_v5 = vsel %vm811_vm0, %v2040_v1, 0  ;;  %v360_v8 = vld [vmem:[%s2771_s2 + $0x28] sm:$0xff]  ;;  %v361_v10 = vld [vmem:[%s2771_s2 + $0x30] sm:$0xff]  ;;  %v939_v13 = vsel %vm811_vm0, %v2044_v9, 0  ;;  %v2050_v21 = vld [vmem:[%s2149_s21 + $0x198] sm:$0xff]  }
  0x22   : > { %v2045_v11 = vld [vmem:[%s2149_s21 + $0x190] sm:$0xff]   ;;  %398 = vperm.xlu1 %1998, %v360_v8   ;;  %v366_v28 = vld [vmem:[%s2771_s2 + $0x58] sm:$0xff]  ;;  %v2054_v29 = vld [vmem:[%s2149_s21 + $0x120] sm:$0xff]  }
  0x23   : > { %403 = vperm.xlu0 %1997, %v361_v10   ;;  %v987_v15 = vsel %vm811_vm0, %v2045_v11, 0  ;;  %v365_v22 = vld [vmem:[%s2771_s2 + $0x50] sm:$0xff]  ;;  %v2351_v34 = vld [vmem:[%s2770_s1 + $0x28] sm:$0xff]   ;;  %v370_v40 = vld [vmem:[%s2771_s2 + $0x78] sm:$0xff] }
  0x24   : > { %v2060_v41 = vld [vmem:[%s2149_s21 + $0x1a8] sm:$0xff]   ;;  %v2063_v46 = vld [vmem:[%s2149_s21 + $0x1f0] sm:$0xff]   ;;  %v2067_v52 = vld [vmem:[%s2149_s21 + $0x178] sm:$0xff]  }
  0x25   : > { %1817 = vmatpush3.bf16.xpose.msra.mxu0 %v843_v17  ;;  %v2048_v17 = vld [vmem:[%s2149_s21 + $0x1d8] sm:$0xff]   ;;  %v2064_v47 = vld [vmem:[%s2149_s21 + $0x130] sm:$0xff]  }
  0x26   : > { %1849 = vmatpush3.bf16.xpose.msra.mxu1 %v891_v19  ;;  %1943 = vmatprep.subr.msk.bf16.mxu0 %vm811_vm0, %v2011_v18  ;;  %v363_v18 = vld [vmem:[%s2771_s2 + $0x40] sm:$0xff]  ;;  %v2049_v19 = vld [vmem:[%s2149_s21 + $0x118] sm:$0xff]  }
  0x27   : > { %1951 = vmatprep.subr.msk.bf16.mxu1 %vm811_vm0, %v2012_v20  ;;  %408 = vperm.xlu1 %1998, %v362_v12   ;;  %v364_v20 = vld [vmem:[%s2771_s2 + $0x48] sm:$0xff]  ;;  %v942_v23 = vsel %vm811_vm0, %v2049_v19, 0  ;;  %v2068_v53 = vld [vmem:[%s2149_s21 + $0x1f8] sm:$0xff]  }
  0x28   : > { %413 = vperm.xlu0 %1997, %v363_v18   ;;  %v2070_v56 = vld [vmem:[%s2149_s21 + $0x1b8] sm:$0xff]  }
  0x2b   : > { %418 = vperm.xlu1 %1998, %v364_v20  }
  0x2c   : > { %423 = vperm.xlu0 %1997, %v365_v22  }
  0x2d   : > { %1819 = vmatpush3.bf16.xpose.msra.mxu0 %v846_v24  ;;  %v2321_v24 = vld [vmem:[%s2770_s1 + $0x20] sm:$0xff]  }
  0x2e   : > { %1851 = vmatpush3.bf16.xpose.msra.mxu1 %v894_v26  ;;  %1944 = vmatprep.subr.msk.bf16.mxu0 %vm811_vm0, %v2015_v25  ;;  %v990_v25 = vsel %vm811_vm0, %v2050_v21, 0  ;;  %v2052_v26 = vld [vmem:[%s2149_s21 + $0x160] sm:$0xff]  }
  0x2f   : > { %1952 = vmatprep.subr.msk.bf16.mxu1 %vm811_vm0, %v2016_v27  ;;  %v2053_v27 = vld [vmem:[%s2149_s21 + $0x1e0] sm:$0xff]   ;;  %428 = vperm.xlu1 %1998, %v366_v28  }
  0x35   : > { %1821 = vmatpush3.bf16.xpose.msra.mxu0 %v849_v30  ;;  %v367_v30 = vld [vmem:[%s2771_s2 + $0x60] sm:$0xff] }
  0x36   : > { %1853 = vmatpush3.bf16.xpose.msra.mxu1 %v897_v32  ;;  %1945 = vmatprep.subr.msk.bf16.mxu0 %vm811_vm0, %v2019_v31  ;;  %v2055_v31 = vld [vmem:[%s2149_s21 + $0x1a0] sm:$0xff]   ;;  %v368_v32 = vld [vmem:[%s2771_s2 + $0x68] sm:$0xff] }
  0x37   : > { %1953 = vmatprep.subr.msk.bf16.mxu1 %vm811_vm0, %v2020_v33  ;;  %433 = vperm.xlu0 %1997, %v367_v30   ;;  %v945_v33 = vsel %vm811_vm0, %v2054_v29, 0  ;;  %v993_v35 = vsel %vm811_vm0, %v2055_v31, 0 }
  0x38   : > { %438 = vperm.xlu1 %1998, %v368_v32  }
  0x3c   : > { %448 = vperm.xlu1 %1998, %v370_v40  }
  0x3d   : > { %1823 = vmatpush3.bf16.xpose.msra.mxu0 %v852_v36  ;;  %v2057_v36 = vld [vmem:[%s2149_s21 + $0x168] sm:$0xff]  }
  0x3e   : > { %1855 = vmatpush3.bf16.xpose.msra.mxu1 %v900_v38  ;;  %1946 = vmatprep.subr.msk.bf16.mxu0 %vm811_vm0, %v2023_v37  ;;  %v2058_v37 = vld [vmem:[%s2149_s21 + $0x1e8] sm:$0xff]   ;;  %v369_v38 = vld [vmem:[%s2771_s2 + $0x70] sm:$0xff] }
  0x3f   : > { %1954 = vmatprep.subr.msk.bf16.mxu1 %vm811_vm0, %v2024_v39  ;;  %v2059_v39 = vld [vmem:[%s2149_s21 + $0x128] sm:$0xff]   ;;  %443 = vperm.xlu0 %1997, %v369_v38  }
  0x45   : > { %1825 = vmatpush3.bf16.xpose.msra.mxu0 %v855_v42  ;;  %v948_v42 = vsel %vm811_vm0, %v2059_v39, 0 }
  0x46   : > { %1857 = vmatpush3.bf16.xpose.msra.mxu1 %v903_v44  ;;  %1947 = vmatprep.subr.msk.bf16.mxu0 %vm811_vm0, %v2027_v43  ;;  %v2061_v43 = vld [vmem:[%s2770_s1 + $0x30] sm:$0xff]   ;;  %v996_v44 = vsel %vm811_vm0, %v2060_v41, 0 }
  0x47   : > { %1955 = vmatprep.subr.msk.bf16.mxu1 %vm811_vm0, %v2028_v45  ;;  %v2062_v45 = vld [vmem:[%s2149_s21 + $0x170] sm:$0xff]  }
  0x4d   : > { %1827 = vmatpush3.bf16.xpose.msra.mxu0 %v858_v48  ;;  %v2065_v48 = vld [vmem:[%s2149_s21 + $0x1b0] sm:$0xff]  }
  0x4e   : > { %1859 = vmatpush3.bf16.xpose.msra.mxu1 %v906_v50  ;;  %1956 = vmatprep.subr.msk.bf16.mxu0 %vm811_vm0, %v2032_v49  ;;  %v951_v49 = vsel %vm811_vm0, %v2064_v47, 0  ;;  %v2066_v50 = vld [vmem:[%s2770_s1 + $0x38] sm:$0xff]  }
  0x4f   : > { %1964 = vmatprep.subr.msk.bf16.mxu1 %vm811_vm0, %v2033_v51  ;;  %v999_v51 = vsel %vm811_vm0, %v2065_v48, 0 }
  0x54   : > { %1829 = vmatmul.mubr.msk.bf16.vlgmr.msra.gmra.mrb[0].mxu0 %vm811_vm0, %v2137_v0 }
  0x55   : > { %1861 = vmatmul.mubr.msk.bf16.vlgmr.msra.gmra.mrb[0].mxu1 %vm811_vm0, %v2137_v0  ;;  %1877 = vmatpush3.bf16.xpose.msra.mxu0 %v933_v54  ;;  %v2069_v54 = vld [vmem:[%s2149_s21 + $0x138] sm:$0xff]   ;;  %s1811_s21 = sshll.u32 %s2778_s12, 10 }
  0x56   : > { %1909 = vmatpush3.bf16.xpose.msra.mxu1 %v981_v57  ;;  %1830 = vmatprep.mubr.msk.bf16.mxu0 %vm811_vm0, %v2225_v55  ;;  %v954_v57 = vsel %vm811_vm0, %v2069_v54, 0  ;;  %s2474_s26 = scalar_lea.vmem %s2772_s3, %s1811_s21 }
  0x57   : > { %1862 = vmatprep.mubr.msk.bf16.mxu1 %vm811_vm0, %v2225_v55  ;;  %1957 = vmatprep.subr.msk.bf16.mxu0 %vm811_vm0, %v2037_v58  ;;  %v1002_v58 = vsel %vm811_vm0, %v2070_v56, 0 }
  0x58   : > { %1965 = vmatprep.subr.msk.bf16.mxu1 %vm811_vm0, %v2038_v60 }
  0x5c   : > { %1831 = vmatmul.mubr.msk.bf16.gmra.mrb[4].mxu0 %vm811_vm0, %v2225_v55 }
  0x5d   : > { %1863 = vmatmul.mubr.msk.bf16.gmra.mrb[4].mxu1 %vm811_vm0, %v2225_v55  ;;  %1879 = vmatpush3.bf16.xpose.msra.mxu0 %v936_v3 }
  0x5e   : > { %1911 = vmatpush3.bf16.xpose.msra.mxu1 %v984_v5  ;;  %1832 = vmatprep.mubr.msk.bf16.mxu0 %vm811_vm0, %v2261_v4 }
  0x5f   : > { %1864 = vmatprep.mubr.msk.bf16.mxu1 %vm811_vm0, %v2261_v4  ;;  %1958 = vmatprep.subr.msk.bf16.mxu0 %vm811_vm0, %v2042_v6 }
  0x60   : > { %1966 = vmatprep.subr.msk.bf16.mxu1 %vm811_vm0, %v2043_v7 }
  0x64   : > { %1833 = vmatmul.mubr.msk.bf16.gmra.mrb[8].mxu0 %vm811_vm0, %v2261_v4 }
  0x65   : > { %1865 = vmatmul.mubr.msk.bf16.gmra.mrb[8].mxu1 %vm811_vm0, %v2261_v4  ;;  %1881 = vmatpush3.bf16.xpose.msra.mxu0 %v939_v13 }
  0x66   : > { %1913 = vmatpush3.bf16.xpose.msra.mxu1 %v987_v15  ;;  %1834 = vmatprep.mubr.msk.bf16.mxu0 %vm811_vm0, %v2291_v14 }
  0x67   : > { %1866 = vmatprep.mubr.msk.bf16.mxu1 %vm811_vm0, %v2291_v14  ;;  %1959 = vmatprep.subr.msk.bf16.mxu0 %vm811_vm0, %v2047_v16 }
  0x68   : > { %1967 = vmatprep.subr.msk.bf16.mxu1 %vm811_vm0, %v2048_v17 }
  0x6c   : > { %1835 = vmatmul.mubr.msk.bf16.gmra.mrb[12].mxu0 %vm811_vm0, %v2291_v14 }
  0x6d   : > { %1867 = vmatmul.mubr.msk.bf16.gmra.mrb[12].mxu1 %vm811_vm0, %v2291_v14  ;;  %1883 = vmatpush3.bf16.xpose.msra.mxu0 %v942_v23 }
  0x6e   : > { %1915 = vmatpush3.bf16.xpose.msra.mxu1 %v990_v25  ;;  %1836 = vmatprep.mubr.msk.bf16.mxu0 %vm811_vm0, %v2321_v24 }
  0x6f   : > { %1868 = vmatprep.mubr.msk.bf16.mxu1 %vm811_vm0, %v2321_v24  ;;  %1960 = vmatprep.subr.msk.bf16.mxu0 %vm811_vm0, %v2052_v26 }
  0x70   : > { %1968 = vmatprep.subr.msk.bf16.mxu1 %vm811_vm0, %v2053_v27 }
  0x74   : > { %1837 = vmatmul.mubr.msk.bf16.gmra.mrb[16].mxu0 %vm811_vm0, %v2321_v24 }
  0x75   : > { %1869 = vmatmul.mubr.msk.bf16.gmra.mrb[16].mxu1 %vm811_vm0, %v2321_v24  ;;  %1885 = vmatpush3.bf16.xpose.msra.mxu0 %v945_v33 }
  0x76   : > { %1917 = vmatpush3.bf16.xpose.msra.mxu1 %v993_v35  ;;  %1838 = vmatprep.mubr.msk.bf16.mxu0 %vm811_vm0, %v2351_v34 }
  0x77   : > { %1870 = vmatprep.mubr.msk.bf16.mxu1 %vm811_vm0, %v2351_v34  ;;  %1961 = vmatprep.subr.msk.bf16.mxu0 %vm811_vm0, %v2057_v36 }
  0x78   : > { %1969 = vmatprep.subr.msk.bf16.mxu1 %vm811_vm0, %v2058_v37 }
  0x7c   : > { %1839 = vmatmul.mubr.msk.bf16.gmra.mrb[20].mxu0 %vm811_vm0, %v2351_v34 }
  0x7d   : > { %1871 = vmatmul.mubr.msk.bf16.gmra.mrb[20].mxu1 %vm811_vm0, %v2351_v34  ;;  %1887 = vmatpush3.bf16.xpose.msra.mxu0 %v948_v42 }
  0x7e   : > { %1919 = vmatpush3.bf16.xpose.msra.mxu1 %v996_v44  ;;  %1840 = vmatprep.mubr.msk.bf16.mxu0 %vm811_vm0, %v2061_v43 }
  0x7f   : > { %1872 = vmatprep.mubr.msk.bf16.mxu1 %vm811_vm0, %v2061_v43  ;;  %1962 = vmatprep.subr.msk.bf16.mxu0 %vm811_vm0, %v2062_v45 }
  0x80   : > { %1970 = vmatprep.subr.msk.bf16.mxu1 %vm811_vm0, %v2063_v46 }
  0x84   : > { %1841 = vmatmul.mubr.msk.bf16.gmra.mrb[24].mxu0 %vm811_vm0, %v2061_v43 }
  0x85   : > { %1873 = vmatmul.mubr.msk.bf16.gmra.mrb[24].mxu1 %vm811_vm0, %v2061_v43  ;;  %1889 = vmatpush3.bf16.xpose.msra.mxu0 %v951_v49 }
  0x86   : > { %1921 = vmatpush3.bf16.xpose.msra.mxu1 %v999_v51  ;;  %1842 = vmatprep.mubr.msk.bf16.mxu0 %vm811_vm0, %v2066_v50 }
  0x87   : > { %1874 = vmatprep.mubr.msk.bf16.mxu1 %vm811_vm0, %v2066_v50  ;;  %1963 = vmatprep.subr.msk.bf16.mxu0 %vm811_vm0, %v2067_v52 }
  0x88   : > { %1971 = vmatprep.subr.msk.bf16.mxu1 %vm811_vm0, %v2068_v53 }
  0x8c   : > { %1843 = vmatmul.mubr.msk.bf16.gmra.mrb[28].mxu0 %vm811_vm0, %v2066_v50 }
  0x8d   : > { %1875 = vmatmul.mubr.msk.bf16.gmra.mrb[28].mxu1 %vm811_vm0, %v2066_v50  ;;  %1891 = vmatpush3.bf16.xpose.msra.mxu0 %v954_v57 }
  0x8e   : > { %1923 = vmatpush3.bf16.xpose.msra.mxu1 %v1002_v58  ;;  %1892 = vmatprep.mubr.msk.bf16.mxu0 %vm811_vm0, %v2137_v0 }
  0x8f   : > { %1924 = vmatprep.mubr.msk.bf16.mxu1 %vm811_vm0, %v2137_v0 }
  0x94   : > { %1893 = vmatmul.mubr.msk.bf16.vlgmr.msra.gmra.mrb[32].mxu0 %vm811_vm0, %v2137_v0 }
  0x95   : > { %1925 = vmatmul.mubr.msk.bf16.vlgmr.msra.gmra.mrb[32].mxu1 %vm811_vm0, %v2137_v0  ;;  %1894 = vmatprep.mubr.msk.bf16.mxu0 %vm811_vm0, %v2225_v55  ;;  %v2466_v0 = vpop.permute.xlu0 %373 }
  0x96   : > { %1926 = vmatprep.mubr.msk.bf16.mxu1 %vm811_vm0, %v2225_v55 }
  0x99   : > { %v2476_v60 = vpop.permute.xlu0 %378 }
  0x9c   : > { %1895 = vmatmul.mubr.msk.bf16.gmra.mrb[36].mxu0 %vm811_vm0, %v2225_v55 }
  0x9d   : > { %1927 = vmatmul.mubr.msk.bf16.gmra.mrb[36].mxu1 %vm811_vm0, %v2225_v55  ;;  %1896 = vmatprep.mubr.msk.bf16.mxu0 %vm811_vm0, %v2261_v4  ;;  %v2469_v55 = vpop.permute.xlu1 %383 }
  0x9e   : > { %1928 = vmatprep.mubr.msk.bf16.mxu1 %vm811_vm0, %v2261_v4  ;;  %v2511_v30 = vpop.permute.xlu0 %393 }
  0xa2   : > { %v2531_v48 = vpop.permute.xlu0 %403 }
  0xa4   : > { %1897 = vmatmul.mubr.msk.bf16.gmra.mrb[40].mxu0 %vm811_vm0, %v2261_v4 }
  0xa5   : > { %1929 = vmatmul.mubr.msk.bf16.gmra.mrb[40].mxu1 %vm811_vm0, %v2261_v4  ;;  %1898 = vmatprep.mubr.msk.bf16.mxu0 %vm811_vm0, %v2291_v14 }
  0xa6   : > { %1930 = vmatprep.mubr.msk.bf16.mxu1 %vm811_vm0, %v2291_v14 }
  0xac   : > { %1899 = vmatmul.mubr.msk.bf16.gmra.mrb[44].mxu0 %vm811_vm0, %v2291_v14 }
  0xad   : > { %1931 = vmatmul.mubr.msk.bf16.gmra.mrb[44].mxu1 %vm811_vm0, %v2291_v14  ;;  %1900 = vmatprep.mubr.msk.bf16.mxu0 %vm811_vm0, %v2321_v24  ;;  %v2494_v14 = vpop.permute.xlu1 %388 }
  0xae   : > { %1932 = vmatprep.mubr.msk.bf16.mxu1 %vm811_vm0, %v2321_v24 }
  0xb1   : > { %v2514_v32 = vpop.permute.xlu1 %398 }
  0xb4   : > { %1901 = vmatmul.mubr.msk.bf16.gmra.mrb[48].mxu0 %vm811_vm0, %v2321_v24 }
  0xb5   : > { %1933 = vmatmul.mubr.msk.bf16.gmra.mrb[48].mxu1 %vm811_vm0, %v2321_v24  ;;  %1902 = vmatprep.mubr.msk.bf16.mxu0 %vm811_vm0, %v2351_v34 }
  0xb6   : > { %1934 = vmatprep.mubr.msk.bf16.mxu1 %vm811_vm0, %v2351_v34 }
  0xbc   : > { %1903 = vmatmul.mubr.msk.bf16.gmra.mrb[52].mxu0 %vm811_vm0, %v2351_v34 }
  0xbd   : > { %1935 = vmatmul.mubr.msk.bf16.gmra.mrb[52].mxu1 %vm811_vm0, %v2351_v34  ;;  %1904 = vmatprep.mubr.msk.bf16.mxu0 %vm811_vm0, %v2061_v43 }
  0xbe   : > { %1936 = vmatprep.mubr.msk.bf16.mxu1 %vm811_vm0, %v2061_v43 }
  0xc4   : > { %1905 = vmatmul.mubr.msk.bf16.gmra.mrb[56].mxu0 %vm811_vm0, %v2061_v43 }
  0xc5   : > { %1937 = vmatmul.mubr.msk.bf16.gmra.mrb[56].mxu1 %vm811_vm0, %v2061_v43  ;;  %1906 = vmatprep.mubr.msk.bf16.mxu0 %vm811_vm0, %v2066_v50 }
  0xc6   : > { %1938 = vmatprep.mubr.msk.bf16.mxu1 %vm811_vm0, %v2066_v50 }
  0xcc   : > { %1907 = vmatmul.mubr.msk.bf16.gmra.mrb[60].mxu0 %vm811_vm0, %v2066_v50 }
  0xcd   : > { %1939 = vmatmul.mubr.msk.bf16.gmra.mrb[60].mxu1 %vm811_vm0, %v2066_v50  ;;  %v2534_v50 = vpop.permute.xlu1 %408 }
 0x127   : > { %v1062_v59 = vpop.f32.mrb[0].mxu0 }
 0x128   : > { %v1063_v61 = vadd.f32 %v1062_v59, %v2466_v0  ;;  %v1175_v62 = vpop.f32.mrb[0].mxu1  ;;  %v1064_v63 = vpop.f32.mrb[1].mxu0 }
 0x129   : > { %v1176_v1 = vadd.f32 %v1175_v62, %v2466_v0  ;;  %v1065_v2 = vadd.f32 %v1064_v63, %v2466_v0  ;;  %v1177_v3 = vpop.f32.mrb[1].mxu1  ;;  %v1066_v4 = vpop.f32.mrb[2].mxu0 }
 0x12a   : > { %1480 = vst [vmem:[%s2474_s26] sm:$0xff] %v1063_v61  ;;  %v1178_v5 = vadd.f32 %v1177_v3, %v2466_v0  ;;  %v1067_v6 = vadd.f32 %v1066_v4, %v2476_v60  ;;  %v1179_v7 = vpop.f32.mrb[2].mxu1  ;;  %v1068_v8 = vpop.f32.mrb[3].mxu0 }
 0x12b   : > { %1482 = vst [vmem:[%s2474_s26 + $0x10] sm:$0xff] %v1176_v1  ;;  %1481 = vst [vmem:[%s2474_s26 + $0x8] sm:$0xff] %v1065_v2  ;;  %v1180_v9 = vadd.f32 %v1179_v7, %v2476_v60  ;;  %v1069_v10 = vadd.f32 %v1068_v8, %v2476_v60  ;;  %v1181_v11 = vpop.f32.mrb[3].mxu1  ;;  %v2554_v7 = vpop.permute.xlu1 %418 }
 0x12c   : > { %1483 = vst [vmem:[%s2474_s26 + $0x18] sm:$0xff] %v1178_v5  ;;  %1488 = vst [vmem:[%s2474_s26 + $0x40] sm:$0xff] %v1067_v6  ;;  %v1182_v12 = vadd.f32 %v1181_v11, %v2476_v60  ;;  %v2551_v5 = vpop.permute.xlu0 %413 }
 0x12d   : > { %1490 = vst [vmem:[%s2474_s26 + $0x50] sm:$0xff] %v1180_v9  ;;  %1489 = vst [vmem:[%s2474_s26 + $0x48] sm:$0xff] %v1069_v10 }
 0x12e   : > { %1491 = vst [vmem:[%s2474_s26 + $0x58] sm:$0xff] %v1182_v12 }
 0x12f   : > { %v1072_v13 = vpop.f32.mrb[4].mxu0 }
 0x130   : > { %v1073_v15 = vadd.f32 %v1072_v13, %v2469_v55  ;;  %v1185_v16 = vpop.f32.mrb[4].mxu1  ;;  %v1074_v17 = vpop.f32.mrb[5].mxu0 }
 0x131   : > { %v1186_v18 = vadd.f32 %v1185_v16, %v2469_v55  ;;  %v1075_v19 = vadd.f32 %v1074_v17, %v2469_v55  ;;  %v1187_v20 = vpop.f32.mrb[5].mxu1  ;;  %v1076_v21 = vpop.f32.mrb[6].mxu0 }
 0x132   : > { %1496 = vst [vmem:[%s2474_s26 + $0x80] sm:$0xff] %v1073_v15  ;;  %v1188_v22 = vadd.f32 %v1187_v20, %v2469_v55  ;;  %v1077_v23 = vadd.f32 %v1076_v21, %v2494_v14  ;;  %v1189_v24 = vpop.f32.mrb[6].mxu1  ;;  %v1078_v25 = vpop.f32.mrb[7].mxu0 }
 0x133   : > { %1498 = vst [vmem:[%s2474_s26 + $0x90] sm:$0xff] %v1186_v18  ;;  %1497 = vst [vmem:[%s2474_s26 + $0x88] sm:$0xff] %v1075_v19  ;;  %v1190_v26 = vadd.f32 %v1189_v24, %v2494_v14  ;;  %v1079_v27 = vadd.f32 %v1078_v25, %v2494_v14  ;;  %v1191_v28 = vpop.f32.mrb[7].mxu1  ;;  %v2571_v24 = vpop.permute.xlu0 %423 }
 0x134   : > { %1499 = vst [vmem:[%s2474_s26 + $0x98] sm:$0xff] %v1188_v22  ;;  %1504 = vst [vmem:[%s2474_s26 + $0xc0] sm:$0xff] %v1077_v23  ;;  %v1192_v29 = vadd.f32 %v1191_v28, %v2494_v14 }
 0x135   : > { %1506 = vst [vmem:[%s2474_s26 + $0xd0] sm:$0xff] %v1190_v26  ;;  %1505 = vst [vmem:[%s2474_s26 + $0xc8] sm:$0xff] %v1079_v27  ;;  %v2574_v26 = vpop.permute.xlu1 %428 }
 0x136   : > { %1507 = vst [vmem:[%s2474_s26 + $0xd8] sm:$0xff] %v1192_v29 }
 0x137   : > { %v1082_v31 = vpop.f32.mrb[8].mxu0 }
 0x138   : > { %v1195_v33 = vpop.f32.mrb[8].mxu1  ;;  %v1083_v34 = vadd.f32 %v1082_v31, %v2511_v30  ;;  %v1084_v35 = vpop.f32.mrb[9].mxu0 }
 0x139   : > { %v1196_v36 = vadd.f32 %v1195_v33, %v2511_v30  ;;  %v1085_v37 = vadd.f32 %v1084_v35, %v2511_v30  ;;  %v1197_v38 = vpop.f32.mrb[9].mxu1  ;;  %v1086_v39 = vpop.f32.mrb[10].mxu0 }
 0x13a   : > { %1512 = vst [vmem:[%s2474_s26 + $0x100] sm:$0xff] %v1083_v34  ;;  %v1198_v40 = vadd.f32 %v1197_v38, %v2511_v30  ;;  %v1087_v41 = vadd.f32 %v1086_v39, %v2514_v32  ;;  %v1199_v42 = vpop.f32.mrb[10].mxu1  ;;  %v1088_v43 = vpop.f32.mrb[11].mxu0 }
 0x13b   : > { %1514 = vst [vmem:[%s2474_s26 + $0x110] sm:$0xff] %v1196_v36  ;;  %1513 = vst [vmem:[%s2474_s26 + $0x108] sm:$0xff] %v1085_v37  ;;  %v1200_v44 = vadd.f32 %v1199_v42, %v2514_v32  ;;  %v1089_v45 = vadd.f32 %v1088_v43, %v2514_v32  ;;  %v1201_v46 = vpop.f32.mrb[11].mxu1 }
 0x13c   : > { %1515 = vst [vmem:[%s2474_s26 + $0x118] sm:$0xff] %v1198_v40  ;;  %1520 = vst [vmem:[%s2474_s26 + $0x140] sm:$0xff] %v1087_v41  ;;  %v1202_v47 = vadd.f32 %v1201_v46, %v2514_v32  ;;  %v2594_v46 = vpop.permute.xlu1 %438 }
 0x13d   : > { %1522 = vst [vmem:[%s2474_s26 + $0x150] sm:$0xff] %v1200_v44  ;;  %1521 = vst [vmem:[%s2474_s26 + $0x148] sm:$0xff] %v1089_v45  ;;  %v2591_v44 = vpop.permute.xlu0 %433 }
 0x13e   : > { %1523 = vst [vmem:[%s2474_s26 + $0x158] sm:$0xff] %v1202_v47 }
 0x13f   : > { %v1092_v49 = vpop.f32.mrb[12].mxu0 }
 0x140   : > { %v1205_v51 = vpop.f32.mrb[12].mxu1  ;;  %v1093_v52 = vadd.f32 %v1092_v49, %v2531_v48  ;;  %v1094_v53 = vpop.f32.mrb[13].mxu0 }
 0x141   : > { %v1206_v54 = vadd.f32 %v1205_v51, %v2531_v48  ;;  %v1095_v56 = vadd.f32 %v1094_v53, %v2531_v48  ;;  %v1207_v57 = vpop.f32.mrb[13].mxu1  ;;  %v1096_v58 = vpop.f32.mrb[14].mxu0 }
 0x142   : > { %1528 = vst [vmem:[%s2474_s26 + $0x180] sm:$0xff] %v1093_v52  ;;  %v1208_v59 = vadd.f32 %v1207_v57, %v2531_v48  ;;  %v1097_v61 = vadd.f32 %v1096_v58, %v2534_v50  ;;  %v1209_v62 = vpop.f32.mrb[14].mxu1  ;;  %v1098_v63 = vpop.f32.mrb[15].mxu0 }
 0x143   : > { %1530 = vst [vmem:[%s2474_s26 + $0x190] sm:$0xff] %v1206_v54  ;;  %1529 = vst [vmem:[%s2474_s26 + $0x188] sm:$0xff] %v1095_v56  ;;  %v1210_v1 = vadd.f32 %v1209_v62, %v2534_v50  ;;  %v1099_v2 = vadd.f32 %v1098_v63, %v2534_v50  ;;  %v1211_v3 = vpop.f32.mrb[15].mxu1 }
 0x144   : > { %1531 = vst [vmem:[%s2474_s26 + $0x198] sm:$0xff] %v1208_v59  ;;  %1536 = vst [vmem:[%s2474_s26 + $0x1c0] sm:$0xff] %v1097_v61  ;;  %v1212_v4 = vadd.f32 %v1211_v3, %v2534_v50  ;;  %v2611_v3 = vpop.permute.xlu0 %443 }
 0x145   : > { %1538 = vst [vmem:[%s2474_s26 + $0x1d0] sm:$0xff] %v1210_v1  ;;  %1537 = vst [vmem:[%s2474_s26 + $0x1c8] sm:$0xff] %v1099_v2 }
 0x146   : > { %1539 = vst [vmem:[%s2474_s26 + $0x1d8] sm:$0xff] %v1212_v4 }
 0x147   : > { %v1102_v6 = vpop.f32.mrb[16].mxu0 }
 0x148   : > { %v1215_v8 = vpop.f32.mrb[16].mxu1  ;;  %v1103_v9 = vadd.f32 %v1102_v6, %v2551_v5  ;;  %v1104_v10 = vpop.f32.mrb[17].mxu0 }
 0x149   : > { %v1216_v11 = vadd.f32 %v1215_v8, %v2551_v5  ;;  %v1105_v12 = vadd.f32 %v1104_v10, %v2551_v5  ;;  %v1217_v13 = vpop.f32.mrb[17].mxu1  ;;  %v1106_v15 = vpop.f32.mrb[18].mxu0 }
 0x14a   : > { %1544 = vst [vmem:[%s2474_s26 + $0x200] sm:$0xff] %v1103_v9  ;;  %v1218_v16 = vadd.f32 %v1217_v13, %v2551_v5  ;;  %v1107_v17 = vadd.f32 %v1106_v15, %v2554_v7  ;;  %v1219_v18 = vpop.f32.mrb[18].mxu1  ;;  %v1108_v19 = vpop.f32.mrb[19].mxu0 }
 0x14b   : > { %1546 = vst [vmem:[%s2474_s26 + $0x210] sm:$0xff] %v1216_v11  ;;  %1545 = vst [vmem:[%s2474_s26 + $0x208] sm:$0xff] %v1105_v12  ;;  %v1220_v20 = vadd.f32 %v1219_v18, %v2554_v7  ;;  %v1109_v21 = vadd.f32 %v1108_v19, %v2554_v7  ;;  %v1221_v22 = vpop.f32.mrb[19].mxu1  ;;  %v2614_v6 = vpop.permute.xlu1 %448 }
 0x14c   : > { %1547 = vst [vmem:[%s2474_s26 + $0x218] sm:$0xff] %v1218_v16  ;;  %1552 = vst [vmem:[%s2474_s26 + $0x240] sm:$0xff] %v1107_v17  ;;  %v1222_v23 = vadd.f32 %v1221_v22, %v2554_v7 }
 0x14d   : > { %1554 = vst [vmem:[%s2474_s26 + $0x250] sm:$0xff] %v1220_v20  ;;  %1553 = vst [vmem:[%s2474_s26 + $0x248] sm:$0xff] %v1109_v21 }
 0x14e   : > { %1555 = vst [vmem:[%s2474_s26 + $0x258] sm:$0xff] %v1222_v23 }
 0x14f   : > { %v1112_v25 = vpop.f32.mrb[20].mxu0 }
 0x150   : > { %v1225_v27 = vpop.f32.mrb[20].mxu1  ;;  %v1113_v28 = vadd.f32 %v1112_v25, %v2571_v24  ;;  %v1114_v29 = vpop.f32.mrb[21].mxu0 }
 0x151   : > { %v1226_v31 = vadd.f32 %v1225_v27, %v2571_v24  ;;  %v1115_v33 = vadd.f32 %v1114_v29, %v2571_v24  ;;  %v1227_v34 = vpop.f32.mrb[21].mxu1  ;;  %v1116_v35 = vpop.f32.mrb[22].mxu0 }
 0x152   : > { %1560 = vst [vmem:[%s2474_s26 + $0x280] sm:$0xff] %v1113_v28  ;;  %v1228_v36 = vadd.f32 %v1227_v34, %v2571_v24  ;;  %v1117_v37 = vadd.f32 %v1116_v35, %v2574_v26  ;;  %v1229_v38 = vpop.f32.mrb[22].mxu1  ;;  %v1118_v39 = vpop.f32.mrb[23].mxu0 }
 0x153   : > { %1562 = vst [vmem:[%s2474_s26 + $0x290] sm:$0xff] %v1226_v31  ;;  %1561 = vst [vmem:[%s2474_s26 + $0x288] sm:$0xff] %v1115_v33  ;;  %v1230_v40 = vadd.f32 %v1229_v38, %v2574_v26  ;;  %v1119_v41 = vadd.f32 %v1118_v39, %v2574_v26  ;;  %v1231_v42 = vpop.f32.mrb[23].mxu1 }
 0x154   : > { %1563 = vst [vmem:[%s2474_s26 + $0x298] sm:$0xff] %v1228_v36  ;;  %1568 = vst [vmem:[%s2474_s26 + $0x2c0] sm:$0xff] %v1117_v37  ;;  %v1232_v43 = vadd.f32 %v1231_v42, %v2574_v26 }
 0x155   : > { %1570 = vst [vmem:[%s2474_s26 + $0x2d0] sm:$0xff] %v1230_v40  ;;  %1569 = vst [vmem:[%s2474_s26 + $0x2c8] sm:$0xff] %v1119_v41 }
 0x156   : > { %1571 = vst [vmem:[%s2474_s26 + $0x2d8] sm:$0xff] %v1232_v43 }
 0x157   : > { %v1122_v45 = vpop.f32.mrb[24].mxu0 }
 0x158   : > { %v1235_v47 = vpop.f32.mrb[24].mxu1  ;;  %v1123_v49 = vadd.f32 %v1122_v45, %v2591_v44  ;;  %v1124_v51 = vpop.f32.mrb[25].mxu0 }
 0x159   : > { %v1236_v52 = vadd.f32 %v1235_v47, %v2591_v44  ;;  %v1125_v53 = vadd.f32 %v1124_v51, %v2591_v44  ;;  %v1237_v54 = vpop.f32.mrb[25].mxu1  ;;  %v1126_v56 = vpop.f32.mrb[26].mxu0 }
 0x15a   : > { %1576 = vst [vmem:[%s2474_s26 + $0x300] sm:$0xff] %v1123_v49  ;;  %v1238_v57 = vadd.f32 %v1237_v54, %v2591_v44  ;;  %v1127_v58 = vadd.f32 %v1126_v56, %v2594_v46  ;;  %v1239_v59 = vpop.f32.mrb[26].mxu1  ;;  %v1128_v61 = vpop.f32.mrb[27].mxu0 }
 0x15b   : > { %1578 = vst [vmem:[%s2474_s26 + $0x310] sm:$0xff] %v1236_v52  ;;  %1577 = vst [vmem:[%s2474_s26 + $0x308] sm:$0xff] %v1125_v53  ;;  %v1240_v62 = vadd.f32 %v1239_v59, %v2594_v46  ;;  %v1129_v63 = vadd.f32 %v1128_v61, %v2594_v46  ;;  %v1241_v1 = vpop.f32.mrb[27].mxu1 }
 0x15c   : > { %1579 = vst [vmem:[%s2474_s26 + $0x318] sm:$0xff] %v1238_v57  ;;  %1584 = vst [vmem:[%s2474_s26 + $0x340] sm:$0xff] %v1127_v58  ;;  %v1242_v2 = vadd.f32 %v1241_v1, %v2594_v46 }
 0x15d   : > { %1586 = vst [vmem:[%s2474_s26 + $0x350] sm:$0xff] %v1240_v62  ;;  %1585 = vst [vmem:[%s2474_s26 + $0x348] sm:$0xff] %v1129_v63 }
 0x15e   : > { %1587 = vst [vmem:[%s2474_s26 + $0x358] sm:$0xff] %v1242_v2 }
 0x15f   : > { %v1132_v4 = vpop.f32.mrb[28].mxu0 }
 0x160   : > { %v1245_v8 = vpop.f32.mrb[28].mxu1  ;;  %v1133_v9 = vadd.f32 %v1132_v4, %v2611_v3  ;;  %v1134_v10 = vpop.f32.mrb[29].mxu0 }
 0x161   : > { %v1246_v11 = vadd.f32 %v1245_v8, %v2611_v3  ;;  %v1135_v12 = vadd.f32 %v1134_v10, %v2611_v3  ;;  %v1247_v13 = vpop.f32.mrb[29].mxu1  ;;  %v1136_v15 = vpop.f32.mrb[30].mxu0 }
 0x162   : > { %1592 = vst [vmem:[%s2474_s26 + $0x380] sm:$0xff] %v1133_v9  ;;  %v1248_v16 = vadd.f32 %v1247_v13, %v2611_v3  ;;  %v1137_v17 = vadd.f32 %v1136_v15, %v2614_v6  ;;  %v1249_v18 = vpop.f32.mrb[30].mxu1  ;;  %v1138_v19 = vpop.f32.mrb[31].mxu0 }
 0x163   : > { %1594 = vst [vmem:[%s2474_s26 + $0x390] sm:$0xff] %v1246_v11  ;;  %1593 = vst [vmem:[%s2474_s26 + $0x388] sm:$0xff] %v1135_v12  ;;  %v1250_v20 = vadd.f32 %v1249_v18, %v2614_v6  ;;  %v1139_v21 = vadd.f32 %v1138_v19, %v2614_v6  ;;  %v1251_v22 = vpop.f32.mrb[31].mxu1 }
 0x164   : > { %1595 = vst [vmem:[%s2474_s26 + $0x398] sm:$0xff] %v1248_v16  ;;  %1600 = vst [vmem:[%s2474_s26 + $0x3c0] sm:$0xff] %v1137_v17  ;;  %v1252_v23 = vadd.f32 %v1251_v22, %v2614_v6 }
 0x165   : > { %1602 = vst [vmem:[%s2474_s26 + $0x3d0] sm:$0xff] %v1250_v20  ;;  %1601 = vst [vmem:[%s2474_s26 + $0x3c8] sm:$0xff] %v1139_v21 }
 0x166   : > { %1603 = vst [vmem:[%s2474_s26 + $0x3d8] sm:$0xff] %v1252_v23 }
 0x167   : > { %v1288_v25 = vpop.f32.mrb[32].mxu0 }
 0x168   : > { %v1289_v27 = vadd.f32 %v1288_v25, %v2466_v0  ;;  %v1401_v28 = vpop.f32.mrb[32].mxu1  ;;  %v1290_v29 = vpop.f32.mrb[33].mxu0 }
 0x169   : > { %v1402_v31 = vadd.f32 %v1401_v28, %v2466_v0  ;;  %v1291_v33 = vadd.f32 %v1290_v29, %v2466_v0  ;;  %v1403_v34 = vpop.f32.mrb[33].mxu1  ;;  %v1292_v35 = vpop.f32.mrb[34].mxu0 }
 0x16a   : > { %1484 = vst [vmem:[%s2474_s26 + $0x20] sm:$0xff] %v1289_v27  ;;  %v1404_v36 = vadd.f32 %v1403_v34, %v2466_v0  ;;  %v1293_v37 = vadd.f32 %v1292_v35, %v2476_v60  ;;  %v1405_v38 = vpop.f32.mrb[34].mxu1  ;;  %v1294_v39 = vpop.f32.mrb[35].mxu0 }
 0x16b   : > { %1486 = vst [vmem:[%s2474_s26 + $0x30] sm:$0xff] %v1402_v31  ;;  %1485 = vst [vmem:[%s2474_s26 + $0x28] sm:$0xff] %v1291_v33  ;;  %v1406_v40 = vadd.f32 %v1405_v38, %v2476_v60  ;;  %v1295_v41 = vadd.f32 %v1294_v39, %v2476_v60  ;;  %v1407_v42 = vpop.f32.mrb[35].mxu1 }
 0x16c   : > { %1487 = vst [vmem:[%s2474_s26 + $0x38] sm:$0xff] %v1404_v36  ;;  %1492 = vst [vmem:[%s2474_s26 + $0x60] sm:$0xff] %v1293_v37  ;;  %v1408_v43 = vadd.f32 %v1407_v42, %v2476_v60 }
 0x16d   : > { %1494 = vst [vmem:[%s2474_s26 + $0x70] sm:$0xff] %v1406_v40  ;;  %1493 = vst [vmem:[%s2474_s26 + $0x68] sm:$0xff] %v1295_v41 }
 0x16e   : > { %1495 = vst [vmem:[%s2474_s26 + $0x78] sm:$0xff] %v1408_v43 }
 0x16f   : > { %v1298_v0 = vpop.f32.mrb[36].mxu0 }
 0x170   : > { %v1299_v45 = vadd.f32 %v1298_v0, %v2469_v55  ;;  %v1411_v47 = vpop.f32.mrb[36].mxu1  ;;  %v1300_v49 = vpop.f32.mrb[37].mxu0 }
 0x171   : > { %v1412_v51 = vadd.f32 %v1411_v47, %v2469_v55  ;;  %v1301_v52 = vadd.f32 %v1300_v49, %v2469_v55  ;;  %v1413_v53 = vpop.f32.mrb[37].mxu1  ;;  %v1302_v60 = vpop.f32.mrb[38].mxu0 }
 0x172   : > { %1500 = vst [vmem:[%s2474_s26 + $0xa0] sm:$0xff] %v1299_v45  ;;  %v1414_v54 = vadd.f32 %v1413_v53, %v2469_v55  ;;  %v1303_v56 = vadd.f32 %v1302_v60, %v2494_v14  ;;  %v1415_v57 = vpop.f32.mrb[38].mxu1  ;;  %v1304_v58 = vpop.f32.mrb[39].mxu0 }
 0x173   : > { %1502 = vst [vmem:[%s2474_s26 + $0xb0] sm:$0xff] %v1412_v51  ;;  %1501 = vst [vmem:[%s2474_s26 + $0xa8] sm:$0xff] %v1301_v52  ;;  %v1416_v59 = vadd.f32 %v1415_v57, %v2494_v14  ;;  %v1305_v61 = vadd.f32 %v1304_v58, %v2494_v14  ;;  %v1417_v62 = vpop.f32.mrb[39].mxu1 }
 0x174   : > { %1503 = vst [vmem:[%s2474_s26 + $0xb8] sm:$0xff] %v1414_v54  ;;  %1508 = vst [vmem:[%s2474_s26 + $0xe0] sm:$0xff] %v1303_v56  ;;  %v1418_v63 = vadd.f32 %v1417_v62, %v2494_v14 }
 0x175   : > { %1510 = vst [vmem:[%s2474_s26 + $0xf0] sm:$0xff] %v1416_v59  ;;  %1509 = vst [vmem:[%s2474_s26 + $0xe8] sm:$0xff] %v1305_v61 }
 0x176   : > { %1511 = vst [vmem:[%s2474_s26 + $0xf8] sm:$0xff] %v1418_v63 }
 0x177   : > { %v1308_v55 = vpop.f32.mrb[40].mxu0 }
 0x178   : > { %v1309_v1 = vadd.f32 %v1308_v55, %v2511_v30  ;;  %v1421_v2 = vpop.f32.mrb[40].mxu1  ;;  %v1310_v4 = vpop.f32.mrb[41].mxu0 }
 0x179   : > { %v1422_v8 = vadd.f32 %v1421_v2, %v2511_v30  ;;  %v1311_v9 = vadd.f32 %v1310_v4, %v2511_v30  ;;  %v1423_v10 = vpop.f32.mrb[41].mxu1  ;;  %v1312_v14 = vpop.f32.mrb[42].mxu0 }
 0x17a   : > { %1516 = vst [vmem:[%s2474_s26 + $0x120] sm:$0xff] %v1309_v1  ;;  %v1424_v11 = vadd.f32 %v1423_v10, %v2511_v30  ;;  %v1313_v12 = vadd.f32 %v1312_v14, %v2514_v32  ;;  %v1425_v13 = vpop.f32.mrb[42].mxu1  ;;  %v1314_v15 = vpop.f32.mrb[43].mxu0 }
 0x17b   : > { %1518 = vst [vmem:[%s2474_s26 + $0x130] sm:$0xff] %v1422_v8  ;;  %1517 = vst [vmem:[%s2474_s26 + $0x128] sm:$0xff] %v1311_v9  ;;  %v1426_v16 = vadd.f32 %v1425_v13, %v2514_v32  ;;  %v1315_v17 = vadd.f32 %v1314_v15, %v2514_v32  ;;  %v1427_v18 = vpop.f32.mrb[43].mxu1 }
 0x17c   : > { %1519 = vst [vmem:[%s2474_s26 + $0x138] sm:$0xff] %v1424_v11  ;;  %1524 = vst [vmem:[%s2474_s26 + $0x160] sm:$0xff] %v1313_v12  ;;  %v1428_v19 = vadd.f32 %v1427_v18, %v2514_v32 }
 0x17d   : > { %1526 = vst [vmem:[%s2474_s26 + $0x170] sm:$0xff] %v1426_v16  ;;  %1525 = vst [vmem:[%s2474_s26 + $0x168] sm:$0xff] %v1315_v17 }
 0x17e   : > { %1527 = vst [vmem:[%s2474_s26 + $0x178] sm:$0xff] %v1428_v19 }
 0x17f   : > { %v1318_v30 = vpop.f32.mrb[44].mxu0 }
 0x180   : > { %v1319_v20 = vadd.f32 %v1318_v30, %v2531_v48  ;;  %v1431_v21 = vpop.f32.mrb[44].mxu1  ;;  %v1320_v22 = vpop.f32.mrb[45].mxu0 }
 0x181   : > { %v1432_v23 = vadd.f32 %v1431_v21, %v2531_v48  ;;  %v1321_v25 = vadd.f32 %v1320_v22, %v2531_v48  ;;  %v1433_v27 = vpop.f32.mrb[45].mxu1  ;;  %v1322_v32 = vpop.f32.mrb[46].mxu0 }
 0x182   : > { %1532 = vst [vmem:[%s2474_s26 + $0x1a0] sm:$0xff] %v1319_v20  ;;  %v1434_v28 = vadd.f32 %v1433_v27, %v2531_v48  ;;  %v1323_v29 = vadd.f32 %v1322_v32, %v2534_v50  ;;  %v1435_v31 = vpop.f32.mrb[46].mxu1  ;;  %v1324_v33 = vpop.f32.mrb[47].mxu0 }
 0x183   : > { %1534 = vst [vmem:[%s2474_s26 + $0x1b0] sm:$0xff] %v1432_v23  ;;  %1533 = vst [vmem:[%s2474_s26 + $0x1a8] sm:$0xff] %v1321_v25  ;;  %v1436_v34 = vadd.f32 %v1435_v31, %v2534_v50  ;;  %v1325_v35 = vadd.f32 %v1324_v33, %v2534_v50  ;;  %v1437_v36 = vpop.f32.mrb[47].mxu1 }
 0x184   : > { %1535 = vst [vmem:[%s2474_s26 + $0x1b8] sm:$0xff] %v1434_v28  ;;  %1540 = vst [vmem:[%s2474_s26 + $0x1e0] sm:$0xff] %v1323_v29  ;;  %v1438_v37 = vadd.f32 %v1437_v36, %v2534_v50 }
 0x185   : > { %1542 = vst [vmem:[%s2474_s26 + $0x1f0] sm:$0xff] %v1436_v34  ;;  %1541 = vst [vmem:[%s2474_s26 + $0x1e8] sm:$0xff] %v1325_v35 }
 0x186   : > { %1543 = vst [vmem:[%s2474_s26 + $0x1f8] sm:$0xff] %v1438_v37 }
 0x187   : > { %v1328_v48 = vpop.f32.mrb[48].mxu0 }
 0x188   : > { %v1329_v38 = vadd.f32 %v1328_v48, %v2551_v5  ;;  %v1441_v39 = vpop.f32.mrb[48].mxu1  ;;  %v1330_v40 = vpop.f32.mrb[49].mxu0 }
 0x189   : > { %v1442_v41 = vadd.f32 %v1441_v39, %v2551_v5  ;;  %v1331_v42 = vadd.f32 %v1330_v40, %v2551_v5  ;;  %v1443_v43 = vpop.f32.mrb[49].mxu1  ;;  %v1332_v50 = vpop.f32.mrb[50].mxu0 }
 0x18a   : > { %1548 = vst [vmem:[%s2474_s26 + $0x220] sm:$0xff] %v1329_v38  ;;  %v1444_v0 = vadd.f32 %v1443_v43, %v2551_v5  ;;  %v1333_v45 = vadd.f32 %v1332_v50, %v2554_v7  ;;  %v1445_v47 = vpop.f32.mrb[50].mxu1  ;;  %v1334_v49 = vpop.f32.mrb[51].mxu0 }
 0x18b   : > { %1550 = vst [vmem:[%s2474_s26 + $0x230] sm:$0xff] %v1442_v41  ;;  %1549 = vst [vmem:[%s2474_s26 + $0x228] sm:$0xff] %v1331_v42  ;;  %v1446_v51 = vadd.f32 %v1445_v47, %v2554_v7  ;;  %v1335_v52 = vadd.f32 %v1334_v49, %v2554_v7  ;;  %v1447_v53 = vpop.f32.mrb[51].mxu1 }
 0x18c   : > { %1551 = vst [vmem:[%s2474_s26 + $0x238] sm:$0xff] %v1444_v0  ;;  %1556 = vst [vmem:[%s2474_s26 + $0x260] sm:$0xff] %v1333_v45  ;;  %v1448_v60 = vadd.f32 %v1447_v53, %v2554_v7 }
 0x18d   : > { %1558 = vst [vmem:[%s2474_s26 + $0x270] sm:$0xff] %v1446_v51  ;;  %1557 = vst [vmem:[%s2474_s26 + $0x268] sm:$0xff] %v1335_v52 }
 0x18e   : > { %1559 = vst [vmem:[%s2474_s26 + $0x278] sm:$0xff] %v1448_v60 }
 0x18f   : > { %v1338_v5 = vpop.f32.mrb[52].mxu0 }
 0x190   : > { %v1339_v54 = vadd.f32 %v1338_v5, %v2571_v24  ;;  %v1451_v56 = vpop.f32.mrb[52].mxu1  ;;  %v1340_v57 = vpop.f32.mrb[53].mxu0 }
 0x191   : > { %v1452_v58 = vadd.f32 %v1451_v56, %v2571_v24  ;;  %v1341_v59 = vadd.f32 %v1340_v57, %v2571_v24  ;;  %v1453_v61 = vpop.f32.mrb[53].mxu1  ;;  %v1342_v7 = vpop.f32.mrb[54].mxu0 }
 0x192   : > { %1564 = vst [vmem:[%s2474_s26 + $0x2a0] sm:$0xff] %v1339_v54  ;;  %v1454_v62 = vadd.f32 %v1453_v61, %v2571_v24  ;;  %v1343_v63 = vadd.f32 %v1342_v7, %v2574_v26  ;;  %v1455_v55 = vpop.f32.mrb[54].mxu1  ;;  %v1344_v1 = vpop.f32.mrb[55].mxu0 }
 0x193   : > { %1566 = vst [vmem:[%s2474_s26 + $0x2b0] sm:$0xff] %v1452_v58  ;;  %1565 = vst [vmem:[%s2474_s26 + $0x2a8] sm:$0xff] %v1341_v59  ;;  %v1456_v2 = vadd.f32 %v1455_v55, %v2574_v26  ;;  %v1345_v4 = vadd.f32 %v1344_v1, %v2574_v26  ;;  %v1457_v8 = vpop.f32.mrb[55].mxu1 }
 0x194   : > { %1567 = vst [vmem:[%s2474_s26 + $0x2b8] sm:$0xff] %v1454_v62  ;;  %1572 = vst [vmem:[%s2474_s26 + $0x2e0] sm:$0xff] %v1343_v63  ;;  %v1458_v9 = vadd.f32 %v1457_v8, %v2574_v26 }
 0x195   : > { %1574 = vst [vmem:[%s2474_s26 + $0x2f0] sm:$0xff] %v1456_v2  ;;  %1573 = vst [vmem:[%s2474_s26 + $0x2e8] sm:$0xff] %v1345_v4 }
 0x196   : > { %1575 = vst [vmem:[%s2474_s26 + $0x2f8] sm:$0xff] %v1458_v9 }
 0x197   : > { %v1348_v24 = vpop.f32.mrb[56].mxu0 }
 0x198   : > { %v1349_v10 = vadd.f32 %v1348_v24, %v2591_v44  ;;  %v1461_v14 = vpop.f32.mrb[56].mxu1  ;;  %v1350_v11 = vpop.f32.mrb[57].mxu0 }
 0x199   : > { %v1462_v12 = vadd.f32 %v1461_v14, %v2591_v44  ;;  %v1351_v13 = vadd.f32 %v1350_v11, %v2591_v44  ;;  %v1463_v15 = vpop.f32.mrb[57].mxu1  ;;  %v1352_v26 = vpop.f32.mrb[58].mxu0 }
 0x19a   : > { %1580 = vst [vmem:[%s2474_s26 + $0x320] sm:$0xff] %v1349_v10  ;;  %v1464_v16 = vadd.f32 %v1463_v15, %v2591_v44  ;;  %v1353_v17 = vadd.f32 %v1352_v26, %v2594_v46  ;;  %v1465_v18 = vpop.f32.mrb[58].mxu1  ;;  %v1354_v19 = vpop.f32.mrb[59].mxu0 }
 0x19b   : > { %1582 = vst [vmem:[%s2474_s26 + $0x330] sm:$0xff] %v1462_v12  ;;  %1581 = vst [vmem:[%s2474_s26 + $0x328] sm:$0xff] %v1351_v13  ;;  %v1466_v30 = vadd.f32 %v1465_v18, %v2594_v46  ;;  %v1355_v20 = vadd.f32 %v1354_v19, %v2594_v46  ;;  %v1467_v21 = vpop.f32.mrb[59].mxu1 }
 0x19c   : > { %1583 = vst [vmem:[%s2474_s26 + $0x338] sm:$0xff] %v1464_v16  ;;  %1588 = vst [vmem:[%s2474_s26 + $0x360] sm:$0xff] %v1353_v17  ;;  %v1468_v22 = vadd.f32 %v1467_v21, %v2594_v46 }
 0x19d   : > { %1590 = vst [vmem:[%s2474_s26 + $0x370] sm:$0xff] %v1466_v30  ;;  %1589 = vst [vmem:[%s2474_s26 + $0x368] sm:$0xff] %v1355_v20 }
 0x19e   : > { %1591 = vst [vmem:[%s2474_s26 + $0x378] sm:$0xff] %v1468_v22 }
 0x19f   : > { %v1358_v44 = vpop.f32.mrb[60].mxu0 }
 0x1a0   : > { %v1359_v23 = vadd.f32 %v1358_v44, %v2611_v3  ;;  %v1471_v25 = vpop.f32.mrb[60].mxu1  ;;  %v1360_v27 = vpop.f32.mrb[61].mxu0 }
 0x1a1   : > { %v1472_v32 = vadd.f32 %v1471_v25, %v2611_v3  ;;  %v1361_v28 = vadd.f32 %v1360_v27, %v2611_v3  ;;  %v1473_v29 = vpop.f32.mrb[61].mxu1  ;;  %v1362_v46 = vpop.f32.mrb[62].mxu0 }
 0x1a2   : > { %1596 = vst [vmem:[%s2474_s26 + $0x3a0] sm:$0xff] %v1359_v23  ;;  %v1474_v31 = vadd.f32 %v1473_v29, %v2611_v3  ;;  %v1363_v33 = vadd.f32 %v1362_v46, %v2614_v6  ;;  %v1475_v34 = vpop.f32.mrb[62].mxu1  ;;  %v1364_v35 = vpop.f32.mrb[63].mxu0 }
 0x1a3   : > { %1598 = vst [vmem:[%s2474_s26 + $0x3b0] sm:$0xff] %v1472_v32  ;;  %1597 = vst [vmem:[%s2474_s26 + $0x3a8] sm:$0xff] %v1361_v28  ;;  %v1476_v36 = vadd.f32 %v1475_v34, %v2614_v6  ;;  %v1365_v37 = vadd.f32 %v1364_v35, %v2614_v6  ;;  %v1477_v48 = vpop.f32.mrb[63].mxu1 }
 0x1a4   : > { %1599 = vst [vmem:[%s2474_s26 + $0x3b8] sm:$0xff] %v1474_v31  ;;  %1604 = vst [vmem:[%s2474_s26 + $0x3e0] sm:$0xff] %v1363_v33  ;;  %v1478_v38 = vadd.f32 %v1477_v48, %v2614_v6 }
 0x1a5   : > { %1606 = vst [vmem:[%s2474_s26 + $0x3f0] sm:$0xff] %v1476_v36  ;;  %1605 = vst [vmem:[%s2474_s26 + $0x3e8] sm:$0xff] %v1365_v37 }
 0x1a6   : > { %1607 = vst [vmem:[%s2474_s26 + $0x3f8] sm:$0xff] %v1478_v38 }
 0x1a7 PF: > { %s13_s14 = sadd.s32 1, %s2093_s14   ;;  %s2773_s12 = smov %s2089_s13 }
 0x1a8   : > { %p10_p5 = scmp.ge.s32.totalorder %s13_s14, 4   ;;  %s2774_s13 = smov %s2776_s15 }
 0x1aa   :  { %12 = sbr.rel (!%p10_p5) target bundleno = 2 (0x2), region = 62 }

// kernel: a_call__.6
= control target key start
LH: loop header
LB: loop body
LE: loop exit
PB: predicated region body
PF: predicated region fallthrough
CT: control target
= control target key end

     0   :  { %s9979_s15 = smov 0   ;;  %s9981_s16 = smov 0   ;;  %s13080_s0 = inlined_call_operand.vmem [shape: bf16[2,16,16,16], index: 0, kind: input, shape index: {}]   ;;  %s13081_s1 = inlined_call_operand.vmem [shape: bf16[16,16,16], index: 1, kind: input, shape index: {}]   ;;  %s13082_s2 = inlined_call_operand.vmem [shape: f32[1,16], index: 2, kind: input, shape index: {}]   ;;  %s13083_s3 = inlined_call_operand.vmem [shape: f32[1,16], index: 3, kind: input, shape index: {}]   ;;  %s13084_s4 = inlined_call_operand.vmem [shape: bf16[2,16,2,16,32], index: 4, kind: output, shape index: {}]  }
   0x1   :  { %s9983_s17 = smov 0  }
   0x2 LB: > { %s26_s18 = sadd.s32 1, %s9946_s16  ;;  %p7797_p0 = scmp.ge.s32.totalorder %s9950_s17, 1  ;;  %s9950_s17 = sphi %s9983_s17, %s14_s17   ;;  %s9946_s16 = sphi %s9981_s16, %s13425_s16   ;;  %s9942_s15 = sphi %s9979_s15, %s13424_s15  }
   0x3   : > { %p28_p1 = scmp.ge.s32.totalorder %s26_s18, 2  ;;  %p190_p2 = scmp.lt.s32.totalorder %s9950_s17, 3 }
   0x5   : > { %s13427_s18 = smov (%p28_p1, %s26_s18), 0  ;;  %p191_p3 = pnand %p7797_p0, %p190_p2 }
   0x7   : > { %194 = sbr.rel (%p191_p3) target bundleno = 968 (0x3c8), region = 36 }
   0xe   : > { %v9854_v0 = vld [vmem:[%s13081_s1 + $0x38] sm:$0xff]   ;;  %p224_p4 = scmp.lt.s32.totalorder %s9942_s15, 1  ;;  %vm248_vm0 = vcmask 125952   ;;  %vm251_vm1 = vcmask 122880   ;;  %v9857_v1 = vld [vmem:[%s13081_s1 + $0x30] sm:$0xff]   ;;  %v9952_v2 = vmov 0  }
   0xf   : > { %8900 = vmatprep.subr.bf16.mxu0 %v9854_v0  ;;  %253 = vst.msk [vmem:[#allocation2 + $0xc] sm:$0xf] %vm248_vm0, %v9952_v2  ;;  %254 = vst.msk [vmem:[#allocation2 + $0x10] sm:$0xf] %vm248_vm0, %v9952_v2  ;;  %vm336_vm2 = vsmask.f32 256  ;;  %9036 = vmatprep.subr.bf16.mxu1 %v9857_v1 }
  0x10   : > { %s13429_s15 = smov (!%p224_p4, %s9942_s15), 1  ;;  %249 = vst.msk [vmem:[#allocation2] sm:$0xf] %vm248_vm0, %v9952_v2  ;;  %250 = vst.msk [vmem:[#allocation2 + $0x4] sm:$0xf] %vm248_vm0, %v9952_v2  ;;  %8901 = vmatpush3.bf16.msra.mxu0 %v9854_v0  ;;  %9037 = vmatpush3.bf16.msra.mxu1 %v9857_v1  ;;  %v10068_v3 = vld [vmem:[%s13081_s1 + $0x20] sm:$0xff]  }
  0x11   : > { %252 = vst.msk [vmem:[#allocation2 + $0x8] sm:$0x1] %vm251_vm1, %v9952_v2  ;;  %255 = vst.msk [vmem:[#allocation2 + $0x14] sm:$0x1] %vm251_vm1, %v9952_v2  ;;  %s8498_s23 = sshll.u32 %s13429_s15, 7  ;;  %9070 = vmatprep.subr.bf16.mxu1 %v10068_v3  ;;  %v10112_v51 = vld [vmem:[%s13081_s1 + $0x28] sm:$0xff]  }
  0x12   : > { %256 = vst.msk [vmem:[#allocation2 + $0x18] sm:$0xf] %vm248_vm0, %v9952_v2  ;;  %257 = vst.msk [vmem:[#allocation2 + $0x1c] sm:$0xf] %vm248_vm0, %v9952_v2  ;;  %vm337_vm3 = vsmask.f32 4368  ;;  %s10063_s26 = scalar_lea.vmem %s13080_s0, %s8498_s23  ;;  %8934 = vmatprep.subr.bf16.mxu0 %v10112_v51 }
  0x13   : > { %258 = vst.msk [vmem:[#allocation2 + $0x20] sm:$0x1] %vm251_vm1, %v9952_v2  ;;  %261 = vst.msk [vmem:[#allocation2 + $0x2c] sm:$0x1] %vm251_vm1, %v9952_v2  ;;  %vm661_vm4 = vsmask.f32 7938 }
  0x14   : > { %259 = vst.msk [vmem:[#allocation2 + $0x24] sm:$0xf] %vm248_vm0, %v9952_v2  ;;  %260 = vst.msk [vmem:[#allocation2 + $0x28] sm:$0xf] %vm248_vm0, %v9952_v2  ;;  %v304_v4 = vld [vmem:[%s10063_s26] sm:$0xf] }
  0x15   : > { %262 = vst.msk [vmem:[#allocation2 + $0x30] sm:$0xf] %vm248_vm0, %v9952_v2  ;;  %263 = vst.msk [vmem:[#allocation2 + $0x34] sm:$0xf] %vm248_vm0, %v9952_v2  ;;  %v305_v5 = vld [vmem:[%s10063_s26 + $0x4] sm:$0xf] }
  0x16   : > { %264 = vst.msk [vmem:[#allocation2 + $0x38] sm:$0x1] %vm251_vm1, %v9952_v2  ;;  %267 = vst.msk [vmem:[#allocation2 + $0x44] sm:$0x1] %vm251_vm1, %v9952_v2  ;;  %v306_v6 = vld [vmem:[%s10063_s26 + $0x8] sm:$0xf] }
  0x17   : > { %265 = vst.msk [vmem:[#allocation2 + $0x3c] sm:$0xf] %vm248_vm0, %v9952_v2  ;;  %266 = vst.msk [vmem:[#allocation2 + $0x40] sm:$0xf] %vm248_vm0, %v9952_v2  ;;  %v340_v7 = vshrl.u32 %v304_v4, 16  ;;  %v343_v8 = vshll.u32 %v304_v4, 16 }
  0x18   : > { %268 = vst.msk [vmem:[#allocation2 + $0x48] sm:$0xf] %vm248_vm0, %v9952_v2  ;;  %269 = vst.msk [vmem:[#allocation2 + $0x4c] sm:$0xf] %vm248_vm0, %v9952_v2  ;;  %v348_v9 = vshrl.u32 %v305_v5, 16  ;;  %v351_v10 = vshll.u32 %v305_v5, 16 }
  0x19   : > { %270 = vst.msk [vmem:[#allocation2 + $0x50] sm:$0x1] %vm251_vm1, %v9952_v2  ;;  %273 = vst.msk [vmem:[#allocation2 + $0x5c] sm:$0x1] %vm251_vm1, %v9952_v2  ;;  %v307_v11 = vld [vmem:[%s10063_s26 + $0xc] sm:$0xf] }
  0x1a   : > { %271 = vst.msk [vmem:[#allocation2 + $0x54] sm:$0xf] %vm248_vm0, %v9952_v2  ;;  %272 = vst.msk [vmem:[#allocation2 + $0x58] sm:$0xf] %vm248_vm0, %v9952_v2  ;;  %v357_v12 = vshrl.u32 %v306_v6, 16  ;;  %v360_v13 = vshll.u32 %v306_v6, 16 }
  0x1b   : > { %274 = vst.msk [vmem:[#allocation2 + $0x60] sm:$0xf] %vm248_vm0, %v9952_v2  ;;  %275 = vst.msk [vmem:[#allocation2 + $0x64] sm:$0xf] %vm248_vm0, %v9952_v2  ;;  %v365_v14 = vshrl.u32 %v307_v11, 16  ;;  %v368_v15 = vshll.u32 %v307_v11, 16 }
  0x1c   : > { %276 = vst.msk [vmem:[#allocation2 + $0x68] sm:$0x1] %vm251_vm1, %v9952_v2  ;;  %279 = vst.msk [vmem:[#allocation2 + $0x74] sm:$0x1] %vm251_vm1, %v9952_v2  ;;  %v308_v16 = vld [vmem:[%s10063_s26 + $0x10] sm:$0xf] }
  0x1d   : > { %277 = vst.msk [vmem:[#allocation2 + $0x6c] sm:$0xf] %vm248_vm0, %v9952_v2  ;;  %278 = vst.msk [vmem:[#allocation2 + $0x70] sm:$0xf] %vm248_vm0, %v9952_v2  ;;  %v342_v18 = vrot.slane %v340_v7, 7  ;;  %v350_v19 = vrot.slane %v348_v9, 7 }
  0x1e   : > { %280 = vst.msk [vmem:[#allocation2 + $0x78] sm:$0xf] %vm248_vm0, %v9952_v2  ;;  %281 = vst.msk [vmem:[#allocation2 + $0x7c] sm:$0xf] %vm248_vm0, %v9952_v2  ;;  %v663_v20 = vld [vmem:[#allocation2 + $0xc] sm:$0xf] }
  0x1f   : > { %282 = vst.msk [vmem:[#allocation2 + $0x80] sm:$0x1] %vm251_vm1, %v9952_v2  ;;  %285 = vst.msk [vmem:[#allocation2 + $0x8c] sm:$0x1] %vm251_vm1, %v9952_v2  ;;  %v359_v22 = vrot.slane %v357_v12, 7  ;;  %v367_v23 = vrot.slane %v365_v14, 7  ;;  %v345_v27 = vor.u32 %v343_v8, %v342_v18  ;;  %v353_v29 = vor.u32 %v351_v10, %v350_v19 }
  0x20   : > { %283 = vst.msk [vmem:[#allocation2 + $0x84] sm:$0xf] %vm248_vm0, %v9952_v2  ;;  %284 = vst.msk [vmem:[#allocation2 + $0x88] sm:$0xf] %vm248_vm0, %v9952_v2  ;;  %v309_v24 = vld [vmem:[%s10063_s26 + $0x14] sm:$0xf] }
  0x21   : > { %286 = vst.msk [vmem:[#allocation2 + $0x90] sm:$0xf] %vm248_vm0, %v9952_v2  ;;  %287 = vst.msk [vmem:[#allocation2 + $0x94] sm:$0xf] %vm248_vm0, %v9952_v2  ;;  %v374_v25 = vshrl.u32 %v308_v16, 16  ;;  %v377_v26 = vshll.u32 %v308_v16, 16  ;;  %v362_v32 = vor.u32 %v360_v13, %v359_v22  ;;  %v370_v34 = vor.u32 %v368_v15, %v367_v23 }
  0x22   : > { %288 = vst.msk [vmem:[#allocation2 + $0x98] sm:$0x1] %vm251_vm1, %v9952_v2  ;;  %291 = vst.msk [vmem:[#allocation2 + $0xa4] sm:$0x1] %vm251_vm1, %v9952_v2  ;;  %v346_v28 = vrot.slane %v342_v18, 4  ;;  %v355_v30 = vrot.slane %v350_v19, 4 }
  0x23   : > { %289 = vst.msk [vmem:[#allocation2 + $0x9c] sm:$0xf] %vm248_vm0, %v9952_v2  ;;  %290 = vst.msk [vmem:[#allocation2 + $0xa0] sm:$0xf] %vm248_vm0, %v9952_v2  ;;  %v673_v31 = vld [vmem:[#allocation2 + $0x18] sm:$0xf] }
  0x24   : > { %292 = vst.msk [vmem:[#allocation2 + $0xa8] sm:$0xf] %vm248_vm0, %v9952_v2  ;;  %293 = vst.msk [vmem:[#allocation2 + $0xac] sm:$0xf] %vm248_vm0, %v9952_v2  ;;  %v363_v33 = vrot.slane %v359_v22, 4  ;;  %v376_v35 = vrot.slane %v374_v25, 7 }
  0x25   : > { %294 = vst.msk [vmem:[#allocation2 + $0xb0] sm:$0x1] %vm251_vm1, %v9952_v2  ;;  %297 = vst.msk [vmem:[#allocation2 + $0xbc] sm:$0x1] %vm251_vm1, %v9952_v2  ;;  %v310_v36 = vld [vmem:[%s10063_s26 + $0x18] sm:$0xf] }
  0x26   : > { %295 = vst.msk [vmem:[#allocation2 + $0xb4] sm:$0xf] %vm248_vm0, %v9952_v2  ;;  %296 = vst.msk [vmem:[#allocation2 + $0xb8] sm:$0xf] %vm248_vm0, %v9952_v2  ;;  %v311_v37 = vld [vmem:[%s10063_s26 + $0x1c] sm:$0xf]  ;;  %v379_v47 = vor.u32 %v377_v26, %v376_v35 }
  0x27   : > { %298 = vst.msk [vmem:[#allocation2 + $0xc0] sm:$0xf] %vm248_vm0, %v9952_v2  ;;  %299 = vst.msk [vmem:[#allocation2 + $0xc4] sm:$0xf] %vm248_vm0, %v9952_v2  ;;  %v382_v41 = vshrl.u32 %v309_v24, 16  ;;  %v385_v42 = vshll.u32 %v309_v24, 16 }
  0x28   : > { %300 = vst.msk [vmem:[#allocation2 + $0xc8] sm:$0x1] %vm251_vm1, %v9952_v2  ;;  %303 = vst.msk [vmem:[#allocation2 + $0xd4] sm:$0x1] %vm251_vm1, %v9952_v2  ;;  %v680_v43 = vld [vmem:[#allocation2 + $0x24] sm:$0xf] }
  0x29   : > { %301 = vst.msk [vmem:[#allocation2 + $0xcc] sm:$0xf] %vm248_vm0, %v9952_v2  ;;  %302 = vst.msk [vmem:[#allocation2 + $0xd0] sm:$0xf] %vm248_vm0, %v9952_v2  ;;  %v670_v44 = vld [vmem:[#allocation2 + $0x14] sm:$0x1] }
  0x2a   : > { %vm10078_vm5 = vmor %vm336_vm2, %vm337_vm3  ;;  %v380_v48 = vrot.slane %v376_v35, 4  ;;  %v677_v49 = vld [vmem:[#allocation2 + $0x20] sm:$0x1]  ;;  %v10115_v52 = vrot.slane %v382_v41, 7  ;;  %v391_v53 = vshrl.u32 %v310_v36, 16  ;;  %v394_v54 = vshll.u32 %v310_v36, 16 }
  0x2b   : > { %vm10084_vm6 = vmand %vm248_vm0, %vm661_vm4  ;;  %v354_v38 = vsel %vm10078_vm5, %v346_v28, %v353_v29  ;;  %v371_v45 = vsel %vm10078_vm5, %v363_v33, %v370_v34  ;;  %v10107_v50 = vld [vmem:[%s10063_s26 + $0x20] sm:$0xf]  ;;  %v399_v55 = vshrl.u32 %v311_v37, 16  ;;  %v10118_v56 = vld [vmem:[%s10063_s26 + $0x24] sm:$0xf]  ;;  %v402_v58 = vshll.u32 %v311_v37, 16 }
  0x2c   : > { %v664_v39 = vsel %vm10084_vm6, %v345_v27, %v663_v20  ;;  %vm10097_vm7 = vmand %vm251_vm1, %vm336_vm2  ;;  %667 = vst.msk [vmem:[#allocation2 + $0x10] sm:$0xf] %vm248_vm0, %v354_v38  ;;  %v674_v46 = vsel %vm10084_vm6, %v362_v32, %v673_v31  ;;  %v681_v57 = vsel %vm10084_vm6, %v379_v47, %v680_v43  ;;  %v372_v60 = vrot.slane %v367_v23, 4  ;;  %v687_v1 = vld [vmem:[#allocation2 + $0x30] sm:$0xf]  ;;  %s8499_s13 = sshll.u32 %s13429_s15, 8 }
  0x2d   : > { %665 = vst [vmem:[#allocation2 + $0xc] sm:$0xf] %v664_v39  ;;  %675 = vst [vmem:[#allocation2 + $0x18] sm:$0xf] %v674_v46  ;;  %v671_v59 = vsel %vm10097_vm7, %v355_v30, %v670_v44  ;;  %v387_v61 = vor.u32 %v385_v42, %v10115_v52  ;;  %v393_v62 = vrot.slane %v391_v53, 7  ;;  %v10126_v63 = vrot.slane %v399_v55, 7  ;;  %s12388_s19 = scalar_lea.vmem %s13084_s4, %s8499_s13 }
  0x2e   : > { %676 = vst.msk [vmem:[#allocation2 + $0x1c] sm:$0xf] %vm248_vm0, %v371_v45  ;;  %682 = vst [vmem:[#allocation2 + $0x24] sm:$0xf] %v681_v57  ;;  %vm826_vm8 = vsmask.f32 3328  ;;  %v678_v2 = vsel %vm10097_vm7, %v372_v60, %v677_v49 }
  0x2f   : > { %672 = vst [vmem:[#allocation2 + $0x14] sm:$0x1] %v671_v59  ;;  %vm827_vm9 = vsmask.f32 7440  ;;  %v408_v0 = vshrl.u32 %v10107_v50, 16  ;;  %vm2685_vm10 = vcmask 130048   ;;  %v388_v6 = vsel %vm10078_vm5, %v380_v48, %v387_v61 }
  0x30   : > { %v416_v4 = vshrl.u32 %v10118_v56, 16  ;;  %v10133_v5 = vld [vmem:[%s10063_s26 + $0x28] sm:$0xf]  ;;  %v396_v7 = vor.u32 %v394_v54, %v393_v62  ;;  %v397_v8 = vrot.slane %v393_v62, 4  ;;  %v404_v9 = vor.u32 %v402_v58, %v10126_v63  ;;  %679 = vst [vmem:[#allocation2 + $0x20] sm:$0x1] %v678_v2  ;;  %vm10181_vm11 = vmor %vm826_vm8, %vm827_vm9 }
  0x31   : > { %683 = vst.msk [vmem:[#allocation2 + $0x28] sm:$0xf] %vm248_vm0, %v388_v6  ;;  %v10139_v10 = vrot.slane %v408_v0, 7  ;;  %v411_v11 = vshll.u32 %v10107_v50, 16  ;;  %v419_v13 = vshll.u32 %v10118_v56, 16  ;;  %v425_v20 = vshrl.u32 %v10133_v5, 16 }
  0x32   : > { %v10142_v12 = vrot.slane %v416_v4, 7  ;;  %v10146_v14 = vld [vmem:[%s10063_s26 + $0x2c] sm:$0xf]  ;;  %v405_v18 = vsel %vm10078_vm5, %v397_v8, %v404_v9  ;;  %v688_v19 = vsel %vm10084_vm6, %v396_v7, %v687_v1  ;;  %v428_v22 = vshll.u32 %v10133_v5, 16  ;;  %v768_v17 = vld [vmem:[#allocation2 + $0xbc] sm:$0x1] }
  0x33   : > { %v10148_v16 = vld [vmem:[#allocation2 + $0x10] sm:$0xf]  ;;  %689 = vst [vmem:[#allocation2 + $0x30] sm:$0xf] %v688_v19  ;;  %690 = vst.msk [vmem:[#allocation2 + $0x34] sm:$0xf] %vm248_vm0, %v405_v18  ;;  %v413_v9 = vor.u32 %v411_v11, %v10139_v10 }
  0x34   : > { %v1392_v15 = vld [vmem:[#allocation2 + $0xc] sm:$0xf]  ;;  %v1450_v25 = vshll.u32 %v10148_v16, 16  ;;  %v1454_v26 = vshrl.u32 %v10148_v16, 16  ;;  %v1394_v27 = vld [vmem:[#allocation2 + $0x18] sm:$0xf] }
  0x35   : > { %v1441_v23 = vshrl.u32 %v1392_v15, 16  ;;  %v1444_v24 = vshll.u32 %v1392_v15, 16  ;;  %v13085_v28 = vrot.slane %v10148_v16, 5  ;;  %v10161_v29 = vcombine.low %v1392_v15, %v10148_v16  ;;  %v10163_v30 = vld [vmem:[#allocation2 + $0x1c] sm:$0xf]  ;;  %s9953_s20 = smov 16  }
  0x36   : > { %v1465_v31 = vshrl.u32 %v1394_v27, 16  ;;  %v1468_v32 = vshll.u32 %v1394_v27, 16  ;;  %v1452_v35 = vrot.slane %v1450_v25, 5  ;;  %v1456_v36 = vrot.slane %v1454_v26, 4  ;;  %v1396_v37 = vld [vmem:[#allocation2 + $0x24] sm:$0xf] }
  0x37   : > { %13196 = vst [vmem:[#allocation3_spill] sm:$0xff] %v10161_v29  ;;  %v1443_v33 = vrot.slane %v1441_v23, 4  ;;  %v1446_v34 = vrot.slane %v1444_v24, 5  ;;  %8902 = vmatprep.mubr.msk.bf16.mxu0 %vm2685_vm10, %v10161_v29  ;;  %v1424_v41 = vld [vmem:[#allocation2 + $0x14] sm:$0x1]  ;;  %v433_v42 = vshrl.u32 %v10146_v14, 16  ;;  %v10174_v47 = vcombine.low %v1394_v27, %v10163_v30 }
  0x38   : > { %v1467_v38 = vrot.slane %v1465_v31, 4  ;;  %v1470_v39 = vrot.slane %v1468_v32, 5  ;;  %v436_v43 = vshll.u32 %v10146_v14, 16  ;;  %v1457_v45 = vor.u32 %v1456_v36, %v1452_v35  ;;  %v1397_v48 = vld [vmem:[#allocation2 + $0x28] sm:$0xf] }
  0x39   : > { %v1447_v44 = vor.u32 %v1446_v34, %v1443_v33  ;;  %v10171_v46 = vrot.slane %v13085_v28, 4  ;;  %13197 = vst [vmem:[#allocation4_spill] sm:$0xff] %v10174_v47  ;;  %v1489_v49 = vshrl.u32 %v1396_v37, 16  ;;  %v1492_v50 = vshll.u32 %v1396_v37, 16  ;;  %8903 = vmatmul.mubr.msk.bf16.vlgmr.msra.gmra.mrb[0].mxu0 %vm2685_vm10, %v10174_v47  ;;  %v10185_v61 = vld [vmem:[#allocation2 + $0x20] sm:$0x1] }
  0x3a   : > { %v1460_v53 = vshll.u32 %v1424_v41, 16  ;;  %v1471_v54 = vor.u32 %v1470_v39, %v1467_v38  ;;  %v1458_v57 = vrot.slane %v1457_v45, 4  ;;  %v1478_v58 = vshrl.u32 %v10163_v30, 16  ;;  %v1398_v2 = vld [vmem:[#allocation2 + $0x30] sm:$0xf]  ;;  %8935 = vmatpush3.bf16.msra.mxu0 %v10112_v51 }
  0x3b   : > { %v1448_v55 = vrot.slane %v1447_v44, 4  ;;  %v1502_v59 = vshrl.u32 %v1397_v48, 16  ;;  %v1491_v62 = vrot.slane %v1489_v49, 4  ;;  %v1494_v0 = vrot.slane %v1492_v50, 5  ;;  %v10189_v4 = vld [vmem:[#allocation2 + $0x34] sm:$0xf] }
  0x3c   : > { %v10187_v1 = vcombine.low %v1396_v37, %v1397_v48  ;;  %v1513_v6 = vshrl.u32 %v1398_v2, 16  ;;  %v1516_v7 = vshll.u32 %v1398_v2, 16  ;;  %v1526_v8 = vshrl.u32 %v10189_v4, 16  ;;  %v694_v23 = vld [vmem:[#allocation2 + $0x3c] sm:$0xf] }
  0x3d   : > { %v1453_v14 = vsel %vm10181_vm11, %v1448_v55, %v1452_v35  ;;  %v1462_v15 = vrot.slane %v1460_v53, 5  ;;  %v1472_v18 = vrot.slane %v1471_v54, 4  ;;  %v1474_v19 = vshll.u32 %v10163_v30, 16  ;;  %v691_v54 = vld [vmem:[#allocation2 + $0x38] sm:$0x1] }
  0x3e   : > { %13200 = vst [vmem:[#allocation5_spill] sm:$0xff] %v10187_v1  ;;  %8906 = vmatprep.mubr.msk.bf16.mxu0 %vm2685_vm10, %v10187_v1  ;;  %v1515_v24 = vrot.slane %v1513_v6, 4  ;;  %v10200_v51 = vcombine.low %v1398_v2, %v10189_v4  ;;  %v1480_v25 = vrot.slane %v1478_v58, 4  ;;  %v1484_v26 = vshll.u32 %v10185_v61, 16  ;;  %v2435_v60 = vld [vmem:[#allocation2 + $0x30] sm:$0xe] }
  0x3f   : > { %v1518_v27 = vrot.slane %v1516_v7, 5  ;;  %v1463_v11 = vsel %vm10181_vm11, %v1458_v57, %v1462_v15  ;;  %v1476_v31 = vrot.slane %v1474_v19, 5  ;;  %v414_v32 = vrot.slane %v10139_v10, 4  ;;  %v684_v10 = vld [vmem:[#allocation2 + $0x2c] sm:$0x1] }
  0x40   : > { %13201 = vst [vmem:[#allocation6_spill] sm:$0xff] %v10200_v51  ;;  %v10206_v33 = vcombine.low %v1453_v14, %v1463_v11  ;;  %v1486_v34 = vrot.slane %v1484_v26, 5  ;;  %v421_v35 = vor.u32 %v419_v13, %v10142_v12  ;;  %v695_v36 = vsel %vm10084_vm6, %v413_v9, %v694_v23  ;;  %v701_v13 = vld [vmem:[#allocation2 + $0x48] sm:$0xf]  ;;  %v9874_v9 = vld [vmem:[%s13081_s1 + $0x60] sm:$0xff]  }
  0x41   : > { %v1477_v37 = vsel %vm10181_vm11, %v1472_v18, %v1476_v31  ;;  %v1481_v38 = vor.u32 %v1480_v25, %v1476_v31  ;;  %696 = vst [vmem:[#allocation2 + $0x3c] sm:$0xf] %v695_v36  ;;  %v427_v39 = vrot.slane %v425_v20, 7  ;;  %v10217_v41 = vrot.slane %v433_v42, 7  ;;  %8907 = vmatmul.mubr.msk.bf16.gmra.mrb[4].mxu0 %vm2685_vm10, %v10200_v51  ;;  %v318_v19 = vld [vmem:[%s10063_s26 + $0x38] sm:$0xf] }
  0x42   : > { %13202 = vst [vmem:[#allocation7_spill] sm:$0xff] %v10206_v33  ;;  %9038 = vmatprep.mubr.msk.bf16.mxu1 %vm2685_vm10, %v10206_v33  ;;  %v422_v56 = vsel %vm10078_vm5, %v414_v32, %v421_v35  ;;  %v389_v44 = vrot.slane %v10115_v52, 4  ;;  %v1495_v45 = vor.u32 %v1494_v0, %v1491_v62  ;;  %v1498_v49 = vshll.u32 %v1397_v48, 16  ;;  %v316_v48 = vld [vmem:[%s10063_s26 + $0x30] sm:$0xf] }
  0x43   : > { %v1482_v50 = vrot.slane %v1481_v38, 4  ;;  %697 = vst.msk [vmem:[#allocation2 + $0x40] sm:$0xf] %vm248_vm0, %v422_v56  ;;  %v430_v20 = vor.u32 %v428_v22, %v427_v39  ;;  %v431_v42 = vrot.slane %v427_v39, 4  ;;  %v438_v53 = vor.u32 %v436_v43, %v10217_v41  ;;  %v317_v0 = vld [vmem:[%s10063_s26 + $0x34] sm:$0xf] }
  0x44   : > { %v685_v55 = vsel %vm10097_vm7, %v389_v44, %v684_v10  ;;  %v10232_v57 = vrot.slane %v1495_v45, 4  ;;  %v10234_v58 = vrot.slane %v1498_v49, 5  ;;  %v1504_v52 = vrot.slane %v1502_v59, 4 }
  0x45   : > { %v1487_v62 = vsel %vm10181_vm11, %v1482_v50, %v1486_v34  ;;  %v439_v5 = vsel %vm10078_vm5, %v431_v42, %v438_v53  ;;  %v702_v22 = vsel %vm10084_vm6, %v430_v20, %v701_v13  ;;  %686 = vst [vmem:[#allocation2 + $0x2c] sm:$0x1] %v685_v55  ;;  %v406_v43 = vrot.slane %v10126_v63, 4  ;;  %v708_v50 = vld [vmem:[#allocation2 + $0x54] sm:$0xf] }
  0x46   : > { %v10245_v2 = vcombine.low %v1477_v37, %v1487_v62  ;;  %703 = vst [vmem:[#allocation2 + $0x48] sm:$0xf] %v702_v22  ;;  %704 = vst.msk [vmem:[#allocation2 + $0x4c] sm:$0xf] %vm248_vm0, %v439_v5  ;;  %v1501_v59 = vsel %vm10181_vm11, %v10232_v57, %v10234_v58  ;;  %v1505_v6 = vor.u32 %v1504_v52, %v10234_v58  ;;  %v1522_v14 = vshll.u32 %v10189_v4, 16 }
  0x47   : > { %v1519_v7 = vor.u32 %v1518_v27, %v1515_v24  ;;  %v692_v63 = vsel %vm10097_vm7, %v406_v43, %v691_v54  ;;  %v1528_v15 = vrot.slane %v1526_v8, 4  ;;  %v442_v18 = vshrl.u32 %v316_v48, 16  ;;  %v319_v43 = vld [vmem:[%s10063_s26 + $0x3c] sm:$0xf] }
  0x48   : > { %13203 = vst [vmem:[#allocation8_spill] sm:$0xff] %v10245_v2  ;;  %9039 = vmatmul.mubr.msk.bf16.vlgmr.msra.gmra.mrb[0].mxu1 %vm2685_vm10, %v10245_v2  ;;  %v1400_v23 = vld [vmem:[#allocation2 + $0x3c] sm:$0xf]  ;;  %v1506_v25 = vrot.slane %v1505_v6, 4  ;;  %693 = vst [vmem:[#allocation2 + $0x38] sm:$0x1] %v692_v63 }
  0x49   : > { %v10262_v26 = vrot.slane %v1519_v7, 4  ;;  %v445_v24 = vshll.u32 %v316_v48, 16  ;;  %v450_v27 = vshrl.u32 %v317_v0, 16  ;;  %9071 = vmatpush3.bf16.msra.mxu1 %v10068_v3  ;;  %v1537_v11 = vshrl.u32 %v1400_v23, 16 }
  0x4a   : > { %v1540_v31 = vshll.u32 %v1400_v23, 16  ;;  %v10265_v32 = vrot.slane %v1522_v14, 5  ;;  %v444_v4 = vrot.slane %v442_v18, 7  ;;  %v10267_v8 = vld [vmem:[#allocation2 + $0x40] sm:$0xf]  ;;  %v453_v35 = vshll.u32 %v317_v0, 16  ;;  %9104 = vmatprep.subr.bf16.mxu1 %v9874_v9 }
  0x4b   : > { %v10269_v34 = vrot.slane %v450_v27, 7  ;;  %v459_v36 = vshrl.u32 %v318_v19, 16  ;;  %v462_v37 = vshll.u32 %v318_v19, 16  ;;  %v1539_v38 = vrot.slane %v1537_v11, 4  ;;  %v715_v14 = vld [vmem:[#allocation2 + $0x60] sm:$0xf] }
  0x4c   : > { %v1542_v39 = vrot.slane %v1540_v31, 5  ;;  %v1550_v10 = vshrl.u32 %v10267_v8, 16  ;;  %v10273_v56 = vcombine.low %v1400_v23, %v10267_v8  ;;  %v10275_v3 = vld [vmem:[#allocation2 + $0x2c] sm:$0x1]  ;;  %v1525_v13 = vsel %vm10181_vm11, %v10262_v26, %v10265_v32  ;;  %v698_v31 = vld [vmem:[#allocation2 + $0x44] sm:$0x1] }
  0x4d   : > { %v1529_v44 = vor.u32 %v1528_v15, %v10265_v32  ;;  %v447_v45 = vor.u32 %v445_v24, %v444_v4  ;;  %v448_v49 = vrot.slane %v444_v4, 4  ;;  %v1402_v20 = vld [vmem:[#allocation2 + $0x48] sm:$0xf]  ;;  %v1403_v42 = vld [vmem:[#allocation2 + $0x4c] sm:$0xf]  ;;  %v1508_v53 = vshll.u32 %v10275_v3, 16 }
  0x4e   : > { %13204 = vst [vmem:[#allocation9_spill] sm:$0xff] %v10273_v56  ;;  %8910 = vmatprep.mubr.msk.bf16.mxu0 %vm2685_vm10, %v10273_v56  ;;  %v455_v54 = vor.u32 %v453_v35, %v10269_v34  ;;  %v461_v55 = vrot.slane %v459_v36, 7  ;;  %v1543_v52 = vor.u32 %v1542_v39, %v1539_v38  ;;  %v1561_v48 = vshrl.u32 %v1402_v20, 16 }
  0x4f   : > { %v1564_v62 = vshll.u32 %v1402_v20, 16  ;;  %v1574_v5 = vshrl.u32 %v1403_v42, 16  ;;  %v10286_v22 = vcombine.low %v1402_v20, %v1403_v42  ;;  %v1510_v0 = vrot.slane %v1508_v53, 5  ;;  %v10289_v6 = vld [vmem:[#allocation2 + $0x38] sm:$0x1] }
  0x50   : > { %v1530_v7 = vrot.slane %v1529_v44, 4  ;;  %v456_v9 = vsel %vm10078_vm5, %v448_v49, %v455_v54  ;;  %v709_v63 = vsel %vm10084_vm6, %v447_v45, %v708_v50  ;;  %v1563_v15 = vrot.slane %v1561_v48, 4  ;;  %v320_v45 = vld [vmem:[%s10063_s26 + $0x40] sm:$0xf] }
  0x51   : > { %13205 = vst [vmem:[#allocation10_spill] sm:$0xff] %v10286_v22  ;;  %v1566_v18 = vrot.slane %v1564_v62, 5  ;;  %8911 = vmatmul.mubr.msk.bf16.gmra.mrb[8].mxu0 %vm2685_vm10, %v10286_v22  ;;  %v1532_v19 = vshll.u32 %v10289_v6, 16  ;;  %710 = vst [vmem:[#allocation2 + $0x54] sm:$0xf] %v709_v63  ;;  %v464_v23 = vor.u32 %v462_v37, %v461_v55  ;;  %v1511_v26 = vsel %vm10181_vm11, %v1506_v25, %v1510_v0 }
  0x52   : > { %711 = vst.msk [vmem:[#allocation2 + $0x58] sm:$0xf] %vm248_vm0, %v456_v9  ;;  %v465_v24 = vrot.slane %v461_v55, 4  ;;  %v467_v27 = vshrl.u32 %v319_v43, 16  ;;  %v470_v11 = vshll.u32 %v319_v43, 16  ;;  %v10306_v32 = vcombine.low %v1501_v59, %v1511_v26 }
  0x53   : > { %v1534_v4 = vrot.slane %v1532_v19, 5  ;;  %v716_v35 = vsel %vm10084_vm6, %v464_v23, %v715_v14  ;;  %v423_v36 = vrot.slane %v10142_v12, 4  ;;  %v705_v37 = vld [vmem:[#allocation2 + $0x50] sm:$0x1]  ;;  %v10313_v25 = vrot.slane %v1543_v52, 4 }
  0x54   : > { %13206 = vst [vmem:[#allocation11_spill] sm:$0xff] %v10306_v32  ;;  %v10311_v38 = vrot.slane %v467_v27, 7  ;;  %717 = vst [vmem:[#allocation2 + $0x60] sm:$0xf] %v716_v35  ;;  %v1546_v39 = vshll.u32 %v10267_v8, 16  ;;  %v1552_v44 = vrot.slane %v1550_v10, 4  ;;  %9042 = vmatprep.mubr.msk.bf16.mxu1 %vm2685_vm10, %v10306_v32  ;;  %v1567_v59 = vor.u32 %v1566_v18, %v1563_v15 }
  0x55   : > { %v1535_v57 = vsel %vm10181_vm11, %v1530_v7, %v1534_v4  ;;  %v699_v12 = vsel %vm10097_vm7, %v423_v36, %v698_v31  ;;  %v440_v58 = vrot.slane %v10217_v41, 4  ;;  %v1570_v10 = vshll.u32 %v1403_v42, 16  ;;  %v321_v55 = vld [vmem:[%s10063_s26 + $0x44] sm:$0xf]  ;;  %v322_v63 = vld [vmem:[%s10063_s26 + $0x48] sm:$0xf] }
  0x56   : > { %v10324_v49 = vcombine.low %v1525_v13, %v1535_v57  ;;  %v472_v50 = vor.u32 %v470_v11, %v10311_v38  ;;  %700 = vst [vmem:[#allocation2 + $0x44] sm:$0x1] %v699_v12  ;;  %v10327_v8 = vrot.slane %v1546_v39, 5  ;;  %v10331_v53 = vrot.slane %v1567_v59, 4  ;;  %v722_v23 = vld [vmem:[#allocation2 + $0x6c] sm:$0xf] }
  0x57   : > { %v706_v20 = vsel %vm10097_vm7, %v440_v58, %v705_v37  ;;  %v1576_v54 = vrot.slane %v1574_v5, 4  ;;  %v476_v52 = vshrl.u32 %v320_v45, 16  ;;  %v10345_v5 = vrot.slane %v1570_v10, 5  ;;  %v323_v26 = vld [vmem:[%s10063_s26 + $0x4c] sm:$0xf] }
  0x58   : > { %13207 = vst [vmem:[#allocation12_spill] sm:$0xff] %v10324_v49  ;;  %9043 = vmatmul.mubr.msk.bf16.gmra.mrb[4].mxu1 %vm2685_vm10, %v10324_v49  ;;  %v1404_v41 = vld [vmem:[#allocation2 + $0x54] sm:$0xf]  ;;  %v473_v48 = vsel %vm10078_vm5, %v465_v24, %v472_v50  ;;  %v1549_v42 = vsel %vm10181_vm11, %v10313_v25, %v10327_v8  ;;  %v1553_v62 = vor.u32 %v1552_v44, %v10327_v8  ;;  %707 = vst [vmem:[#allocation2 + $0x50] sm:$0x1] %v706_v20  ;;  %vm1277_vm12 = vcmask 1042432  }
  0x59   : > { %v10336_v13 = vld [vmem:[#allocation2 + $0x58] sm:$0xf]  ;;  %v1585_v43 = vshrl.u32 %v1404_v41, 16  ;;  %v1588_v0 = vshll.u32 %v1404_v41, 16  ;;  %718 = vst.msk [vmem:[#allocation2 + $0x64] sm:$0xf] %vm248_vm0, %v473_v48  ;;  %v1573_v15 = vsel %vm10181_vm11, %v10331_v53, %v10345_v5  ;;  %v1577_v18 = vor.u32 %v1576_v54, %v10345_v5 }
  0x5a   : > { %v1598_v7 = vshrl.u32 %v10336_v13, 16  ;;  %v10349_v9 = vcombine.low %v1404_v41, %v10336_v13  ;;  %v1554_v14 = vrot.slane %v1553_v62, 4  ;;  %v478_v19 = vrot.slane %v476_v52, 7  ;;  %v729_v20 = vld [vmem:[#allocation2 + $0x78] sm:$0xf] }
  0x5b   : > { %v1587_v24 = vrot.slane %v1585_v43, 4  ;;  %v1590_v27 = vrot.slane %v1588_v0, 5  ;;  %v1406_v11 = vld [vmem:[#allocation2 + $0x60] sm:$0xf]  ;;  %v479_v31 = vshll.u32 %v320_v45, 16  ;;  %v484_v4 = vshrl.u32 %v321_v55, 16 }
  0x5c   : > { %13208 = vst [vmem:[#allocation13_spill] sm:$0xff] %v10349_v9  ;;  %8914 = vmatprep.mubr.msk.bf16.mxu0 %vm2685_vm10, %v10349_v9  ;;  %v1609_v35 = vshrl.u32 %v1406_v11, 16  ;;  %v1612_v36 = vshll.u32 %v1406_v11, 16  ;;  %v1578_v37 = vrot.slane %v1577_v18, 4  ;;  %v482_v25 = vrot.slane %v478_v19, 4 }
  0x5d   : > { %v10361_v39 = vld [vmem:[#allocation2 + $0x44] sm:$0x1]  ;;  %v481_v44 = vor.u32 %v479_v31, %v478_v19  ;;  %v10363_v57 = vrot.slane %v484_v4, 7  ;;  %v487_v12 = vshll.u32 %v321_v55, 16  ;;  %v493_v58 = vshrl.u32 %v322_v63, 16 }
  0x5e   : > { %v1611_v59 = vrot.slane %v1609_v35, 4  ;;  %v1614_v50 = vrot.slane %v1612_v36, 5  ;;  %v1556_v8 = vshll.u32 %v10361_v39, 16  ;;  %v496_v10 = vshll.u32 %v322_v63, 16  ;;  %v712_v48 = vld [vmem:[#allocation2 + $0x5c] sm:$0x1] }
  0x5f   : > { %v10366_v53 = vld [vmem:[#allocation2 + $0x50] sm:$0x1]  ;;  %v489_v45 = vor.u32 %v487_v12, %v10363_v57  ;;  %v723_v54 = vsel %vm10084_vm6, %v481_v44, %v722_v23  ;;  %v495_v52 = vrot.slane %v493_v58, 7  ;;  %v501_v41 = vshrl.u32 %v323_v26, 16 }
  0x60   : > { %v10371_v62 = vld [vmem:[#allocation2 + $0x64] sm:$0xf]  ;;  %v1558_v55 = vrot.slane %v1556_v8, 5  ;;  %v1580_v5 = vshll.u32 %v10366_v53, 16  ;;  %724 = vst [vmem:[#allocation2 + $0x6c] sm:$0xf] %v723_v54 }
  0x61   : > { %v504_v43 = vshll.u32 %v323_v26, 16  ;;  %v457_v0 = vrot.slane %v10269_v34, 4  ;;  %v1622_v63 = vshrl.u32 %v10371_v62, 16  ;;  %v10377_v18 = vcombine.low %v1406_v11, %v10371_v62  ;;  %v324_v8 = vld [vmem:[%s10063_s26 + $0x50] sm:$0xf] }
  0x62   : > { %v490_v19 = vsel %vm10078_vm5, %v482_v25, %v489_v45  ;;  %v498_v23 = vor.u32 %v496_v10, %v495_v52  ;;  %v1559_v31 = vsel %vm10181_vm11, %v1554_v14, %v1558_v55  ;;  %v1582_v4 = vrot.slane %v1580_v5, 5 }
  0x63   : > { %13209 = vst [vmem:[#allocation14_spill] sm:$0xff] %v10377_v18  ;;  %725 = vst.msk [vmem:[#allocation2 + $0x70] sm:$0xf] %vm248_vm0, %v490_v19  ;;  %v499_v35 = vrot.slane %v495_v52, 4  ;;  %v10384_v26 = vrot.slane %v501_v41, 7  ;;  %8915 = vmatmul.mubr.msk.bf16.gmra.mrb[12].mxu0 %vm2685_vm10, %v10377_v18  ;;  %v10388_v34 = vcombine.low %v1549_v42, %v1559_v31  ;;  %v713_v36 = vsel %vm10097_vm7, %v457_v0, %v712_v48  ;;  %v10413_v41 = vld [vmem:[%s13081_s1 + $0x68] sm:$0xff]  }
  0x64   : > { %v730_v11 = vsel %vm10084_vm6, %v498_v23, %v729_v20  ;;  %v1591_v14 = vor.u32 %v1590_v27, %v1587_v24  ;;  %v1583_v25 = vsel %vm10181_vm11, %v1578_v37, %v1582_v4  ;;  %714 = vst [vmem:[#allocation2 + $0x5c] sm:$0x1] %v713_v36  ;;  %v1594_v12 = vshll.u32 %v10336_v13, 16  ;;  %v719_v42 = vld [vmem:[#allocation2 + $0x68] sm:$0x1]  ;;  %8968 = vmatprep.subr.bf16.mxu0 %v10413_v41 }
  0x65   : > { %13210 = vst [vmem:[#allocation15_spill] sm:$0xff] %v10388_v34  ;;  %v506_v44 = vor.u32 %v504_v43, %v10384_v26  ;;  %731 = vst [vmem:[#allocation2 + $0x78] sm:$0xf] %v730_v11  ;;  %v1600_v58 = vrot.slane %v1598_v7, 4  ;;  %9046 = vmatprep.mubr.msk.bf16.mxu1 %vm2685_vm10, %v10388_v34  ;;  %v10401_v10 = vcombine.low %v1573_v15, %v1583_v25  ;;  %v474_v24 = vrot.slane %v10311_v38, 4 }
  0x66   : > { %v10403_v20 = vrot.slane %v1591_v14, 4  ;;  %v1615_v27 = vor.u32 %v1614_v50, %v1611_v59  ;;  %v325_v37 = vld [vmem:[%s10063_s26 + $0x54] sm:$0xf]  ;;  %v1596_v54 = vrot.slane %v1594_v12, 5  ;;  %v1618_v52 = vshll.u32 %v10371_v62, 16 }
  0x67   : > { %13211 = vst [vmem:[#allocation16_spill] sm:$0xff] %v10401_v10  ;;  %v507_v45 = vsel %vm10078_vm5, %v499_v35, %v506_v44  ;;  %v1624_v7 = vrot.slane %v1622_v63, 4  ;;  %9047 = vmatmul.mubr.msk.bf16.gmra.mrb[8].mxu1 %vm2685_vm10, %v10401_v10  ;;  %v1408_v15 = vld [vmem:[#allocation2 + $0x6c] sm:$0xf]  ;;  %v720_v38 = vsel %vm10097_vm7, %v474_v24, %v719_v42  ;;  %v510_v50 = vshrl.u32 %v324_v8, 16 }
  0x68   : > { %732 = vst.msk [vmem:[#allocation2 + $0x7c] sm:$0xf] %vm248_vm0, %v507_v45  ;;  %v10420_v59 = vrot.slane %v1615_v27, 4  ;;  %v513_v48 = vshll.u32 %v324_v8, 16  ;;  %v1633_v55 = vshrl.u32 %v1408_v15, 16  ;;  %v1636_v5 = vshll.u32 %v1408_v15, 16 }
  0x69   : > { %v1597_v43 = vsel %vm10181_vm11, %v10403_v20, %v1596_v54  ;;  %v1601_v0 = vor.u32 %v1600_v58, %v1596_v54  ;;  %721 = vst [vmem:[#allocation2 + $0x68] sm:$0x1] %v720_v38  ;;  %v736_v63 = vld [vmem:[#allocation2 + $0x84] sm:$0xf]  ;;  %v10428_v23 = vrot.slane %v1618_v52, 5  ;;  %v512_v31 = vrot.slane %v510_v50, 7 }
  0x6a   : > { %v10426_v19 = vld [vmem:[#allocation2 + $0x70] sm:$0xf]  ;;  %v518_v4 = vshrl.u32 %v325_v37, 16  ;;  %v521_v35 = vshll.u32 %v325_v37, 16  ;;  %v1635_v11 = vrot.slane %v1633_v55, 4  ;;  %v1638_v36 = vrot.slane %v1636_v5, 5 }
  0x6b   : > { %v1646_v14 = vshrl.u32 %v10426_v19, 16  ;;  %v10432_v25 = vcombine.low %v1408_v15, %v10426_v19  ;;  %v326_v44 = vld [vmem:[%s10063_s26 + $0x58] sm:$0xf]  ;;  %v10435_v58 = vld [vmem:[#allocation2 + $0x5c] sm:$0x1]  ;;  %v1602_v42 = vrot.slane %v1601_v0, 4  ;;  %v1621_v8 = vsel %vm10181_vm11, %v10420_v59, %v10428_v23 }
  0x6c   : > { %v1410_v12 = vld [vmem:[#allocation2 + $0x78] sm:$0xf]  ;;  %v1625_v20 = vor.u32 %v1624_v7, %v10428_v23  ;;  %v515_v24 = vor.u32 %v513_v48, %v512_v31  ;;  %v1604_v45 = vshll.u32 %v10435_v58, 16  ;;  %v516_v54 = vrot.slane %v512_v31, 4  ;;  %v327_v50 = vld [vmem:[%s10063_s26 + $0x5c] sm:$0xf] }
  0x6d   : > { %13212 = vst [vmem:[#allocation17_spill] sm:$0xff] %v10432_v25  ;;  %8918 = vmatprep.mubr.msk.bf16.mxu0 %vm2685_vm10, %v10432_v25  ;;  %v1657_v27 = vshrl.u32 %v1410_v12, 16  ;;  %v1660_v37 = vshll.u32 %v1410_v12, 16  ;;  %v10445_v15 = vrot.slane %v518_v4, 7  ;;  %v527_v55 = vshrl.u32 %v326_v44, 16 }
  0x6e   : > { %v1626_v52 = vrot.slane %v1625_v20, 4  ;;  %v737_v38 = vsel %vm10084_vm6, %v515_v24, %v736_v63  ;;  %v1606_v5 = vrot.slane %v1604_v45, 5  ;;  %v530_v0 = vshll.u32 %v326_v44, 16  ;;  %v743_v45 = vld [vmem:[#allocation2 + $0x90] sm:$0xf] }
  0x6f   : > { %v10450_v59 = vld [vmem:[#allocation2 + $0x7c] sm:$0xf]  ;;  %v1659_v7 = vrot.slane %v1657_v27, 4  ;;  %v1662_v48 = vrot.slane %v1660_v37, 5  ;;  %738 = vst [vmem:[#allocation2 + $0x84] sm:$0xf] %v737_v38  ;;  %v523_v4 = vor.u32 %v521_v35, %v10445_v15 }
  0x70   : > { %v1670_v23 = vshrl.u32 %v10450_v59, 16  ;;  %v10454_v28 = vcombine.low %v1410_v12, %v10450_v59  ;;  %v10456_v31 = vld [vmem:[#allocation2 + $0x68] sm:$0x1]  ;;  %v529_v20 = vrot.slane %v527_v55, 7  ;;  %v1607_v63 = vsel %vm10181_vm11, %v1602_v42, %v1606_v5  ;;  %v726_v35 = vld [vmem:[#allocation2 + $0x74] sm:$0x1] }
  0x71   : > { %v1628_v24 = vshll.u32 %v10456_v31, 16  ;;  %v535_v27 = vshrl.u32 %v327_v50, 16  ;;  %v538_v37 = vshll.u32 %v327_v50, 16  ;;  %v10464_v44 = vcombine.low %v1597_v43, %v1607_v63  ;;  %v733_v18 = vld [vmem:[#allocation2 + $0x80] sm:$0x1] }
  0x72   : > { %13213 = vst [vmem:[#allocation18_spill] sm:$0xff] %v10454_v28  ;;  %8919 = vmatmul.mubr.msk.bf16.gmra.mrb[16].mxu0 %vm2685_vm10, %v10454_v28  ;;  %v524_v12 = vsel %vm10078_vm5, %v516_v54, %v523_v4  ;;  %v532_v38 = vor.u32 %v530_v0, %v529_v20  ;;  %v533_v25 = vrot.slane %v529_v20, 4  ;;  %v491_v5 = vrot.slane %v10363_v57, 4 }
  0x73   : > { %13214 = vst [vmem:[#allocation19_spill] sm:$0xff] %v10464_v44  ;;  %v1630_v55 = vrot.slane %v1628_v24, 5  ;;  %739 = vst.msk [vmem:[#allocation2 + $0x88] sm:$0xf] %vm248_vm0, %v524_v12  ;;  %v10469_v42 = vrot.slane %v535_v27, 7  ;;  %v1639_v50 = vor.u32 %v1638_v36, %v1635_v11  ;;  %9050 = vmatprep.mubr.msk.bf16.mxu1 %vm2685_vm10, %v10464_v44  ;;  %v1642_v54 = vshll.u32 %v10426_v19, 16 }
  0x74   : > { %v744_v43 = vsel %vm10084_vm6, %v532_v38, %v743_v45  ;;  %v1648_v0 = vrot.slane %v1646_v14, 4  ;;  %v508_v4 = vrot.slane %v10384_v26, 4  ;;  %v727_v57 = vsel %vm10097_vm7, %v491_v5, %v726_v35  ;;  %v329_v38 = vld [vmem:[%s10063_s26 + $0x64] sm:$0xf]  ;;  %v771_v44 = vld [vmem:[#allocation2 + $0xc0] sm:$0xf] }
  0x75   : > { %v1631_v20 = vsel %vm10181_vm11, %v1626_v52, %v1630_v55  ;;  %v540_v63 = vor.u32 %v538_v37, %v10469_v42  ;;  %745 = vst [vmem:[#allocation2 + $0x90] sm:$0xf] %v744_v43  ;;  %v10483_v11 = vrot.slane %v1639_v50, 4  ;;  %728 = vst [vmem:[#allocation2 + $0x74] sm:$0x1] %v727_v57  ;;  %v10487_v27 = vrot.slane %v1642_v54, 5 }
  0x76   : > { %v10485_v36 = vcombine.low %v1621_v8, %v1631_v20  ;;  %v1412_v24 = vld [vmem:[#allocation2 + $0x84] sm:$0xf]  ;;  %v734_v26 = vsel %vm10097_vm7, %v508_v4, %v733_v18  ;;  %v1663_v14 = vor.u32 %v1662_v48, %v1659_v7  ;;  %v328_v52 = vld [vmem:[%s10063_s26 + $0x60] sm:$0xf]  ;;  %v1666_v8 = vshll.u32 %v10450_v59, 16 }
  0x77   : > { %v1681_v37 = vshrl.u32 %v1412_v24, 16  ;;  %v1684_v45 = vshll.u32 %v1412_v24, 16  ;;  %v541_v12 = vsel %vm10078_vm5, %v533_v25, %v540_v63  ;;  %735 = vst [vmem:[#allocation2 + $0x80] sm:$0x1] %v734_v26  ;;  %v1645_v18 = vsel %vm10181_vm11, %v10483_v11, %v10487_v27  ;;  %v330_v55 = vld [vmem:[%s10063_s26 + $0x68] sm:$0xf] }
  0x78   : > { %13215 = vst [vmem:[#allocation20_spill] sm:$0xff] %v10485_v36  ;;  %9051 = vmatmul.mubr.msk.bf16.gmra.mrb[12].mxu1 %vm2685_vm10, %v10485_v36  ;;  %746 = vst.msk [vmem:[#allocation2 + $0x94] sm:$0xf] %vm248_vm0, %v541_v12  ;;  %v1649_v7 = vor.u32 %v1648_v0, %v10487_v27  ;;  %v1664_v48 = vrot.slane %v1663_v14, 4  ;;  %v1672_v35 = vrot.slane %v1670_v23, 4  ;;  %v1668_v43 = vrot.slane %v1666_v8, 5 }
  0x79   : > { %v331_v25 = vld [vmem:[%s10063_s26 + $0x6c] sm:$0xf]  ;;  %v10506_v5 = vrot.slane %v1681_v37, 4  ;;  %v10508_v50 = vrot.slane %v1684_v45, 5  ;;  %v544_v54 = vshrl.u32 %v328_v52, 16  ;;  %v547_v63 = vshll.u32 %v328_v52, 16 }
  0x7a   : > { %v10510_v4 = vld [vmem:[#allocation2 + $0x88] sm:$0xf]  ;;  %v1650_v20 = vrot.slane %v1649_v7, 4  ;;  %v552_v57 = vshrl.u32 %v329_v38, 16  ;;  %v555_v26 = vshll.u32 %v329_v38, 16  ;;  %v1669_v23 = vsel %vm10181_vm11, %v1664_v48, %v1668_v43 }
  0x7b   : > { %v1694_v11 = vshrl.u32 %v10510_v4, 16  ;;  %v10514_v0 = vcombine.low %v1412_v24, %v10510_v4  ;;  %v1673_v27 = vor.u32 %v1672_v35, %v1668_v43  ;;  %v546_v37 = vrot.slane %v544_v54, 7  ;;  %v750_v54 = vld [vmem:[#allocation2 + $0x9c] sm:$0xf]  ;;  %v740_v36 = vld [vmem:[#allocation2 + $0x8c] sm:$0x1] }
  0x7c   : > { %v1414_v14 = vld [vmem:[#allocation2 + $0x90] sm:$0xf]  ;;  %v10518_v45 = vrot.slane %v552_v57, 7  ;;  %v561_v12 = vshrl.u32 %v330_v55, 16  ;;  %v564_v8 = vshll.u32 %v330_v55, 16  ;;  %v569_v24 = vshrl.u32 %v331_v25, 16 }
  0x7d   : > { %13216 = vst [vmem:[#allocation21_spill] sm:$0xff] %v10514_v0  ;;  %8922 = vmatprep.mubr.msk.bf16.mxu0 %vm2685_vm10, %v10514_v0  ;;  %v1705_v52 = vshrl.u32 %v1414_v14, 16  ;;  %v1708_v38 = vshll.u32 %v1414_v14, 16  ;;  %v10522_v7 = vld [vmem:[#allocation2 + $0x74] sm:$0x1]  ;;  %v1674_v28 = vrot.slane %v1673_v27, 4  ;;  %v549_v48 = vor.u32 %v547_v63, %v546_v37 }
  0x7e   : > { %v1652_v9 = vshll.u32 %v10522_v7, 16  ;;  %v10525_v22 = vld [vmem:[#allocation2 + $0x80] sm:$0x1]  ;;  %v550_v35 = vrot.slane %v546_v37, 4  ;;  %v557_v43 = vor.u32 %v555_v26, %v10518_v45  ;;  %v563_v51 = vrot.slane %v561_v12, 7 }
  0x7f   : > { %v10528_v57 = vld [vmem:[#allocation2 + $0x94] sm:$0xf]  ;;  %v1707_v55 = vrot.slane %v1705_v52, 4  ;;  %v1710_v56 = vrot.slane %v1708_v38, 5  ;;  %v1676_v0 = vshll.u32 %v10525_v22, 16  ;;  %v751_v26 = vsel %vm10084_vm6, %v549_v48, %v750_v54 }
  0x80   : > { %13217 = vst [vmem:[#allocation22_spill] sm:$0xff] %v10528_v57  ;;  %v1718_v1 = vshrl.u32 %v10528_v57, 16  ;;  %v10533_v27 = vcombine.low %v1414_v14, %v10528_v57  ;;  %v1654_v47 = vrot.slane %v1652_v9, 5  ;;  %v558_v63 = vsel %vm10078_vm5, %v550_v35, %v557_v43  ;;  %v757_v37 = vld [vmem:[#allocation2 + $0xa8] sm:$0xf] }
  0x81   : > { %v1678_v29 = vrot.slane %v1676_v0, 5  ;;  %753 = vst.msk [vmem:[#allocation2 + $0xa0] sm:$0xf] %vm248_vm0, %v558_v63  ;;  %v566_v52 = vor.u32 %v564_v8, %v563_v51  ;;  %v567_v38 = vrot.slane %v563_v51, 4  ;;  %752 = vst [vmem:[#allocation2 + $0x9c] sm:$0xf] %v751_v26  ;;  %v1687_v48 = vor.u32 %v10508_v50, %v10506_v5 }
  0x82   : > { %13218 = vst [vmem:[#allocation23_spill] sm:$0xff] %v10533_v27  ;;  %8923 = vmatmul.mubr.msk.bf16.gmra.mrb[20].mxu0 %vm2685_vm10, %v10533_v27  ;;  %v1655_v9 = vsel %vm10181_vm11, %v1650_v20, %v1654_v47  ;;  %v10544_v14 = vrot.slane %v569_v24, 7  ;;  %v572_v12 = vshll.u32 %v331_v25, 16  ;;  %v525_v0 = vrot.slane %v10445_v15, 4  ;;  %v747_v25 = vld [vmem:[#allocation2 + $0x98] sm:$0x1] }
  0x83   : > { %v10547_v35 = vcombine.low %v1645_v18, %v1655_v9  ;;  %v1679_v8 = vsel %vm10181_vm11, %v1674_v28, %v1678_v29  ;;  %v758_v51 = vsel %vm10084_vm6, %v566_v52, %v757_v37  ;;  %v1690_v18 = vshll.u32 %v10510_v4, 16  ;;  %v332_v20 = vld [vmem:[%s10063_s26 + $0x70] sm:$0xf]  ;;  %v333_v63 = vld [vmem:[%s10063_s26 + $0x74] sm:$0xf] }
  0x84   : > { %v10555_v43 = vcombine.low %v1669_v23, %v1679_v8  ;;  %v574_v47 = vor.u32 %v572_v12, %v10544_v14  ;;  %759 = vst [vmem:[#allocation2 + $0xa8] sm:$0xf] %v758_v51  ;;  %v741_v15 = vsel %vm10097_vm7, %v525_v0, %v740_v36  ;;  %v10564_v28 = vrot.slane %v1687_v48, 4 }
  0x85   : > { %13219 = vst [vmem:[#allocation24_spill] sm:$0xff] %v10547_v35  ;;  %9054 = vmatprep.mubr.msk.bf16.mxu1 %vm2685_vm10, %v10547_v35  ;;  %742 = vst [vmem:[#allocation2 + $0x8c] sm:$0x1] %v741_v15  ;;  %v1696_v29 = vrot.slane %v1694_v11, 4  ;;  %v542_v5 = vrot.slane %v10469_v42, 4  ;;  %v1711_v50 = vor.u32 %v1710_v56, %v1707_v55  ;;  %v10571_v23 = vrot.slane %v1690_v18, 5 }
  0x86   : > { %13220 = vst [vmem:[#allocation25_spill] sm:$0xff] %v10555_v43  ;;  %9055 = vmatmul.mubr.msk.bf16.gmra.mrb[16].mxu1 %vm2685_vm10, %v10555_v43  ;;  %v575_v36 = vsel %vm10078_vm5, %v567_v38, %v574_v47  ;;  %v1714_v24 = vshll.u32 %v10528_v57, 16  ;;  %v1720_v54 = vrot.slane %v1718_v1, 4  ;;  %v578_v56 = vshrl.u32 %v332_v20, 16  ;;  %v334_v55 = vld [vmem:[%s10063_s26 + $0x78] sm:$0xf] }
  0x87   : > { %760 = vst.msk [vmem:[#allocation2 + $0xac] sm:$0xf] %vm248_vm0, %v575_v36  ;;  %v748_v11 = vsel %vm10097_vm7, %v542_v5, %v747_v25  ;;  %v10578_v37 = vrot.slane %v1711_v50, 4  ;;  %v581_v42 = vshll.u32 %v332_v20, 16  ;;  %v1693_v1 = vsel %vm10181_vm11, %v10564_v28, %v10571_v23  ;;  %v764_v25 = vld [vmem:[#allocation2 + $0xb4] sm:$0xf] }
  0x88   : > { %v10582_v52 = vld [vmem:[#allocation2 + $0xa0] sm:$0xf]  ;;  %v1697_v38 = vor.u32 %v1696_v29, %v10571_v23  ;;  %749 = vst [vmem:[#allocation2 + $0x98] sm:$0x1] %v748_v11  ;;  %v10589_v9 = vrot.slane %v1714_v24, 5  ;;  %v580_v8 = vrot.slane %v578_v56, 7 }
  0x89   : > { %v1416_v12 = vld [vmem:[#allocation2 + $0x9c] sm:$0xf]  ;;  %v1742_v0 = vshrl.u32 %v10582_v52, 16  ;;  %v586_v51 = vshrl.u32 %v333_v63, 16  ;;  %v589_v48 = vshll.u32 %v333_v63, 16  ;;  %v595_v20 = vshrl.u32 %v334_v55, 16 }
  0x8a   : > { %v1729_v47 = vshrl.u32 %v1416_v12, 16  ;;  %v1732_v15 = vshll.u32 %v1416_v12, 16  ;;  %v10593_v18 = vcombine.low %v1416_v12, %v10582_v52  ;;  %v1698_v5 = vrot.slane %v1697_v38, 4  ;;  %v754_v57 = vld [vmem:[#allocation2 + $0xa4] sm:$0x1] }
  0x8b   : > { %v1418_v28 = vld [vmem:[#allocation2 + $0xa8] sm:$0xf]  ;;  %v1717_v29 = vsel %vm10181_vm11, %v10578_v37, %v10589_v9  ;;  %v1721_v50 = vor.u32 %v1720_v54, %v10589_v9  ;;  %v583_v36 = vor.u32 %v581_v42, %v580_v8  ;;  %v584_v56 = vrot.slane %v580_v8, 4  ;;  %v335_v37 = vld [vmem:[%s10063_s26 + $0x7c] sm:$0xf] }
  0x8c   : > { %13221 = vst [vmem:[#allocation26_spill] sm:$0xff] %v10593_v18  ;;  %v10600_v23 = vrot.slane %v1729_v47, 4  ;;  %8926 = vmatprep.mubr.msk.bf16.mxu0 %vm2685_vm10, %v10593_v18  ;;  %v1753_v24 = vshrl.u32 %v1418_v28, 16  ;;  %v1756_v63 = vshll.u32 %v1418_v28, 16  ;;  %v10604_v11 = vld [vmem:[#allocation2 + $0x8c] sm:$0x1] }
  0x8d   : > { %v10606_v12 = vrot.slane %v1732_v15, 5  ;;  %v1700_v38 = vshll.u32 %v10604_v11, 16  ;;  %v10609_v26 = vrot.slane %v586_v51, 7  ;;  %v765_v54 = vsel %vm10084_vm6, %v583_v36, %v764_v25 }
  0x8e   : > { %v10614_v42 = vld [vmem:[#allocation2 + $0xac] sm:$0xf]  ;;  %v10616_v9 = vrot.slane %v1753_v24, 4  ;;  %v1722_v47 = vrot.slane %v1721_v50, 4  ;;  %766 = vst [vmem:[#allocation2 + $0xb4] sm:$0xf] %v765_v54 }
  0x8f   : > { %v597_v18 = vrot.slane %v595_v20, 7  ;;  %v598_v27 = vshll.u32 %v334_v55, 16  ;;  %v1758_v43 = vrot.slane %v1756_v63, 5  ;;  %v10619_v8 = vcombine.low %v1418_v28, %v10614_v42  ;;  %v10621_v35 = vld [vmem:[#allocation2 + $0x98] sm:$0x1] }
  0x90   : > { %v1702_v15 = vrot.slane %v1700_v38, 5  ;;  %v591_v51 = vor.u32 %v589_v48, %v10609_v26  ;;  %v1724_v25 = vshll.u32 %v10621_v35, 16  ;;  %v603_v24 = vshrl.u32 %v335_v37, 16 }
  0x91   : > { %13222 = vst [vmem:[#allocation27_spill] sm:$0xff] %v10619_v8  ;;  %v600_v36 = vor.u32 %v598_v27, %v597_v18  ;;  %v601_v10 = vrot.slane %v597_v18, 4  ;;  %8927 = vmatmul.mubr.msk.bf16.gmra.mrb[24].mxu0 %vm2685_vm10, %v10619_v8  ;;  %v606_v28 = vshll.u32 %v335_v37, 16  ;;  %v559_v50 = vrot.slane %v10518_v45, 4  ;;  %v761_v37 = vld [vmem:[#allocation2 + $0xb0] sm:$0x1] }
  0x92   : > { %v1703_v55 = vsel %vm10181_vm11, %v1698_v5, %v1702_v15  ;;  %v592_v20 = vsel %vm10078_vm5, %v584_v56, %v591_v51  ;;  %v1726_v63 = vrot.slane %v1724_v25, 5  ;;  %v605_v27 = vrot.slane %v603_v24, 7 }
  0x93   : > { %v10632_v48 = vcombine.low %v1693_v1, %v1703_v55  ;;  %767 = vst.msk [vmem:[#allocation2 + $0xb8] sm:$0xf] %vm248_vm0, %v592_v20  ;;  %v772_v18 = vsel %vm10084_vm6, %v600_v36, %v771_v44  ;;  %v1766_v38 = vshrl.u32 %v10614_v42, 16  ;;  %v755_v5 = vsel %vm10097_vm7, %v559_v50, %v754_v57  ;;  %v775_v50 = vld [vmem:[#allocation2 + $0xc8] sm:$0x1] }
  0x94   : > { %773 = vst [vmem:[#allocation2 + $0xc0] sm:$0xf] %v772_v18  ;;  %v1738_v56 = vshll.u32 %v10582_v52, 16  ;;  %v1744_v54 = vrot.slane %v1742_v0, 4  ;;  %v1727_v45 = vsel %vm10181_vm11, %v1722_v47, %v1726_v63  ;;  %v608_v1 = vor.u32 %v606_v28, %v605_v27  ;;  %756 = vst [vmem:[#allocation2 + $0xa4] sm:$0x1] %v755_v5 }
  0x95   : > { %13223 = vst [vmem:[#allocation28_spill] sm:$0xff] %v10632_v48  ;;  %9058 = vmatprep.mubr.msk.bf16.mxu1 %vm2685_vm10, %v10632_v48  ;;  %v1735_v21 = vor.u32 %v10606_v12, %v10600_v23  ;;  %v576_v44 = vrot.slane %v10544_v14, 4  ;;  %v10648_v15 = vcombine.low %v1717_v29, %v1727_v45  ;;  %v1420_v57 = vld [vmem:[#allocation2 + $0xb4] sm:$0xf]  ;;  %v1759_v0 = vor.u32 %v1758_v43, %v10616_v9 }
  0x96   : > { %v10650_v51 = vrot.slane %v1738_v56, 5  ;;  %v1762_v25 = vshll.u32 %v10614_v42, 16  ;;  %v1777_v36 = vshrl.u32 %v1420_v57, 16  ;;  %v1780_v24 = vshll.u32 %v1420_v57, 16 }
  0x97   : > { %13224 = vst [vmem:[#allocation29_spill] sm:$0xff] %v10648_v15  ;;  %v609_v47 = vsel %vm10078_vm5, %v601_v10, %v608_v1  ;;  %v762_v55 = vsel %vm10097_vm7, %v576_v44, %v761_v37  ;;  %v13225_v23 = vrot.slane %v10163_v30, 5  ;;  %9059 = vmatmul.mubr.msk.bf16.gmra.mrb[20].mxu1 %vm2685_vm10, %v10648_v15  ;;  %v1768_v20 = vrot.slane %v1766_v38, 4 }
  0x98   : > { %774 = vst.msk [vmem:[#allocation2 + $0xc4] sm:$0xf] %vm248_vm0, %v609_v47  ;;  %v1745_v43 = vor.u32 %v1744_v54, %v10650_v51  ;;  %763 = vst [vmem:[#allocation2 + $0xb0] sm:$0x1] %v762_v55  ;;  %v10667_v12 = vrot.slane %v1762_v25, 5  ;;  %v1779_v10 = vrot.slane %v1777_v36, 4 }
  0x99   : > { %v10660_v14 = vrot.slane %v13225_v23, 4  ;;  %v1782_v9 = vrot.slane %v1780_v24, 5  ;;  %v593_v28 = vrot.slane %v10609_v26, 4  ;;  %v1736_v18 = vrot.slane %v1735_v21, 4 }
  0x9a   : > { %v10670_v63 = vld [vmem:[#allocation2 + $0xb8] sm:$0xf]  ;;  %v1746_v5 = vrot.slane %v1745_v43, 4  ;;  %v1760_v56 = vrot.slane %v1759_v0, 4  ;;  %v610_v37 = vrot.slane %v605_v27, 4  ;;  %v1769_v44 = vor.u32 %v1768_v20, %v10667_v12 }
  0x9b   : > { %v1790_v45 = vshrl.u32 %v10670_v63, 16  ;;  %v10674_v54 = vcombine.low %v1420_v57, %v10670_v63  ;;  %v1422_v1 = vld [vmem:[#allocation2 + $0xc0] sm:$0xf]  ;;  %v769_v38 = vsel %vm10097_vm7, %v593_v28, %v768_v17  ;;  %v10679_v36 = vld [vmem:[#allocation2 + $0xa4] sm:$0x1]  ;;  %v1783_v21 = vor.u32 %v1782_v9, %v1779_v10 }
  0x9c   : > { %v1801_v25 = vshrl.u32 %v1422_v1, 16  ;;  %v1804_v26 = vshll.u32 %v1422_v1, 16  ;;  %770 = vst [vmem:[#allocation2 + $0xbc] sm:$0x1] %v769_v38  ;;  %v1786_v0 = vshll.u32 %v10670_v63, 16  ;;  %v1748_v27 = vshll.u32 %v10679_v36, 16 }
  0x9d   : > { %13226 = vst [vmem:[#allocation30_spill] sm:$0xff] %v10674_v54  ;;  %8930 = vmatprep.mubr.msk.bf16.mxu0 %vm2685_vm10, %v10674_v54  ;;  %v1792_v57 = vrot.slane %v1790_v45, 4  ;;  %v776_v24 = vsel %vm10097_vm7, %v610_v37, %v775_v50  ;;  %v1784_v23 = vrot.slane %v1783_v21, 4  ;;  %v1824_v17 = vld [vmem:[#allocation2 + $0xc] sm:$0xe]  ;;  %v1741_v10 = vsel %vm10181_vm11, %v1736_v18, %v10650_v51 }
  0x9e   : > { %v1803_v47 = vrot.slane %v1801_v25, 4  ;;  %v1806_v55 = vrot.slane %v1804_v26, 5  ;;  %v1788_v43 = vrot.slane %v1786_v0, 5  ;;  %777 = vst [vmem:[#allocation2 + $0xc8] sm:$0x1] %v776_v24  ;;  %v1750_v9 = vrot.slane %v1748_v27, 5 }
  0x9f   : > { %v10687_v20 = vld [vmem:[#allocation2 + $0xc4] sm:$0xf]  ;;  %v10692_v28 = vld [vmem:[#allocation2 + $0xb0] sm:$0x1]  ;;  %v1765_v40 = vsel %vm10181_vm11, %v1760_v56, %v10667_v12  ;;  %vm1278_vm13 = vcmask 1046532   ;;  %v1770_v45 = vrot.slane %v1769_v44, 4 }
  0xa0   : > { %v1814_v50 = vshrl.u32 %v10687_v20, 16  ;;  %v10699_v37 = vcombine.low %v1422_v1, %v10687_v20  ;;  %v1772_v38 = vshll.u32 %v10692_v28, 16  ;;  %v1751_v25 = vsel %vm10181_vm11, %v1746_v5, %v1750_v9  ;;  %v1825_v21 = vld [vmem:[#allocation2 + $0x18] sm:$0xe]  ;;  %vm10710_vm14 = vmor %vm1277_vm12, %vm1278_vm13 }
  0xa1   : > { %v1793_v51 = vor.u32 %v1792_v57, %v1788_v43  ;;  %v1807_v18 = vor.u32 %v1806_v55, %v1803_v47  ;;  %v1810_v26 = vshll.u32 %v10687_v20, 16  ;;  %v10707_v12 = vcombine.low %v1741_v10, %v1751_v25  ;;  %v9918_v47 = vld [vmem:[#allocation2 + $0x14] sm:$0x1] }
  0xa2   : > { %13227 = vst [vmem:[#allocation31_spill] sm:$0xff] %v10699_v37  ;;  %8931 = vmatmul.mubr.msk.bf16.gmra.mrb[28].mxu0 %vm2685_vm10, %v10699_v37  ;;  %v1774_v56 = vrot.slane %v1772_v38, 5  ;;  %v1816_v0 = vrot.slane %v1814_v50, 4  ;;  %v7818_v44 = vrot.slane %v1824_v17, 9  ;;  %v1789_v27 = vsel %vm10181_vm11, %v1784_v23, %v1788_v43  ;;  %v1826_v38 = vld [vmem:[#allocation2 + $0x24] sm:$0xe] }
  0xa3   : > { %13228 = vst [vmem:[#allocation32_spill] sm:$0xff] %v10707_v12  ;;  %8936 = vmatprep.mubr.msk.bf16.mxu0 %vm2685_vm10, %v10206_v33  ;;  %v10716_v5 = vld [vmem:[#allocation2 + $0xbc] sm:$0x1]  ;;  %v1808_v57 = vrot.slane %v1807_v18, 4  ;;  %v1812_v24 = vrot.slane %v1810_v26, 5  ;;  %v1893_v55 = vrot.slane %v9918_v47, 5  ;;  %9062 = vmatprep.mubr.msk.bf16.mxu1 %vm2685_vm10, %v10707_v12 }
  0xa4   : > { %v1775_v10 = vsel %vm10181_vm11, %v1770_v45, %v1774_v56  ;;  %v1794_v9 = vrot.slane %v1793_v51, 4  ;;  %v1796_v17 = vshll.u32 %v10716_v5, 16  ;;  %v7819_v50 = vrot.slane %v1825_v21, 9  ;;  %v1827_v56 = vld [vmem:[#allocation2 + $0x30] sm:$0xe] }
  0xa5   : > { %v10725_v25 = vcombine.low %v1765_v40, %v1775_v10  ;;  %v10727_v29 = vld [vmem:[#allocation2 + $0xc8] sm:$0x1]  ;;  %v1813_v23 = vsel %vm10181_vm11, %v1808_v57, %v1812_v24  ;;  %v1817_v43 = vor.u32 %v1816_v0, %v1812_v24  ;;  %v13232_v18 = vrot.slane %v10148_v16, 5 }
  0xa6   : > { %v1798_v47 = vrot.slane %v1796_v17, 5  ;;  %v1820_v45 = vshll.u32 %v10727_v29, 16  ;;  %v1894_v51 = vsel %vm10710_vm14, %v10171_v46, %v1893_v55  ;;  %v13233_v40 = vrot.slane %v10163_v30, 5  ;;  %v9919_v24 = vld [vmem:[#allocation2 + $0x28] sm:$0xf] }
  0xa7   : > { %13231 = vst [vmem:[#allocation33_spill] sm:$0xff] %v10725_v25  ;;  %v1891_v26 = vsel %vm10710_vm14, %v7818_v44, %v13232_v18  ;;  %9063 = vmatmul.mubr.msk.bf16.gmra.mrb[24].mxu1 %vm2685_vm10, %v10725_v25  ;;  %v1818_v16 = vrot.slane %v1817_v43, 4  ;;  %v13234_v0 = vrot.slane %v10185_v61, 5  ;;  %v7820_v57 = vrot.slane %v1826_v38, 9  ;;  %v1828_v46 = vld [vmem:[#allocation2 + $0x3c] sm:$0xe] }
  0xa8   : > { %v1898_v21 = vsel %vm10710_vm14, %v7819_v50, %v13233_v40  ;;  %v1904_v10 = vrot.slane %v9919_v24, 5  ;;  %v1799_v30 = vsel %vm10181_vm11, %v1794_v9, %v1798_v47  ;;  %v1822_v55 = vrot.slane %v1820_v45, 5  ;;  %v10762_v38 = vld [vmem:[%s13081_s1 + $0x78] sm:$0xff]  }
  0xa9   : > { %v1901_v44 = vsel %vm10710_vm14, %v10660_v14, %v13234_v0  ;;  %v1907_v50 = vrot.slane %v10275_v3, 5  ;;  %v10755_v18 = vcombine.low %v1789_v27, %v1799_v30  ;;  %v7821_v40 = vrot.slane %v1827_v56, 9  ;;  %v1829_v14 = vld [vmem:[#allocation2 + $0x48] sm:$0xe]  ;;  %v9920_v3 = vld [vmem:[#allocation2 + $0x34] sm:$0xf] }
  0xaa   : > { %v10752_v17 = vcombine.low %v1898_v21, %v1901_v44  ;;  %v1905_v61 = vsel %vm10710_vm14, %v7820_v57, %v1904_v10  ;;  %v1906_v43 = vrot.slane %v1904_v10, 4  ;;  %8937 = vmatmul.mubr.msk.bf16.vlgmr.msra.gmra.mrb[0].mxu0 %vm2685_vm10, %v10245_v2  ;;  %v1823_v9 = vsel %vm10181_vm11, %v1818_v16, %v1822_v55  ;;  %v1830_v21 = vld [vmem:[#allocation2 + $0x54] sm:$0xe]  ;;  %v9921_v44 = vld [vmem:[#allocation2 + $0x40] sm:$0xf] }
  0xab   : > { %13236 = vst [vmem:[#allocation35_spill] sm:$0xff] %v10755_v18  ;;  %v1911_v27 = vrot.slane %v9920_v3, 5  ;;  %v1914_v47 = vrot.slane %v10289_v6, 5  ;;  %v7822_v45 = vrot.slane %v1828_v46, 9  ;;  %9066 = vmatprep.mubr.msk.bf16.mxu1 %vm2685_vm10, %v10755_v18  ;;  %v10771_v56 = vcombine.low %v1813_v23, %v1823_v9  ;;  %8940 = vmatprep.mubr.msk.bf16.mxu0 %vm2685_vm10, %v10306_v32  ;;  %v1831_v30 = vld [vmem:[#allocation2 + $0x60] sm:$0xe] }
  0xac   : > { %13235 = vst [vmem:[#allocation34_spill] sm:$0xff] %v10752_v17  ;;  %v1908_v0 = vsel %vm10710_vm14, %v1906_v43, %v1907_v50  ;;  %v1918_v57 = vrot.slane %v9921_v44, 5  ;;  %v1921_v16 = vrot.slane %v10361_v39, 5  ;;  %v10778_v24 = vcombine.low %v1891_v26, %v1894_v51  ;;  %v1832_v23 = vld [vmem:[#allocation2 + $0x6c] sm:$0xe]  ;;  %8969 = vmatpush3.bf16.msra.mxu0 %v10413_v41 }
  0xad   : > { %13237 = vst [vmem:[#allocation36_spill] sm:$0xff] %v10771_v56  ;;  %v1912_v6 = vsel %vm10710_vm14, %v7821_v40, %v1911_v27  ;;  %v1913_v10 = vrot.slane %v1911_v27, 4  ;;  %v7823_v46 = vrot.slane %v1829_v14, 9  ;;  %v9922_v50 = vld [vmem:[#allocation2 + $0x4c] sm:$0xf]  ;;  %v1928_v3 = vrot.slane %v10366_v53, 5  ;;  %9002 = vmatprep.subr.bf16.mxu0 %v10762_v38 }
  0xae   : > { %13238 = vst [vmem:[#allocation37_spill] sm:$0xff] %v10778_v24  ;;  %v1919_v55 = vsel %vm10710_vm14, %v7822_v45, %v1918_v57  ;;  %v1920_v9 = vrot.slane %v1918_v57, 4  ;;  %v1925_v43 = vrot.slane %v9922_v50, 5  ;;  %v10787_v39 = vcombine.low %v1905_v61, %v1908_v0  ;;  %v1833_v14 = vld [vmem:[#allocation2 + $0x78] sm:$0xe] }
  0xaf   : > { %v1915_v26 = vsel %vm10710_vm14, %v1913_v10, %v1914_v47  ;;  %v7824_v51 = vrot.slane %v1830_v21, 9  ;;  %v1932_v40 = vrot.slane %v10336_v13, 5  ;;  %9067 = vmatmul.mubr.msk.bf16.gmra.mrb[28].mxu1 %vm2685_vm10, %v10771_v56  ;;  %v1935_v61 = vrot.slane %v10435_v58, 5  ;;  %v1834_v0 = vld [vmem:[#allocation2 + $0x84] sm:$0xe] }
  0xb0   : > { %13239 = vst [vmem:[#allocation38_spill] sm:$0xff] %v10787_v39  ;;  %v1922_v41 = vsel %vm10710_vm14, %v1920_v9, %v1921_v16  ;;  %v1926_v53 = vsel %vm10710_vm14, %v7823_v46, %v1925_v43  ;;  %v1927_v27 = vrot.slane %v1925_v43, 4  ;;  %9072 = vmatprep.mubr.msk.bf16.mxu1 %vm2685_vm10, %v10778_v24  ;;  %v10801_v47 = vcombine.low %v1912_v6, %v1915_v26 }
  0xb1   : > { %v10803_v45 = vcombine.low %v1919_v55, %v1922_v41  ;;  %v1934_v13 = vrot.slane %v1932_v40, 4  ;;  %v7825_v21 = vrot.slane %v1831_v30, 9  ;;  %v1939_v57 = vrot.slane %v10371_v62, 5  ;;  %v1835_v55 = vld [vmem:[#allocation2 + $0x90] sm:$0xe] }
  0xb2   : > { %13240 = vst [vmem:[#allocation39_spill] sm:$0xff] %v10801_v47  ;;  %v1929_v44 = vsel %vm10710_vm14, %v1927_v27, %v1928_v3  ;;  %v1942_v16 = vrot.slane %v10456_v31, 5  ;;  %v7826_v10 = vrot.slane %v1832_v23, 9  ;;  %8941 = vmatmul.mubr.msk.bf16.gmra.mrb[4].mxu0 %vm2685_vm10, %v10324_v49  ;;  %v1933_v6 = vsel %vm10710_vm14, %v7824_v51, %v1932_v40  ;;  %v1836_v3 = vld [vmem:[#allocation2 + $0x9c] sm:$0xe] }
  0xb3   : > { %13241 = vst [vmem:[#allocation40_spill] sm:$0xff] %v10803_v45  ;;  %v10811_v58 = vcombine.low %v1926_v53, %v1929_v44  ;;  %v1946_v46 = vrot.slane %v10426_v19, 5  ;;  %v1949_v30 = vrot.slane %v10522_v7, 5  ;;  %8944 = vmatprep.mubr.msk.bf16.mxu0 %vm2685_vm10, %v10388_v34  ;;  %v1936_v62 = vsel %vm10710_vm14, %v1934_v13, %v1935_v61  ;;  %v1837_v53 = vld [vmem:[#allocation2 + $0xa8] sm:$0xe] }
  0xb4   : > { %v1940_v31 = vsel %vm10710_vm14, %v7825_v21, %v1939_v57  ;;  %v1941_v23 = vrot.slane %v1939_v57, 4  ;;  %v7827_v9 = vrot.slane %v1833_v14, 9  ;;  %v1953_v19 = vrot.slane %v10450_v59, 5  ;;  %v10834_v14 = vld [vmem:[%s13081_s1 + $0x70] sm:$0xff]  }
  0xb5   : > { %13242 = vst [vmem:[#allocation41_spill] sm:$0xff] %v10811_v58  ;;  %v1947_v50 = vsel %vm10710_vm14, %v7826_v10, %v1946_v46  ;;  %v1948_v43 = vrot.slane %v1946_v46, 4  ;;  %v1956_v7 = vrot.slane %v10525_v22, 5  ;;  %v7828_v51 = vrot.slane %v1834_v0, 9  ;;  %v9923_v0 = vld [vmem:[%s13081_s1 + $0x60] sm:$0xff]  }
  0xb6   : > { %v1943_v26 = vsel %vm10710_vm14, %v1941_v23, %v1942_v16  ;;  %v1960_v40 = vrot.slane %v10510_v4, 5  ;;  %v1963_v41 = vrot.slane %v10604_v11, 5  ;;  %v10836_v27 = vcombine.low %v1933_v6, %v1936_v62  ;;  %v13246_v16 = vld [vmem:[#allocation22_spill] sm:$0xff]  ;;  %v778_v46 = vld [vmem:[#allocation2] sm:$0xf] }
  0xb7   : > { %v10838_v59 = vcombine.low %v1940_v31, %v1943_v26  ;;  %v1950_v22 = vsel %vm10710_vm14, %v1948_v43, %v1949_v30  ;;  %v1955_v61 = vrot.slane %v1953_v19, 4  ;;  %9073 = vmatmul.mubr.msk.bf16.vlgmr.msra.gmra.mrb[0].mxu1 %vm2685_vm10, %v10752_v17  ;;  %v1954_v4 = vsel %vm10710_vm14, %v7827_v9, %v1953_v19  ;;  %v10863_v23 = vld [vmem:[#allocation2 + $0x4] sm:$0xf] }
  0xb8   : > { %13243 = vst [vmem:[#allocation42_spill] sm:$0xff] %v10836_v27  ;;  %v1961_v11 = vsel %vm10710_vm14, %v7828_v51, %v1960_v40  ;;  %v1962_v13 = vrot.slane %v1960_v40, 4  ;;  %v7829_v21 = vrot.slane %v1835_v55, 9  ;;  %9105 = vmatpush3.bf16.msra.mxu1 %v9923_v0  ;;  %9076 = vmatprep.mubr.msk.bf16.mxu1 %vm2685_vm10, %v10787_v39  ;;  %v10853_v44 = vcombine.low %v1947_v50, %v1950_v22  ;;  %v13247_v9 = vld [vmem:[#allocation16_spill] sm:$0xff]  ;;  %v10878_v51 = vld [vmem:[#allocation2 + $0x8] sm:$0x1] }
  0xb9   : > { %13244 = vst [vmem:[#allocation43_spill] sm:$0xff] %v10838_v59  ;;  %v1957_v57 = vsel %vm10710_vm14, %v1955_v61, %v1956_v7  ;;  %v1967_v10 = vrot.slane %v13246_v16, 5  ;;  %v1970_v6 = vrot.slane %v10621_v35, 5  ;;  %v7830_v55 = vrot.slane %v1836_v3, 9  ;;  %9138 = vmatprep.subr.bf16.mxu1 %v10834_v14  ;;  %v13249_v7 = vld [vmem:[#allocation19_spill] sm:$0xff] }
  0xba   : > { %13245 = vst [vmem:[#allocation44_spill] sm:$0xff] %v10853_v44  ;;  %v1964_v30 = vsel %vm10710_vm14, %v1962_v13, %v1963_v41  ;;  %v1974_v62 = vrot.slane %v10582_v52, 5  ;;  %v1977_v31 = vrot.slane %v10679_v36, 5  ;;  %8945 = vmatmul.mubr.msk.bf16.gmra.mrb[8].mxu0 %vm2685_vm10, %v13247_v9  ;;  %v7831_v19 = vrot.slane %v1837_v53, 9  ;;  %v780_v53 = vld [vmem:[#allocation2 + $0xc] sm:$0xf] }
  0xbb   : > { %v10868_v50 = vcombine.low %v1961_v11, %v1964_v30  ;;  %v1968_v35 = vsel %vm10710_vm14, %v7829_v21, %v1967_v10  ;;  %v1969_v43 = vrot.slane %v1967_v10, 4  ;;  %8948 = vmatprep.mubr.msk.bf16.mxu0 %vm2685_vm10, %v13249_v7  ;;  %v10874_v52 = vcombine.low %v1954_v4, %v1957_v57  ;;  %v10899_v30 = vld [vmem:[#allocation2 + $0x14] sm:$0x1]  ;;  %v1218_v9 = vld [vmem:[#allocation2 + $0x3c] sm:$0xe] }
  0xbc   : > { %v1976_v36 = vrot.slane %v1974_v62, 4  ;;  %v1981_v3 = vrot.slane %v10614_v42, 5  ;;  %v1984_v26 = vrot.slane %v10692_v28, 5  ;;  %v830_v41 = vshrl.u32 %v778_v46, 16  ;;  %v10889_v28 = vld [vmem:[#allocation2 + $0x10] sm:$0xf] }
  0xbd   : > { %13248 = vst [vmem:[#allocation22_spill] sm:$0xff] %v10868_v50  ;;  %13250 = vst [vmem:[#allocation45_spill] sm:$0xff] %v10874_v52  ;;  %v1971_v40 = vsel %vm10710_vm14, %v1969_v43, %v1970_v6  ;;  %v833_v22 = vshll.u32 %v778_v46, 16  ;;  %v839_v61 = vshll.u32 %v10863_v23, 16  ;;  %v1975_v4 = vsel %vm10710_vm14, %v7830_v55, %v1974_v62 }
  0xbe   : > { %v10883_v11 = vcombine.low %v1968_v35, %v1971_v40  ;;  %v1982_v42 = vsel %vm10710_vm14, %v7831_v19, %v1981_v3  ;;  %v1983_v13 = vrot.slane %v1981_v3, 4  ;;  %v1978_v21 = vsel %vm10710_vm14, %v1976_v36, %v1977_v31  ;;  %v1838_v19 = vld [vmem:[#allocation2 + $0xb4] sm:$0xe] }
  0xbf   : > { %v832_v0 = vrot.slane %v830_v41, 4  ;;  %v835_v57 = vrot.slane %v833_v22, 5  ;;  %v841_v16 = vrot.slane %v839_v61, 5  ;;  %9077 = vmatmul.mubr.msk.bf16.gmra.mrb[4].mxu1 %vm2685_vm10, %v10801_v47  ;;  %v843_v6 = vshrl.u32 %v10863_v23, 16  ;;  %v13253_v41 = vld [vmem:[#allocation20_spill] sm:$0xff] }
  0xc0   : > { %13251 = vst [vmem:[#allocation46_spill] sm:$0xff] %v10883_v11  ;;  %v1985_v10 = vsel %vm10710_vm14, %v1983_v13, %v1984_v26  ;;  %v849_v46 = vshll.u32 %v10878_v51, 16  ;;  %v854_v55 = vshrl.u32 %v780_v53, 16  ;;  %9080 = vmatprep.mubr.msk.bf16.mxu1 %vm2685_vm10, %v10803_v45  ;;  %v857_v35 = vshll.u32 %v780_v53, 16 }
  0xc1   : > { %v10903_v62 = vcombine.low %v1982_v42, %v1985_v10  ;;  %v836_v31 = vor.u32 %v835_v57, %v832_v0  ;;  %v863_v43 = vshll.u32 %v10889_v28, 16  ;;  %v845_v36 = vrot.slane %v843_v6, 4  ;;  %v13254_v10 = vld [vmem:[#allocation24_spill] sm:$0xff] }
  0xc2   : > { %v851_v3 = vrot.slane %v849_v46, 5  ;;  %v856_v26 = vrot.slane %v854_v55, 4  ;;  %v867_v40 = vshrl.u32 %v10889_v28, 16  ;;  %8949 = vmatmul.mubr.msk.bf16.gmra.mrb[12].mxu0 %vm2685_vm10, %v13253_v41  ;;  %v859_v61 = vrot.slane %v857_v35, 5  ;;  %v1839_v46 = vld [vmem:[#allocation2 + $0xc0] sm:$0xe] }
  0xc3   : > { %13252 = vst [vmem:[#allocation47_spill] sm:$0xff] %v10903_v62  ;;  %v837_v22 = vrot.slane %v836_v31, 4  ;;  %v10909_v13 = vrot.slane %v863_v43, 5  ;;  %v873_v42 = vshll.u32 %v10899_v30, 16  ;;  %8952 = vmatprep.mubr.msk.bf16.mxu0 %vm2685_vm10, %v13254_v10  ;;  %v846_v53 = vor.u32 %v845_v36, %v841_v16  ;;  %v10920_v35 = vld [vmem:[#allocation2 + $0x18] sm:$0xf] }
  0xc4   : > { %v869_v0 = vrot.slane %v867_v40, 4  ;;  %v7832_v57 = vrot.slane %v1838_v19, 9  ;;  %v1988_v6 = vrot.slane %v10670_v63, 5  ;;  %v860_v37 = vor.u32 %v859_v61, %v856_v26  ;;  %v10937_v61 = vld [vmem:[#allocation2 + $0x1c] sm:$0xf] }
  0xc5   : > { %v842_v55 = vsel %vm10181_vm11, %v837_v22, %v841_v16  ;;  %v10917_v54 = vrot.slane %v873_v42, 5  ;;  %v1991_v31 = vrot.slane %v10716_v5, 5  ;;  %v847_v43 = vrot.slane %v846_v53, 4  ;;  %v10954_v53 = vld [vmem:[#allocation2 + $0x24] sm:$0xf] }
  0xc6   : > { %v870_v8 = vor.u32 %v869_v0, %v10909_v13  ;;  %v1989_v36 = vsel %vm10710_vm14, %v7832_v57, %v1988_v6  ;;  %v1990_v19 = vrot.slane %v1988_v6, 4  ;;  %v10925_v40 = vrot.slane %v860_v37, 4  ;;  %v10939_v37 = vld [vmem:[#allocation2 + $0x20] sm:$0x1] }
  0xc7   : > { %v7833_v63 = vrot.slane %v1839_v46, 9  ;;  %v1995_v10 = vrot.slane %v10687_v20, 5  ;;  %v1998_v16 = vrot.slane %v10727_v29, 5  ;;  %9081 = vmatmul.mubr.msk.bf16.gmra.mrb[8].mxu1 %vm2685_vm10, %v10811_v58  ;;  %v852_v5 = vsel %vm10181_vm11, %v847_v43, %v851_v3 }
  0xc8   : > { %v10933_v26 = vrot.slane %v870_v8, 4  ;;  %v1992_v22 = vsel %vm10710_vm14, %v1990_v19, %v1991_v31  ;;  %v878_v42 = vshrl.u32 %v10920_v35, 16  ;;  %9084 = vmatprep.mubr.msk.bf16.mxu1 %vm2685_vm10, %v10836_v27  ;;  %v10944_v29 = vcombine.low %v1975_v4, %v1978_v21  ;;  %v10959_v4 = vld [vmem:[#allocation2 + $0x28] sm:$0xf] }
  0xc9   : > { %v10946_v20 = vcombine.low %v842_v55, %v852_v5  ;;  %v866_v8 = vsel %vm10181_vm11, %v10925_v40, %v10909_v13  ;;  %v10952_v3 = vcombine.low %v1989_v36, %v1992_v22  ;;  %v1996_v0 = vsel %vm10710_vm14, %v7833_v63, %v1995_v10  ;;  %v13257_v21 = vld [vmem:[#allocation25_spill] sm:$0xff] }
  0xca   : > { %13255 = vst [vmem:[#allocation48_spill] sm:$0xff] %v10944_v29  ;;  %v1997_v57 = vrot.slane %v1995_v10, 4  ;;  %v880_v6 = vrot.slane %v878_v42, 4  ;;  %v881_v46 = vshll.u32 %v10920_v35, 16  ;;  %8953 = vmatmul.mubr.msk.bf16.gmra.mrb[16].mxu0 %vm2685_vm10, %v13257_v21  ;;  %v876_v13 = vsel %vm10181_vm11, %v10933_v26, %v10917_v54  ;;  %v10970_v10 = vld [vmem:[#allocation2 + $0x2c] sm:$0x1] }
  0xcb   : > { %13256 = vst [vmem:[#allocation49_spill] sm:$0xff] %v10952_v3  ;;  %v887_v55 = vshll.u32 %v10937_v61, 16  ;;  %v891_v31 = vshrl.u32 %v10937_v61, 16  ;;  %v897_v43 = vshll.u32 %v10939_v37, 16  ;;  %8956 = vmatprep.mubr.msk.bf16.mxu0 %vm2685_vm10, %v10632_v48  ;;  %v902_v40 = vshrl.u32 %v10954_v53, 16 }
  0xcc   : > { %v1999_v36 = vsel %vm10710_vm14, %v1997_v57, %v1998_v16  ;;  %v883_v19 = vrot.slane %v881_v46, 5  ;;  %v905_v63 = vshll.u32 %v10954_v53, 16  ;;  %v1213_v54 = vld [vmem:[#allocation2] sm:$0xe]  ;;  %v911_v41 = vshll.u32 %v10959_v4, 16 }
  0xcd   : > { %v10978_v5 = vcombine.low %v1996_v0, %v1999_v36  ;;  %v889_v26 = vrot.slane %v887_v55, 5  ;;  %v893_v22 = vrot.slane %v891_v31, 4  ;;  %v899_v42 = vrot.slane %v897_v43, 5  ;;  %v1214_v31 = vld [vmem:[#allocation2 + $0xc] sm:$0xe] }
  0xce   : > { %v884_v21 = vor.u32 %v883_v19, %v880_v6  ;;  %v904_v27 = vrot.slane %v902_v40, 4  ;;  %v907_v58 = vrot.slane %v905_v63, 5  ;;  %v915_v45 = vshrl.u32 %v10959_v4, 16 }
  0xcf   : > { %13258 = vst [vmem:[#allocation50_spill] sm:$0xff] %v10978_v5  ;;  %v894_v48 = vor.u32 %v893_v22, %v889_v26  ;;  %v921_v16 = vshll.u32 %v10970_v10, 16  ;;  %v7802_v57 = vrot.slane %v1213_v54, 9  ;;  %9085 = vmatmul.mubr.msk.bf16.gmra.mrb[12].mxu1 %vm2685_vm10, %v10838_v59  ;;  %v913_v36 = vrot.slane %v911_v41, 5  ;;  %v11002_v41 = vld [vmem:[#allocation2 + $0x34] sm:$0xf] }
  0xd0   : > { %v885_v46 = vrot.slane %v884_v21, 4  ;;  %v908_v0 = vor.u32 %v907_v58, %v904_v27  ;;  %v1282_v55 = vrot.slane %v10863_v23, 5  ;;  %9088 = vmatprep.mubr.msk.bf16.mxu1 %vm2685_vm10, %v10853_v44  ;;  %v917_v43 = vrot.slane %v915_v45, 4 }
  0xd1   : > { %v895_v6 = vrot.slane %v894_v48, 4  ;;  %v923_v19 = vrot.slane %v921_v16, 5  ;;  %v1285_v40 = vrot.slane %v10878_v51, 5  ;;  %v7803_v45 = vrot.slane %v1214_v31, 9  ;;  %v11000_v51 = vld [vmem:[#allocation2 + $0x30] sm:$0xf] }
  0xd2   : > { %v890_v63 = vsel %vm10181_vm11, %v885_v46, %v889_v26  ;;  %v909_v54 = vrot.slane %v908_v0, 4  ;;  %v10993_v21 = vsel %vm10710_vm14, %v7802_v57, %v1282_v55  ;;  %v1284_v58 = vrot.slane %v1282_v55, 4  ;;  %8957 = vmatmul.mubr.msk.bf16.gmra.mrb[20].mxu0 %vm2685_vm10, %v10648_v15  ;;  %v11015_v57 = vld [vmem:[#allocation2 + $0x38] sm:$0x1] }
  0xd3   : > { %v900_v27 = vsel %vm10181_vm11, %v895_v6, %v899_v42  ;;  %v918_v48 = vor.u32 %v917_v43, %v913_v36  ;;  %v1289_v23 = vrot.slane %v10889_v28, 5  ;;  %8960 = vmatprep.mubr.msk.bf16.mxu0 %vm2685_vm10, %v10707_v12  ;;  %v11006_v26 = vcombine.low %v866_v8, %v876_v13  ;;  %v11017_v28 = vld [vmem:[#allocation2 + $0x3c] sm:$0xf] }
  0xd4   : > { %v11008_v22 = vcombine.low %v890_v63, %v900_v27  ;;  %v11012_v16 = vsel %vm10710_vm14, %v1284_v58, %v1285_v40  ;;  %v1292_v42 = vrot.slane %v10899_v30, 5  ;;  %v914_v46 = vsel %vm10181_vm11, %v909_v54, %v913_v36  ;;  %v11034_v63 = vld [vmem:[#allocation2 + $0x40] sm:$0xf] }
  0xd5   : > { %v919_v0 = vrot.slane %v918_v48, 4  ;;  %v1291_v13 = vrot.slane %v1289_v23, 4  ;;  %v926_v55 = vshrl.u32 %v11000_v51, 16  ;;  %v929_v31 = vshll.u32 %v11000_v51, 16 }
  0xd6   : > { %13259 = vst [vmem:[#allocation51_spill] sm:$0xff] %v11008_v22  ;;  %v935_v6 = vshll.u32 %v11002_v41, 16  ;;  %v939_v30 = vshrl.u32 %v11002_v41, 16  ;;  %v11031_v40 = vsel %vm10710_vm14, %v7803_v45, %v1289_v23  ;;  %v945_v36 = vshll.u32 %v11015_v57, 16  ;;  %v1215_v45 = vld [vmem:[#allocation2 + $0x18] sm:$0xe] }
  0xd7   : > { %v924_v43 = vsel %vm10181_vm11, %v919_v0, %v923_v19  ;;  %v950_v54 = vshrl.u32 %v11017_v28, 16  ;;  %9089 = vmatmul.mubr.msk.bf16.gmra.mrb[16].mxu1 %vm2685_vm10, %v10874_v52  ;;  %v11043_v27 = vsel %vm10710_vm14, %v1291_v13, %v1292_v42  ;;  %v928_v19 = vrot.slane %v926_v55, 4  ;;  %v11045_v0 = vld [vmem:[#allocation2 + $0x44] sm:$0x1] }
  0xd8   : > { %v11039_v58 = vcombine.low %v914_v46, %v924_v43  ;;  %v931_v48 = vrot.slane %v929_v31, 5  ;;  %9092 = vmatprep.mubr.msk.bf16.mxu1 %vm2685_vm10, %v10868_v50  ;;  %v937_v23 = vrot.slane %v935_v6, 5  ;;  %v941_v8 = vrot.slane %v939_v30, 4 }
  0xd9   : > { %v947_v12 = vrot.slane %v945_v36, 5  ;;  %v952_v15 = vrot.slane %v950_v54, 4  ;;  %v953_v46 = vshll.u32 %v11017_v28, 16  ;;  %v959_v43 = vshll.u32 %v11034_v63, 16 }
  0xda   : > { %13260 = vst [vmem:[#allocation52_spill] sm:$0xff] %v11039_v58  ;;  %v932_v44 = vor.u32 %v931_v48, %v928_v19  ;;  %v963_v42 = vshrl.u32 %v11034_v63, 16  ;;  %8961 = vmatmul.mubr.msk.bf16.gmra.mrb[24].mxu0 %vm2685_vm10, %v10725_v25  ;;  %v942_v13 = vor.u32 %v941_v8, %v937_v23  ;;  %v969_v55 = vshll.u32 %v11045_v0, 16  ;;  %v1216_v19 = vld [vmem:[#allocation2 + $0x24] sm:$0xe] }
  0xdb   : > { %v7804_v31 = vrot.slane %v1215_v45, 9  ;;  %v1296_v50 = vrot.slane %v10937_v61, 5  ;;  %8964 = vmatprep.mubr.msk.bf16.mxu0 %vm2685_vm10, %v10755_v18  ;;  %v955_v30 = vrot.slane %v953_v46, 5  ;;  %v961_v36 = vrot.slane %v959_v43, 5  ;;  %v11065_v18 = vld [vmem:[#allocation2 + $0x48] sm:$0xf] }
  0xdc   : > { %v933_v6 = vrot.slane %v932_v44, 4  ;;  %v965_v54 = vrot.slane %v963_v42, 4  ;;  %v943_v48 = vrot.slane %v942_v13, 4  ;;  %v971_v52 = vrot.slane %v969_v55, 5  ;;  %13261 = vst [vmem:[#allocation53_spill] sm:$0xff] %v11065_v18 }
  0xdd   : > { %v11060_v59 = vsel %vm10710_vm14, %v7804_v31, %v1296_v50  ;;  %v1298_v8 = vrot.slane %v1296_v50, 4  ;;  %v956_v25 = vor.u32 %v955_v30, %v952_v15  ;;  %v1299_v7 = vrot.slane %v10939_v37, 5  ;;  %v11072_v13 = vld [vmem:[#allocation2 + $0x4c] sm:$0xf]  ;;  %v1217_v55 = vld [vmem:[#allocation2 + $0x30] sm:$0xe] }
  0xde   : > { %v938_v45 = vsel %vm10181_vm11, %v933_v6, %v937_v23  ;;  %v966_v47 = vor.u32 %v965_v54, %v961_v36  ;;  %v948_v46 = vsel %vm10181_vm11, %v943_v48, %v947_v12  ;;  %v7805_v43 = vrot.slane %v1216_v19, 9  ;;  %v11087_v6 = vld [vmem:[#allocation2 + $0x50] sm:$0x1]  ;;  %v11096_v54 = vld [vmem:[#allocation2 + $0x54] sm:$0xf] }
  0xdf   : > { %v1303_v42 = vrot.slane %v10959_v4, 5  ;;  %9093 = vmatmul.mubr.msk.bf16.gmra.mrb[20].mxu1 %vm2685_vm10, %v10883_v11  ;;  %v957_v15 = vrot.slane %v956_v25, 4  ;;  %v11078_v37 = vsel %vm10710_vm14, %v1298_v8, %v1299_v7  ;;  %v1306_v23 = vrot.slane %v10970_v10, 5  ;;  %v11098_v19 = vld [vmem:[#allocation2 + $0x58] sm:$0xf] }
  0xe0   : > { %v967_v50 = vrot.slane %v966_v47, 4  ;;  %9096 = vmatprep.mubr.msk.bf16.mxu1 %vm2685_vm10, %v10944_v29  ;;  %v11083_v12 = vcombine.low %v938_v45, %v948_v46  ;;  %v974_v25 = vshrl.u32 %v11065_v18, 16  ;;  %v977_v10 = vshll.u32 %v11065_v18, 16  ;;  %v11109_v45 = vld [vmem:[#allocation2 + $0x5c] sm:$0x1] }
  0xe1   : > { %v1305_v31 = vrot.slane %v1303_v42, 4  ;;  %v962_v47 = vsel %vm10181_vm11, %v957_v15, %v961_v36  ;;  %v983_v30 = vshll.u32 %v11072_v13, 16  ;;  %v11106_v8 = vsel %vm10710_vm14, %v7805_v43, %v1303_v42 }
  0xe2   : > { %13262 = vst [vmem:[#allocation54_spill] sm:$0xff] %v11083_v12  ;;  %v972_v7 = vsel %vm10181_vm11, %v967_v50, %v971_v52  ;;  %8965 = vmatmul.mubr.msk.bf16.gmra.mrb[28].mxu0 %vm2685_vm10, %v10771_v56  ;;  %v976_v36 = vrot.slane %v974_v25, 4  ;;  %v987_v52 = vshrl.u32 %v11072_v13, 16  ;;  %v979_v15 = vrot.slane %v977_v10, 5 }
  0xe3   : > { %v11102_v48 = vcombine.low %v962_v47, %v972_v7  ;;  %8970 = vmatprep.mubr.msk.bf16.mxu0 %vm2685_vm10, %v10946_v20  ;;  %v11115_v46 = vsel %vm10710_vm14, %v1305_v31, %v1306_v23  ;;  %v985_v50 = vrot.slane %v983_v30, 5  ;;  %v993_v47 = vshll.u32 %v11087_v6, 16 }
  0xe4   : > { %v989_v7 = vrot.slane %v987_v52, 4  ;;  %v998_v43 = vshrl.u32 %v11096_v54, 16  ;;  %v1001_v42 = vshll.u32 %v11096_v54, 16  ;;  %v1007_v25 = vshll.u32 %v11098_v19, 16 }
  0xe5   : > { %13263 = vst [vmem:[#allocation55_spill] sm:$0xff] %v11102_v48  ;;  %v980_v44 = vor.u32 %v979_v15, %v976_v36  ;;  %v995_v56 = vrot.slane %v993_v47, 5  ;;  %v1011_v29 = vshrl.u32 %v11098_v19, 16  ;;  %v1017_v11 = vshll.u32 %v11109_v45, 16 }
  0xe6   : > { %v990_v23 = vor.u32 %v989_v7, %v985_v50  ;;  %v1000_v31 = vrot.slane %v998_v43, 4  ;;  %v1003_v10 = vrot.slane %v1001_v42, 5  ;;  %v1009_v30 = vrot.slane %v1007_v25, 5  ;;  %v11132_v43 = vld [vmem:[%s13081_s1 + $0x18] sm:$0xff]   ;;  %v11137_v42 = vld [vmem:[#allocation2 + $0x60] sm:$0xf] }
  0xe7   : > { %9097 = vmatmul.mubr.msk.bf16.gmra.mrb[24].mxu1 %vm2685_vm10, %v10903_v62  ;;  %v981_v52 = vrot.slane %v980_v44, 4  ;;  %v1013_v39 = vrot.slane %v1011_v29, 4  ;;  %v1019_v17 = vrot.slane %v1017_v11, 5  ;;  %v7806_v34 = vrot.slane %v1217_v55, 9  ;;  %v1219_v62 = vld [vmem:[#allocation2 + $0x48] sm:$0xe] }
  0xe8   : > { %9100 = vmatprep.mubr.msk.bf16.mxu1 %vm2685_vm10, %v10952_v3  ;;  %v991_v36 = vrot.slane %v990_v23, 4  ;;  %v1004_v15 = vor.u32 %v1003_v10, %v1000_v31  ;;  %v1310_v47 = vrot.slane %v11002_v41, 5  ;;  %v1313_v7 = vrot.slane %v11015_v57, 5  ;;  %v11145_v10 = vld [vmem:[#allocation2 + $0x64] sm:$0xf] }
  0xe9   : > { %v986_v44 = vsel %vm10181_vm11, %v981_v52, %v985_v50  ;;  %v1014_v29 = vor.u32 %v1013_v39, %v1009_v30  ;;  %v7807_v11 = vrot.slane %v1218_v9, 9  ;;  %v1317_v55 = vrot.slane %v11034_v63, 5  ;;  %v11163_v57 = vld [vmem:[#allocation2 + $0x68] sm:$0x1] }
  0xea   : > { %8971 = vmatmul.mubr.msk.bf16.vlgmr.msra.gmra.mrb[0].mxu0 %vm2685_vm10, %v11006_v26  ;;  %v996_v25 = vsel %vm10181_vm11, %v991_v36, %v995_v56  ;;  %v1005_v23 = vrot.slane %v1004_v15, 4  ;;  %v1312_v31 = vrot.slane %v1310_v47, 4  ;;  %v11153_v50 = vsel %vm10710_vm14, %v7806_v34, %v1310_v47 }
  0xeb   : > { %8974 = vmatprep.mubr.msk.bf16.mxu0 %vm2685_vm10, %v11008_v22  ;;  %v11149_v39 = vcombine.low %v986_v44, %v996_v25  ;;  %v1015_v9 = vrot.slane %v1014_v29, 4  ;;  %v1319_v52 = vrot.slane %v1317_v55, 4  ;;  %9003 = vmatpush3.bf16.msra.mxu0 %v10762_v38  ;;  %v1320_v15 = vrot.slane %v11045_v0, 5  ;;  %v11177_v0 = vld [vmem:[#allocation2 + $0x70] sm:$0xf] }
  0xec   : > { %v1010_v56 = vsel %vm10181_vm11, %v1005_v23, %v1009_v30  ;;  %v11160_v36 = vsel %vm10710_vm14, %v1312_v31, %v1313_v7  ;;  %v1022_v44 = vshrl.u32 %v11137_v42, 16  ;;  %9172 = vmatprep.subr.bf16.mxu0 %v11132_v43  ;;  %v11171_v38 = vsel %vm10710_vm14, %v7807_v11, %v1317_v55  ;;  %v11175_v7 = vld [vmem:[#allocation2 + $0x6c] sm:$0xf]  ;;  %v11184_v31 = vld [vmem:[#allocation2 + $0x74] sm:$0x1] }
  0xed   : > { %13264 = vst [vmem:[#allocation56_spill] sm:$0xff] %v11149_v39  ;;  %v1020_v34 = vsel %vm10181_vm11, %v1015_v9, %v1019_v17  ;;  %v1025_v30 = vshll.u32 %v11137_v42, 16  ;;  %v1031_v47 = vshll.u32 %v11145_v10, 16  ;;  %v1035_v17 = vshrl.u32 %v11145_v10, 16 }
  0xee   : > { %v11179_v29 = vcombine.low %v1010_v56, %v1020_v34  ;;  %v1024_v23 = vrot.slane %v1022_v44, 4  ;;  %v11190_v11 = vsel %vm10710_vm14, %v1319_v52, %v1320_v15  ;;  %v1041_v56 = vshll.u32 %v11163_v57, 16 }
  0xef   : > { %9101 = vmatmul.mubr.msk.bf16.gmra.mrb[28].mxu1 %vm2685_vm10, %v10978_v5  ;;  %v1027_v55 = vrot.slane %v1025_v30, 5  ;;  %v1033_v9 = vrot.slane %v1031_v47, 5  ;;  %v13266_v34 = vcombine.low %v10993_v21, %v11012_v16  ;;  %v1037_v44 = vrot.slane %v1035_v17, 4 }
  0xf0   : > { %13265 = vst [vmem:[#allocation57_spill] sm:$0xff] %v11179_v29  ;;  %v1046_v25 = vshrl.u32 %v11175_v7, 16  ;;  %v1049_v3 = vshll.u32 %v11175_v7, 16  ;;  %v1055_v5 = vshll.u32 %v11177_v0, 16  ;;  %v1043_v52 = vrot.slane %v1041_v56, 5 }
  0xf1   : > { %9106 = vmatprep.mubr.msk.bf16.mxu1 %vm2685_vm10, %v13266_v34  ;;  %v1028_v49 = vor.u32 %v1027_v55, %v1024_v23  ;;  %v1059_v15 = vshrl.u32 %v11177_v0, 16  ;;  %v1065_v30 = vshll.u32 %v11184_v31, 16  ;;  %v1038_v21 = vor.u32 %v1037_v44, %v1033_v9  ;;  %v1220_v34 = vld [vmem:[#allocation2 + $0x54] sm:$0xe] }
  0xf2   : > { %8975 = vmatmul.mubr.msk.bf16.gmra.mrb[4].mxu0 %vm2685_vm10, %v11039_v58  ;;  %v1048_v16 = vrot.slane %v1046_v25, 4  ;;  %v1051_v47 = vrot.slane %v1049_v3, 5  ;;  %v1057_v17 = vrot.slane %v1055_v5, 5  ;;  %v7808_v23 = vrot.slane %v1219_v62, 9  ;;  %v11211_v58 = vld [vmem:[#allocation2 + $0x78] sm:$0xf] }
  0xf3   : > { %8978 = vmatprep.mubr.msk.bf16.mxu0 %vm2685_vm10, %v11083_v12  ;;  %v1029_v24 = vrot.slane %v1028_v49, 4  ;;  %v1061_v32 = vrot.slane %v1059_v15, 4  ;;  %v1067_v2 = vrot.slane %v1065_v30, 5  ;;  %v1039_v55 = vrot.slane %v1038_v21, 4  ;;  %v11216_v49 = vld [vmem:[%s13081_s1 + $0x10] sm:$0xff]  }
  0xf4   : > { %v1052_v56 = vor.u32 %v1051_v47, %v1048_v16  ;;  %v1324_v33 = vrot.slane %v11072_v13, 5  ;;  %v1327_v22 = vrot.slane %v11087_v6, 5  ;;  %v7809_v3 = vrot.slane %v1220_v34, 9  ;;  %13267 = vst [vmem:[#allocation58_spill] sm:$0xff] %v11216_v49 }
  0xf5   : > { %v1034_v44 = vsel %vm10181_vm11, %v1029_v24, %v1033_v9  ;;  %v1062_v25 = vor.u32 %v1061_v32, %v1057_v17  ;;  %v1331_v5 = vrot.slane %v11098_v19, 5  ;;  %v1044_v6 = vsel %vm10181_vm11, %v1039_v55, %v1043_v52  ;;  %v11222_v24 = vld [vmem:[#allocation2 + $0x7c] sm:$0xf]  ;;  %v11246_v55 = vld [vmem:[#allocation2 + $0x80] sm:$0x1] }
  0xf6   : > { %v1053_v15 = vrot.slane %v1052_v56, 4  ;;  %v1326_v30 = vrot.slane %v1324_v33, 4  ;;  %v13268_v32 = vcombine.low %v11031_v40, %v11043_v27  ;;  %v11228_v9 = vcombine.low %v1034_v44, %v1044_v6 }
  0xf7   : > { %v1063_v21 = vrot.slane %v1062_v25, 4  ;;  %v11232_v16 = vsel %vm10710_vm14, %v7808_v23, %v1324_v33  ;;  %v1333_v47 = vrot.slane %v1331_v5, 4  ;;  %v13270_v52 = vcombine.low %v11060_v59, %v11078_v37  ;;  %v11257_v23 = vld [vmem:[#allocation2 + $0x84] sm:$0xf]  ;;  %v11269_v25 = vld [vmem:[#allocation2 + $0x8c] sm:$0x1] }
  0xf8   : > { %9107 = vmatmul.mubr.msk.bf16.vlgmr.msra.gmra.mrb[0].mxu1 %vm2685_vm10, %v13268_v32  ;;  %13269 = vst [vmem:[#allocation59_spill] sm:$0xff] %v11228_v9  ;;  %v1058_v40 = vsel %vm10181_vm11, %v1053_v15, %v1057_v17  ;;  %v11243_v27 = vsel %vm10710_vm14, %v1326_v30, %v1327_v22  ;;  %v1334_v34 = vrot.slane %v11109_v45, 5  ;;  %v1070_v33 = vshrl.u32 %v11211_v58, 16  ;;  %v11259_v22 = vld [vmem:[#allocation2 + $0x88] sm:$0xf] }
  0xf9   : > { %9139 = vmatpush3.bf16.msra.mxu1 %v10834_v14  ;;  %9110 = vmatprep.mubr.msk.bf16.mxu1 %vm2685_vm10, %v13270_v52  ;;  %v1068_v14 = vsel %vm10181_vm11, %v1063_v21, %v1067_v2  ;;  %v11253_v59 = vsel %vm10710_vm14, %v7809_v3, %v1331_v5  ;;  %v1073_v37 = vshll.u32 %v11211_v58, 16  ;;  %v1079_v17 = vshll.u32 %v11222_v24, 16 }
  0xfa   : > { %9308 = vmatprep.subr.bf16.mxu1 %v11216_v49  ;;  %8979 = vmatmul.mubr.msk.bf16.gmra.mrb[8].mxu0 %vm2685_vm10, %v11102_v48  ;;  %v11264_v45 = vcombine.low %v1058_v40, %v1068_v14  ;;  %v1072_v56 = vrot.slane %v1070_v33, 4  ;;  %v1083_v44 = vshrl.u32 %v11222_v24, 16  ;;  %v11275_v3 = vsel %vm10710_vm14, %v1333_v47, %v1334_v34  ;;  %v1221_v40 = vld [vmem:[#allocation2 + $0x60] sm:$0xe] }
  0xfb   : > { %8982 = vmatprep.mubr.msk.bf16.mxu0 %vm2685_vm10, %v11149_v39  ;;  %v1075_v5 = vrot.slane %v1073_v37, 5  ;;  %v1081_v6 = vrot.slane %v1079_v17, 5  ;;  %v1089_v15 = vshll.u32 %v11246_v55, 16  ;;  %v1094_v32 = vshrl.u32 %v11257_v23, 16  ;;  %v1222_v39 = vld [vmem:[#allocation2 + $0x6c] sm:$0xe] }
  0xfc   : > { %13271 = vst [vmem:[#allocation60_spill] sm:$0xff] %v11264_v45  ;;  %v1085_v30 = vrot.slane %v1083_v44, 4  ;;  %v1097_v21 = vshll.u32 %v11257_v23, 16  ;;  %v1103_v52 = vshll.u32 %v11259_v22, 16  ;;  %v1107_v2 = vshrl.u32 %v11259_v22, 16 }
  0xfd   : > { %v1076_v33 = vor.u32 %v1075_v5, %v1072_v56  ;;  %v1091_v14 = vrot.slane %v1089_v15, 5  ;;  %v1113_v62 = vshll.u32 %v11269_v25, 16  ;;  %v1096_v34 = vrot.slane %v1094_v32, 4 }
  0xfe   : > { %v1086_v47 = vor.u32 %v1085_v30, %v1081_v6  ;;  %v1099_v37 = vrot.slane %v1097_v21, 5  ;;  %v1105_v17 = vrot.slane %v1103_v52, 5  ;;  %v13272_v44 = vcombine.low %v11106_v8, %v11115_v46 }
  0xff   : > { %v1077_v48 = vrot.slane %v1076_v33, 4  ;;  %v1109_v12 = vrot.slane %v1107_v2, 4  ;;  %v1115_v49 = vrot.slane %v1113_v62, 5  ;;  %v7810_v18 = vrot.slane %v1221_v40, 9  ;;  %v11296_v62 = vld [vmem:[#allocation2 + $0x90] sm:$0xf] }
 0x100   : > { %9111 = vmatmul.mubr.msk.bf16.gmra.mrb[4].mxu1 %vm2685_vm10, %v13272_v44  ;;  %v13273_v56 = vcombine.low %v11153_v50, %v11160_v36  ;;  %v1087_v5 = vrot.slane %v1086_v47, 4  ;;  %v1100_v15 = vor.u32 %v1099_v37, %v1096_v34  ;;  %v1338_v30 = vrot.slane %v11145_v10, 5  ;;  %v11304_v40 = vld [vmem:[#allocation2 + $0x94] sm:$0xf]  ;;  %v11319_v34 = vld [vmem:[#allocation2 + $0x98] sm:$0x1] }
 0x101   : > { %v1341_v32 = vrot.slane %v11163_v57, 5  ;;  %v1082_v8 = vsel %vm10181_vm11, %v1077_v48, %v1081_v6  ;;  %v1110_v46 = vor.u32 %v1109_v12, %v1105_v17  ;;  %v7811_v21 = vrot.slane %v1222_v39, 9 }
 0x102   : > { %9114 = vmatprep.mubr.msk.bf16.mxu1 %vm2685_vm10, %v13273_v56  ;;  %v1345_v2 = vrot.slane %v11177_v0, 5  ;;  %8983 = vmatmul.mubr.msk.bf16.gmra.mrb[12].mxu0 %vm2685_vm10, %v11179_v29  ;;  %v1092_v36 = vsel %vm10181_vm11, %v1087_v5, %v1091_v14  ;;  %v1101_v52 = vrot.slane %v1100_v15, 4  ;;  %v1340_v57 = vrot.slane %v1338_v30, 4  ;;  %v11330_v5 = vld [vmem:[#allocation2 + $0x9c] sm:$0xf] }
 0x103   : > { %8986 = vmatprep.mubr.msk.bf16.mxu0 %vm2685_vm10, %v11228_v9  ;;  %v11308_v12 = vcombine.low %v1082_v8, %v1092_v36  ;;  %v1111_v48 = vrot.slane %v1110_v46, 4  ;;  %v11312_v39 = vsel %vm10710_vm14, %v7810_v18, %v1338_v30  ;;  %v1348_v47 = vrot.slane %v11184_v31, 5  ;;  %v11332_v15 = vld [vmem:[#allocation2 + $0xa0] sm:$0xf] }
 0x104   : > { %v1347_v6 = vrot.slane %v1345_v2, 4  ;;  %v1106_v33 = vsel %vm10181_vm11, %v1101_v52, %v1105_v17  ;;  %v1342_v14 = vsel %vm10710_vm14, %v1340_v57, %v1341_v32  ;;  %v1118_v37 = vshrl.u32 %v11296_v62, 16 }
 0x105   : > { %13274 = vst [vmem:[#allocation61_spill] sm:$0xff] %v11308_v12  ;;  %v1116_v44 = vsel %vm10181_vm11, %v1111_v48, %v1115_v49  ;;  %v11326_v18 = vsel %vm10710_vm14, %v7811_v21, %v1345_v2  ;;  %v1121_v56 = vshll.u32 %v11296_v62, 16  ;;  %v1127_v17 = vshll.u32 %v11304_v40, 16  ;;  %v11338_v49 = vld [vmem:[#allocation2 + $0xa4] sm:$0x1] }
 0x106   : > { %v11334_v31 = vcombine.low %v1106_v33, %v1116_v44  ;;  %v8054_v30 = vcombine.low %v11312_v39, %v1342_v14  ;;  %v1120_v32 = vrot.slane %v1118_v37, 4  ;;  %v1131_v8 = vshrl.u32 %v11304_v40, 16  ;;  %v1223_v33 = vld [vmem:[#allocation2 + $0x78] sm:$0xe] }
 0x107   : > { %v13276_v46 = vcombine.low %v11171_v38, %v11190_v11  ;;  %v11346_v21 = vsel %vm10710_vm14, %v1347_v6, %v1348_v47  ;;  %v1123_v2 = vrot.slane %v1121_v56, 5  ;;  %v1129_v36 = vrot.slane %v1127_v17, 5  ;;  %v1224_v17 = vld [vmem:[#allocation2 + $0x84] sm:$0xe] }
 0x108   : > { %13275 = vst [vmem:[#allocation62_spill] sm:$0xff] %v11334_v31  ;;  %v1137_v52 = vshll.u32 %v11319_v34, 16  ;;  %v13277_v57 = vcombine.low %v11232_v16, %v11243_v27  ;;  %v1133_v48 = vrot.slane %v1131_v8, 4  ;;  %v1142_v39 = vshrl.u32 %v11330_v5, 16 }
 0x109   : > { %9115 = vmatmul.mubr.msk.bf16.gmra.mrb[8].mxu1 %vm2685_vm10, %v13276_v46  ;;  %v1145_v38 = vshll.u32 %v11330_v5, 16  ;;  %v1151_v11 = vshll.u32 %v11332_v15, 16  ;;  %v1124_v14 = vor.u32 %v1123_v2, %v1120_v32  ;;  %v1155_v47 = vshrl.u32 %v11332_v15, 16 }
 0x10a   : > { %9118 = vmatprep.mubr.msk.bf16.mxu1 %vm2685_vm10, %v13277_v57  ;;  %v1139_v6 = vrot.slane %v1137_v52, 5  ;;  %v1161_v37 = vshll.u32 %v11338_v49, 16  ;;  %8987 = vmatmul.mubr.msk.bf16.gmra.mrb[16].mxu0 %vm2685_vm10, %v11264_v45  ;;  %v1134_v16 = vor.u32 %v1133_v48, %v1129_v36  ;;  %v1144_v27 = vrot.slane %v1142_v39, 4  ;;  %v11367_v45 = vld [vmem:[#allocation2 + $0xa8] sm:$0xf] }
 0x10b   : > { %v1147_v44 = vrot.slane %v1145_v38, 5  ;;  %v1153_v56 = vrot.slane %v1151_v11, 5  ;;  %8990 = vmatprep.mubr.msk.bf16.mxu0 %vm2685_vm10, %v11308_v12  ;;  %v1125_v8 = vrot.slane %v1124_v14, 4  ;;  %v1157_v46 = vrot.slane %v1155_v47, 4 }
 0x10c   : > { %v1163_v57 = vrot.slane %v1161_v37, 5  ;;  %v7812_v32 = vrot.slane %v1223_v33, 9  ;;  %v1135_v2 = vrot.slane %v1134_v16, 4  ;;  %v1352_v50 = vrot.slane %v11222_v24, 5  ;;  %v11373_v16 = vld [vmem:[#allocation2 + $0xac] sm:$0xf] }
 0x10d   : > { %v1148_v52 = vor.u32 %v1147_v44, %v1144_v27  ;;  %v1355_v9 = vrot.slane %v11246_v55, 5  ;;  %v1130_v48 = vsel %vm10181_vm11, %v1125_v8, %v1129_v36  ;;  %v1158_v39 = vor.u32 %v1157_v46, %v1153_v56  ;;  %v11400_v46 = vld [vmem:[#allocation2 + $0xb4] sm:$0xf] }
 0x10e   : > { %v7813_v38 = vrot.slane %v1224_v17, 9  ;;  %v1359_v11 = vrot.slane %v11259_v22, 5  ;;  %v8055_v14 = vcombine.low %v11326_v18, %v11346_v21  ;;  %v1140_v33 = vsel %vm10181_vm11, %v1135_v2, %v1139_v6 }
 0x10f   : > { %v1149_v47 = vrot.slane %v1148_v52, 4  ;;  %v1354_v37 = vrot.slane %v1352_v50, 4  ;;  %v13278_v55 = vcombine.low %v11253_v59, %v11275_v3  ;;  %v11379_v36 = vcombine.low %v1130_v48, %v1140_v33  ;;  %v11389_v59 = vld [vmem:[#allocation2 + $0xb0] sm:$0x1]  ;;  %v11409_v52 = vld [vmem:[#allocation2 + $0xbc] sm:$0x1] }
 0x110   : > { %v1159_v27 = vrot.slane %v1158_v39, 4  ;;  %v1353_v44 = vsel %vm10710_vm14, %v7812_v32, %v1352_v50  ;;  %v1361_v17 = vrot.slane %v1359_v11, 4  ;;  %v1362_v6 = vrot.slane %v11269_v25, 5 }
 0x111   : > { %9119 = vmatmul.mubr.msk.bf16.gmra.mrb[12].mxu1 %vm2685_vm10, %v13278_v55  ;;  %13279 = vst [vmem:[#allocation63_spill] sm:$0xff] %v11379_v36  ;;  %v1154_v18 = vsel %vm10181_vm11, %v1149_v47, %v1153_v56  ;;  %v1356_v21 = vsel %vm10710_vm14, %v1354_v37, %v1355_v9  ;;  %v1166_v3 = vshrl.u32 %v11367_v45, 16  ;;  %v11396_v50 = vsel %vm10710_vm14, %v7813_v38, %v1359_v11  ;;  %v11402_v9 = vld [vmem:[#allocation2 + $0xb8] sm:$0xf] }
 0x112   : > { %9122 = vmatprep.mubr.msk.bf16.mxu1 %vm2685_vm10, %v8054_v30  ;;  %v1164_v8 = vsel %vm10181_vm11, %v1159_v27, %v1163_v57  ;;  %v1169_v30 = vshll.u32 %v11367_v45, 16  ;;  %v1175_v56 = vshll.u32 %v11373_v16, 16  ;;  %8991 = vmatmul.mubr.msk.bf16.gmra.mrb[20].mxu0 %vm2685_vm10, %v11334_v31  ;;  %v8056_v32 = vcombine.low %v1353_v44, %v1356_v21  ;;  %v1225_v27 = vld [vmem:[#allocation2 + $0x90] sm:$0xe] }
 0x113   : > { %v11406_v25 = vcombine.low %v1154_v18, %v1164_v8  ;;  %v1168_v2 = vrot.slane %v1166_v3, 4  ;;  %v1179_v57 = vshrl.u32 %v11373_v16, 16  ;;  %8994 = vmatprep.mubr.msk.bf16.mxu0 %vm2685_vm10, %v11379_v36  ;;  %v1363_v48 = vsel %vm10710_vm14, %v1361_v17, %v1362_v6 }
 0x114   : > { %v1171_v39 = vrot.slane %v1169_v30, 5  ;;  %v1177_v38 = vrot.slane %v1175_v56, 5  ;;  %v1185_v11 = vshll.u32 %v11389_v59, 16  ;;  %v1190_v47 = vshrl.u32 %v11400_v46, 16  ;;  %v1226_v56 = vld [vmem:[#allocation2 + $0x9c] sm:$0xe] }
 0x115   : > { %v1181_v33 = vrot.slane %v1179_v57, 4  ;;  %v1193_v37 = vshll.u32 %v11400_v46, 16  ;;  %v1199_v55 = vshll.u32 %v11402_v9, 16  ;;  %v1203_v21 = vshrl.u32 %v11402_v9, 16 }
 0x116   : > { %v1172_v44 = vor.u32 %v1171_v39, %v1168_v2  ;;  %v1187_v18 = vrot.slane %v1185_v11, 5  ;;  %v1209_v3 = vshll.u32 %v11409_v52, 16  ;;  %v1192_v17 = vrot.slane %v1190_v47, 4 }
 0x117   : > { %v1182_v8 = vor.u32 %v1181_v33, %v1177_v38  ;;  %v1195_v6 = vrot.slane %v1193_v37, 5  ;;  %v1201_v30 = vrot.slane %v1199_v55, 5  ;;  %v1205_v36 = vrot.slane %v1203_v21, 4  ;;  %v1227_v21 = vld [vmem:[#allocation2 + $0xa8] sm:$0xe] }
 0x118   : > { %v1173_v57 = vrot.slane %v1172_v44, 4  ;;  %v1211_v31 = vrot.slane %v1209_v3, 5  ;;  %v7814_v12 = vrot.slane %v1225_v27, 9  ;;  %v1366_v39 = vrot.slane %v11304_v40, 5 }
 0x119   : > { %9123 = vmatmul.mubr.msk.bf16.gmra.mrb[16].mxu1 %vm2685_vm10, %v8055_v14  ;;  %v1183_v29 = vrot.slane %v1182_v8, 4  ;;  %v1196_v2 = vor.u32 %v1195_v6, %v1192_v17  ;;  %v1369_v11 = vrot.slane %v11319_v34, 5  ;;  %v1206_v47 = vor.u32 %v1205_v36, %v1201_v30 }
 0x11a   : > { %9126 = vmatprep.mubr.msk.bf16.mxu1 %vm2685_vm10, %v8056_v32  ;;  %v1178_v33 = vsel %vm10181_vm11, %v1173_v57, %v1177_v38  ;;  %v7815_v37 = vrot.slane %v1226_v56, 9  ;;  %v1373_v55 = vrot.slane %v11332_v15, 5  ;;  %8995 = vmatmul.mubr.msk.bf16.gmra.mrb[24].mxu0 %vm2685_vm10, %v11406_v25  ;;  %v1367_v27 = vsel %vm10710_vm14, %v7814_v12, %v1366_v39  ;;  %v9924_v57 = vld [vmem:[#allocation2] sm:$0xf] }
 0x11b   : > { %v1188_v14 = vsel %vm10181_vm11, %v1183_v29, %v1187_v18  ;;  %v1197_v32 = vrot.slane %v1196_v2, 4  ;;  %v1368_v44 = vrot.slane %v1366_v39, 4  ;;  %v8057_v34 = vcombine.low %v11396_v50, %v1363_v48  ;;  %v9925_v2 = vld [vmem:[#allocation2 + $0x4] sm:$0xf] }
 0x11c   : > { %v11435_v3 = vcombine.low %v1178_v33, %v1188_v14  ;;  %v1207_v36 = vrot.slane %v1206_v47, 4  ;;  %v1375_v38 = vrot.slane %v1373_v55, 4  ;;  %v1376_v29 = vrot.slane %v11338_v49, 5 }
 0x11d   : > { %v1202_v8 = vsel %vm10181_vm11, %v1197_v32, %v1201_v30  ;;  %v1370_v17 = vsel %vm10710_vm14, %v1368_v44, %v1369_v11  ;;  %v1374_v50 = vsel %vm10710_vm14, %v7815_v37, %v1373_v55  ;;  %v7816_v48 = vrot.slane %v1227_v21, 9 }
 0x11e   : > { %8998 = vmatprep.mubr.msk.bf16.mxu0 %vm2685_vm10, %v11435_v3  ;;  %v1212_v12 = vsel %vm10181_vm11, %v1207_v36, %v1211_v31  ;;  %v8058_v18 = vcombine.low %v1367_v27, %v1370_v17  ;;  %v1377_v30 = vsel %vm10710_vm14, %v1375_v38, %v1376_v29  ;;  %v1380_v56 = vrot.slane %v11373_v16, 5  ;;  %v1228_v31 = vld [vmem:[#allocation2 + $0xb4] sm:$0xe] }
 0x11f   : > { %v11448_v6 = vcombine.low %v1202_v8, %v1212_v12  ;;  %v1383_v49 = vrot.slane %v11389_v59, 5  ;;  %v7957_v39 = vcombine.low %v9924_v57, %v9925_v2  ;;  %v1387_v11 = vrot.slane %v11402_v9, 5  ;;  %v11494_v12 = vld [vmem:[%s13081_s1 + $0x8] sm:$0xff]  }
 0x120   : > { %v1382_v33 = vrot.slane %v1380_v56, 4  ;;  %v8059_v47 = vcombine.low %v1374_v50, %v1377_v30  ;;  %v1381_v37 = vsel %vm10710_vm14, %v7816_v48, %v1380_v56  ;;  %v7817_v55 = vrot.slane %v1228_v31, 9  ;;  %v13283_v50 = vld [vmem:[#allocation52_spill] sm:$0xff]  ;;  %v11540_v56 = vld [vmem:[#allocation2 + $0x28] sm:$0xf]  ;;  %v13285_v31 = vld [vmem:[#allocation55_spill] sm:$0xff] }
 0x121   : > { %9127 = vmatmul.mubr.msk.bf16.gmra.mrb[20].mxu1 %vm2685_vm10, %v8057_v34  ;;  %v7964_v14 = vcombine.low %v11096_v54, %v11098_v19  ;;  %v7965_v32 = vcombine.low %v11137_v42, %v11145_v10  ;;  %v1389_v27 = vrot.slane %v1387_v11, 4  ;;  %v1390_v44 = vrot.slane %v11409_v52, 5 }
 0x122   : > { %9130 = vmatprep.mubr.msk.bf16.mxu1 %vm2685_vm10, %v8058_v18  ;;  %8999 = vmatmul.mubr.msk.bf16.gmra.mrb[28].mxu0 %vm2685_vm10, %v11448_v6  ;;  %v1384_v59 = vsel %vm10710_vm14, %v1382_v33, %v1383_v49  ;;  %v7966_v21 = vcombine.low %v11175_v7, %v11177_v0  ;;  %v7967_v34 = vcombine.low %v11211_v58, %v11222_v24  ;;  %v9926_v7 = vld [vmem:[#allocation2 + $0xc] sm:$0xf]  ;;  %v9927_v0 = vld [vmem:[#allocation2 + $0x10] sm:$0xf]  ;;  %vm7069_vm15 = vcmask 257152  }
 0x123   : > { %9004 = vmatprep.mubr.msk.bf16.mxu0 %vm2685_vm10, %v7957_v39  ;;  %v8060_v36 = vcombine.low %v1381_v37, %v1384_v59  ;;  %v7968_v38 = vcombine.low %v11257_v23, %v11259_v22  ;;  %v7969_v54 = vcombine.low %v11296_v62, %v11304_v40  ;;  %v7970_v19 = vcombine.low %v11330_v5, %v11332_v15  ;;  %v11549_v37 = vld [vmem:[#allocation2 + $0x30] sm:$0xf]  ;;  %v11618_v22 = vld [vmem:[#allocation2 + $0x38] sm:$0x1]  ;;  %v11671_v5 = vld [vmem:[#allocation2 + $0x6c] sm:$0xf] }
 0x124   : > { %v7971_v42 = vcombine.low %v11367_v45, %v11373_v16  ;;  %v7972_v10 = vcombine.low %v11400_v46, %v11402_v9  ;;  %v7958_v52 = vcombine.low %v9926_v7, %v9927_v0  ;;  %v7959_v8 = vcombine.low %v10920_v35, %v10937_v61 }
 0x125   : > { %v1388_v17 = vsel %vm10710_vm14, %v7817_v55, %v1387_v11  ;;  %v1391_v29 = vsel %vm10710_vm14, %v1389_v27, %v1390_v44  ;;  %v7960_v35 = vcombine.low %v10954_v53, %v10959_v4  ;;  %v7961_v61 = vcombine.low %v11000_v51, %v11002_v41  ;;  %v13280_v4 = vld [vmem:[#allocation53_spill] sm:$0xff]  ;;  %v13281_v41 = vld [vmem:[#allocation58_spill] sm:$0xff]  ;;  %v13286_v55 = vld [vmem:[#allocation56_spill] sm:$0xff] }
 0x126   : > { %v8061_v18 = vcombine.low %v1388_v17, %v1391_v29  ;;  %v7962_v53 = vcombine.low %v11017_v28, %v11034_v63  ;;  %v7963_v51 = vcombine.low %v13280_v4, %v11072_v13  ;;  %v13284_v28 = vld [vmem:[#allocation54_spill] sm:$0xff]  ;;  %v11532_v63 = vld [vmem:[#allocation2 + $0x24] sm:$0xf]  ;;  %v11536_v13 = vld [vmem:[#allocation2 + $0x1c] sm:$0xf]  ;;  %v2083_v59 = vshll.u32 %v11540_v56, 16 }
 0x127   : > { %v2074_v49 = vshrl.u32 %v11532_v63, 16  ;;  %v2077_v57 = vshll.u32 %v11532_v63, 16  ;;  %v2063_v2 = vshrl.u32 %v11536_v13, 16  ;;  %v2059_v39 = vshll.u32 %v11536_v13, 16  ;;  %v11554_v27 = vld [vmem:[#allocation2 + $0x34] sm:$0xf] }
 0x128   : > { %v2098_v44 = vshrl.u32 %v11549_v37, 16  ;;  %v11569_v29 = vrot.slane %v2083_v59, 5  ;;  %v2111_v24 = vshrl.u32 %v11554_v27, 16 }
 0x129   : > { %9131 = vmatmul.mubr.msk.bf16.gmra.mrb[24].mxu1 %vm2685_vm10, %v8059_v47  ;;  %v2087_v47 = vshrl.u32 %v11540_v56, 16  ;;  %v11560_v7 = vrot.slane %v2059_v39, 5  ;;  %v2065_v0 = vrot.slane %v2063_v2, 4 }
 0x12a   : > { %9134 = vmatprep.mubr.msk.bf16.mxu1 %vm2685_vm10, %v8060_v36  ;;  %9005 = vmatmul.mubr.msk.bf16.vlgmr.msra.gmra.mrb[0].mxu0 %vm2685_vm10, %v7958_v52  ;;  %v11558_v36 = vld [vmem:[#allocation2 + $0x3c] sm:$0xf]  ;;  %v2101_v52 = vshll.u32 %v11549_v37, 16 }
 0x12b   : > { %9008 = vmatprep.mubr.msk.bf16.mxu0 %vm2685_vm10, %v7959_v8  ;;  %9173 = vmatpush3.bf16.msra.mxu0 %v11132_v43  ;;  %v11512_v43 = vld [vmem:[%s13081_s1] sm:$0xff]   ;;  %v2122_v4 = vshrl.u32 %v11558_v36, 16 }
 0x12c   : > { %9206 = vmatprep.subr.bf16.mxu0 %v11494_v12  ;;  %v11567_v8 = vld [vmem:[#allocation2 + $0x20] sm:$0x1] }
 0x131   : > { %9135 = vmatmul.mubr.msk.bf16.gmra.mrb[28].mxu1 %vm2685_vm10, %v8061_v18 }
 0x132   : > { %9140 = vmatprep.mubr.msk.bf16.mxu1 %vm2685_vm10, %v10946_v20  ;;  %9009 = vmatmul.mubr.msk.bf16.gmra.mrb[4].mxu0 %vm2685_vm10, %v7960_v35  ;;  %v13282_v20 = vld [vmem:[#allocation51_spill] sm:$0xff] }
 0x133   : > { %9012 = vmatprep.mubr.msk.bf16.mxu0 %vm2685_vm10, %v7961_v61  ;;  %v11575_v61 = vld [vmem:[#allocation2 + $0x40] sm:$0xf]  ;;  %13291 = vst [vmem:[#allocation51_spill] sm:$0xff] %v11618_v22 }
 0x134   : > { %v2131_v59 = vshll.u32 %v11575_v61, 16 }
 0x136   : > { %v11627_v62 = vrot.slane %v2131_v59, 5 }
 0x139   : > { %9141 = vmatmul.mubr.msk.bf16.vlgmr.msra.gmra.mrb[0].mxu1 %vm2685_vm10, %v11006_v26  ;;  %v11530_v26 = vld [vmem:[#allocation2 + $0x18] sm:$0xf] }
 0x13a   : > { %9309 = vmatpush3.bf16.msra.mxu1 %v13281_v41  ;;  %9144 = vmatprep.mubr.msk.bf16.mxu1 %vm2685_vm10, %v13282_v20  ;;  %v2050_v48 = vshrl.u32 %v11530_v26, 16  ;;  %v2053_v30 = vshll.u32 %v11530_v26, 16  ;;  %v8102_v18 = vcombine.low %v11530_v26, %v11536_v13  ;;  %v11584_v41 = vld [vmem:[#allocation2 + $0x48] sm:$0xf]  ;;  %v2100_v20 = vrot.slane %v2098_v44, 4 }
 0x13b   : > { %9342 = vmatprep.subr.bf16.mxu1 %v11512_v43  ;;  %9013 = vmatmul.mubr.msk.bf16.gmra.mrb[8].mxu0 %vm2685_vm10, %v7962_v53  ;;  %v11577_v53 = vld [vmem:[#allocation2 + $0x2c] sm:$0x1] }
 0x13c   : > { %9016 = vmatprep.mubr.msk.bf16.mxu0 %vm2685_vm10, %v7963_v51  ;;  %v2052_v11 = vrot.slane %v2050_v48, 4  ;;  %v2055_v33 = vrot.slane %v2053_v30, 5  ;;  %13287 = vst [vmem:[#allocation53_spill] sm:$0xff] %v11577_v53  ;;  %v2125_v51 = vshll.u32 %v11558_v36, 16  ;;  %v2107_v48 = vshll.u32 %v11554_v27, 16  ;;  %v13288_v30 = vld [vmem:[#allocation57_spill] sm:$0xff] }
 0x13d   : > { %v2093_v39 = vshll.u32 %v11577_v53, 16  ;;  %v11600_v44 = vld [vmem:[#allocation2 + $0x4c] sm:$0xf] }
 0x13e   : > { %v2056_v17 = vor.u32 %v2055_v33, %v2052_v11  ;;  %v2135_v11 = vshrl.u32 %v11575_v61, 16  ;;  %13290 = vst [vmem:[#allocation58_spill] sm:$0xff] %v11600_v44 }
 0x13f   : > { %v2095_v23 = vrot.slane %v2093_v39, 5  ;;  %v11631_v39 = vld [vmem:[#allocation2 + $0x60] sm:$0xf] }
 0x140   : > { %v2137_v40 = vrot.slane %v2135_v11, 4 }
 0x141   : > { %9145 = vmatmul.mubr.msk.bf16.gmra.mrb[4].mxu1 %vm2685_vm10, %v13283_v50  ;;  %v2066_v50 = vor.u32 %v2065_v0, %v11560_v7  ;;  %v2149_v0 = vshll.u32 %v11584_v41, 16 }
 0x142   : > { %9148 = vmatprep.mubr.msk.bf16.mxu1 %vm2685_vm10, %v13284_v28  ;;  %v2069_v28 = vshll.u32 %v11567_v8, 16 }
 0x143   : > { %9017 = vmatmul.mubr.msk.bf16.gmra.mrb[12].mxu0 %vm2685_vm10, %v7964_v14  ;;  %v2076_v14 = vrot.slane %v2074_v49, 4  ;;  %v2103_v49 = vrot.slane %v2101_v52, 5  ;;  %v2067_v52 = vrot.slane %v2066_v50, 4  ;;  %v11620_v50 = vld [vmem:[#allocation2 + $0x44] sm:$0x1] }
 0x144   : > { %9020 = vmatprep.mubr.msk.bf16.mxu0 %vm2685_vm10, %v7965_v32  ;;  %v2079_v32 = vrot.slane %v2077_v57, 5  ;;  %v2057_v57 = vrot.slane %v2056_v17, 4  ;;  %v2071_v17 = vrot.slane %v2069_v28, 5  ;;  %13292 = vst [vmem:[#allocation52_spill] sm:$0xff] %v11620_v50 }
 0x146   : > { %v2080_v58 = vor.u32 %v2079_v32, %v2076_v14  ;;  %v2127_v14 = vrot.slane %v2125_v51, 5  ;;  %v2062_v51 = vsel %vm10181_vm11, %v2057_v57, %v11560_v7  ;;  %v2159_v7 = vshrl.u32 %v11600_v44, 16 }
 0x148   : > { %v2081_v33 = vrot.slane %v2080_v58, 4  ;;  %v11609_v58 = vrot.slane %v2107_v48, 5  ;;  %v11625_v48 = vld [vmem:[#allocation2 + $0x58] sm:$0xf] }
 0x149   : > { %9149 = vmatmul.mubr.msk.bf16.gmra.mrb[8].mxu1 %vm2685_vm10, %v13285_v31  ;;  %v13289_v31 = vld [vmem:[#allocation59_spill] sm:$0xff]  ;;  %13293 = vst [vmem:[#allocation54_spill] sm:$0xff] %v11625_v48  ;;  %v2179_v15 = vshll.u32 %v11625_v48, 16 }
 0x14a   : > { %9152 = vmatprep.mubr.msk.bf16.mxu1 %vm2685_vm10, %v13286_v55  ;;  %v2124_v55 = vrot.slane %v2122_v4, 4  ;;  %v2113_v4 = vrot.slane %v2111_v24, 4  ;;  %v2086_v24 = vsel %vm10181_vm11, %v2081_v33, %v11569_v29  ;;  %v13294_v33 = vld [vmem:[#allocation60_spill] sm:$0xff] }
 0x14b   : > { %9021 = vmatmul.mubr.msk.bf16.gmra.mrb[16].mxu0 %vm2685_vm10, %v7966_v21  ;;  %v2089_v21 = vrot.slane %v2087_v47, 4  ;;  %v2146_v47 = vshrl.u32 %v11584_v41, 16 }
 0x14c   : > { %9024 = vmatprep.mubr.msk.bf16.mxu0 %vm2685_vm10, %v7967_v34 }
 0x14d   : > { %v2090_v2 = vor.u32 %v2089_v21, %v11569_v29  ;;  %v11607_v21 = vld [vmem:[#allocation2 + $0x54] sm:$0xf]  ;;  %v2148_v28 = vrot.slane %v2146_v47, 4  ;;  %v2114_v29 = vor.u32 %v2113_v4, %v11609_v58  ;;  %v2194_v4 = vshrl.u32 %v11631_v39, 16  ;;  %v11654_v47 = vld [vmem:[#allocation2 + $0x64] sm:$0xf] }
 0x14e   : > { %v2170_v57 = vshrl.u32 %v11607_v21, 16 }
 0x14f   : > { %v2115_v32 = vrot.slane %v2114_v29, 4 }
 0x151   : > { %9153 = vmatmul.mubr.msk.bf16.gmra.mrb[12].mxu1 %vm2685_vm10, %v13288_v30  ;;  %v2091_v30 = vrot.slane %v2090_v2, 4  ;;  %v2128_v2 = vor.u32 %v2127_v14, %v2124_v55  ;;  %v2141_v55 = vshll.u32 %v11620_v50, 16  ;;  %v13295_v14 = vld [vmem:[#allocation61_spill] sm:$0xff] }
 0x152   : > { %9156 = vmatprep.mubr.msk.bf16.mxu1 %vm2685_vm10, %v13289_v31  ;;  %v2117_v31 = vshll.u32 %v11618_v22, 16  ;;  %v11801_v22 = vld [vmem:[#allocation2 + $0x9c] sm:$0xf] }
 0x153   : > { %9025 = vmatmul.mubr.msk.bf16.gmra.mrb[20].mxu0 %vm2685_vm10, %v7968_v38  ;;  %v2104_v38 = vor.u32 %v2103_v49, %v2100_v20  ;;  %v2072_v20 = vsel %vm10181_vm11, %v2067_v52, %v2071_v17  ;;  %v2173_v49 = vshll.u32 %v11607_v21, 16  ;;  %v2096_v11 = vsel %vm10181_vm11, %v2091_v30, %v2095_v23 }
 0x154   : > { %9028 = vmatprep.mubr.msk.bf16.mxu0 %vm2685_vm10, %v7969_v54  ;;  %v2151_v54 = vrot.slane %v2149_v0, 5  ;;  %v2183_v0 = vshrl.u32 %v11625_v48, 16  ;;  %v2138_v17 = vor.u32 %v2137_v40, %v11627_v62  ;;  %v2172_v30 = vrot.slane %v2170_v57, 4 }
 0x155   : > { %v2105_v59 = vrot.slane %v2104_v38, 4  ;;  %v2129_v23 = vrot.slane %v2128_v2, 4  ;;  %v2155_v38 = vshll.u32 %v11600_v44, 16  ;;  %v2175_v52 = vrot.slane %v2173_v49, 5  ;;  %v11677_v49 = vld [vmem:[#allocation2 + $0x70] sm:$0xf] }
 0x156   : > { %v2119_v40 = vrot.slane %v2117_v31, 5  ;;  %v2143_v57 = vrot.slane %v2141_v55, 5  ;;  %v2197_v2 = vshll.u32 %v11631_v39, 16  ;;  %v2152_v45 = vor.u32 %v2151_v54, %v2148_v28  ;;  %v13297_v54 = vld [vmem:[#allocation62_spill] sm:$0xff] }
 0x157   : > { %v2134_v16 = vsel %vm10181_vm11, %v2129_v23, %v11627_v62  ;;  %v11686_v29 = vrot.slane %v2155_v38, 5  ;;  %v2161_v31 = vrot.slane %v2159_v7, 4  ;;  %v2221_v55 = vshll.u32 %v11671_v5, 16  ;;  %v13299_v7 = vld [vmem:[#allocation63_spill] sm:$0xff] }
 0x158   : > { %v2176_v28 = vor.u32 %v2175_v52, %v2172_v30  ;;  %v2199_v62 = vrot.slane %v2197_v2, 5  ;;  %v11697_v23 = vrot.slane %v2179_v15, 5  ;;  %v2185_v38 = vrot.slane %v2183_v0, 4  ;;  %v11706_v30 = vld [vmem:[#allocation2 + $0x78] sm:$0xf] }
 0x159   : > { %9157 = vmatmul.mubr.msk.bf16.gmra.mrb[16].mxu1 %vm2685_vm10, %v13294_v33  ;;  %v11652_v33 = vcombine.low %v2062_v51, %v2072_v20  ;;  %v2110_v51 = vsel %vm10181_vm11, %v2105_v59, %v11609_v58  ;;  %v2207_v20 = vshrl.u32 %v11654_v47, 16  ;;  %v11684_v58 = vld [vmem:[#allocation2 + $0x50] sm:$0x1]  ;;  %v2218_v59 = vshrl.u32 %v11671_v5, 16 }
 0x15a   : > { %9160 = vmatprep.mubr.msk.bf16.mxu1 %vm2685_vm10, %v13295_v14  ;;  %v11661_v14 = vcombine.low %v2086_v24, %v2096_v11  ;;  %v11674_v24 = vrot.slane %v2194_v4, 4  ;;  %13296 = vst [vmem:[#allocation55_spill] sm:$0xff] %v11684_v58  ;;  %v2120_v11 = vsel %vm10181_vm11, %v2115_v32, %v2119_v40  ;;  %v11695_v4 = vld [vmem:[#allocation2 + $0x5c] sm:$0x1]  ;;  %v11703_v40 = vrot.slane %v2152_v45, 4 }
 0x15b   : > { %9029 = vmatmul.mubr.msk.bf16.gmra.mrb[24].mxu0 %vm2685_vm10, %v7970_v19  ;;  %v2139_v19 = vrot.slane %v2138_v17, 4  ;;  %v2231_v17 = vshrl.u32 %v11677_v49, 16  ;;  %13298 = vst [vmem:[#allocation56_spill] sm:$0xff] %v11695_v4  ;;  %v2165_v52 = vshll.u32 %v11684_v58, 16  ;;  %v2203_v2 = vshll.u32 %v11654_v47, 16 }
 0x15c   : > { %9032 = vmatprep.mubr.msk.bf16.mxu0 %vm2685_vm10, %v7971_v42  ;;  %v2162_v0 = vor.u32 %v2161_v31, %v11686_v29  ;;  %v11719_v45 = vrot.slane %v2176_v28, 4  ;;  %v2189_v42 = vshll.u32 %v11695_v4, 16  ;;  %v2242_v46 = vshrl.u32 %v11706_v30, 16 }
 0x15d   : > { %v2144_v32 = vsel %vm10181_vm11, %v2139_v19, %v2143_v57  ;;  %v2220_v57 = vrot.slane %v2218_v59, 4  ;;  %v2223_v19 = vrot.slane %v2221_v55, 5  ;;  %v2245_v9 = vshll.u32 %v11706_v30, 16 }
 0x15e   : > { %v11728_v31 = vcombine.low %v2134_v16, %v2144_v32  ;;  %v2158_v59 = vsel %vm10181_vm11, %v11703_v40, %v11686_v29  ;;  %v2167_v55 = vrot.slane %v2165_v52, 5  ;;  %v11739_v28 = vrot.slane %v2203_v2, 5  ;;  %v11742_v32 = vld [vmem:[#allocation2 + $0x68] sm:$0x1]  ;;  %v11752_v52 = vld [vmem:[#allocation2 + $0x74] sm:$0x1] }
 0x15f   : > { %v2209_v26 = vrot.slane %v2207_v20, 4  ;;  %v2233_v15 = vrot.slane %v2231_v17, 4  ;;  %v2182_v34 = vsel %vm10181_vm11, %v11719_v45, %v11697_v23  ;;  %v2191_v35 = vrot.slane %v2189_v42, 5  ;;  %v11771_v45 = vld [vmem:[%s13081_s1 + $0x48] sm:$0xff]  }
 0x160   : > { %v2200_v40 = vor.u32 %v2199_v62, %v11674_v24  ;;  %v2244_v2 = vrot.slane %v2242_v46, 4 }
 0x161   : > { %9161 = vmatmul.mubr.msk.bf16.gmra.mrb[20].mxu1 %vm2685_vm10, %v13297_v54  ;;  %v11709_v54 = vcombine.low %v2110_v51, %v2120_v11  ;;  %v11722_v51 = vld [vmem:[#allocation2 + $0x7c] sm:$0xf]  ;;  %v2186_v11 = vor.u32 %v2185_v38, %v11697_v23  ;;  %v2210_v62 = vor.u32 %v2209_v26, %v11739_v28  ;;  %v2213_v23 = vshll.u32 %v11742_v32, 16 }
 0x162   : > { %9164 = vmatprep.mubr.msk.bf16.mxu1 %vm2685_vm10, %v13299_v7  ;;  %v2227_v7 = vshll.u32 %v11677_v49, 16  ;;  %v2255_v16 = vshrl.u32 %v11722_v51, 16  ;;  %v2251_v17 = vshll.u32 %v11722_v51, 16  ;;  %v13300_v26 = vcombine.low %v11532_v63, %v11540_v56  ;;  %v11791_v63 = vld [vmem:[#allocation2 + $0x80] sm:$0x1] }
 0x163   : > { %9033 = vmatmul.mubr.msk.bf16.gmra.mrb[28].mxu0 %vm2685_vm10, %v7972_v10  ;;  %v11733_v10 = vld [vmem:[#allocation2 + $0x84] sm:$0xf]  ;;  %v2187_v20 = vrot.slane %v2186_v11, 4  ;;  %v2201_v50 = vrot.slane %v2200_v40, 4  ;;  %v2215_v58 = vrot.slane %v2213_v23, 5 }
 0x164   : > { %9174 = vmatprep.mubr.msk.bf16.mxu0 %vm2685_vm10, %v8102_v18  ;;  %v2163_v18 = vrot.slane %v2162_v0, 4  ;;  %v11744_v38 = vrot.slane %v2227_v7, 5  ;;  %v2266_v29 = vshrl.u32 %v11733_v10, 16  ;;  %v2247_v0 = vrot.slane %v2245_v9, 5  ;;  %v11756_v7 = vld [vmem:[#allocation2 + $0x88] sm:$0xf] }
 0x165   : > { %v2269_v24 = vshll.u32 %v11733_v10, 16  ;;  %v2237_v9 = vshll.u32 %v11752_v52, 16  ;;  %v2279_v4 = vshrl.u32 %v11756_v7, 16  ;;  %v11815_v23 = vld [vmem:[#allocation2 + $0xa0] sm:$0xf] }
 0x166   : > { %v2168_v11 = vsel %vm10181_vm11, %v2163_v18, %v2167_v55  ;;  %v2234_v46 = vor.u32 %v2233_v15, %v11744_v38  ;;  %v2268_v42 = vrot.slane %v2266_v29, 4  ;;  %v13301_v55 = vcombine.low %v11549_v37, %v11554_v27  ;;  %v11798_v37 = vld [vmem:[#allocation2 + $0x94] sm:$0xf] }
 0x167   : > { %v2192_v15 = vsel %vm10181_vm11, %v2187_v20, %v2191_v35  ;;  %v2257_v18 = vrot.slane %v2255_v16, 4  ;;  %v11796_v29 = vcombine.low %v2158_v59, %v2168_v11  ;;  %v2271_v40 = vrot.slane %v2269_v24, 5 }
 0x168   : > { %v2235_v35 = vrot.slane %v2234_v46, 4  ;;  %v2239_v20 = vrot.slane %v2237_v9, 5  ;;  %v2248_v53 = vor.u32 %v2247_v0, %v2244_v2  ;;  %v2275_v16 = vshll.u32 %v11756_v7, 16  ;;  %v11834_v9 = vld [vmem:[#allocation2 + $0x8c] sm:$0x1] }
 0x169   : > { %9165 = vmatmul.mubr.msk.bf16.gmra.mrb[24].mxu1 %vm2685_vm10, %v11406_v25  ;;  %v11766_v25 = vld [vmem:[#allocation2 + $0x90] sm:$0xf]  ;;  %v2261_v2 = vshll.u32 %v11791_v63, 16  ;;  %v2317_v0 = vshll.u32 %v11801_v22, 16 }
 0x16a   : > { %9168 = vmatprep.mubr.msk.bf16.mxu1 %vm2685_vm10, %v11435_v3  ;;  %v2224_v3 = vor.u32 %v2223_v19, %v2220_v57  ;;  %v2290_v57 = vshrl.u32 %v11766_v25, 16  ;;  %v11793_v19 = vrot.slane %v2251_v17, 5  ;;  %v11803_v17 = vcombine.low %v2182_v34, %v2192_v15 }
 0x16b   : > { %9175 = vmatmul.mubr.msk.bf16.vlgmr.msra.gmra.mrb[32].mxu0 %vm2685_vm10, %v13300_v26  ;;  %v2211_v26 = vrot.slane %v2210_v62, 4  ;;  %v2293_v59 = vshll.u32 %v11766_v25, 16  ;;  %v2303_v62 = vshrl.u32 %v11798_v37, 16  ;;  %v11832_v46 = vrot.slane %v2248_v53, 4 }
 0x16c   : > { %9178 = vmatprep.mubr.msk.bf16.mxu0 %vm2685_vm10, %v13301_v55  ;;  %9207 = vmatpush3.bf16.msra.mxu0 %v11494_v12  ;;  %v2225_v55 = vrot.slane %v2224_v3, 4  ;;  %v2206_v12 = vsel %vm10181_vm11, %v2201_v50, %v11739_v28  ;;  %v11812_v24 = vrot.slane %v2290_v57, 4  ;;  %v2258_v34 = vor.u32 %v2257_v18, %v11793_v19 }
 0x16d   : > { %9240 = vmatprep.subr.bf16.mxu0 %v11771_v45  ;;  %v2216_v50 = vsel %vm10181_vm11, %v2211_v26, %v2215_v58  ;;  %v2240_v3 = vsel %vm10181_vm11, %v2235_v35, %v2239_v20  ;;  %v2272_v15 = vor.u32 %v2271_v40, %v2268_v42  ;;  %v13302_v58 = vcombine.low %v11558_v36, %v11575_v61  ;;  %v11861_v20 = vld [vmem:[#allocation2 + $0xac] sm:$0xf]  ;;  %v11887_v36 = vld [vmem:[#allocation2 + $0x98] sm:$0x1] }
 0x16e   : > { %v2230_v11 = vsel %vm10181_vm11, %v2225_v55, %v11744_v38  ;;  %v11840_v57 = vrot.slane %v2293_v59, 5  ;;  %v11843_v26 = vrot.slane %v2275_v16, 5  ;;  %v11845_v38 = vrot.slane %v2279_v4, 4  ;;  %v11847_v55 = vld [vmem:[#allocation2 + $0xa8] sm:$0xf] }
 0x16f   : > { %v13303_v53 = vcombine.low %v11584_v41, %v11600_v44  ;;  %v11853_v42 = vcombine.low %v2206_v12, %v2216_v50  ;;  %v11857_v40 = vrot.slane %v2258_v34, 4  ;;  %v11859_v35 = vrot.slane %v2261_v2, 5  ;;  %v2439_v4 = vld [vmem:[#allocation2 + $0x60] sm:$0xe]  ;;  %v2441_v50 = vld [vmem:[#allocation2 + $0x78] sm:$0xe] }
 0x170   : > { %v11863_v59 = vcombine.low %v2230_v11, %v2240_v3  ;;  %v2299_v41 = vshll.u32 %v11798_v37, 16  ;;  %v11874_v34 = vrot.slane %v2272_v15, 4  ;;  %v7840_v15 = vrot.slane %v2439_v4, 9  ;;  %v2442_v2 = vld [vmem:[#allocation2 + $0x84] sm:$0xe] }
 0x171   : > { %9169 = vmatmul.mubr.msk.bf16.gmra.mrb[28].mxu1 %vm2685_vm10, %v11448_v6  ;;  %v2314_v6 = vshrl.u32 %v11801_v22, 16  ;;  %v2541_v28 = vrot.slane %v11654_v47, 5  ;;  %v2544_v3 = vrot.slane %v11742_v32, 5  ;;  %v2548_v18 = vrot.slane %v11677_v49, 5 }
 0x172   : > { %9310 = vmatprep.mubr.msk.bf16.mxu1 %vm2685_vm10, %v11652_v33  ;;  %v11902_v4 = vrot.slane %v2299_v41, 5  ;;  %v2551_v44 = vrot.slane %v11752_v52, 5  ;;  %v13306_v41 = vcombine.low %v11607_v21, %v11625_v48  ;;  %v7842_v12 = vrot.slane %v2441_v50, 9  ;;  %v12030_v48 = vld [vmem:[#allocation2 + $0xd4] sm:$0x1] }
 0x173   : > { %9179 = vmatmul.mubr.msk.bf16.gmra.mrb[36].mxu0 %vm2685_vm10, %v13302_v58  ;;  %v11865_v16 = vrot.slane %v2314_v6, 4  ;;  %v11867_v58 = vrot.slane %v2317_v0, 5  ;;  %v11881_v6 = vld [vmem:[%s13081_s1 + $0x40] sm:$0xff]   ;;  %v2440_v0 = vld [vmem:[#allocation2 + $0x6c] sm:$0xe]  ;;  %v11911_v32 = vsel %vm10710_vm14, %v7840_v15, %v2541_v28  ;;  %v13308_v15 = vcombine.low %v11631_v39, %v11654_v47 }
 0x174   : > { %9182 = vmatprep.mubr.msk.bf16.mxu0 %vm2685_vm10, %v13303_v53  ;;  %13304 = vst [vmem:[#allocation57_spill] sm:$0xff] %v11881_v6  ;;  %v11904_v53 = vrot.slane %v2303_v62, 4  ;;  %v7841_v11 = vrot.slane %v2440_v0, 9  ;;  %13305 = vst [vmem:[#allocation59_spill] sm:$0xff] %v11911_v32  ;;  %v2550_v0 = vrot.slane %v2548_v18, 4  ;;  %v2558_v21 = vrot.slane %v11791_v63, 5 }
 0x175   : > { %v11958_v63 = vld [vmem:[#allocation2 + $0xa4] sm:$0x1]  ;;  %v2583_v32 = vrot.slane %v11861_v20, 5 }
 0x176   : > { %v11920_v62 = vsel %vm10710_vm14, %v7841_v11, %v2548_v18  ;;  %v2443_v11 = vld [vmem:[#allocation2 + $0x90] sm:$0xe]  ;;  %v11937_v50 = vsel %vm10710_vm14, %v2550_v0, %v2551_v44  ;;  %v2445_v18 = vld [vmem:[#allocation2 + $0xa8] sm:$0xe] }
 0x177   : > { %13307 = vst [vmem:[#allocation60_spill] sm:$0xff] %v11920_v62  ;;  %13310 = vst [vmem:[#allocation62_spill] sm:$0xff] %v11937_v50  ;;  %v7844_v0 = vrot.slane %v2443_v11, 9  ;;  %v2576_v11 = vrot.slane %v11815_v23, 5  ;;  %v11969_v50 = vld [vmem:[#allocation2 + $0xb8] sm:$0xf]  ;;  %v13316_v62 = vcombine.low %v11671_v5, %v11677_v49 }
 0x179   : > { %9311 = vmatmul.mubr.msk.bf16.vlgmr.msra.gmra.mrb[32].mxu1 %vm2685_vm10, %v11661_v14 }
 0x17a   : > { %9343 = vmatpush3.bf16.msra.mxu1 %v11512_v43  ;;  %9314 = vmatprep.mubr.msk.bf16.mxu1 %vm2685_vm10, %v11709_v54  ;;  %v2543_v43 = vrot.slane %v2541_v28, 4  ;;  %v7843_v28 = vrot.slane %v2442_v2, 9 }
 0x17b   : > { %9376 = vmatprep.subr.bf16.mxu1 %v11881_v6  ;;  %9183 = vmatmul.mubr.msk.bf16.gmra.mrb[40].mxu0 %vm2685_vm10, %v13306_v41  ;;  %v2555_v6 = vrot.slane %v11722_v51, 5  ;;  %v2562_v41 = vrot.slane %v11756_v7, 5 }
 0x17c   : > { %9186 = vmatprep.mubr.msk.bf16.mxu0 %vm2685_vm10, %v13308_v15  ;;  %v11929_v52 = vsel %vm10710_vm14, %v2543_v43, %v2544_v3  ;;  %v2444_v3 = vld [vmem:[#allocation2 + $0x9c] sm:$0xe]  ;;  %v2565_v15 = vrot.slane %v11834_v9, 5 }
 0x17d   : > { %13309 = vst [vmem:[#allocation61_spill] sm:$0xff] %v11929_v52  ;;  %v11941_v39 = vsel %vm10710_vm14, %v7842_v12, %v2555_v6  ;;  %v2557_v47 = vrot.slane %v2555_v6, 4  ;;  %v11947_v2 = vsel %vm10710_vm14, %v7843_v28, %v2562_v41  ;;  %v2564_v43 = vrot.slane %v2562_v41, 4 }
 0x17e   : > { %13311 = vst [vmem:[#allocation63_spill] sm:$0xff] %v11941_v39  ;;  %13312 = vst [vmem:[#allocation64_spill] sm:$0xff] %v11947_v2  ;;  %v2569_v12 = vrot.slane %v11798_v37, 5  ;;  %v2572_v6 = vrot.slane %v11887_v36, 5  ;;  %v7846_v39 = vrot.slane %v2445_v18, 9  ;;  %v2590_v2 = vrot.slane %v11969_v50, 5 }
 0x17f   : > { %v11952_v44 = vsel %vm10710_vm14, %v2557_v47, %v2558_v21  ;;  %v11964_v41 = vsel %vm10710_vm14, %v2564_v43, %v2565_v15  ;;  %v7845_v21 = vrot.slane %v2444_v3, 9  ;;  %v2446_v47 = vld [vmem:[#allocation2 + $0xb4] sm:$0xe]  ;;  %v2579_v43 = vrot.slane %v11958_v63, 5  ;;  %v11978_v15 = vld [vmem:[#allocation2 + $0xb0] sm:$0x1] }
 0x180   : > { %13313 = vst [vmem:[#allocation65_spill] sm:$0xff] %v11952_v44  ;;  %13314 = vst [vmem:[#allocation66_spill] sm:$0xff] %v11964_v41  ;;  %v11975_v52 = vsel %vm10710_vm14, %v7844_v0, %v2569_v12  ;;  %v2571_v28 = vrot.slane %v2569_v12, 4  ;;  %v2578_v44 = vrot.slane %v2576_v11, 4  ;;  %v2586_v12 = vrot.slane %v11978_v15, 5  ;;  %v13351_v1 = vld [vmem:[#allocation60_spill] sm:$0xff] }
 0x181   : > { %9315 = vmatmul.mubr.msk.bf16.gmra.mrb[36].mxu1 %vm2685_vm10, %v11728_v31  ;;  %13315 = vst [vmem:[#allocation67_spill] sm:$0xff] %v11975_v52  ;;  %v11982_v3 = vsel %vm10710_vm14, %v7845_v21, %v2576_v11  ;;  %v7847_v41 = vrot.slane %v2446_v47, 9  ;;  %v2447_v21 = vld [vmem:[#allocation2 + $0xc0] sm:$0xe]  ;;  %v13318_v18 = vcombine.low %v11706_v30, %v11722_v51  ;;  %v11999_v11 = vld [vmem:[#allocation2 + $0xbc] sm:$0x1] }
 0x182   : > { %9318 = vmatprep.mubr.msk.bf16.mxu1 %vm2685_vm10, %v11796_v29  ;;  %v11991_v0 = vsel %vm10710_vm14, %v2571_v28, %v2572_v6  ;;  %v12005_v49 = vsel %vm10710_vm14, %v2578_v44, %v2579_v43  ;;  %v2585_v6 = vrot.slane %v2583_v32, 4  ;;  %v2448_v28 = vld [vmem:[#allocation2 + $0xcc] sm:$0xe]  ;;  %v12011_v47 = vld [vmem:[#allocation2 + $0xc4] sm:$0xf]  ;;  %v2592_v5 = vrot.slane %v2590_v2, 4 }
 0x183   : > { %9187 = vmatmul.mubr.msk.bf16.gmra.mrb[44].mxu0 %vm2685_vm10, %v13316_v62  ;;  %13317 = vst [vmem:[#allocation68_spill] sm:$0xff] %v11991_v0  ;;  %13319 = vst [vmem:[#allocation69_spill] sm:$0xff] %v12005_v49  ;;  %v12009_v62 = vsel %vm10710_vm14, %v7846_v39, %v2583_v32  ;;  %v12013_v30 = vld [vmem:[#allocation2 + $0xc8] sm:$0x1]  ;;  %v2593_v44 = vrot.slane %v11999_v11, 5  ;;  %v7848_v39 = vrot.slane %v2447_v21, 9 }
 0x184   : > { %9190 = vmatprep.mubr.msk.bf16.mxu0 %vm2685_vm10, %v13318_v18  ;;  %13320 = vst [vmem:[#allocation70_spill] sm:$0xff] %v12009_v62  ;;  %v12019_v18 = vsel %vm10710_vm14, %v7847_v41, %v2590_v2  ;;  %v12022_v43 = vld [vmem:[#allocation2 + $0xd0] sm:$0xf]  ;;  %v12026_v32 = vsel %vm10710_vm14, %v2585_v6, %v2586_v12  ;;  %v2597_v0 = vrot.slane %v12011_v47, 5  ;;  %v2600_v52 = vrot.slane %v12013_v30, 5 }
 0x185   : > { %13321 = vst [vmem:[#allocation71_spill] sm:$0xff] %v12019_v18  ;;  %13322 = vst [vmem:[#allocation72_spill] sm:$0xff] %v12026_v32  ;;  %v12036_v2 = vsel %vm10710_vm14, %v2592_v5, %v2593_v44  ;;  %v7849_v51 = vrot.slane %v2448_v28, 9  ;;  %v2604_v49 = vrot.slane %v12022_v43, 5  ;;  %v2607_v41 = vrot.slane %v12030_v48, 5 }
 0x186   : > { %13323 = vst [vmem:[#allocation73_spill] sm:$0xff] %v12036_v2  ;;  %v12045_v21 = vsel %vm10710_vm14, %v7848_v39, %v2597_v0  ;;  %v2599_v6 = vrot.slane %v2597_v0, 4  ;;  %v2306_v5 = vor.u32 %v11904_v53, %v11902_v4  ;;  %v2323_v28 = vshll.u32 %v11815_v23, 16 }
 0x187   : > { %v12055_v44 = vsel %vm10710_vm14, %v7849_v51, %v2604_v49  ;;  %v2606_v12 = vrot.slane %v2604_v49, 4  ;;  %v2278_v0 = vsel %vm10181_vm11, %v11874_v34, %v11843_v26  ;;  %v13325_v39 = vshll.u32 %v11834_v9, 16  ;;  %v12077_v9 = vld [vmem:[#allocation2 + $0xb4] sm:$0xf] }
 0x188   : > { %13324 = vst [vmem:[#allocation74_spill] sm:$0xff] %v12055_v44  ;;  %v2347_v18 = vshll.u32 %v11861_v20, 16  ;;  %v12066_v53 = vsel %vm10710_vm14, %v2599_v6, %v2600_v52  ;;  %v13327_v32 = vcombine.low %v11733_v10, %v11756_v7  ;;  %v13328_v49 = vor.u32 %v11845_v38, %v11843_v26 }
 0x189   : > { %9319 = vmatmul.mubr.msk.bf16.gmra.mrb[40].mxu1 %vm2685_vm10, %v11803_v17  ;;  %v2287_v2 = vrot.slane %v13325_v39, 5  ;;  %13326 = vst [vmem:[#allocation75_spill] sm:$0xff] %v12066_v53  ;;  %v13329_v34 = vshrl.u32 %v11847_v55, 16  ;;  %v12083_v52 = vsel %vm10710_vm14, %v2606_v12, %v2607_v41  ;;  %v13331_v10 = vcombine.low %v11766_v25, %v11798_v37 }
 0x18a   : > { %9322 = vmatprep.mubr.msk.bf16.mxu1 %vm2685_vm10, %v11853_v42  ;;  %v2283_v51 = vrot.slane %v13328_v49, 4  ;;  %13330 = vst [vmem:[#allocation76_spill] sm:$0xff] %v12083_v52  ;;  %v13332_v7 = vsel %vm10181_vm11, %v11857_v40, %v11859_v35  ;;  %v13333_v26 = vsel %vm10181_vm11, %v11832_v46, %v11793_v19  ;;  %v13335_v25 = vor.u32 %v11840_v57, %v11812_v24 }
 0x18b   : > { %9191 = vmatmul.mubr.msk.bf16.gmra.mrb[48].mxu0 %vm2685_vm10, %v13327_v32  ;;  %v2340_v62 = vrot.slane %v13329_v34, 4  ;;  %v12099_v38 = vcombine.low %v13333_v26, %v13332_v7  ;;  %v13334_v32 = vshll.u32 %v11847_v55, 16  ;;  %v2307_v6 = vrot.slane %v2306_v5, 4  ;;  %v12114_v34 = vld [vmem:[#allocation2 + $0xc0] sm:$0xf] }
 0x18c   : > { %9194 = vmatprep.mubr.msk.bf16.mxu0 %vm2685_vm10, %v13331_v10  ;;  %v2297_v37 = vrot.slane %v13335_v25, 4  ;;  %v13336_v40 = vshll.u32 %v11887_v36, 16  ;;  %v12110_v49 = vrot.slane %v2323_v28, 5  ;;  %v13337_v19 = vshrl.u32 %v11815_v23, 16 }
 0x18d   : > { %v2343_v41 = vrot.slane %v13334_v32, 5  ;;  %v8114_v10 = vcombine.low %v11847_v55, %v11861_v20  ;;  %v2362_v24 = vshrl.u32 %v12077_v9, 16  ;;  %v12119_v57 = vrot.slane %v2347_v18, 5 }
 0x18e   : > { %v2311_v35 = vrot.slane %v13336_v40, 5  ;;  %v2329_v46 = vrot.slane %v13337_v19, 4  ;;  %v13338_v7 = vshrl.u32 %v11861_v20, 16  ;;  %v2288_v36 = vsel %vm10181_vm11, %v2283_v51, %v2287_v2 }
 0x18f   : > { %v2365_v28 = vshll.u32 %v12077_v9, 16  ;;  %v2375_v26 = vshrl.u32 %v11969_v50, 16  ;;  %v2320_v32 = vor.u32 %v11867_v58, %v11865_v16  ;;  %v2302_v55 = vsel %vm10181_vm11, %v2297_v37, %v11902_v4 }
 0x190   : > { %v2353_v5 = vrot.slane %v13338_v7, 4  ;;  %v2333_v20 = vshll.u32 %v11958_v63, 16  ;;  %v2386_v18 = vshrl.u32 %v12114_v34, 16  ;;  %v2389_v2 = vshll.u32 %v12114_v34, 16 }
 0x191   : > { %9323 = vmatmul.mubr.msk.bf16.gmra.mrb[44].mxu1 %vm2685_vm10, %v11863_v59  ;;  %v2312_v51 = vsel %vm10181_vm11, %v2307_v6, %v2311_v35  ;;  %v2330_v16 = vor.u32 %v2329_v46, %v12110_v49  ;;  %v2344_v58 = vor.u32 %v2343_v41, %v2340_v62  ;;  %v2371_v25 = vshll.u32 %v11969_v50, 16 }
 0x192   : > { %9326 = vmatprep.mubr.msk.bf16.mxu1 %vm2685_vm10, %v12099_v38  ;;  %v2399_v40 = vshrl.u32 %v12011_v47, 16  ;;  %v2354_v4 = vor.u32 %v2353_v5, %v12119_v57  ;;  %v2357_v63 = vshll.u32 %v11978_v15, 16  ;;  %v2395_v37 = vshll.u32 %v12011_v47, 16  ;;  %v2031_v15 = vld [vmem:[#allocation2 + $0xcc] sm:$0xf] }
 0x193   : > { %v13339_v19 = vcombine.low %v11801_v22, %v11815_v23  ;;  %v12151_v7 = vcombine.low %v2278_v0, %v2288_v36  ;;  %v2364_v6 = vrot.slane %v2362_v24, 4  ;;  %v2367_v35 = vrot.slane %v2365_v28, 5 }
 0x194   : > { %v2321_v62 = vrot.slane %v2320_v32, 4  ;;  %v12154_v41 = vcombine.low %v2302_v55, %v2312_v51  ;;  %v2335_v46 = vrot.slane %v2333_v20, 5  ;;  %v2388_v5 = vrot.slane %v2386_v18, 4 }
 0x195   : > { %9195 = vmatmul.mubr.msk.bf16.gmra.mrb[52].mxu0 %vm2685_vm10, %v13339_v19  ;;  %v2391_v12 = vrot.slane %v2389_v2, 5  ;;  %v2331_v39 = vrot.slane %v2330_v16, 4  ;;  %v2345_v52 = vrot.slane %v2344_v58, 4  ;;  %v2373_v44 = vrot.slane %v2371_v25, 5 }
 0x196   : > { %9198 = vmatprep.mubr.msk.bf16.mxu0 %vm2685_vm10, %v8114_v10  ;;  %v2377_v53 = vrot.slane %v2375_v26, 4  ;;  %v2355_v22 = vrot.slane %v2354_v4, 4  ;;  %v2359_v23 = vrot.slane %v2357_v63, 5  ;;  %v2397_v19 = vrot.slane %v2395_v37, 5 }
 0x197   : > { %v2401_v0 = vrot.slane %v2399_v40, 4  ;;  %v8115_v24 = vcombine.low %v12077_v9, %v11969_v50  ;;  %v2326_v10 = vsel %vm10181_vm11, %v2321_v62, %v12110_v49  ;;  %v8116_v36 = vcombine.low %v12114_v34, %v12011_v47 }
 0x198   : > { %v2410_v28 = vshrl.u32 %v2031_v15, 16  ;;  %v2413_v32 = vshll.u32 %v2031_v15, 16  ;;  %v2423_v26 = vshrl.u32 %v12022_v43, 16  ;;  %v2368_v55 = vor.u32 %v2367_v35, %v2364_v6 }
 0x199   : > { %9327 = vmatmul.mubr.msk.bf16.gmra.mrb[48].mxu1 %vm2685_vm10, %v12151_v7  ;;  %v2381_v20 = vshll.u32 %v11999_v11, 16  ;;  %v2336_v50 = vsel %vm10181_vm11, %v2331_v39, %v2335_v46  ;;  %v2378_v9 = vor.u32 %v2377_v53, %v2373_v44  ;;  %v2392_v49 = vor.u32 %v2391_v12, %v2388_v5 }
 0x19a   : > { %9330 = vmatprep.mubr.msk.bf16.mxu1 %vm2685_vm10, %v12154_v41  ;;  %v2419_v47 = vshll.u32 %v12022_v43, 16  ;;  %v2350_v34 = vsel %vm10181_vm11, %v2345_v52, %v12119_v57  ;;  %v2360_v18 = vsel %vm10181_vm11, %v2355_v22, %v2359_v23  ;;  %v2402_v2 = vor.u32 %v2401_v0, %v2397_v19 }
 0x19b   : > { %v2405_v11 = vshll.u32 %v12013_v30, 16  ;;  %v2412_v51 = vrot.slane %v2410_v28, 4  ;;  %v12179_v16 = vcombine.low %v2326_v10, %v2336_v50  ;;  %v2415_v53 = vrot.slane %v2413_v32, 5  ;;  %v12219_v32 = vld [vmem:[%s13081_s1 + $0x58] sm:$0xff]  }
 0x19c   : > { %v2369_v39 = vrot.slane %v2368_v55, 4  ;;  %v2383_v12 = vrot.slane %v2381_v20, 5  ;;  %v12182_v58 = vcombine.low %v2350_v34, %v2360_v18  ;;  %v2379_v25 = vrot.slane %v2378_v9, 4  ;;  %v2434_v55 = vld [vmem:[#allocation2 + $0x24] sm:$0xe] }
 0x19d   : > { %9199 = vmatmul.mubr.msk.bf16.gmra.mrb[56].mxu0 %vm2685_vm10, %v8115_v24  ;;  %v2421_v52 = vrot.slane %v2419_v47, 5  ;;  %v2425_v57 = vrot.slane %v2423_v26, 4  ;;  %v2393_v40 = vrot.slane %v2392_v49, 4  ;;  %v2403_v4 = vrot.slane %v2402_v2, 4  ;;  %v13340_v47 = vld [vmem:[#allocation53_spill] sm:$0xff]  ;;  %v13341_v2 = vld [vmem:[#allocation51_spill] sm:$0xff] }
 0x19e   : > { %9202 = vmatprep.mubr.msk.bf16.mxu0 %vm2685_vm10, %v8116_v36  ;;  %v2407_v63 = vrot.slane %v2405_v11, 5  ;;  %v8117_v30 = vcombine.low %v2031_v15, %v12022_v43  ;;  %v2374_v37 = vsel %vm10181_vm11, %v2369_v39, %v2373_v44  ;;  %v2384_v6 = vsel %vm10181_vm11, %v2379_v25, %v2383_v12  ;;  %v2433_v44 = vld [vmem:[#allocation2 + $0x18] sm:$0xe]  ;;  %v2436_v39 = vld [vmem:[#allocation2 + $0x3c] sm:$0xe]  ;;  %v13342_v12 = vld [vmem:[#allocation58_spill] sm:$0xff] }
 0x19f   : > { %v2416_v35 = vor.u32 %v2415_v53, %v2412_v51  ;;  %v2426_v62 = vor.u32 %v2425_v57, %v2421_v52  ;;  %v2429_v46 = vshll.u32 %v12030_v48, 16  ;;  %v2398_v5 = vsel %vm10181_vm11, %v2393_v40, %v2397_v19 }
 0x1a0   : > { %v2408_v43 = vsel %vm10181_vm11, %v2403_v4, %v2407_v63  ;;  %v2499_v15 = vrot.slane %v11536_v13, 5  ;;  %v12200_v22 = vcombine.low %v2374_v37, %v2384_v6  ;;  %v7834_v10 = vrot.slane %v2433_v44, 9  ;;  %v13343_v63 = vld [vmem:[#allocation52_spill] sm:$0xff] }
 0x1a1   : > { %9331 = vmatmul.mubr.msk.bf16.gmra.mrb[52].mxu1 %vm2685_vm10, %v12179_v16  ;;  %v12204_v23 = vcombine.low %v2398_v5, %v2408_v43  ;;  %v2417_v0 = vrot.slane %v2416_v35, 4  ;;  %v2427_v48 = vrot.slane %v2426_v62, 4  ;;  %v2431_v24 = vrot.slane %v2429_v46, 5  ;;  %v13344_v35 = vld [vmem:[#allocation55_spill] sm:$0xff]  ;;  %v9916_v46 = vld [vmem:[%s13081_s1 + $0x50] sm:$0xff]  }
 0x1a2   : > { %9334 = vmatprep.mubr.msk.bf16.mxu1 %vm2685_vm10, %v12182_v58  ;;  %v2501_v19 = vrot.slane %v2499_v15, 4  ;;  %v2502_v36 = vrot.slane %v11567_v8, 5  ;;  %v2506_v28 = vrot.slane %v11540_v56, 5  ;;  %v2500_v8 = vsel %vm10710_vm14, %v7834_v10, %v2499_v15  ;;  %v13346_v43 = vld [vmem:[#allocation54_spill] sm:$0xff] }
 0x1a3   : > { %v2422_v13 = vsel %vm10181_vm11, %v2417_v0, %v2421_v52  ;;  %v2513_v20 = vrot.slane %v11554_v27, 5  ;;  %v7835_v9 = vrot.slane %v2434_v55, 9  ;;  %v2509_v34 = vrot.slane %v13340_v47, 5  ;;  %v2437_v52 = vld [vmem:[#allocation2 + $0x48] sm:$0xe]  ;;  %v13361_v47 = vld [vmem:[#allocation68_spill] sm:$0xff] }
 0x1a4   : > { %v2503_v26 = vsel %vm10710_vm14, %v2501_v19, %v2502_v36  ;;  %v2508_v49 = vrot.slane %v2506_v28, 4  ;;  %v7836_v18 = vrot.slane %v2435_v60, 9  ;;  %v2516_v11 = vrot.slane %v13341_v2, 5  ;;  %v13354_v60 = vld [vmem:[#allocation63_spill] sm:$0xff] }
 0x1a5   : > { %9203 = vmatmul.mubr.msk.bf16.gmra.mrb[60].mxu0 %vm2685_vm10, %v8117_v30  ;;  %v8225_v56 = vcombine.low %v2500_v8, %v2503_v26  ;;  %v2515_v27 = vrot.slane %v2513_v20, 4  ;;  %v2527_v25 = vrot.slane %v13342_v12, 5  ;;  %v7837_v4 = vrot.slane %v2436_v39, 9  ;;  %v13349_v26 = vld [vmem:[#allocation61_spill] sm:$0xff] }
 0x1a6   : > { %9208 = vmatprep.mubr.msk.bf16.mxu0 %vm2685_vm10, %v11652_v33  ;;  %v2432_v33 = vsel %vm10181_vm11, %v2427_v48, %v2431_v24  ;;  %v2514_v51 = vsel %vm10710_vm14, %v7836_v18, %v2513_v20  ;;  %v2523_v30 = vrot.slane %v13343_v63, 5  ;;  %v7838_v37 = vrot.slane %v2437_v52, 9  ;;  %v2438_v48 = vld [vmem:[#allocation2 + $0x54] sm:$0xe]  ;;  %v13379_v12 = vld [vmem:[#allocation37_spill] sm:$0xff] }
 0x1a7   : > { %v12228_v50 = vcombine.low %v2422_v13, %v2432_v33  ;;  %v2517_v53 = vsel %vm10710_vm14, %v2515_v27, %v2516_v11  ;;  %v2529_v6 = vrot.slane %v2527_v25, 4  ;;  %v2530_v62 = vrot.slane %v13344_v35, 5  ;;  %v13347_v13 = vld [vmem:[#allocation56_spill] sm:$0xff]  ;;  %v13352_v20 = vld [vmem:[#allocation62_spill] sm:$0xff]  ;;  %v13368_v11 = vld [vmem:[#allocation7_spill] sm:$0xff] }
 0x1a8   : > { %v8227_v40 = vcombine.low %v2514_v51, %v2517_v53  ;;  %v2534_v15 = vrot.slane %v13346_v43, 5  ;;  %v2528_v44 = vsel %vm10710_vm14, %v7838_v37, %v2527_v25  ;;  %v7839_v19 = vrot.slane %v2438_v48, 9  ;;  %v13366_v27 = vld [vmem:[#allocation72_spill] sm:$0xff]  ;;  %v13375_v51 = vld [vmem:[#allocation11_spill] sm:$0xff]  ;;  %v13382_v52 = vld [vmem:[#allocation34_spill] sm:$0xff] }
 0x1a9   : > { %9335 = vmatmul.mubr.msk.bf16.gmra.mrb[56].mxu1 %vm2685_vm10, %v12200_v22  ;;  %v2531_v0 = vsel %vm10710_vm14, %v2529_v6, %v2530_v62  ;;  %v2537_v33 = vrot.slane %v13347_v13, 5  ;;  %v13377_v53 = vld [vmem:[#allocation76_spill] sm:$0xff]  ;;  %v13386_v6 = vld [vmem:[#allocation39_spill] sm:$0xff] }
 0x1aa   : > { %9338 = vmatprep.mubr.msk.bf16.mxu1 %vm2685_vm10, %v12204_v23  ;;  %v8229_v10 = vcombine.low %v2528_v44, %v2531_v0  ;;  %v2536_v36 = vrot.slane %v2534_v15, 4  ;;  %v13380_v25 = vld [vmem:[#allocation12_spill] sm:$0xff] }
 0x1ab   : > { %v12369_v63 = vld [vmem:[%s13083_s3] ss:$0 sm:$0xff] }
 0x1ac   : > { %v2538_v8 = vsel %vm10710_vm14, %v2536_v36, %v2537_v33  ;;  %v13388_v48 = vld [vmem:[#allocation20_spill] sm:$0xff] }
 0x1ad   : > { %9209 = vmatmul.mubr.msk.bf16.vlgmr.msra.gmra.mrb[32].mxu0 %vm2685_vm10, %v11661_v14  ;;  %v2507_v14 = vsel %vm10710_vm14, %v7835_v9, %v2506_v28  ;;  %v2535_v28 = vsel %vm10710_vm14, %v7839_v19, %v2534_v15  ;;  %v13358_v9 = vld [vmem:[#allocation66_spill] sm:$0xff]  ;;  %v13389_v19 = vld [vmem:[#allocation24_spill] sm:$0xff] }
 0x1ae   : > { %9212 = vmatprep.mubr.msk.bf16.mxu0 %vm2685_vm10, %v11709_v54  ;;  %9241 = vmatpush3.bf16.msra.mxu0 %v11771_v45  ;;  %v2510_v54 = vsel %vm10710_vm14, %v2508_v49, %v2509_v34  ;;  %v2520_v45 = vrot.slane %v11575_v61, 5 }
 0x1af   : > { %9274 = vmatprep.subr.bf16.mxu0 %v12219_v32  ;;  %v8226_v57 = vcombine.low %v2507_v14, %v2510_v54  ;;  %v13370_v14 = vld [vmem:[#allocation73_spill] sm:$0xff] }
 0x1b0   : > { %v2522_v61 = vrot.slane %v2520_v45, 4 }
 0x1b1   : > { %9339 = vmatmul.mubr.msk.bf16.gmra.mrb[60].mxu1 %vm2685_vm10, %v12228_v50 }
 0x1b2   : > { %9344 = vmatprep.mubr.msk.bf16.mxu1 %vm2685_vm10, %v8225_v56  ;;  %v2524_v5 = vsel %vm10710_vm14, %v2522_v61, %v2523_v30 }
 0x1b5   : > { %9213 = vmatmul.mubr.msk.bf16.gmra.mrb[36].mxu0 %vm2685_vm10, %v11728_v31  ;;  %v13345_v31 = vld [vmem:[#allocation57_spill] sm:$0xff] }
 0x1b6   : > { %9216 = vmatprep.mubr.msk.bf16.mxu0 %vm2685_vm10, %v11796_v29  ;;  %v2521_v29 = vsel %vm10710_vm14, %v7837_v4, %v2520_v45  ;;  %v13374_v45 = vld [vmem:[#allocation8_spill] sm:$0xff]  ;;  %v13385_v4 = vld [vmem:[#allocation19_spill] sm:$0xff] }
 0x1b7   : > { %v8228_v24 = vcombine.low %v2521_v29, %v2524_v5  ;;  %v13387_v5 = vld [vmem:[#allocation40_spill] sm:$0xff] }
 0x1b9   : > { %9345 = vmatmul.mubr.msk.bf16.vlgmr.msra.gmra.mrb[32].mxu1 %vm2685_vm10, %v8226_v57  ;;  %v13384_v57 = vld [vmem:[#allocation16_spill] sm:$0xff] }
 0x1ba   : > { %9377 = vmatpush3.bf16.msra.mxu1 %v13345_v31  ;;  %9348 = vmatprep.mubr.msk.bf16.mxu1 %vm2685_vm10, %v8227_v40  ;;  %v12362_v40 = vld [vmem:[%s13082_s2] ss:$0 sm:$0xff] }
 0x1bb   : > { %9410 = vmatprep.subr.bf16.mxu1 %v9916_v46 }
 0x1bd   : > { %9217 = vmatmul.mubr.msk.bf16.gmra.mrb[40].mxu0 %vm2685_vm10, %v11803_v17  ;;  %v8230_v17 = vcombine.low %v2535_v28, %v2538_v8 }
 0x1be   : > { %9220 = vmatprep.mubr.msk.bf16.mxu0 %vm2685_vm10, %v11853_v42  ;;  %v13348_v42 = vld [vmem:[#allocation59_spill] sm:$0xff] }
 0x1bf   : > { %v13350_v55 = vcombine.low %v13348_v42, %v13349_v26 }
 0x1c1   : > { %9349 = vmatmul.mubr.msk.bf16.gmra.mrb[36].mxu1 %vm2685_vm10, %v8228_v24 }
 0x1c2   : > { %9352 = vmatprep.mubr.msk.bf16.mxu1 %vm2685_vm10, %v8229_v10 }
 0x1c5   : > { %9221 = vmatmul.mubr.msk.bf16.gmra.mrb[44].mxu0 %vm2685_vm10, %v11863_v59  ;;  %v13353_v59 = vcombine.low %v13351_v1, %v13352_v20  ;;  %v13390_v1 = vld [vmem:[#allocation41_spill] sm:$0xff] }
 0x1c6   : > { %9224 = vmatprep.mubr.msk.bf16.mxu0 %vm2685_vm10, %v12099_v38  ;;  %v13355_v38 = vld [vmem:[#allocation65_spill] sm:$0xff] }
 0x1c7   : > { %v13356_v56 = vcombine.low %v13354_v60, %v13355_v38 }
 0x1c9   : > { %9353 = vmatmul.mubr.msk.bf16.gmra.mrb[40].mxu1 %vm2685_vm10, %v8230_v17 }
 0x1ca   : > { %9356 = vmatprep.mubr.msk.bf16.mxu1 %vm2685_vm10, %v13350_v55 }
 0x1cd   : > { %9225 = vmatmul.mubr.msk.bf16.gmra.mrb[48].mxu0 %vm2685_vm10, %v12151_v7  ;;  %v13357_v7 = vld [vmem:[#allocation64_spill] sm:$0xff] }
 0x1ce   : > { %9228 = vmatprep.mubr.msk.bf16.mxu0 %vm2685_vm10, %v12154_v41  ;;  %v13359_v49 = vcombine.low %v13357_v7, %v13358_v9  ;;  %v13360_v41 = vld [vmem:[#allocation67_spill] sm:$0xff]  ;;  %v13391_v7 = vld [vmem:[#allocation42_spill] sm:$0xff] }
 0x1cf   : > { %v13362_v34 = vcombine.low %v13360_v41, %v13361_v47 }
 0x1d1   : > { %9357 = vmatmul.mubr.msk.bf16.gmra.mrb[44].mxu1 %vm2685_vm10, %v13353_v59 }
 0x1d2   : > { %9360 = vmatprep.mubr.msk.bf16.mxu1 %vm2685_vm10, %v13356_v56 }
 0x1d5   : > { %9229 = vmatmul.mubr.msk.bf16.gmra.mrb[52].mxu0 %vm2685_vm10, %v12179_v16  ;;  %v13363_v16 = vld [vmem:[#allocation69_spill] sm:$0xff] }
 0x1d6   : > { %9232 = vmatprep.mubr.msk.bf16.mxu0 %vm2685_vm10, %v12182_v58  ;;  %v13364_v18 = vcombine.low %v11982_v3, %v13363_v16  ;;  %v13365_v58 = vld [vmem:[#allocation70_spill] sm:$0xff]  ;;  %v13372_v3 = vld [vmem:[#allocation75_spill] sm:$0xff]  ;;  %v13392_v16 = vld [vmem:[#allocation25_spill] sm:$0xff] }
 0x1d7   : > { %v13367_v2 = vcombine.low %v13365_v58, %v13366_v27 }
 0x1d9   : > { %9361 = vmatmul.mubr.msk.bf16.gmra.mrb[48].mxu1 %vm2685_vm10, %v13359_v49 }
 0x1da   : > { %9364 = vmatprep.mubr.msk.bf16.mxu1 %vm2685_vm10, %v13362_v34 }
 0x1dd   : > { %9233 = vmatmul.mubr.msk.bf16.gmra.mrb[56].mxu0 %vm2685_vm10, %v12200_v22  ;;  %v13369_v22 = vld [vmem:[#allocation71_spill] sm:$0xff] }
 0x1de   : > { %9236 = vmatprep.mubr.msk.bf16.mxu0 %vm2685_vm10, %v12204_v23  ;;  %v13371_v54 = vcombine.low %v13369_v22, %v13370_v14  ;;  %v13373_v23 = vcombine.low %v12045_v21, %v13372_v3  ;;  %v13381_v21 = vld [vmem:[#allocation15_spill] sm:$0xff]  ;;  %v13393_v22 = vld [vmem:[#allocation28_spill] sm:$0xff] }
 0x1e1   : > { %9365 = vmatmul.mubr.msk.bf16.gmra.mrb[52].mxu1 %vm2685_vm10, %v13364_v18 }
 0x1e2   : > { %9368 = vmatprep.mubr.msk.bf16.mxu1 %vm2685_vm10, %v13367_v2 }
 0x1e5   : > { %9237 = vmatmul.mubr.msk.bf16.gmra.mrb[60].mxu0 %vm2685_vm10, %v12228_v50  ;;  %v13376_v50 = vld [vmem:[#allocation74_spill] sm:$0xff] }
 0x1e6   : > { %9242 = vmatprep.mubr.msk.bf16.mxu0 %vm2685_vm10, %v13368_v11  ;;  %v13378_v39 = vcombine.low %v13376_v50, %v13377_v53 }
 0x1e9   : > { %9369 = vmatmul.mubr.msk.bf16.gmra.mrb[56].mxu1 %vm2685_vm10, %v13371_v54 }
 0x1ea   : > { %9372 = vmatprep.mubr.msk.bf16.mxu1 %vm2685_vm10, %v13373_v23 }
 0x1ed   : > { %9243 = vmatmul.mubr.msk.bf16.vlgmr.msra.gmra.mrb[32].mxu0 %vm2685_vm10, %v13374_v45 }
 0x1ee   : > { %9246 = vmatprep.mubr.msk.bf16.mxu0 %vm2685_vm10, %v13375_v51  ;;  %9275 = vmatpush3.bf16.msra.mxu0 %v12219_v32  ;;  %v13383_v32 = vld [vmem:[#allocation38_spill] sm:$0xff] }
 0x1f1   : > { %9373 = vmatmul.mubr.msk.bf16.gmra.mrb[60].mxu1 %vm2685_vm10, %v13378_v39 }
 0x1f2   : > { %9378 = vmatprep.mubr.msk.bf16.mxu1 %vm2685_vm10, %v13379_v12 }
 0x1f5   : > { %9247 = vmatmul.mubr.msk.bf16.gmra.mrb[36].mxu0 %vm2685_vm10, %v13380_v25 }
 0x1f6   : > { %9250 = vmatprep.mubr.msk.bf16.mxu0 %vm2685_vm10, %v13381_v21 }
 0x1f9   : > { %9379 = vmatmul.mubr.msk.bf16.vlgmr.msra.gmra.mrb[32].mxu1 %vm2685_vm10, %v13382_v52 }
 0x1fa   : > { %9411 = vmatpush3.bf16.msra.mxu1 %v9916_v46  ;;  %9382 = vmatprep.mubr.msk.bf16.mxu1 %vm2685_vm10, %v13383_v32 }
 0x1fd   : > { %9251 = vmatmul.mubr.msk.bf16.gmra.mrb[40].mxu0 %vm2685_vm10, %v13384_v57  ;;  %v9006_v61 = vpop.f32.mrb[0].mxu0 }
 0x1fe   : > { %9254 = vmatprep.mubr.msk.bf16.mxu0 %vm2685_vm10, %v13385_v4  ;;  %v6506_v30 = vmul.f32 %v9006_v61, %v12362_v40  ;;  %v3611_v37 = vpop.f32.mrb[1].mxu0 }
 0x1ff   : > { %v6504_v35 = vmul.f32 %v12362_v40, %v3611_v37  ;;  %v9007_v62 = vpop.f32.mrb[2].mxu0 }
 0x200   : > { %v6545_v46 = vadd.f32 %v12369_v63, %v6506_v30  ;;  %v6507_v31 = vmul.f32 %v9007_v62, %v12362_v40  ;;  %v3614_v29 = vpop.f32.mrb[3].mxu0 }
 0x201   : > { %9383 = vmatmul.mubr.msk.bf16.gmra.mrb[36].mxu1 %vm2685_vm10, %v13386_v6  ;;  %v6543_v43 = vadd.f32 %v12369_v63, %v6504_v35  ;;  %v6505_v15 = vmul.f32 %v12362_v40, %v3614_v29 }
 0x202   : > { %9386 = vmatprep.mubr.msk.bf16.mxu1 %vm2685_vm10, %v13387_v5  ;;  %v6577_v44 = vmax.f32 %v6545_v46, 0.0  ;;  %v6546_v0 = vadd.f32 %v12369_v63, %v6507_v31  ;;  %v13394_v31 = vld [vmem:[#allocation43_spill] sm:$0xff] }
 0x203   : > { %v6575_v24 = vmax.f32 %v6543_v43, 0.0  ;;  %v6544_v10 = vadd.f32 %v12369_v63, %v6505_v15 }
 0x204   : > { %v8502_v36 = vpack.c.bf16 %v6577_v44, %v6577_v44  ;;  %v6578_v13 = vmax.f32 %v6546_v0, 0.0 }
 0x205   : > { %9255 = vmatmul.mubr.msk.bf16.gmra.mrb[44].mxu0 %vm2685_vm10, %v13388_v48  ;;  %v8500_v33 = vpack.c.bf16 %v6575_v24, %v6575_v24  ;;  %v6576_v28 = vmax.f32 %v6544_v10, 0.0  ;;  %v9010_v8 = vpop.f32.mrb[4].mxu0 }
 0x206   : > { %9258 = vmatprep.mubr.msk.bf16.mxu0 %vm2685_vm10, %v13389_v19  ;;  %6737 = vst.msk [vmem:[%s12388_s19 + $0x10] sm:$0xf] %vm248_vm0, %v8502_v36  ;;  %v8503_v17 = vpack.c.bf16 %v6578_v13, %v6578_v13  ;;  %v6510_v42 = vmul.f32 %v9010_v8, %v12362_v40  ;;  %v3627_v26 = vpop.f32.mrb[5].mxu0  ;;  %v13395_v36 = vld [vmem:[#allocation44_spill] sm:$0xff] }
 0x207   : > { %6735 = vst.msk [vmem:[%s12388_s19] sm:$0xf] %vm248_vm0, %v8500_v33  ;;  %v8501_v55 = vpack.c.bf16 %v6576_v28, %v6576_v28  ;;  %v6508_v20 = vmul.f32 %v12362_v40, %v3627_v26  ;;  %v9011_v59 = vpop.f32.mrb[6].mxu0 }
 0x208   : > { %6738 = vst.msk [vmem:[%s12388_s19 + $0x14] sm:$0xf] %vm248_vm0, %v8503_v17  ;;  %v6549_v60 = vadd.f32 %v12369_v63, %v6510_v42  ;;  %v6511_v38 = vmul.f32 %v9011_v59, %v12362_v40  ;;  %v3630_v56 = vpop.f32.mrb[7].mxu0 }
 0x209   : > { %9387 = vmatmul.mubr.msk.bf16.gmra.mrb[40].mxu1 %vm2685_vm10, %v13390_v1  ;;  %6736 = vst.msk [vmem:[%s12388_s19 + $0x4] sm:$0xf] %vm248_vm0, %v8501_v55  ;;  %v6547_v9 = vadd.f32 %v12369_v63, %v6508_v20  ;;  %v6509_v49 = vmul.f32 %v12362_v40, %v3630_v56  ;;  %v13396_v20 = vld [vmem:[#allocation29_spill] sm:$0xff] }
 0x20a   : > { %9390 = vmatprep.mubr.msk.bf16.mxu1 %vm2685_vm10, %v13391_v7  ;;  %v6581_v41 = vmax.f32 %v6549_v60, 0.0  ;;  %v6550_v34 = vadd.f32 %v12369_v63, %v6511_v38 }
 0x20b   : > { %v6579_v18 = vmax.f32 %v6547_v9, 0.0  ;;  %v6548_v2 = vadd.f32 %v12369_v63, %v6509_v49  ;;  %v13397_v9 = vld [vmem:[#allocation32_spill] sm:$0xff] }
 0x20c   : > { %v9142_v47 = vpop.f32.mrb[0].mxu1  ;;  %v8506_v14 = vpack.c.bf16 %v6581_v41, %v6581_v41  ;;  %v6582_v54 = vmax.f32 %v6550_v34, 0.0 }
 0x20d   : > { %9259 = vmatmul.mubr.msk.bf16.gmra.mrb[48].mxu0 %vm2685_vm10, %v13392_v16  ;;  %v6776_v58 = vmul.f32 %v9142_v47, %v12362_v40  ;;  %v4547_v27 = vpop.f32.mrb[1].mxu1  ;;  %v8504_v50 = vpack.c.bf16 %v6579_v18, %v6579_v18  ;;  %v6580_v53 = vmax.f32 %v6548_v2, 0.0 }
 0x20e   : > { %9262 = vmatprep.mubr.msk.bf16.mxu0 %vm2685_vm10, %v13393_v22  ;;  %v6774_v3 = vmul.f32 %v12362_v40, %v4547_v27  ;;  %v9143_v23 = vpop.f32.mrb[2].mxu1  ;;  %v9014_v52 = vpop.f32.mrb[8].mxu0  ;;  %6741 = vst.msk [vmem:[%s12388_s19 + $0x30] sm:$0xf] %vm248_vm0, %v8506_v14  ;;  %v8507_v61 = vpack.c.bf16 %v6582_v54, %v6582_v54 }
 0x20f   : > { %v6777_v39 = vmul.f32 %v9143_v23, %v12362_v40  ;;  %v4550_v12 = vpop.f32.mrb[3].mxu1  ;;  %v6815_v32 = vadd.f32 %v12369_v63, %v6776_v58  ;;  %v6514_v37 = vmul.f32 %v9014_v52, %v12362_v40  ;;  %v3643_v6 = vpop.f32.mrb[9].mxu0  ;;  %6739 = vst.msk [vmem:[%s12388_s19 + $0x20] sm:$0xf] %vm248_vm0, %v8504_v50  ;;  %v8505_v62 = vpack.c.bf16 %v6580_v53, %v6580_v53 }
 0x210   : > { %v6775_v30 = vmul.f32 %v12362_v40, %v4550_v12  ;;  %v6813_v35 = vadd.f32 %v12369_v63, %v6774_v3  ;;  %v6512_v29 = vmul.f32 %v12362_v40, %v3643_v6  ;;  %v9015_v43 = vpop.f32.mrb[10].mxu0  ;;  %6742 = vst.msk [vmem:[%s12388_s19 + $0x34] sm:$0xf] %vm248_vm0, %v8507_v61 }
 0x211   : > { %v6816_v46 = vadd.f32 %v12369_v63, %v6777_v39  ;;  %9391 = vmatmul.mubr.msk.bf16.gmra.mrb[44].mxu1 %vm2685_vm10, %v13394_v31  ;;  %v6847_v5 = vmax.f32 %v6815_v32, 0.0  ;;  %v6553_v44 = vadd.f32 %v12369_v63, %v6514_v37  ;;  %v6515_v0 = vmul.f32 %v9015_v43, %v12362_v40  ;;  %v3646_v10 = vpop.f32.mrb[11].mxu0  ;;  %6740 = vst.msk [vmem:[%s12388_s19 + $0x24] sm:$0xf] %vm248_vm0, %v8505_v62 }
 0x212   : > { %v6814_v15 = vadd.f32 %v12369_v63, %v6775_v30  ;;  %v6845_v24 = vmax.f32 %v6813_v35, 0.0  ;;  %9394 = vmatprep.mubr.msk.bf16.mxu1 %vm2685_vm10, %v13395_v36  ;;  %v6551_v33 = vadd.f32 %v12369_v63, %v6512_v29  ;;  %v6513_v8 = vmul.f32 %v12362_v40, %v3646_v10  ;;  %v13398_v30 = vld [vmem:[#allocation45_spill] sm:$0xff] }
 0x213   : > { %v6848_v13 = vmax.f32 %v6816_v46, 0.0  ;;  %v8534_v28 = vpack.c.bf16 %v6847_v5, %v6847_v5  ;;  %v6585_v42 = vmax.f32 %v6553_v44, 0.0  ;;  %v6554_v55 = vadd.f32 %v12369_v63, %v6515_v0  ;;  %v13399_v5 = vld [vmem:[#allocation22_spill] sm:$0xff] }
 0x214   : > { %v6846_v17 = vmax.f32 %v6814_v15, 0.0  ;;  %v9146_v26 = vpop.f32.mrb[4].mxu1  ;;  %v8532_v1 = vpack.c.bf16 %v6845_v24, %v6845_v24  ;;  %v6583_v60 = vmax.f32 %v6551_v33, 0.0  ;;  %v6552_v7 = vadd.f32 %v12369_v63, %v6513_v8 }
 0x215   : > { %9263 = vmatmul.mubr.msk.bf16.gmra.mrb[52].mxu0 %vm2685_vm10, %v13396_v20  ;;  %v8535_v59 = vpack.c.bf16 %v6848_v13, %v6848_v13  ;;  %v6780_v38 = vmul.f32 %v9146_v26, %v12362_v40  ;;  %6977 = vrot.lane.b32.xlu1 %v8534_v28, %s9953_s20  ;;  %v4563_v56 = vpop.f32.mrb[5].mxu1  ;;  %v8510_v41 = vpack.c.bf16 %v6585_v42, %v6585_v42  ;;  %v6586_v47 = vmax.f32 %v6554_v55, 0.0  ;;  %v13400_v28 = vld [vmem:[#allocation33_spill] sm:$0xff] }
 0x216   : > { %9266 = vmatprep.mubr.msk.bf16.mxu0 %vm2685_vm10, %v13397_v9  ;;  %v8533_v49 = vpack.c.bf16 %v6846_v17, %v6846_v17  ;;  %v6778_v34 = vmul.f32 %v12362_v40, %v4563_v56  ;;  %6973 = vrot.lane.b32.xlu0 %v8532_v1, %s9953_s20  ;;  %v9147_v18 = vpop.f32.mrb[6].mxu1  ;;  %v8508_v58 = vpack.c.bf16 %v6583_v60, %v6583_v60  ;;  %v6584_v2 = vmax.f32 %v6552_v7, 0.0  ;;  %v9018_v3 = vpop.f32.mrb[12].mxu0  ;;  %v13401_v1 = vld [vmem:[#allocation35_spill] sm:$0xff] }
 0x217   : > { %v6819_v27 = vadd.f32 %v12369_v63, %v6780_v38  ;;  %v6781_v14 = vmul.f32 %v9147_v18, %v12362_v40  ;;  %v4566_v54 = vpop.f32.mrb[7].mxu1  ;;  %6745 = vst.msk [vmem:[%s12388_s19 + $0x50] sm:$0xf] %vm248_vm0, %v8510_v41  ;;  %v8511_v23 = vpack.c.bf16 %v6586_v47, %v6586_v47  ;;  %v6518_v39 = vmul.f32 %v9018_v3, %v12362_v40  ;;  %v3659_v12 = vpop.f32.mrb[13].mxu0 }
 0x218   : > { %v6817_v50 = vadd.f32 %v12369_v63, %v6778_v34  ;;  %v6779_v53 = vmul.f32 %v12362_v40, %v4566_v54  ;;  %6743 = vst.msk [vmem:[%s12388_s19 + $0x40] sm:$0xf] %vm248_vm0, %v8508_v58  ;;  %v8509_v32 = vpack.c.bf16 %v6584_v2, %v6584_v2  ;;  %v6516_v37 = vmul.f32 %v12362_v40, %v3659_v12  ;;  %v9019_v6 = vpop.f32.mrb[14].mxu0 }
 0x219   : > { %v6851_v52 = vmax.f32 %v6819_v27, 0.0  ;;  %v6820_v61 = vadd.f32 %v12369_v63, %v6781_v14  ;;  %9395 = vmatmul.mubr.msk.bf16.gmra.mrb[48].mxu1 %vm2685_vm10, %v13398_v30  ;;  %6979 = vrot.lane.b32.xlu1 %v8535_v59, %s9953_s20  ;;  %6746 = vst.msk [vmem:[%s12388_s19 + $0x54] sm:$0xf] %vm248_vm0, %v8511_v23  ;;  %v6557_v46 = vadd.f32 %v12369_v63, %v6518_v39  ;;  %v3662_v29 = vpop.f32.mrb[15].mxu0  ;;  %v13402_v39 = vld [vmem:[#allocation46_spill] sm:$0xff] }
 0x21a   : > { %v6849_v35 = vmax.f32 %v6817_v50, 0.0  ;;  %v6818_v62 = vadd.f32 %v12369_v63, %v6779_v53  ;;  %6975 = vrot.lane.b32.xlu0 %v8533_v49, %s9953_s20  ;;  %v6519_v31 = vmul.f32 %v9019_v6, %v12362_v40  ;;  %9398 = vmatprep.mubr.msk.bf16.mxu1 %vm2685_vm10, %v13399_v5  ;;  %6744 = vst.msk [vmem:[%s12388_s19 + $0x44] sm:$0xf] %vm248_vm0, %v8509_v32 }
 0x21b   : > { %v8538_v43 = vpack.c.bf16 %v6851_v52, %v6851_v52  ;;  %v6852_v15 = vmax.f32 %v6820_v61, 0.0  ;;  %v6555_v44 = vadd.f32 %v12369_v63, %v6516_v37  ;;  %v6517_v0 = vmul.f32 %v12362_v40, %v3662_v29 }
 0x21c   : > { %v8536_v24 = vpack.c.bf16 %v6849_v35, %v6849_v35  ;;  %v6850_v10 = vmax.f32 %v6818_v62, 0.0  ;;  %v6589_v36 = vmax.f32 %v6557_v46, 0.0  ;;  %v9150_v13 = vpop.f32.mrb[8].mxu1  ;;  %v6558_v33 = vadd.f32 %v12369_v63, %v6519_v31  ;;  %v13403_v35 = vld [vmem:[#allocation48_spill] sm:$0xff] }
 0x21d   : > { %9267 = vmatmul.mubr.msk.bf16.gmra.mrb[56].mxu0 %vm2685_vm10, %v13400_v28  ;;  %v8539_v8 = vpack.c.bf16 %v6852_v15, %v6852_v15  ;;  %v6587_v17 = vmax.f32 %v6555_v44, 0.0  ;;  %v6784_v42 = vmul.f32 %v9150_v13, %v12362_v40  ;;  %v4579_v26 = vpop.f32.mrb[9].mxu1  ;;  %v6556_v55 = vadd.f32 %v12369_v63, %v6517_v0 }
 0x21e   : > { %9270 = vmatprep.mubr.msk.bf16.mxu0 %vm2685_vm10, %v13401_v1  ;;  %v8537_v59 = vpack.c.bf16 %v6850_v10, %v6850_v10  ;;  %v8514_v60 = vpack.c.bf16 %v6589_v36, %v6589_v36  ;;  %v6590_v38 = vmax.f32 %v6558_v33, 0.0  ;;  %v6782_v56 = vmul.f32 %v12362_v40, %v4579_v26  ;;  %6985 = vrot.lane.b32.xlu0 %v8538_v43, %s9953_s20  ;;  %v9151_v7 = vpop.f32.mrb[10].mxu1  ;;  %v9022_v58 = vpop.f32.mrb[16].mxu0 }
 0x21f   : > { %v8512_v49 = vpack.c.bf16 %v6587_v17, %v6587_v17  ;;  %v6823_v41 = vadd.f32 %v12369_v63, %v6784_v42  ;;  %v6588_v47 = vmax.f32 %v6556_v55, 0.0  ;;  %v6785_v34 = vmul.f32 %v9151_v7, %v12362_v40  ;;  %6987 = vrot.lane.b32.xlu1 %v8539_v8, %s9953_s20  ;;  %v4582_v18 = vpop.f32.mrb[11].mxu1  ;;  %v3675_v3 = vpop.f32.mrb[17].mxu0  ;;  %v13405_v17 = vld [vmem:[#allocation3_spill] sm:$0xff] }
 0x220   : > { %6749 = vst.msk [vmem:[%s12388_s19 + $0x70] sm:$0xf] %vm248_vm0, %v8514_v60  ;;  %v8515_v27 = vpack.c.bf16 %v6590_v38, %v6590_v38  ;;  %v6821_v2 = vadd.f32 %v12369_v63, %v6782_v56  ;;  %v6783_v14 = vmul.f32 %v12362_v40, %v4582_v18  ;;  %v6522_v54 = vmul.f32 %v9022_v58, %v12362_v40  ;;  %v9023_v52 = vpop.f32.mrb[18].mxu0 }
 0x221   : > { %6747 = vst.msk [vmem:[%s12388_s19 + $0x60] sm:$0xf] %vm248_vm0, %v8512_v49  ;;  %v6855_v23 = vmax.f32 %v6823_v41, 0.0  ;;  %v8513_v50 = vpack.c.bf16 %v6588_v47, %v6588_v47  ;;  %v6824_v53 = vadd.f32 %v12369_v63, %v6785_v34  ;;  %9399 = vmatmul.mubr.msk.bf16.gmra.mrb[52].mxu1 %vm2685_vm10, %v13402_v39  ;;  %v6520_v12 = vmul.f32 %v12362_v40, %v3675_v3  ;;  %v3678_v6 = vpop.f32.mrb[19].mxu0 }
 0x222   : > { %6750 = vst.msk [vmem:[%s12388_s19 + $0x74] sm:$0xf] %vm248_vm0, %v8515_v27  ;;  %v6853_v32 = vmax.f32 %v6821_v2, 0.0  ;;  %v6822_v61 = vadd.f32 %v12369_v63, %v6783_v14  ;;  %6981 = vrot.lane.b32.xlu0 %v8536_v24, %s9953_s20  ;;  %v6561_v30 = vadd.f32 %v12369_v63, %v6522_v54  ;;  %v6523_v37 = vmul.f32 %v9023_v52, %v12362_v40  ;;  %v13404_v24 = vld [vmem:[#allocation36_spill] sm:$0xff] }
 0x223   : > { %9402 = vmatprep.mubr.msk.bf16.mxu1 %vm2685_vm10, %v13403_v35  ;;  %v8542_v62 = vpack.c.bf16 %v6855_v23, %v6855_v23  ;;  %6748 = vst.msk [vmem:[%s12388_s19 + $0x64] sm:$0xf] %vm248_vm0, %v8513_v50  ;;  %v6856_v46 = vmax.f32 %v6824_v53, 0.0  ;;  %6983 = vrot.lane.b32.xlu1 %v8537_v59, %s9953_s20  ;;  %v6559_v31 = vadd.f32 %v12369_v63, %v6520_v12  ;;  %v13406_v23 = vld [vmem:[#allocation47_spill] sm:$0xff] }
 0x224   : > { %v6521_v29 = vmul.f32 %v12362_v40, %v3678_v6  ;;  %v8540_v5 = vpack.c.bf16 %v6853_v32, %v6853_v32  ;;  %v6854_v43 = vmax.f32 %v6822_v61, 0.0  ;;  %v6593_v15 = vmax.f32 %v6561_v30, 0.0  ;;  %v9154_v44 = vpop.f32.mrb[12].mxu1  ;;  %v13407_v30 = vld [vmem:[#allocation49_spill] sm:$0xff] }
 0x225   : > { %v6562_v0 = vadd.f32 %v12369_v63, %v6523_v37  ;;  %9271 = vmatmul.mubr.msk.bf16.gmra.mrb[60].mxu0 %vm2685_vm10, %v13404_v24  ;;  %v8543_v10 = vpack.c.bf16 %v6856_v46, %v6856_v46  ;;  %v6591_v36 = vmax.f32 %v6559_v31, 0.0  ;;  %v6788_v13 = vmul.f32 %v9154_v44, %v12362_v40  ;;  %v4595_v33 = vpop.f32.mrb[13].mxu1 }
 0x226   : > { %v6560_v8 = vadd.f32 %v12369_v63, %v6521_v29  ;;  %9276 = vmatprep.mubr.msk.bf16.mxu0 %vm2685_vm10, %v13405_v17  ;;  %v8541_v42 = vpack.c.bf16 %v6854_v43, %v6854_v43  ;;  %v8518_v26 = vpack.c.bf16 %v6593_v15, %v6593_v15  ;;  %v6786_v59 = vmul.f32 %v12362_v40, %v4595_v33  ;;  %v9155_v60 = vpop.f32.mrb[14].mxu1  ;;  %v9026_v47 = vpop.f32.mrb[20].mxu0  ;;  %v13408_v15 = vld [vmem:[#allocation4_spill] sm:$0xff]  ;;  %v13409_v33 = vld [vmem:[#allocation5_spill] sm:$0xff] }
 0x227   : > { %v6594_v55 = vmax.f32 %v6562_v0, 0.0  ;;  %6993 = vrot.lane.b32.xlu0 %v8542_v62, %s9953_s20  ;;  %v8516_v38 = vpack.c.bf16 %v6591_v36, %v6591_v36  ;;  %v6827_v56 = vadd.f32 %v12369_v63, %v6788_v13  ;;  %v6789_v49 = vmul.f32 %v9155_v60, %v12362_v40  ;;  %6995 = vrot.lane.b32.xlu1 %v8543_v10, %s9953_s20  ;;  %v4598_v41 = vpop.f32.mrb[15].mxu1  ;;  %v3691_v2 = vpop.f32.mrb[21].mxu0 }
 0x228   : > { %v6592_v7 = vmax.f32 %v6560_v8, 0.0  ;;  %6753 = vst.msk [vmem:[%s12388_s19 + $0x90] sm:$0xf] %vm248_vm0, %v8518_v26  ;;  %v6825_v18 = vadd.f32 %v12369_v63, %v6786_v59  ;;  %v6787_v58 = vmul.f32 %v12362_v40, %v4598_v41  ;;  %v6526_v27 = vmul.f32 %v9026_v47, %v12362_v40  ;;  %v9027_v53 = vpop.f32.mrb[22].mxu0 }
 0x229   : > { %v8519_v34 = vpack.c.bf16 %v6594_v55, %v6594_v55  ;;  %6751 = vst.msk [vmem:[%s12388_s19 + $0x80] sm:$0xf] %vm248_vm0, %v8516_v38  ;;  %v6859_v14 = vmax.f32 %v6827_v56, 0.0  ;;  %v6828_v3 = vadd.f32 %v12369_v63, %v6789_v49  ;;  %9403 = vmatmul.mubr.msk.bf16.gmra.mrb[56].mxu1 %vm2685_vm10, %v13406_v23  ;;  %v6524_v50 = vmul.f32 %v12362_v40, %v3691_v2  ;;  %v3694_v61 = vpop.f32.mrb[23].mxu0 }
 0x22a   : > { %v8517_v54 = vpack.c.bf16 %v6592_v7, %v6592_v7  ;;  %v6857_v39 = vmax.f32 %v6825_v18, 0.0  ;;  %v6826_v12 = vadd.f32 %v12369_v63, %v6787_v58  ;;  %v6565_v52 = vadd.f32 %v12369_v63, %v6526_v27  ;;  %9406 = vmatprep.mubr.msk.bf16.mxu1 %vm2685_vm10, %v13407_v30 }
 0x22b   : > { %6754 = vst.msk [vmem:[%s12388_s19 + $0x94] sm:$0xf] %vm248_vm0, %v8519_v34  ;;  %6989 = vrot.lane.b32.xlu0 %v8540_v5, %s9953_s20  ;;  %v6527_v32 = vmul.f32 %v9027_v53, %v12362_v40  ;;  %v8546_v37 = vpack.c.bf16 %v6859_v14, %v6859_v14  ;;  %v6860_v6 = vmax.f32 %v6828_v3, 0.0  ;;  %6991 = vrot.lane.b32.xlu1 %v8541_v42, %s9953_s20 }
 0x22c   : > { %6752 = vst.msk [vmem:[%s12388_s19 + $0x84] sm:$0xf] %vm248_vm0, %v8517_v54  ;;  %v6563_v35 = vadd.f32 %v12369_v63, %v6524_v50  ;;  %v6525_v62 = vmul.f32 %v12362_v40, %v3694_v61  ;;  %v8544_v46 = vpack.c.bf16 %v6857_v39, %v6857_v39  ;;  %v6858_v31 = vmax.f32 %v6826_v12, 0.0  ;;  %v9158_v5 = vpop.f32.mrb[16].mxu1  ;;  %v13410_v54 = vld [vmem:[#allocation50_spill] sm:$0xff] }
 0x22d   : > { %v6597_v29 = vmax.f32 %v6565_v52, 0.0  ;;  %v6566_v43 = vadd.f32 %v12369_v63, %v6527_v32  ;;  %9277 = vmatmul.mubr.msk.bf16.vlgmr.msra.gmra.mrb[32].mxu0 %vm2685_vm10, %v13408_v15  ;;  %v8547_v44 = vpack.c.bf16 %v6860_v6, %v6860_v6  ;;  %v6792_v10 = vmul.f32 %v9158_v5, %v12362_v40  ;;  %v4611_v36 = vpop.f32.mrb[17].mxu1 }
 0x22e   : > { %v6595_v0 = vmax.f32 %v6563_v35, 0.0  ;;  %v6564_v13 = vadd.f32 %v12369_v63, %v6525_v62  ;;  %9280 = vmatprep.mubr.msk.bf16.mxu0 %vm2685_vm10, %v13409_v33  ;;  %v8545_v8 = vpack.c.bf16 %v6858_v31, %v6858_v31  ;;  %v6790_v26 = vmul.f32 %v12362_v40, %v4611_v36  ;;  %v9159_v55 = vpop.f32.mrb[18].mxu1  ;;  %v9030_v49 = vpop.f32.mrb[24].mxu0 }
 0x22f   : > { %v8522_v17 = vpack.c.bf16 %v6597_v29, %v6597_v29  ;;  %v6598_v42 = vmax.f32 %v6566_v43, 0.0  ;;  %7001 = vrot.lane.b32.xlu0 %v8546_v37, %s9953_s20  ;;  %v6831_v60 = vadd.f32 %v12369_v63, %v6792_v10  ;;  %v6793_v56 = vmul.f32 %v9159_v55, %v12362_v40  ;;  %7003 = vrot.lane.b32.xlu1 %v8547_v44, %s9953_s20  ;;  %v4614_v7 = vpop.f32.mrb[19].mxu1  ;;  %v3707_v58 = vpop.f32.mrb[25].mxu0  ;;  %v13411_v29 = vld [vmem:[#allocation6_spill] sm:$0xff] }
 0x230   : > { %v8520_v59 = vpack.c.bf16 %v6595_v0, %v6595_v0  ;;  %v6596_v38 = vmax.f32 %v6564_v13, 0.0  ;;  %v6829_v47 = vadd.f32 %v12369_v63, %v6790_v26  ;;  %v6791_v34 = vmul.f32 %v12362_v40, %v4614_v7  ;;  %v9031_v23 = vpop.f32.mrb[26].mxu0  ;;  %v13412_v0 = vld [vmem:[#allocation9_spill] sm:$0xff] }
 0x231   : > { %6757 = vst.msk [vmem:[%s12388_s19 + $0xb0] sm:$0xf] %vm248_vm0, %v8522_v17  ;;  %v8523_v41 = vpack.c.bf16 %v6598_v42, %v6598_v42  ;;  %v6530_v18 = vmul.f32 %v9030_v49, %v12362_v40  ;;  %v6863_v27 = vmax.f32 %v6831_v60, 0.0  ;;  %v6832_v14 = vadd.f32 %v12369_v63, %v6793_v56  ;;  %9407 = vmatmul.mubr.msk.bf16.gmra.mrb[60].mxu1 %vm2685_vm10, %v13410_v54  ;;  %v3710_v52 = vpop.f32.mrb[27].mxu0 }
 0x232   : > { %6755 = vst.msk [vmem:[%s12388_s19 + $0xa0] sm:$0xf] %vm248_vm0, %v8520_v59  ;;  %v8521_v2 = vpack.c.bf16 %v6596_v38, %v6596_v38  ;;  %v6528_v3 = vmul.f32 %v12362_v40, %v3707_v58  ;;  %v6861_v50 = vmax.f32 %v6829_v47, 0.0  ;;  %v6830_v53 = vadd.f32 %v12369_v63, %v6791_v34  ;;  %9412 = vmatprep.mubr.msk.bf16.mxu1 %vm2685_vm10, %v13368_v11 }
 0x233   : > { %6758 = vst.msk [vmem:[%s12388_s19 + $0xb4] sm:$0xf] %vm248_vm0, %v8523_v41  ;;  %6997 = vrot.lane.b32.xlu0 %v8544_v46, %s9953_s20  ;;  %v6569_v39 = vadd.f32 %v12369_v63, %v6530_v18  ;;  %v6531_v12 = vmul.f32 %v9031_v23, %v12362_v40  ;;  %v8550_v32 = vpack.c.bf16 %v6863_v27, %v6863_v27  ;;  %v6864_v61 = vmax.f32 %v6832_v14, 0.0 }
 0x234   : > { %6756 = vst.msk [vmem:[%s12388_s19 + $0xa4] sm:$0xf] %vm248_vm0, %v8521_v2  ;;  %6999 = vrot.lane.b32.xlu1 %v8545_v8, %s9953_s20  ;;  %v6567_v30 = vadd.f32 %v12369_v63, %v6528_v3  ;;  %v6529_v37 = vmul.f32 %v12362_v40, %v3710_v52  ;;  %v8548_v6 = vpack.c.bf16 %v6861_v50, %v6861_v50  ;;  %v6862_v35 = vmax.f32 %v6830_v53, 0.0  ;;  %v9162_v46 = vpop.f32.mrb[20].mxu1 }
 0x235   : > { %v6601_v62 = vmax.f32 %v6569_v39, 0.0  ;;  %v6570_v31 = vadd.f32 %v12369_v63, %v6531_v12  ;;  %9281 = vmatmul.mubr.msk.bf16.gmra.mrb[36].mxu0 %vm2685_vm10, %v13411_v29  ;;  %v8551_v11 = vpack.c.bf16 %v6864_v61, %v6864_v61  ;;  %v6796_v43 = vmul.f32 %v9162_v46, %v12362_v40  ;;  %v4627_v15 = vpop.f32.mrb[21].mxu1  ;;  %v13414_v46 = vld [vmem:[#allocation13_spill] sm:$0xff] }
 0x236   : > { %v6599_v5 = vmax.f32 %v6567_v30, 0.0  ;;  %v6568_v44 = vadd.f32 %v12369_v63, %v6529_v37  ;;  %9284 = vmatprep.mubr.msk.bf16.mxu0 %vm2685_vm10, %v13412_v0  ;;  %v8549_v10 = vpack.c.bf16 %v6862_v35, %v6862_v35  ;;  %v6794_v33 = vmul.f32 %v12362_v40, %v4627_v15  ;;  %v9163_v8 = vpop.f32.mrb[22].mxu1  ;;  %v9034_v60 = vpop.f32.mrb[28].mxu0  ;;  %v13413_v30 = vld [vmem:[#allocation10_spill] sm:$0xff] }
 0x237   : > { %v8526_v36 = vpack.c.bf16 %v6601_v62, %v6601_v62  ;;  %v6602_v13 = vmax.f32 %v6570_v31, 0.0  ;;  %7009 = vrot.lane.b32.xlu0 %v8550_v32, %s9953_s20  ;;  %v6835_v42 = vadd.f32 %v12369_v63, %v6796_v43  ;;  %v6797_v55 = vmul.f32 %v9163_v8, %v12362_v40  ;;  %v4630_v59 = vpop.f32.mrb[23].mxu1  ;;  %v3723_v41 = vpop.f32.mrb[29].mxu0 }
 0x238   : > { %v8524_v17 = vpack.c.bf16 %v6599_v5, %v6599_v5  ;;  %v6600_v26 = vmax.f32 %v6568_v44, 0.0  ;;  %7011 = vrot.lane.b32.xlu1 %v8551_v11, %s9953_s20  ;;  %v6833_v56 = vadd.f32 %v12369_v63, %v6794_v33  ;;  %v6795_v7 = vmul.f32 %v12362_v40, %v4630_v59  ;;  %v9035_v27 = vpop.f32.mrb[30].mxu0 }
 0x239   : > { %6761 = vst.msk [vmem:[%s12388_s19 + $0xd0] sm:$0xf] %vm248_vm0, %v8526_v36  ;;  %v8527_v38 = vpack.c.bf16 %v6602_v13, %v6602_v13  ;;  %v6534_v49 = vmul.f32 %v9034_v60, %v12362_v40  ;;  %v6867_v47 = vmax.f32 %v6835_v42, 0.0  ;;  %v6836_v18 = vadd.f32 %v12369_v63, %v6797_v55  ;;  %9413 = vmatmul.mubr.msk.bf16.vlgmr.msra.gmra.mrb[32].mxu1 %vm2685_vm10, %v13374_v45  ;;  %v3726_v3 = vpop.f32.mrb[31].mxu0 }
 0x23a   : > { %6759 = vst.msk [vmem:[%s12388_s19 + $0xc0] sm:$0xf] %vm248_vm0, %v8524_v17  ;;  %v8525_v34 = vpack.c.bf16 %v6600_v26, %v6600_v26  ;;  %v6532_v58 = vmul.f32 %v12362_v40, %v3723_v41  ;;  %v6834_v2 = vadd.f32 %v12369_v63, %v6795_v7  ;;  %v6535_v54 = vmul.f32 %v9035_v27, %v12362_v40 }
 0x23b   : > { %6762 = vst.msk [vmem:[%s12388_s19 + $0xd4] sm:$0xf] %vm248_vm0, %v8527_v38  ;;  %7005 = vrot.lane.b32.xlu0 %v8548_v6, %s9953_s20  ;;  %v6573_v14 = vadd.f32 %v12369_v63, %v6534_v49  ;;  %9416 = vmatprep.mubr.msk.bf16.mxu1 %vm2685_vm10, %v13375_v51  ;;  %v8554_v23 = vpack.c.bf16 %v6867_v47, %v6867_v47  ;;  %v6868_v45 = vmax.f32 %v6836_v18, 0.0  ;;  %v6865_v39 = vmax.f32 %v6833_v56, 0.0  ;;  %v13415_v49 = vld [vmem:[#allocation14_spill] sm:$0xff]  ;;  %v13416_v18 = vld [vmem:[#allocation17_spill] sm:$0xff] }
 0x23c   : > { %6760 = vst.msk [vmem:[%s12388_s19 + $0xc4] sm:$0xf] %vm248_vm0, %v8525_v34  ;;  %7007 = vrot.lane.b32.xlu1 %v8549_v10, %s9953_s20  ;;  %v6571_v50 = vadd.f32 %v12369_v63, %v6532_v58  ;;  %v6533_v53 = vmul.f32 %v12362_v40, %v3726_v3  ;;  %v6866_v12 = vmax.f32 %v6834_v2, 0.0  ;;  %v9166_v32 = vpop.f32.mrb[24].mxu1  ;;  %v6574_v61 = vadd.f32 %v12369_v63, %v6535_v54 }
 0x23d   : > { %v6605_v52 = vmax.f32 %v6573_v14, 0.0  ;;  %9285 = vmatmul.mubr.msk.bf16.gmra.mrb[40].mxu0 %vm2685_vm10, %v13413_v30  ;;  %v8555_v51 = vpack.c.bf16 %v6868_v45, %v6868_v45  ;;  %v6800_v6 = vmul.f32 %v9166_v32, %v12362_v40  ;;  %v4643_v35 = vpop.f32.mrb[25].mxu1  ;;  %v8552_v36 = vpack.c.bf16 %v6865_v39, %v6865_v39 }
 0x23e   : > { %v6603_v37 = vmax.f32 %v6571_v50, 0.0  ;;  %v6572_v62 = vadd.f32 %v12369_v63, %v6533_v53  ;;  %9288 = vmatprep.mubr.msk.bf16.mxu0 %vm2685_vm10, %v13414_v46  ;;  %v6606_v29 = vmax.f32 %v6574_v61, 0.0  ;;  %v6798_v11 = vmul.f32 %v12362_v40, %v4643_v35  ;;  %v9167_v5 = vpop.f32.mrb[26].mxu1 }
 0x23f   : > { %v8530_v31 = vpack.c.bf16 %v6605_v52, %v6605_v52  ;;  %7017 = vrot.lane.b32.xlu0 %v8554_v23, %s9953_s20  ;;  %v6839_v15 = vadd.f32 %v12369_v63, %v6800_v6  ;;  %v6801_v0 = vmul.f32 %v9167_v5, %v12362_v40  ;;  %v4646_v10 = vpop.f32.mrb[27].mxu1  ;;  %v8553_v17 = vpack.c.bf16 %v6866_v12, %v6866_v12  ;;  %v13423_v6 = vld [vmem:[#allocation31_spill] sm:$0xff] }
 0x240   : > { %v8528_v43 = vpack.c.bf16 %v6603_v37, %v6603_v37  ;;  %v6604_v44 = vmax.f32 %v6572_v62, 0.0  ;;  %7019 = vrot.lane.b32.xlu1 %v8555_v51, %s9953_s20  ;;  %v8531_v13 = vpack.c.bf16 %v6606_v29, %v6606_v29  ;;  %v6837_v33 = vadd.f32 %v12369_v63, %v6798_v11  ;;  %v13418_v51 = vld [vmem:[#allocation21_spill] sm:$0xff]  ;;  %v13420_v37 = vld [vmem:[#allocation26_spill] sm:$0xff] }
 0x241   : > { %6765 = vst.msk [vmem:[%s12388_s19 + $0xf0] sm:$0xf] %vm248_vm0, %v8530_v31  ;;  %v6799_v8 = vmul.f32 %v12362_v40, %v4646_v10  ;;  %v6871_v42 = vmax.f32 %v6839_v15, 0.0  ;;  %v6840_v55 = vadd.f32 %v12369_v63, %v6801_v0  ;;  %9417 = vmatmul.mubr.msk.bf16.gmra.mrb[36].mxu1 %vm2685_vm10, %v13380_v25 }
 0x242   : > { %6763 = vst.msk [vmem:[%s12388_s19 + $0xe0] sm:$0xf] %vm248_vm0, %v8528_v43  ;;  %v8529_v26 = vpack.c.bf16 %v6604_v44, %v6604_v44  ;;  %6766 = vst.msk [vmem:[%s12388_s19 + $0xf4] sm:$0xf] %vm248_vm0, %v8531_v13  ;;  %9420 = vmatprep.mubr.msk.bf16.mxu1 %vm2685_vm10, %v13381_v21  ;;  %v6869_v56 = vmax.f32 %v6837_v33, 0.0 }
 0x243   : > { %v6838_v59 = vadd.f32 %v12369_v63, %v6799_v8  ;;  %7013 = vrot.lane.b32.xlu0 %v8552_v36, %s9953_s20  ;;  %v8558_v60 = vpack.c.bf16 %v6871_v42, %v6871_v42  ;;  %v6872_v38 = vmax.f32 %v6840_v55, 0.0 }
 0x244   : > { %6764 = vst.msk [vmem:[%s12388_s19 + $0xe4] sm:$0xf] %vm248_vm0, %v8529_v26  ;;  %7015 = vrot.lane.b32.xlu1 %v8553_v17, %s9953_s20  ;;  %v9170_v7 = vpop.f32.mrb[28].mxu1  ;;  %v8556_v54 = vpack.c.bf16 %v6869_v56, %v6869_v56 }
 0x245   : > { %9289 = vmatmul.mubr.msk.bf16.gmra.mrb[44].mxu0 %vm2685_vm10, %v13415_v49  ;;  %v8559_v25 = vpack.c.bf16 %v6872_v38, %v6872_v38  ;;  %v6870_v41 = vmax.f32 %v6838_v59, 0.0  ;;  %v6804_v47 = vmul.f32 %v9170_v7, %v12362_v40  ;;  %v4659_v34 = vpop.f32.mrb[29].mxu1  ;;  %v12776_v49 = vld [vmem:[%s13082_s2] ss:$0 sm:$0xff] }
 0x246   : > { %9292 = vmatprep.mubr.msk.bf16.mxu0 %vm2685_vm10, %v13416_v18  ;;  %v6802_v21 = vmul.f32 %v12362_v40, %v4659_v34  ;;  %v9171_v58 = vpop.f32.mrb[30].mxu1 }
 0x247   : > { %7025 = vrot.lane.b32.xlu0 %v8558_v60, %s9953_s20  ;;  %v6843_v27 = vadd.f32 %v12369_v63, %v6804_v47  ;;  %v6805_v2 = vmul.f32 %v9171_v58, %v12362_v40  ;;  %v4662_v14 = vpop.f32.mrb[31].mxu1  ;;  %v8557_v45 = vpack.c.bf16 %v6870_v41, %v6870_v41  ;;  %v12781_v41 = vld [vmem:[%s13083_s3] ss:$0 sm:$0xff] }
 0x248   : > { %7027 = vrot.lane.b32.xlu1 %v8559_v25, %s9953_s20  ;;  %v6841_v3 = vadd.f32 %v12369_v63, %v6802_v21  ;;  %v6803_v23 = vmul.f32 %v12362_v40, %v4662_v14  ;;  %v13417_v40 = vld [vmem:[#allocation18_spill] sm:$0xff] }
 0x249   : > { %v6875_v50 = vmax.f32 %v6843_v27, 0.0  ;;  %v6844_v53 = vadd.f32 %v12369_v63, %v6805_v2  ;;  %9421 = vmatmul.mubr.msk.bf16.gmra.mrb[40].mxu1 %vm2685_vm10, %v13384_v57 }
 0x24a   : > { %v6842_v39 = vadd.f32 %v12369_v63, %v6803_v23  ;;  %9424 = vmatprep.mubr.msk.bf16.mxu1 %vm2685_vm10, %v13385_v4  ;;  %v6873_v32 = vmax.f32 %v6841_v3, 0.0  ;;  %v13419_v4 = vld [vmem:[#allocation23_spill] sm:$0xff] }
 0x24b   : > { %7021 = vrot.lane.b32.xlu0 %v8556_v54, %s9953_s20  ;;  %v8562_v12 = vpack.c.bf16 %v6875_v50, %v6875_v50  ;;  %v6876_v52 = vmax.f32 %v6844_v53, 0.0 }
 0x24c   : > { %7023 = vrot.lane.b32.xlu1 %v8557_v45, %s9953_s20  ;;  %v6874_v30 = vmax.f32 %v6842_v39, 0.0  ;;  %v8560_v57 = vpack.c.bf16 %v6873_v32, %v6873_v32 }
 0x24d   : > { %9293 = vmatmul.mubr.msk.bf16.gmra.mrb[48].mxu0 %vm2685_vm10, %v13417_v40  ;;  %v8563_v61 = vpack.c.bf16 %v6876_v52, %v6876_v52 }
 0x24e   : > { %9296 = vmatprep.mubr.msk.bf16.mxu0 %vm2685_vm10, %v13418_v51  ;;  %v8561_v63 = vpack.c.bf16 %v6874_v30, %v6874_v30 }
 0x24f   : > { %7033 = vrot.lane.b32.xlu0 %v8562_v12, %s9953_s20 }
 0x250   : > { %7035 = vrot.lane.b32.xlu1 %v8563_v61, %s9953_s20 }
 0x251   : > { %9425 = vmatmul.mubr.msk.bf16.gmra.mrb[44].mxu1 %vm2685_vm10, %v13388_v48  ;;  %v13421_v48 = vld [vmem:[#allocation27_spill] sm:$0xff] }
 0x252   : > { %9428 = vmatprep.mubr.msk.bf16.mxu1 %vm2685_vm10, %v13389_v19  ;;  %v13422_v19 = vld [vmem:[#allocation30_spill] sm:$0xff] }
 0x253   : > { %7029 = vrot.lane.b32.xlu0 %v8560_v57, %s9953_s20 }
 0x254   : > { %7031 = vrot.lane.b32.xlu1 %v8561_v63, %s9953_s20 }
 0x255   : > { %9297 = vmatmul.mubr.msk.bf16.gmra.mrb[52].mxu0 %vm2685_vm10, %v13419_v4 }
 0x256   : > { %9300 = vmatprep.mubr.msk.bf16.mxu0 %vm2685_vm10, %v13420_v37 }
 0x259   : > { %9429 = vmatmul.mubr.msk.bf16.gmra.mrb[48].mxu1 %vm2685_vm10, %v13392_v16 }
 0x25a   : > { %9432 = vmatprep.mubr.msk.bf16.mxu1 %vm2685_vm10, %v13393_v22 }
 0x25d   : > { %9301 = vmatmul.mubr.msk.bf16.gmra.mrb[56].mxu0 %vm2685_vm10, %v13421_v48 }
 0x25e   : > { %9304 = vmatprep.mubr.msk.bf16.mxu0 %vm2685_vm10, %v13422_v19 }
 0x261   : > { %9433 = vmatmul.mubr.msk.bf16.gmra.mrb[52].mxu1 %vm2685_vm10, %v13396_v20 }
 0x262   : > { %9436 = vmatprep.mubr.msk.bf16.mxu1 %vm2685_vm10, %v13397_v9 }
 0x265   : > { %9305 = vmatmul.mubr.msk.bf16.gmra.mrb[60].mxu0 %vm2685_vm10, %v13423_v6 }
 0x269   : > { %9437 = vmatmul.mubr.msk.bf16.gmra.mrb[56].mxu1 %vm2685_vm10, %v13400_v28 }
 0x26a   : > { %9440 = vmatprep.mubr.msk.bf16.mxu1 %vm2685_vm10, %v13401_v1 }
 0x271   : > { %9441 = vmatmul.mubr.msk.bf16.gmra.mrb[60].mxu1 %vm2685_vm10, %v13404_v24 }
 0x287   : > { %v6978_v16 = vpop.permute.xlu1 %6977 }
 0x288   : > { %7072 = vst.msk [vmem:[%s12388_s19 + $0x10] sm:$0xf] %vm7069_vm15, %v6978_v16  ;;  %v6974_v22 = vpop.permute.xlu0 %6973 }
 0x289   : > { %7070 = vst.msk [vmem:[%s12388_s19] sm:$0xf] %vm7069_vm15, %v6974_v22 }
 0x28b   : > { %v6980_v20 = vpop.permute.xlu1 %6979 }
 0x28c   : > { %7073 = vst.msk [vmem:[%s12388_s19 + $0x14] sm:$0xf] %vm7069_vm15, %v6980_v20  ;;  %v6976_v9 = vpop.permute.xlu0 %6975 }
 0x28d   : > { %7071 = vst.msk [vmem:[%s12388_s19 + $0x4] sm:$0xf] %vm7069_vm15, %v6976_v9 }
 0x290   : > { %v6986_v28 = vpop.permute.xlu0 %6985 }
 0x291   : > { %7076 = vst.msk [vmem:[%s12388_s19 + $0x30] sm:$0xf] %vm7069_vm15, %v6986_v28  ;;  %v6988_v1 = vpop.permute.xlu1 %6987 }
 0x292   : > { %7077 = vst.msk [vmem:[%s12388_s19 + $0x34] sm:$0xf] %vm7069_vm15, %v6988_v1 }
 0x294   : > { %v6982_v24 = vpop.permute.xlu0 %6981 }
 0x295   : > { %7074 = vst.msk [vmem:[%s12388_s19 + $0x20] sm:$0xf] %vm7069_vm15, %v6982_v24  ;;  %v6984_v35 = vpop.permute.xlu1 %6983 }
 0x296   : > { %7075 = vst.msk [vmem:[%s12388_s19 + $0x24] sm:$0xf] %vm7069_vm15, %v6984_v35 }
 0x299   : > { %v6994_v62 = vpop.permute.xlu0 %6993  ;;  %v6996_v46 = vpop.permute.xlu1 %6995 }
 0x29a   : > { %7080 = vst.msk [vmem:[%s12388_s19 + $0x50] sm:$0xf] %vm7069_vm15, %v6994_v62  ;;  %7081 = vst.msk [vmem:[%s12388_s19 + $0x54] sm:$0xf] %vm7069_vm15, %v6996_v46 }
 0x29d   : > { %v6990_v31 = vpop.permute.xlu0 %6989  ;;  %v6992_v29 = vpop.permute.xlu1 %6991 }
 0x29e   : > { %7078 = vst.msk [vmem:[%s12388_s19 + $0x40] sm:$0xf] %vm7069_vm15, %v6990_v31  ;;  %7079 = vst.msk [vmem:[%s12388_s19 + $0x44] sm:$0xf] %vm7069_vm15, %v6992_v29 }
 0x2a1   : > { %v7002_v11 = vpop.permute.xlu0 %7001  ;;  %v7004_v5 = vpop.permute.xlu1 %7003 }
 0x2a2   : > { %7084 = vst.msk [vmem:[%s12388_s19 + $0x70] sm:$0xf] %vm7069_vm15, %v7002_v11  ;;  %7085 = vst.msk [vmem:[%s12388_s19 + $0x74] sm:$0xf] %vm7069_vm15, %v7004_v5 }
 0x2a5   : > { %v6998_v43 = vpop.permute.xlu0 %6997 }
 0x2a6   : > { %7082 = vst.msk [vmem:[%s12388_s19 + $0x60] sm:$0xf] %vm7069_vm15, %v6998_v43  ;;  %v7000_v15 = vpop.permute.xlu1 %6999 }
 0x2a7   : > { %7083 = vst.msk [vmem:[%s12388_s19 + $0x64] sm:$0xf] %vm7069_vm15, %v7000_v15 }
 0x2a9   : > { %v7010_v44 = vpop.permute.xlu0 %7009 }
 0x2aa   : > { %7088 = vst.msk [vmem:[%s12388_s19 + $0x90] sm:$0xf] %vm7069_vm15, %v7010_v44  ;;  %v7012_v0 = vpop.permute.xlu1 %7011 }
 0x2ab   : > { %7089 = vst.msk [vmem:[%s12388_s19 + $0x94] sm:$0xf] %vm7069_vm15, %v7012_v0 }
 0x2ad   : > { %v7006_v10 = vpop.permute.xlu0 %7005 }
 0x2ae   : > { %7086 = vst.msk [vmem:[%s12388_s19 + $0x80] sm:$0xf] %vm7069_vm15, %v7006_v10  ;;  %v7008_v36 = vpop.permute.xlu1 %7007 }
 0x2af   : > { %7087 = vst.msk [vmem:[%s12388_s19 + $0x84] sm:$0xf] %vm7069_vm15, %v7008_v36 }
 0x2b1   : > { %v7018_v13 = vpop.permute.xlu0 %7017 }
 0x2b2   : > { %7092 = vst.msk [vmem:[%s12388_s19 + $0xb0] sm:$0xf] %vm7069_vm15, %v7018_v13  ;;  %v7020_v33 = vpop.permute.xlu1 %7019 }
 0x2b3   : > { %7093 = vst.msk [vmem:[%s12388_s19 + $0xb4] sm:$0xf] %vm7069_vm15, %v7020_v33 }
 0x2b5   : > { %v7014_v8 = vpop.permute.xlu0 %7013 }
 0x2b6   : > { %7090 = vst.msk [vmem:[%s12388_s19 + $0xa0] sm:$0xf] %vm7069_vm15, %v7014_v8  ;;  %v7016_v17 = vpop.permute.xlu1 %7015 }
 0x2b7   : > { %7091 = vst.msk [vmem:[%s12388_s19 + $0xa4] sm:$0xf] %vm7069_vm15, %v7016_v17 }
 0x2b9   : > { %v7026_v42 = vpop.permute.xlu0 %7025 }
 0x2ba   : > { %7096 = vst.msk [vmem:[%s12388_s19 + $0xd0] sm:$0xf] %vm7069_vm15, %v7026_v42  ;;  %v7028_v26 = vpop.permute.xlu1 %7027 }
 0x2bb   : > { %7097 = vst.msk [vmem:[%s12388_s19 + $0xd4] sm:$0xf] %vm7069_vm15, %v7028_v26 }
 0x2bd   : > { %v7022_v55 = vpop.permute.xlu0 %7021 }
 0x2be   : > { %7094 = vst.msk [vmem:[%s12388_s19 + $0xc0] sm:$0xf] %vm7069_vm15, %v7022_v55  ;;  %v7024_v59 = vpop.permute.xlu1 %7023 }
 0x2bf   : > { %7095 = vst.msk [vmem:[%s12388_s19 + $0xc4] sm:$0xf] %vm7069_vm15, %v7024_v59 }
 0x2c1   : > { %v7034_v60 = vpop.permute.xlu0 %7033 }
 0x2c2   : > { %7100 = vst.msk [vmem:[%s12388_s19 + $0xf0] sm:$0xf] %vm7069_vm15, %v7034_v60  ;;  %v7036_v38 = vpop.permute.xlu1 %7035 }
 0x2c3   : > { %7101 = vst.msk [vmem:[%s12388_s19 + $0xf4] sm:$0xf] %vm7069_vm15, %v7036_v38 }
 0x2c5   : > { %v7030_v56 = vpop.permute.xlu0 %7029 }
 0x2c6   : > { %7098 = vst.msk [vmem:[%s12388_s19 + $0xe0] sm:$0xf] %vm7069_vm15, %v7030_v56  ;;  %v7032_v7 = vpop.permute.xlu1 %7031 }
 0x2c7   : > { %7099 = vst.msk [vmem:[%s12388_s19 + $0xe4] sm:$0xf] %vm7069_vm15, %v7032_v7 }
 0x300   : > { %v9278_v25 = vpop.f32.mrb[32].mxu0 }
 0x301   : > { %v7111_v47 = vmul.f32 %v9278_v25, %v12776_v49  ;;  %v5499_v34 = vpop.f32.mrb[33].mxu0 }
 0x302   : > { %v7109_v18 = vmul.f32 %v12776_v49, %v5499_v34  ;;  %v9279_v21 = vpop.f32.mrb[34].mxu0 }
 0x303   : > { %v7150_v58 = vadd.f32 %v12781_v41, %v7111_v47  ;;  %v7112_v27 = vmul.f32 %v9279_v21, %v12776_v49  ;;  %v5502_v2 = vpop.f32.mrb[35].mxu0 }
 0x304   : > { %v7148_v14 = vadd.f32 %v12781_v41, %v7109_v18  ;;  %v7110_v54 = vmul.f32 %v12776_v49, %v5502_v2 }
 0x305   : > { %v7182_v3 = vmax.f32 %v7150_v58, 0.0  ;;  %v7151_v23 = vadd.f32 %v12781_v41, %v7112_v27 }
 0x306   : > { %v7180_v45 = vmax.f32 %v7148_v14, 0.0  ;;  %v7149_v50 = vadd.f32 %v12781_v41, %v7110_v54 }
 0x307   : > { %v8566_v53 = vpack.c.bf16 %v7182_v3, %v7182_v3  ;;  %v7183_v39 = vmax.f32 %v7151_v23, 0.0 }
 0x308   : > { %v8564_v12 = vpack.c.bf16 %v7180_v45, %v7180_v45  ;;  %v7181_v52 = vmax.f32 %v7149_v50, 0.0  ;;  %v9282_v32 = vpop.f32.mrb[36].mxu0 }
 0x309   : > { %8400 = vst.msk [vmem:[%s12388_s19 + $0x18] sm:$0xf] %vm248_vm0, %v8566_v53  ;;  %v8567_v40 = vpack.c.bf16 %v7183_v39, %v7183_v39  ;;  %v7115_v61 = vmul.f32 %v9282_v32, %v12776_v49  ;;  %v5515_v30 = vpop.f32.mrb[37].mxu0 }
 0x30a   : > { %8398 = vst.msk [vmem:[%s12388_s19 + $0x8] sm:$0xf] %vm248_vm0, %v8564_v12  ;;  %v8565_v51 = vpack.c.bf16 %v7181_v52, %v7181_v52  ;;  %v7113_v57 = vmul.f32 %v12776_v49, %v5515_v30  ;;  %v9283_v63 = vpop.f32.mrb[38].mxu0 }
 0x30b   : > { %8401 = vst.msk [vmem:[%s12388_s19 + $0x1c] sm:$0xf] %vm248_vm0, %v8567_v40  ;;  %v7154_v4 = vadd.f32 %v12781_v41, %v7115_v61  ;;  %v7116_v37 = vmul.f32 %v9283_v63, %v12776_v49  ;;  %v5518_v48 = vpop.f32.mrb[39].mxu0 }
 0x30c   : > { %8399 = vst.msk [vmem:[%s12388_s19 + $0xc] sm:$0xf] %vm248_vm0, %v8565_v51  ;;  %v7152_v19 = vadd.f32 %v12781_v41, %v7113_v57  ;;  %v7114_v6 = vmul.f32 %v12776_v49, %v5518_v48  ;;  %v9414_v22 = vpop.f32.mrb[32].mxu1 }
 0x30d   : > { %v7186_v16 = vmax.f32 %v7154_v4, 0.0  ;;  %v7155_v20 = vadd.f32 %v12781_v41, %v7116_v37  ;;  %v7382_v28 = vmul.f32 %v9414_v22, %v12776_v49  ;;  %v6338_v1 = vpop.f32.mrb[33].mxu1 }
 0x30e   : > { %v7184_v9 = vmax.f32 %v7152_v19, 0.0  ;;  %v7153_v24 = vadd.f32 %v12781_v41, %v7114_v6  ;;  %v7380_v46 = vmul.f32 %v12776_v49, %v6338_v1  ;;  %v9415_v31 = vpop.f32.mrb[34].mxu1 }
 0x30f   : > { %v8570_v35 = vpack.c.bf16 %v7186_v16, %v7186_v16  ;;  %v7187_v62 = vmax.f32 %v7155_v20, 0.0  ;;  %v7421_v11 = vadd.f32 %v12781_v41, %v7382_v28  ;;  %v7383_v43 = vmul.f32 %v9415_v31, %v12776_v49  ;;  %v6341_v15 = vpop.f32.mrb[35].mxu1 }
 0x310   : > { %v8568_v29 = vpack.c.bf16 %v7184_v9, %v7184_v9  ;;  %v7185_v5 = vmax.f32 %v7153_v24, 0.0  ;;  %v9286_v44 = vpop.f32.mrb[40].mxu0  ;;  %v7419_v10 = vadd.f32 %v12781_v41, %v7380_v46  ;;  %v7381_v36 = vmul.f32 %v12776_v49, %v6341_v15 }
 0x311   : > { %8404 = vst.msk [vmem:[%s12388_s19 + $0x38] sm:$0xf] %vm248_vm0, %v8570_v35  ;;  %v8571_v0 = vpack.c.bf16 %v7187_v62, %v7187_v62  ;;  %v7119_v13 = vmul.f32 %v9286_v44, %v12776_v49  ;;  %v5531_v33 = vpop.f32.mrb[41].mxu0  ;;  %v7453_v8 = vmax.f32 %v7421_v11, 0.0  ;;  %v7422_v42 = vadd.f32 %v12781_v41, %v7383_v43 }
 0x312   : > { %8402 = vst.msk [vmem:[%s12388_s19 + $0x28] sm:$0xf] %vm248_vm0, %v8568_v29  ;;  %v8569_v17 = vpack.c.bf16 %v7185_v5, %v7185_v5  ;;  %v7117_v26 = vmul.f32 %v12776_v49, %v5531_v33  ;;  %v9287_v55 = vpop.f32.mrb[42].mxu0  ;;  %v7451_v59 = vmax.f32 %v7419_v10, 0.0  ;;  %v7420_v60 = vadd.f32 %v12781_v41, %v7381_v36 }
 0x313   : > { %8405 = vst.msk [vmem:[%s12388_s19 + $0x3c] sm:$0xf] %vm248_vm0, %v8571_v0  ;;  %v7158_v38 = vadd.f32 %v12781_v41, %v7119_v13  ;;  %v7120_v56 = vmul.f32 %v9287_v55, %v12776_v49  ;;  %v5534_v7 = vpop.f32.mrb[43].mxu0  ;;  %v8598_v25 = vpack.c.bf16 %v7453_v8, %v7453_v8  ;;  %v7454_v47 = vmax.f32 %v7422_v42, 0.0 }
 0x314   : > { %8403 = vst.msk [vmem:[%s12388_s19 + $0x2c] sm:$0xf] %vm248_vm0, %v8569_v17  ;;  %v7156_v34 = vadd.f32 %v12781_v41, %v7117_v26  ;;  %v7118_v18 = vmul.f32 %v12776_v49, %v5534_v7  ;;  %v8596_v21 = vpack.c.bf16 %v7451_v59, %v7451_v59  ;;  %v7452_v58 = vmax.f32 %v7420_v60, 0.0  ;;  %v9418_v2 = vpop.f32.mrb[36].mxu1 }
 0x315   : > { %v7190_v27 = vmax.f32 %v7158_v38, 0.0  ;;  %v7159_v14 = vadd.f32 %v12781_v41, %v7120_v56  ;;  %v8599_v54 = vpack.c.bf16 %v7454_v47, %v7454_v47  ;;  %v7386_v23 = vmul.f32 %v9418_v2, %v12776_v49  ;;  %7583 = vrot.lane.b32.xlu0 %v8598_v25, %s9953_s20  ;;  %v6354_v45 = vpop.f32.mrb[37].mxu1 }
 0x316   : > { %v7188_v3 = vmax.f32 %v7156_v34, 0.0  ;;  %v7157_v50 = vadd.f32 %v12781_v41, %v7118_v18  ;;  %v8597_v53 = vpack.c.bf16 %v7452_v58, %v7452_v58  ;;  %v7384_v52 = vmul.f32 %v12776_v49, %v6354_v45  ;;  %v9419_v32 = vpop.f32.mrb[38].mxu1 }
 0x317   : > { %v8574_v39 = vpack.c.bf16 %v7190_v27, %v7190_v27  ;;  %v7191_v12 = vmax.f32 %v7159_v14, 0.0  ;;  %v7425_v61 = vadd.f32 %v12781_v41, %v7386_v23  ;;  %v7387_v51 = vmul.f32 %v9419_v32, %v12776_v49  ;;  %7585 = vrot.lane.b32.xlu1 %v8599_v54, %s9953_s20  ;;  %v6357_v57 = vpop.f32.mrb[39].mxu1 }
 0x318   : > { %v8572_v40 = vpack.c.bf16 %v7188_v3, %v7188_v3  ;;  %v7189_v30 = vmax.f32 %v7157_v50, 0.0  ;;  %v9290_v63 = vpop.f32.mrb[44].mxu0  ;;  %v7423_v37 = vadd.f32 %v12781_v41, %v7384_v52  ;;  %v7385_v48 = vmul.f32 %v12776_v49, %v6357_v57 }
 0x319   : > { %8408 = vst.msk [vmem:[%s12388_s19 + $0x58] sm:$0xf] %vm248_vm0, %v8574_v39  ;;  %v8575_v4 = vpack.c.bf16 %v7191_v12, %v7191_v12  ;;  %v7123_v19 = vmul.f32 %v9290_v63, %v12776_v49  ;;  %v5547_v6 = vpop.f32.mrb[45].mxu0  ;;  %v7457_v16 = vmax.f32 %v7425_v61, 0.0  ;;  %v7426_v20 = vadd.f32 %v12781_v41, %v7387_v51  ;;  %7579 = vrot.lane.b32.xlu0 %v8596_v21, %s9953_s20 }
 0x31a   : > { %8406 = vst.msk [vmem:[%s12388_s19 + $0x48] sm:$0xf] %vm248_vm0, %v8572_v40  ;;  %v8573_v22 = vpack.c.bf16 %v7189_v30, %v7189_v30  ;;  %v7121_v9 = vmul.f32 %v12776_v49, %v5547_v6  ;;  %v9291_v28 = vpop.f32.mrb[46].mxu0  ;;  %v7455_v1 = vmax.f32 %v7423_v37, 0.0  ;;  %v7424_v24 = vadd.f32 %v12781_v41, %v7385_v48 }
 0x31b   : > { %8409 = vst.msk [vmem:[%s12388_s19 + $0x5c] sm:$0xf] %vm248_vm0, %v8575_v4  ;;  %v7162_v35 = vadd.f32 %v12781_v41, %v7123_v19  ;;  %v7124_v62 = vmul.f32 %v9291_v28, %v12776_v49  ;;  %v5550_v46 = vpop.f32.mrb[47].mxu0  ;;  %v8602_v31 = vpack.c.bf16 %v7457_v16, %v7457_v16  ;;  %v7458_v29 = vmax.f32 %v7426_v20, 0.0  ;;  %7581 = vrot.lane.b32.xlu1 %v8597_v53, %s9953_s20 }
 0x31c   : > { %8407 = vst.msk [vmem:[%s12388_s19 + $0x4c] sm:$0xf] %vm248_vm0, %v8573_v22  ;;  %v7160_v11 = vadd.f32 %v12781_v41, %v7121_v9  ;;  %v7122_v5 = vmul.f32 %v12776_v49, %v5550_v46  ;;  %v8600_v43 = vpack.c.bf16 %v7455_v1, %v7455_v1  ;;  %v7456_v15 = vmax.f32 %v7424_v24, 0.0  ;;  %v9422_v0 = vpop.f32.mrb[40].mxu1 }
 0x31d   : > { %v7194_v44 = vmax.f32 %v7162_v35, 0.0  ;;  %v7163_v10 = vadd.f32 %v12781_v41, %v7124_v62  ;;  %v8603_v36 = vpack.c.bf16 %v7458_v29, %v7458_v29  ;;  %v7390_v33 = vmul.f32 %v9422_v0, %v12776_v49  ;;  %7591 = vrot.lane.b32.xlu0 %v8602_v31, %s9953_s20  ;;  %v6370_v8 = vpop.f32.mrb[41].mxu1 }
 0x31e   : > { %v7192_v13 = vmax.f32 %v7160_v11, 0.0  ;;  %v7161_v17 = vadd.f32 %v12781_v41, %v7122_v5  ;;  %v8601_v42 = vpack.c.bf16 %v7456_v15, %v7456_v15  ;;  %v7388_v59 = vmul.f32 %v12776_v49, %v6370_v8  ;;  %v9423_v60 = vpop.f32.mrb[42].mxu1 }
 0x31f   : > { %v8578_v26 = vpack.c.bf16 %v7194_v44, %v7194_v44  ;;  %v7195_v55 = vmax.f32 %v7163_v10, 0.0  ;;  %v7429_v56 = vadd.f32 %v12781_v41, %v7390_v33  ;;  %v7391_v25 = vmul.f32 %v9423_v60, %v12776_v49  ;;  %7593 = vrot.lane.b32.xlu1 %v8603_v36, %s9953_s20  ;;  %v6373_v47 = vpop.f32.mrb[43].mxu1 }
 0x320   : > { %v8576_v38 = vpack.c.bf16 %v7192_v13, %v7192_v13  ;;  %v7193_v7 = vmax.f32 %v7161_v17, 0.0  ;;  %v9294_v34 = vpop.f32.mrb[48].mxu0  ;;  %v7427_v21 = vadd.f32 %v12781_v41, %v7388_v59  ;;  %v7389_v58 = vmul.f32 %v12776_v49, %v6373_v47 }
 0x321   : > { %8412 = vst.msk [vmem:[%s12388_s19 + $0x78] sm:$0xf] %vm248_vm0, %v8578_v26  ;;  %v8579_v18 = vpack.c.bf16 %v7195_v55, %v7195_v55  ;;  %v7127_v27 = vmul.f32 %v9294_v34, %v12776_v49  ;;  %v5563_v2 = vpop.f32.mrb[49].mxu0  ;;  %v7461_v14 = vmax.f32 %v7429_v56, 0.0  ;;  %v7430_v3 = vadd.f32 %v12781_v41, %v7391_v25  ;;  %7587 = vrot.lane.b32.xlu0 %v8600_v43, %s9953_s20 }
 0x322   : > { %8410 = vst.msk [vmem:[%s12388_s19 + $0x68] sm:$0xf] %vm248_vm0, %v8576_v38  ;;  %v8577_v54 = vpack.c.bf16 %v7193_v7, %v7193_v7  ;;  %v7125_v23 = vmul.f32 %v12776_v49, %v5563_v2  ;;  %v9295_v45 = vpop.f32.mrb[50].mxu0  ;;  %v7459_v50 = vmax.f32 %v7427_v21, 0.0  ;;  %v7428_v53 = vadd.f32 %v12781_v41, %v7389_v58 }
 0x323   : > { %8413 = vst.msk [vmem:[%s12388_s19 + $0x7c] sm:$0xf] %vm248_vm0, %v8579_v18  ;;  %v7166_v39 = vadd.f32 %v12781_v41, %v7127_v27  ;;  %v7128_v12 = vmul.f32 %v9295_v45, %v12776_v49  ;;  %v5566_v52 = vpop.f32.mrb[51].mxu0  ;;  %v8606_v32 = vpack.c.bf16 %v7461_v14, %v7461_v14  ;;  %v7462_v40 = vmax.f32 %v7430_v3, 0.0  ;;  %7589 = vrot.lane.b32.xlu1 %v8601_v42, %s9953_s20 }
 0x324   : > { %8411 = vst.msk [vmem:[%s12388_s19 + $0x6c] sm:$0xf] %vm248_vm0, %v8577_v54  ;;  %v7164_v61 = vadd.f32 %v12781_v41, %v7125_v23  ;;  %v7126_v30 = vmul.f32 %v12776_v49, %v5566_v52  ;;  %v8604_v51 = vpack.c.bf16 %v7459_v50, %v7459_v50  ;;  %v7460_v57 = vmax.f32 %v7428_v53, 0.0  ;;  %v9426_v4 = vpop.f32.mrb[44].mxu1 }
 0x325   : > { %v7198_v63 = vmax.f32 %v7166_v39, 0.0  ;;  %v7167_v37 = vadd.f32 %v12781_v41, %v7128_v12  ;;  %v8607_v48 = vpack.c.bf16 %v7462_v40, %v7462_v40  ;;  %v7394_v6 = vmul.f32 %v9426_v4, %v12776_v49  ;;  %7599 = vrot.lane.b32.xlu0 %v8606_v32, %s9953_s20  ;;  %v6386_v16 = vpop.f32.mrb[45].mxu1 }
 0x326   : > { %v7196_v19 = vmax.f32 %v7164_v61, 0.0  ;;  %v7165_v22 = vadd.f32 %v12781_v41, %v7126_v30  ;;  %v8605_v20 = vpack.c.bf16 %v7460_v57, %v7460_v57  ;;  %v7392_v1 = vmul.f32 %v12776_v49, %v6386_v16  ;;  %v9427_v24 = vpop.f32.mrb[46].mxu1 }
 0x327   : > { %v8582_v9 = vpack.c.bf16 %v7198_v63, %v7198_v63  ;;  %v7199_v28 = vmax.f32 %v7167_v37, 0.0  ;;  %v7433_v62 = vadd.f32 %v12781_v41, %v7394_v6  ;;  %v7395_v31 = vmul.f32 %v9427_v24, %v12776_v49  ;;  %7601 = vrot.lane.b32.xlu1 %v8607_v48, %s9953_s20  ;;  %v6389_v29 = vpop.f32.mrb[47].mxu1 }
 0x328   : > { %v8580_v35 = vpack.c.bf16 %v7196_v19, %v7196_v19  ;;  %v7197_v46 = vmax.f32 %v7165_v22, 0.0  ;;  %v9298_v11 = vpop.f32.mrb[52].mxu0  ;;  %v7431_v43 = vadd.f32 %v12781_v41, %v7392_v1  ;;  %v7393_v15 = vmul.f32 %v12776_v49, %v6389_v29 }
 0x329   : > { %8416 = vst.msk [vmem:[%s12388_s19 + $0x98] sm:$0xf] %vm248_vm0, %v8582_v9  ;;  %v8583_v5 = vpack.c.bf16 %v7199_v28, %v7199_v28  ;;  %v7131_v44 = vmul.f32 %v9298_v11, %v12776_v49  ;;  %v5579_v0 = vpop.f32.mrb[53].mxu0  ;;  %v7465_v10 = vmax.f32 %v7433_v62, 0.0  ;;  %v7434_v13 = vadd.f32 %v12781_v41, %v7395_v31  ;;  %7595 = vrot.lane.b32.xlu0 %v8604_v51, %s9953_s20 }
 0x32a   : > { %8414 = vst.msk [vmem:[%s12388_s19 + $0x88] sm:$0xf] %vm248_vm0, %v8580_v35  ;;  %v8581_v36 = vpack.c.bf16 %v7197_v46, %v7197_v46  ;;  %v7129_v33 = vmul.f32 %v12776_v49, %v5579_v0  ;;  %v9299_v8 = vpop.f32.mrb[54].mxu0  ;;  %v7463_v17 = vmax.f32 %v7431_v43, 0.0  ;;  %v7432_v42 = vadd.f32 %v12781_v41, %v7393_v15 }
 0x32b   : > { %8417 = vst.msk [vmem:[%s12388_s19 + $0x9c] sm:$0xf] %vm248_vm0, %v8583_v5  ;;  %v7170_v26 = vadd.f32 %v12781_v41, %v7131_v44  ;;  %v7132_v55 = vmul.f32 %v9299_v8, %v12776_v49  ;;  %v5582_v59 = vpop.f32.mrb[55].mxu0  ;;  %v8610_v60 = vpack.c.bf16 %v7465_v10, %v7465_v10  ;;  %v7466_v38 = vmax.f32 %v7434_v13, 0.0  ;;  %7597 = vrot.lane.b32.xlu1 %v8605_v20, %s9953_s20 }
 0x32c   : > { %8415 = vst.msk [vmem:[%s12388_s19 + $0x8c] sm:$0xf] %vm248_vm0, %v8581_v36  ;;  %v7168_v56 = vadd.f32 %v12781_v41, %v7129_v33  ;;  %v7130_v7 = vmul.f32 %v12776_v49, %v5582_v59  ;;  %v8608_v25 = vpack.c.bf16 %v7463_v17, %v7463_v17  ;;  %v7464_v47 = vmax.f32 %v7432_v42, 0.0  ;;  %v9430_v18 = vpop.f32.mrb[48].mxu1 }
 0x32d   : > { %v7202_v34 = vmax.f32 %v7170_v26, 0.0  ;;  %v7171_v21 = vadd.f32 %v12781_v41, %v7132_v55  ;;  %v8611_v58 = vpack.c.bf16 %v7466_v38, %v7466_v38  ;;  %v7398_v2 = vmul.f32 %v9430_v18, %v12776_v49  ;;  %7607 = vrot.lane.b32.xlu0 %v8610_v60, %s9953_s20  ;;  %v6402_v14 = vpop.f32.mrb[49].mxu1 }
 0x32e   : > { %v7200_v27 = vmax.f32 %v7168_v56, 0.0  ;;  %v7169_v54 = vadd.f32 %v12781_v41, %v7130_v7  ;;  %v8609_v3 = vpack.c.bf16 %v7464_v47, %v7464_v47  ;;  %v7396_v50 = vmul.f32 %v12776_v49, %v6402_v14  ;;  %v9431_v53 = vpop.f32.mrb[50].mxu1 }
 0x32f   : > { %v8586_v23 = vpack.c.bf16 %v7202_v34, %v7202_v34  ;;  %v7203_v45 = vmax.f32 %v7171_v21, 0.0  ;;  %v7437_v12 = vadd.f32 %v12781_v41, %v7398_v2  ;;  %v7399_v32 = vmul.f32 %v9431_v53, %v12776_v49  ;;  %7609 = vrot.lane.b32.xlu1 %v8611_v58, %s9953_s20  ;;  %v6405_v40 = vpop.f32.mrb[51].mxu1 }
 0x330   : > { %v8584_v39 = vpack.c.bf16 %v7200_v27, %v7200_v27  ;;  %v7201_v52 = vmax.f32 %v7169_v54, 0.0  ;;  %v9302_v61 = vpop.f32.mrb[56].mxu0  ;;  %v7435_v51 = vadd.f32 %v12781_v41, %v7396_v50  ;;  %v7397_v57 = vmul.f32 %v12776_v49, %v6405_v40 }
 0x331   : > { %8420 = vst.msk [vmem:[%s12388_s19 + $0xb8] sm:$0xf] %vm248_vm0, %v8586_v23  ;;  %v8587_v30 = vpack.c.bf16 %v7203_v45, %v7203_v45  ;;  %v7135_v63 = vmul.f32 %v9302_v61, %v12776_v49  ;;  %v5595_v4 = vpop.f32.mrb[57].mxu0  ;;  %v7469_v37 = vmax.f32 %v7437_v12, 0.0  ;;  %v7438_v19 = vadd.f32 %v12781_v41, %v7399_v32  ;;  %7603 = vrot.lane.b32.xlu0 %v8608_v25, %s9953_s20 }
 0x332   : > { %8418 = vst.msk [vmem:[%s12388_s19 + $0xa8] sm:$0xf] %vm248_vm0, %v8584_v39  ;;  %v8585_v48 = vpack.c.bf16 %v7201_v52, %v7201_v52  ;;  %v7133_v6 = vmul.f32 %v12776_v49, %v5595_v4  ;;  %v9303_v16 = vpop.f32.mrb[58].mxu0  ;;  %v7467_v22 = vmax.f32 %v7435_v51, 0.0  ;;  %v7436_v20 = vadd.f32 %v12781_v41, %v7397_v57 }
 0x333   : > { %8421 = vst.msk [vmem:[%s12388_s19 + $0xbc] sm:$0xf] %vm248_vm0, %v8587_v30  ;;  %v7174_v9 = vadd.f32 %v12781_v41, %v7135_v63  ;;  %v7136_v28 = vmul.f32 %v9303_v16, %v12776_v49  ;;  %v5598_v1 = vpop.f32.mrb[59].mxu0  ;;  %v8614_v24 = vpack.c.bf16 %v7469_v37, %v7469_v37  ;;  %v7470_v35 = vmax.f32 %v7438_v19, 0.0  ;;  %7605 = vrot.lane.b32.xlu1 %v8609_v3, %s9953_s20 }
 0x334   : > { %8419 = vst.msk [vmem:[%s12388_s19 + $0xac] sm:$0xf] %vm248_vm0, %v8585_v48  ;;  %v7172_v62 = vadd.f32 %v12781_v41, %v7133_v6  ;;  %v7134_v46 = vmul.f32 %v12776_v49, %v5598_v1  ;;  %v8612_v31 = vpack.c.bf16 %v7467_v22, %v7467_v22  ;;  %v7468_v29 = vmax.f32 %v7436_v20, 0.0  ;;  %v9434_v5 = vpop.f32.mrb[52].mxu1 }
 0x335   : > { %v7206_v11 = vmax.f32 %v7174_v9, 0.0  ;;  %v7175_v43 = vadd.f32 %v12781_v41, %v7136_v28  ;;  %v8615_v15 = vpack.c.bf16 %v7470_v35, %v7470_v35  ;;  %v7402_v0 = vmul.f32 %v9434_v5, %v12776_v49  ;;  %7615 = vrot.lane.b32.xlu0 %v8614_v24, %s9953_s20  ;;  %v6418_v10 = vpop.f32.mrb[53].mxu1 }
 0x336   : > { %v7204_v44 = vmax.f32 %v7172_v62, 0.0  ;;  %v7173_v36 = vadd.f32 %v12781_v41, %v7134_v46  ;;  %v8613_v13 = vpack.c.bf16 %v7468_v29, %v7468_v29  ;;  %v7400_v17 = vmul.f32 %v12776_v49, %v6418_v10  ;;  %v9435_v42 = vpop.f32.mrb[54].mxu1 }
 0x337   : > { %v8590_v33 = vpack.c.bf16 %v7206_v11, %v7206_v11  ;;  %v7207_v8 = vmax.f32 %v7175_v43, 0.0  ;;  %v7441_v55 = vadd.f32 %v12781_v41, %v7402_v0  ;;  %v7403_v60 = vmul.f32 %v9435_v42, %v12776_v49  ;;  %7617 = vrot.lane.b32.xlu1 %v8615_v15, %s9953_s20  ;;  %v6421_v38 = vpop.f32.mrb[55].mxu1 }
 0x338   : > { %v8588_v26 = vpack.c.bf16 %v7204_v44, %v7204_v44  ;;  %v7205_v59 = vmax.f32 %v7173_v36, 0.0  ;;  %v9306_v56 = vpop.f32.mrb[60].mxu0  ;;  %v7439_v25 = vadd.f32 %v12781_v41, %v7400_v17  ;;  %v7401_v47 = vmul.f32 %v12776_v49, %v6421_v38 }
 0x339   : > { %8424 = vst.msk [vmem:[%s12388_s19 + $0xd8] sm:$0xf] %vm248_vm0, %v8590_v33  ;;  %v8591_v7 = vpack.c.bf16 %v7207_v8, %v7207_v8  ;;  %v7139_v34 = vmul.f32 %v9306_v56, %v12776_v49  ;;  %v5611_v18 = vpop.f32.mrb[61].mxu0  ;;  %v7473_v21 = vmax.f32 %v7441_v55, 0.0  ;;  %v7442_v27 = vadd.f32 %v12781_v41, %v7403_v60  ;;  %7611 = vrot.lane.b32.xlu0 %v8612_v31, %s9953_s20 }
 0x33a   : > { %8422 = vst.msk [vmem:[%s12388_s19 + $0xc8] sm:$0xf] %vm248_vm0, %v8588_v26  ;;  %v8589_v58 = vpack.c.bf16 %v7205_v59, %v7205_v59  ;;  %v7137_v2 = vmul.f32 %v12776_v49, %v5611_v18  ;;  %v9307_v14 = vpop.f32.mrb[62].mxu0  ;;  %v7471_v54 = vmax.f32 %v7439_v25, 0.0  ;;  %v7440_v3 = vadd.f32 %v12781_v41, %v7401_v47 }
 0x33b   : > { %8425 = vst.msk [vmem:[%s12388_s19 + $0xdc] sm:$0xf] %vm248_vm0, %v8591_v7  ;;  %v7178_v23 = vadd.f32 %v12781_v41, %v7139_v34  ;;  %v7140_v45 = vmul.f32 %v9307_v14, %v12776_v49  ;;  %v5614_v50 = vpop.f32.mrb[63].mxu0  ;;  %v8618_v53 = vpack.c.bf16 %v7473_v21, %v7473_v21  ;;  %v7474_v39 = vmax.f32 %v7442_v27, 0.0  ;;  %7613 = vrot.lane.b32.xlu1 %v8613_v13, %s9953_s20 }
 0x33c   : > { %8423 = vst.msk [vmem:[%s12388_s19 + $0xcc] sm:$0xf] %vm248_vm0, %v8589_v58  ;;  %v7176_v12 = vadd.f32 %v12781_v41, %v7137_v2  ;;  %v7138_v52 = vmul.f32 %v12776_v49, %v5614_v50  ;;  %v7472_v32 = vmax.f32 %v7440_v3, 0.0  ;;  %v9438_v61 = vpop.f32.mrb[56].mxu1  ;;  %v8616_v48 = vpack.c.bf16 %v7471_v54, %v7471_v54 }
 0x33d   : > { %v7210_v40 = vmax.f32 %v7178_v23, 0.0  ;;  %v7179_v30 = vadd.f32 %v12781_v41, %v7140_v45  ;;  %v8619_v51 = vpack.c.bf16 %v7474_v39, %v7474_v39  ;;  %v7406_v63 = vmul.f32 %v9438_v61, %v12776_v49  ;;  %7623 = vrot.lane.b32.xlu0 %v8618_v53, %s9953_s20  ;;  %v6434_v4 = vpop.f32.mrb[57].mxu1 }
 0x33e   : > { %v7208_v57 = vmax.f32 %v7176_v12, 0.0  ;;  %v7177_v37 = vadd.f32 %v12781_v41, %v7138_v52  ;;  %v7404_v16 = vmul.f32 %v12776_v49, %v6434_v4  ;;  %v9439_v22 = vpop.f32.mrb[58].mxu1  ;;  %v8617_v31 = vpack.c.bf16 %v7472_v32, %v7472_v32 }
 0x33f   : > { %v8594_v19 = vpack.c.bf16 %v7210_v40, %v7210_v40  ;;  %v7211_v6 = vmax.f32 %v7179_v30, 0.0  ;;  %v7445_v9 = vadd.f32 %v12781_v41, %v7406_v63  ;;  %v7407_v1 = vmul.f32 %v9439_v22, %v12776_v49  ;;  %7625 = vrot.lane.b32.xlu1 %v8619_v51, %s9953_s20  ;;  %v6437_v24 = vpop.f32.mrb[59].mxu1 }
 0x340   : > { %v8592_v20 = vpack.c.bf16 %v7208_v57, %v7208_v57  ;;  %v7209_v28 = vmax.f32 %v7177_v37, 0.0  ;;  %v7443_v62 = vadd.f32 %v12781_v41, %v7404_v16  ;;  %v7405_v46 = vmul.f32 %v12776_v49, %v6437_v24 }
 0x341   : > { %8428 = vst.msk [vmem:[%s12388_s19 + $0xf8] sm:$0xf] %vm248_vm0, %v8594_v19  ;;  %v8595_v35 = vpack.c.bf16 %v7211_v6, %v7211_v6  ;;  %v7477_v29 = vmax.f32 %v7445_v9, 0.0  ;;  %v7446_v5 = vadd.f32 %v12781_v41, %v7407_v1  ;;  %7619 = vrot.lane.b32.xlu0 %v8616_v48, %s9953_s20 }
 0x342   : > { %8426 = vst.msk [vmem:[%s12388_s19 + $0xe8] sm:$0xf] %vm248_vm0, %v8592_v20  ;;  %v8593_v11 = vpack.c.bf16 %v7209_v28, %v7209_v28  ;;  %v7444_v43 = vadd.f32 %v12781_v41, %v7405_v46  ;;  %v7475_v44 = vmax.f32 %v7443_v62, 0.0 }
 0x343   : > { %8429 = vst.msk [vmem:[%s12388_s19 + $0xfc] sm:$0xf] %vm248_vm0, %v8595_v35  ;;  %v8622_v15 = vpack.c.bf16 %v7477_v29, %v7477_v29  ;;  %v7478_v0 = vmax.f32 %v7446_v5, 0.0  ;;  %7621 = vrot.lane.b32.xlu1 %v8617_v31, %s9953_s20 }
 0x344   : > { %8427 = vst.msk [vmem:[%s12388_s19 + $0xec] sm:$0xf] %vm248_vm0, %v8593_v11  ;;  %v9442_v10 = vpop.f32.mrb[60].mxu1  ;;  %v7476_v13 = vmax.f32 %v7444_v43, 0.0  ;;  %v8620_v26 = vpack.c.bf16 %v7475_v44, %v7475_v44 }
 0x345   : > { %v8623_v36 = vpack.c.bf16 %v7478_v0, %v7478_v0  ;;  %v7410_v33 = vmul.f32 %v9442_v10, %v12776_v49  ;;  %7631 = vrot.lane.b32.xlu0 %v8622_v15, %s9953_s20  ;;  %v6450_v8 = vpop.f32.mrb[61].mxu1 }
 0x346   : > { %v7408_v17 = vmul.f32 %v12776_v49, %v6450_v8  ;;  %v9443_v42 = vpop.f32.mrb[62].mxu1  ;;  %v8621_v7 = vpack.c.bf16 %v7476_v13, %v7476_v13 }
 0x347   : > { %v7411_v55 = vmul.f32 %v9443_v42, %v12776_v49  ;;  %7633 = vrot.lane.b32.xlu1 %v8623_v36, %s9953_s20  ;;  %v6453_v59 = vpop.f32.mrb[63].mxu1  ;;  %v7449_v60 = vadd.f32 %v12781_v41, %v7410_v33 }
 0x348   : > { %v7447_v38 = vadd.f32 %v12781_v41, %v7408_v17  ;;  %v7409_v56 = vmul.f32 %v12776_v49, %v6453_v59 }
 0x349   : > { %7627 = vrot.lane.b32.xlu0 %v8620_v26, %s9953_s20  ;;  %v7450_v47 = vadd.f32 %v12781_v41, %v7411_v55  ;;  %v7481_v18 = vmax.f32 %v7449_v60, 0.0 }
 0x34a   : > { %v7479_v25 = vmax.f32 %v7447_v38, 0.0  ;;  %v7448_v34 = vadd.f32 %v12781_v41, %v7409_v56 }
 0x34b   : > { %7629 = vrot.lane.b32.xlu1 %v8621_v7, %s9953_s20  ;;  %v7482_v27 = vmax.f32 %v7450_v47, 0.0  ;;  %v8626_v49 = vpack.c.bf16 %v7481_v18, %v7481_v18 }
 0x34c   : > { %v8624_v21 = vpack.c.bf16 %v7479_v25, %v7479_v25  ;;  %v7480_v58 = vmax.f32 %v7448_v34, 0.0 }
 0x34d   : > { %v8627_v14 = vpack.c.bf16 %v7482_v27, %v7482_v27 }
 0x34e   : > { %v8625_v2 = vpack.c.bf16 %v7480_v58, %v7480_v58  ;;  %7635 = vrot.lane.b32.xlu0 %v8624_v21, %s9953_s20 }
 0x350   : > { %7637 = vrot.lane.b32.xlu1 %v8625_v2, %s9953_s20 }
 0x352   : > { %7639 = vrot.lane.b32.xlu0 %v8626_v49, %s9953_s20 }
 0x354   : > { %7641 = vrot.lane.b32.xlu1 %v8627_v14, %s9953_s20 }
 0x387   : > { %v7584_v41 = vpop.permute.xlu0 %7583 }
 0x388   : > { %8466 = vst.msk [vmem:[%s12388_s19 + $0x18] sm:$0xf] %vm7069_vm15, %v7584_v41 }
 0x389   : > { %v7586_v54 = vpop.permute.xlu1 %7585 }
 0x38a   : > { %8467 = vst.msk [vmem:[%s12388_s19 + $0x1c] sm:$0xf] %vm7069_vm15, %v7586_v54 }
 0x38b   : > { %v7580_v3 = vpop.permute.xlu0 %7579 }
 0x38c   : > { %8464 = vst.msk [vmem:[%s12388_s19 + $0x8] sm:$0xf] %vm7069_vm15, %v7580_v3 }
 0x38d   : > { %v7582_v23 = vpop.permute.xlu1 %7581 }
 0x38e   : > { %8465 = vst.msk [vmem:[%s12388_s19 + $0xc] sm:$0xf] %vm7069_vm15, %v7582_v23 }
 0x38f   : > { %v7592_v45 = vpop.permute.xlu0 %7591 }
 0x390   : > { %8470 = vst.msk [vmem:[%s12388_s19 + $0x38] sm:$0xf] %vm7069_vm15, %v7592_v45 }
 0x391   : > { %v7594_v50 = vpop.permute.xlu1 %7593 }
 0x392   : > { %8471 = vst.msk [vmem:[%s12388_s19 + $0x3c] sm:$0xf] %vm7069_vm15, %v7594_v50 }
 0x393   : > { %v7588_v53 = vpop.permute.xlu0 %7587 }
 0x394   : > { %8468 = vst.msk [vmem:[%s12388_s19 + $0x28] sm:$0xf] %vm7069_vm15, %v7588_v53 }
 0x395   : > { %v7590_v39 = vpop.permute.xlu1 %7589 }
 0x396   : > { %8469 = vst.msk [vmem:[%s12388_s19 + $0x2c] sm:$0xf] %vm7069_vm15, %v7590_v39 }
 0x397   : > { %v7600_v12 = vpop.permute.xlu0 %7599 }
 0x398   : > { %8474 = vst.msk [vmem:[%s12388_s19 + $0x58] sm:$0xf] %vm7069_vm15, %v7600_v12 }
 0x399   : > { %v7602_v52 = vpop.permute.xlu1 %7601 }
 0x39a   : > { %8475 = vst.msk [vmem:[%s12388_s19 + $0x5c] sm:$0xf] %vm7069_vm15, %v7602_v52 }
 0x39b   : > { %v7596_v32 = vpop.permute.xlu0 %7595 }
 0x39c   : > { %8472 = vst.msk [vmem:[%s12388_s19 + $0x48] sm:$0xf] %vm7069_vm15, %v7596_v32 }
 0x39d   : > { %v7598_v40 = vpop.permute.xlu1 %7597 }
 0x39e   : > { %8473 = vst.msk [vmem:[%s12388_s19 + $0x4c] sm:$0xf] %vm7069_vm15, %v7598_v40 }
 0x39f   : > { %v7608_v61 = vpop.permute.xlu0 %7607 }
 0x3a0   : > { %8478 = vst.msk [vmem:[%s12388_s19 + $0x78] sm:$0xf] %vm7069_vm15, %v7608_v61 }
 0x3a1   : > { %v7610_v30 = vpop.permute.xlu1 %7609 }
 0x3a2   : > { %8479 = vst.msk [vmem:[%s12388_s19 + $0x7c] sm:$0xf] %vm7069_vm15, %v7610_v30 }
 0x3a3   : > { %v7604_v51 = vpop.permute.xlu0 %7603 }
 0x3a4   : > { %8476 = vst.msk [vmem:[%s12388_s19 + $0x68] sm:$0xf] %vm7069_vm15, %v7604_v51 }
 0x3a5   : > { %v7606_v57 = vpop.permute.xlu1 %7605 }
 0x3a6   : > { %8477 = vst.msk [vmem:[%s12388_s19 + $0x6c] sm:$0xf] %vm7069_vm15, %v7606_v57 }
 0x3a7   : > { %v7616_v63 = vpop.permute.xlu0 %7615 }
 0x3a8   : > { %8482 = vst.msk [vmem:[%s12388_s19 + $0x98] sm:$0xf] %vm7069_vm15, %v7616_v63 }
 0x3a9   : > { %v7618_v4 = vpop.permute.xlu1 %7617 }
 0x3aa   : > { %8483 = vst.msk [vmem:[%s12388_s19 + $0x9c] sm:$0xf] %vm7069_vm15, %v7618_v4 }
 0x3ab   : > { %v7612_v37 = vpop.permute.xlu0 %7611 }
 0x3ac   : > { %8480 = vst.msk [vmem:[%s12388_s19 + $0x88] sm:$0xf] %vm7069_vm15, %v7612_v37 }
 0x3ad   : > { %v7614_v48 = vpop.permute.xlu1 %7613 }
 0x3ae   : > { %8481 = vst.msk [vmem:[%s12388_s19 + $0x8c] sm:$0xf] %vm7069_vm15, %v7614_v48 }
 0x3af   : > { %v7624_v19 = vpop.permute.xlu0 %7623 }
 0x3b0   : > { %8486 = vst.msk [vmem:[%s12388_s19 + $0xb8] sm:$0xf] %vm7069_vm15, %v7624_v19 }
 0x3b1   : > { %v7626_v6 = vpop.permute.xlu1 %7625 }
 0x3b2   : > { %8487 = vst.msk [vmem:[%s12388_s19 + $0xbc] sm:$0xf] %vm7069_vm15, %v7626_v6 }
 0x3b3   : > { %v7620_v16 = vpop.permute.xlu0 %7619 }
 0x3b4   : > { %8484 = vst.msk [vmem:[%s12388_s19 + $0xa8] sm:$0xf] %vm7069_vm15, %v7620_v16 }
 0x3b5   : > { %v7622_v22 = vpop.permute.xlu1 %7621 }
 0x3b6   : > { %8485 = vst.msk [vmem:[%s12388_s19 + $0xac] sm:$0xf] %vm7069_vm15, %v7622_v22 }
 0x3b7   : > { %v7632_v20 = vpop.permute.xlu0 %7631 }
 0x3b8   : > { %8490 = vst.msk [vmem:[%s12388_s19 + $0xd8] sm:$0xf] %vm7069_vm15, %v7632_v20 }
 0x3b9   : > { %v7634_v9 = vpop.permute.xlu1 %7633 }
 0x3ba   : > { %8491 = vst.msk [vmem:[%s12388_s19 + $0xdc] sm:$0xf] %vm7069_vm15, %v7634_v9 }
 0x3bb   : > { %v7628_v28 = vpop.permute.xlu0 %7627 }
 0x3bc   : > { %8488 = vst.msk [vmem:[%s12388_s19 + $0xc8] sm:$0xf] %vm7069_vm15, %v7628_v28 }
 0x3bd   : > { %v7630_v1 = vpop.permute.xlu1 %7629 }
 0x3be   : > { %8489 = vst.msk [vmem:[%s12388_s19 + $0xcc] sm:$0xf] %vm7069_vm15, %v7630_v1 }
 0x3c0   : > { %v7636_v24 = vpop.permute.xlu0 %7635 }
 0x3c1   : > { %8492 = vst.msk [vmem:[%s12388_s19 + $0xe8] sm:$0xf] %vm7069_vm15, %v7636_v24 }
 0x3c2   : > { %v7638_v35 = vpop.permute.xlu1 %7637 }
 0x3c3   : > { %8493 = vst.msk [vmem:[%s12388_s19 + $0xec] sm:$0xf] %vm7069_vm15, %v7638_v35 }
 0x3c4   : > { %v7640_v62 = vpop.permute.xlu0 %7639 }
 0x3c5   : > { %8494 = vst.msk [vmem:[%s12388_s19 + $0xf8] sm:$0xf] %vm7069_vm15, %v7640_v62 }
 0x3c6   : > { %v7642_v46 = vpop.permute.xlu1 %7641 }
 0x3c7   : > { %8495 = vst.msk [vmem:[%s12388_s19 + $0xfc] sm:$0xf] %vm7069_vm15, %v7642_v46 }
 0x3c8 PF: > { %s14_s17 = sadd.s32 1, %s9950_s17   ;;  %s13424_s15 = smov %s9946_s16 }
 0x3c9   : > { %p11_p5 = scmp.ge.s32.totalorder %s14_s17, 4   ;;  %s13425_s16 = smov %s13427_s18 }
 0x3cb   :  { %13 = sbr.rel (!%p11_p5) target bundleno = 2 (0x2), region = 91 }

</bundles_post_ra>
